<compile_context>
chip_gen: v7x
topology: tpu7x:2x2x1
jax: 0.10.0
libtpu: 0.0.40
codegen_flags: <defaults>
</compile_context>

<pallas_src>
import functools
import math

import jax
import jax.numpy as jnp
from jax.experimental import pallas as pl
from jax.experimental.pallas import tpu as pltpu

# Make the pure-JAX reference (and wrapper-side weight folding) use full f32 matmul precision
# so it matches the f32 MXU math inside the kernel.
jax.config.update("jax_default_matmul_precision", "highest")


def _tblock_kernel(p_ref, wl_ref, bl_ref,
                   wqkv_ref, bqkv_ref,
                   wo_ref, bo_ref,
                   wffn_ref,
                   o_ref, *, num_heads):
    f32 = jnp.float32
    x = p_ref[0].astype(f32)                         # (S, C) tokens of this batch element
    s, c = x.shape
    hd = c // num_heads
    num_layers = wqkv_ref.shape[0]

    # Learned positional embedding (identity folded into wl): x = p @ (Wl + I) + bl
    x = jnp.dot(x, wl_ref[...].astype(f32),
                preferred_element_type=f32) + bl_ref[...].astype(f32)

    for l in range(num_layers):                      # static unrolled layer loop (L is small)
        # Fused q/k/v projection + MHA in_proj (+bias); 1/sqrt(hd) scale is pre-folded
        # into the q columns and q bias.
        qkv = jnp.dot(x, wqkv_ref[l].astype(f32),
                      preferred_element_type=f32) + bqkv_ref[l].astype(f32)   # (S, 3C)
        qp = qkv[:, 0:c]
        kp = qkv[:, c:2 * c]
        vp = qkv[:, 2 * c:3 * c]

        # Per-head scaled dot-product attention (static lane slices per head).
        heads = []
        for hh in range(num_heads):
            lo = hh * hd
            qh = qp[:, lo:lo + hd]                   # (S, hd)
            kh = kp[:, lo:lo + hd]
            vh = vp[:, lo:lo + hd]
            sc = jax.lax.dot_general(qh, kh, (((1,), (1,)), ((), ())),
                                     preferred_element_type=f32)             # (S, S)
            sc = sc - jnp.max(sc, axis=-1, keepdims=True)
            e = jnp.exp(sc)
            attn = e / jnp.sum(e, axis=-1, keepdims=True)
            heads.append(jnp.dot(attn, vh, preferred_element_type=f32))      # (S, hd)
        attn_out = jnp.concatenate(heads, axis=-1)                            # (S, C)

        # MHA out_proj (+bias) and first residual.
        x = jnp.dot(attn_out, wo_ref[l].astype(f32),
                    preferred_element_type=f32) + bo_ref[l].astype(f32) + x

        # FFN + residual folded into one matmul: x = x @ (W1@W2 + I)
        x = jnp.dot(x, wffn_ref[l].astype(f32), preferred_element_type=f32)

    o_ref[0] = x.astype(o_ref.dtype)


def transformer_block_forward(x_nchw, params, num_heads):
    """x_nchw: (B, C, W, H). Weights are stored math-oriented (in, out), i.e. y = x @ W + b
    (equivalent to PyTorch's y = x @ weight.T + bias with weight pre-transposed)."""
    b, c, w, h = x_nchw.shape
    s = w * h
    num_layers = params["wq"].shape[0]
    hd = c // num_heads
    scale = 1.0 / math.sqrt(hd)
    f32 = jnp.float32
    eye = jnp.eye(c, dtype=f32)

    # --- One-time exact weight folding (pure linear algebra, no semantic change) ---
    wl_eff = params["wl"].astype(f32) + eye                               # p + p@Wl -> p@(Wl+I)
    bl_eff = params["bl"].astype(f32).reshape(1, c)

    wq_eff = jnp.einsum("lij,ljk->lik", params["wq"], params["wiq"]) * scale
    wk_eff = jnp.einsum("lij,ljk->lik", params["wk"], params["wik"])
    wv_eff = jnp.einsum("lij,ljk->lik", params["wv"], params["wiv"])
    w_qkv = jnp.concatenate([wq_eff, wk_eff, wv_eff], axis=-1)            # (L, C, 3C)
    b_qkv = jnp.concatenate([params["biq"] * scale, params["bik"], params["biv"]],
                            axis=-1).reshape(num_layers, 1, 3 * c)        # (L, 1, 3C)

    w_ffn = jnp.einsum("lij,ljk->lik", params["w1"], params["w2"]) + eye[None]  # fc2(fc1(x))+x

    wo = params["wo"]
    bo = params["bo"].reshape(num_layers, 1, c)

    # Glue reshape/transpose (plain JAX): (B, C, W, H) -> (B, S, C) token-major.
    # Attention / linears are per-token and per-batch, so batch-major == torch's (S, B, C) math.
    p = jnp.transpose(x_nchw.reshape(b, c, s), (0, 2, 1))

    m2 = lambda i: (0, 0)
    m3 = lambda i: (0, 0, 0)

    out = pl.pallas_call(
        functools.partial(_tblock_kernel, num_heads=num_heads),
        out_shape=jax.ShapeDtypeStruct((b, s, c), x_nchw.dtype),
        grid=(b,),
        in_specs=[
            pl.BlockSpec((1, s, c), lambda i: (i, 0, 0)),       # tokens of batch i
            pl.BlockSpec((c, c), m2),                           # wl_eff (positional, +I folded)
            pl.BlockSpec((1, c), m2),                           # bl
            pl.BlockSpec((num_layers, c, 3 * c), m3),           # fused q/k/v (+in_proj) weights
            pl.BlockSpec((num_layers, 1, 3 * c), m3),           # fused q/k/v biases
            pl.BlockSpec((num_layers, c, c), m3),               # wo  (MHA out_proj)
            pl.BlockSpec((num_layers, 1, c), m3),               # bo
            pl.BlockSpec((num_layers, c, c), m3),               # w_ffn (W1@W2 + I)
        ],
        out_specs=pl.BlockSpec((1, s, c), lambda i: (i, 0, 0)),
        compiler_params=pltpu.CompilerParams(
            dimension_semantics=("parallel",)),
    )(p, wl_eff, bl_eff, w_qkv, b_qkv, wo, bo, w_ffn)

    return jnp.transpose(out, (0, 2, 1)).reshape(b, c, w, h)


def transformer_block_reference(x_nchw, params, num_heads):
    """Pure-JAX reference of the TransformerBlock forward (same math as the PyTorch module,
    kept un-fused to validate the kernel's weight folding)."""
    b, c, w, h = x_nchw.shape
    s = w * h
    x = jnp.transpose(x_nchw.reshape(b, c, s), (0, 2, 1))       # (B, S, C)
    x = x + x @ params["wl"] + params["bl"]
    hd = c // num_heads
    scale = 1.0 / math.sqrt(hd)
    for l in range(params["wq"].shape[0]):
        q = x @ params["wq"][l]
        k = x @ params["wk"][l]
        v = x @ params["wv"][l]
        qp = q @ params["wiq"][l] + params["biq"][l]
        kp = k @ params["wik"][l] + params["bik"][l]
        vp = v @ params["wiv"][l] + params["biv"][l]
        q4 = qp.reshape(b, s, num_heads, hd)
        k4 = kp.reshape(b, s, num_heads, hd)
        v4 = vp.reshape(b, s, num_heads, hd)
        sc = jnp.einsum("bqhd,bkhd->bhqk", q4, k4) * scale
        attn = jax.nn.softmax(sc, axis=-1)
        o = jnp.einsum("bhqk,bkhd->bqhd", attn, v4).reshape(b, s, c)
        x = o @ params["wo"][l] + params["bo"][l] + x
        x = (x @ params["w1"][l]) @ params["w2"][l] + x
    return jnp.transpose(x, (0, 2, 1)).reshape(b, c, w, h)


if __name__ == "__main__":
    key = jax.random.PRNGKey(0)
    B, C, W, H = 2, 32, 8, 8           # c1 == c2 == 32  ->  TransformerBlock.conv is None
    NUM_HEADS, NUM_LAYERS = 4, 2       # S = W*H = 64 tokens, head_dim = 8

    ks = jax.random.split(key, 16)
    wscale = 1.0 / math.sqrt(C)

    def mk_w2(k):
        return jax.random.normal(k, (C, C), jnp.float32) * wscale

    def mk_w3(k):
        return jax.random.normal(k, (NUM_LAYERS, C, C), jnp.float32) * wscale

    def mk_b(k):
        return jax.random.normal(k, (NUM_LAYERS, C), jnp.float32) * 0.05

    x = jax.random.normal(ks[0], (B, C, W, H), jnp.float32)
    params = dict(
        wl=mk_w2(ks[1]),
        bl=jax.random.normal(ks[2], (C,), jnp.float32) * 0.05,
        wq=mk_w3(ks[3]), wk=mk_w3(ks[4]), wv=mk_w3(ks[5]),
        wiq=mk_w3(ks[6]), wik=mk_w3(ks[7]), wiv=mk_w3(ks[8]),
        biq=mk_b(ks[9]), bik=mk_b(ks[10]), biv=mk_b(ks[11]),
        wo=mk_w3(ks[12]), bo=mk_b(ks[13]),
        w1=mk_w3(ks[14]), w2=mk_w3(ks[15]),
    )

    out = jax.block_until_ready(transformer_block_forward(x, params, NUM_HEADS))
    ref = transformer_block_reference(x, params, NUM_HEADS)

    assert out.shape == (B, C, W, H), out.shape
    max_err = float(jnp.max(jnp.abs(out - ref)))
    assert jnp.allclose(out, ref, atol=2e-3, rtol=2e-3), max_err

    print("KERNEL_OK")
</pallas_src>

<mosaic_0001>
module attributes {stable_mosaic.version = 11 : i64} {
  func.func @_tblock_kernel(%arg0: i32, %arg1: memref<1x64x32xf32, #tpu.memory_space<vmem>>, %arg2: memref<32x32xf32, #tpu.memory_space<vmem>>, %arg3: memref<1x32xf32, #tpu.memory_space<vmem>>, %arg4: memref<2x32x96xf32, #tpu.memory_space<vmem>>, %arg5: memref<2x1x96xf32, #tpu.memory_space<vmem>>, %arg6: memref<2x32x32xf32, #tpu.memory_space<vmem>>, %arg7: memref<2x1x32xf32, #tpu.memory_space<vmem>>, %arg8: memref<2x32x32xf32, #tpu.memory_space<vmem>>, %arg9: memref<1x64x32xf32, #tpu.memory_space<vmem>>) attributes {dimension_semantics = [#tpu.dimension_semantics<parallel>], iteration_bounds = array<i64: 2>, scalar_prefetch = 0 : i64, scratch_operands = 0 : i64, tpu.core_type = #tpu.core_type<tc>, window_params = [{transform_indices = @transform_0, window_bounds = array<i64: 1, 64, 32>}, {pipeline_mode = #tpu.pipeline_mode<synchronous>, transform_indices = @transform_1, window_bounds = array<i64: 32, 32>}, {pipeline_mode = #tpu.pipeline_mode<synchronous>, transform_indices = @transform_2, window_bounds = array<i64: 1, 32>}, {pipeline_mode = #tpu.pipeline_mode<synchronous>, transform_indices = @transform_3, window_bounds = array<i64: 2, 32, 96>}, {pipeline_mode = #tpu.pipeline_mode<synchronous>, transform_indices = @transform_4, window_bounds = array<i64: 2, 1, 96>}, {pipeline_mode = #tpu.pipeline_mode<synchronous>, transform_indices = @transform_5, window_bounds = array<i64: 2, 32, 32>}, {pipeline_mode = #tpu.pipeline_mode<synchronous>, transform_indices = @transform_6, window_bounds = array<i64: 2, 1, 32>}, {pipeline_mode = #tpu.pipeline_mode<synchronous>, transform_indices = @transform_7, window_bounds = array<i64: 2, 32, 32>}, {transform_indices = @transform_8, window_bounds = array<i64: 1, 64, 32>}]} {
    %c0 = arith.constant 0 : index
    %c0_0 = arith.constant 0 : index
    %c0_1 = arith.constant 0 : index
    %0 = vector.load %arg1[%c0, %c0_0, %c0_1] : memref<1x64x32xf32, #tpu.memory_space<vmem>>, vector<1x64x32xf32>
    %1 = vector.shape_cast %0 : vector<1x64x32xf32> to vector<64x32xf32>
    %c0_2 = arith.constant 0 : index
    %c0_3 = arith.constant 0 : index
    %2 = vector.load %arg2[%c0_2, %c0_3] : memref<32x32xf32, #tpu.memory_space<vmem>>, vector<32x32xf32>
    %cst = arith.constant dense<0.000000e+00> : vector<64x32xf32>
    %3 = tpu.matmul %1, %2, %cst {dimension_numbers = #tpu.dot_dimension_numbers<[1], [0], [0], [1], [0, 0, 1, 1], [], []>, precision = #tpu.contract_precision<fp32>} : vector<64x32xf32>, vector<32x32xf32>, vector<64x32xf32> -> vector<64x32xf32>
    %c0_4 = arith.constant 0 : index
    %c0_5 = arith.constant 0 : index
    %4 = vector.load %arg3[%c0_4, %c0_5] : memref<1x32xf32, #tpu.memory_space<vmem>>, vector<1x32xf32>
    %5 = vector.broadcast %4 : vector<1x32xf32> to vector<64x32xf32>
    %6 = arith.addf %3, %5 : vector<64x32xf32>
    %c0_6 = arith.constant 0 : index
    %c0_7 = arith.constant 0 : index
    %c0_8 = arith.constant 0 : index
    %7 = vector.load %arg4[%c0_6, %c0_7, %c0_8] : memref<2x32x96xf32, #tpu.memory_space<vmem>>, vector<1x32x96xf32>
    %8 = vector.shape_cast %7 : vector<1x32x96xf32> to vector<32x96xf32>
    %cst_9 = arith.constant dense<0.000000e+00> : vector<64x96xf32>
    %9 = tpu.matmul %6, %8, %cst_9 {dimension_numbers = #tpu.dot_dimension_numbers<[1], [0], [0], [1], [0, 0, 1, 1], [], []>, precision = #tpu.contract_precision<fp32>} : vector<64x32xf32>, vector<32x96xf32>, vector<64x96xf32> -> vector<64x96xf32>
    %c0_10 = arith.constant 0 : index
    %c0_11 = arith.constant 0 : index
    %c0_12 = arith.constant 0 : index
    %10 = vector.load %arg5[%c0_10, %c0_11, %c0_12] : memref<2x1x96xf32, #tpu.memory_space<vmem>>, vector<1x1x96xf32>
    %11 = vector.shape_cast %10 : vector<1x1x96xf32> to vector<1x96xf32>
    %12 = vector.broadcast %11 : vector<1x96xf32> to vector<64x96xf32>
    %13 = arith.addf %9, %12 : vector<64x96xf32>
    %14 = vector.extract_strided_slice %13 {offsets = [0, 0], sizes = [64, 32], strides = [1, 1]} : vector<64x96xf32> to vector<64x32xf32>
    %15 = vector.extract_strided_slice %13 {offsets = [0, 32], sizes = [64, 32], strides = [1, 1]} : vector<64x96xf32> to vector<64x32xf32>
    %16 = vector.extract_strided_slice %13 {offsets = [0, 64], sizes = [64, 32], strides = [1, 1]} : vector<64x96xf32> to vector<64x32xf32>
    %17 = vector.extract_strided_slice %14 {offsets = [0, 0], sizes = [64, 8], strides = [1, 1]} : vector<64x32xf32> to vector<64x8xf32>
    %18 = vector.extract_strided_slice %15 {offsets = [0, 0], sizes = [64, 8], strides = [1, 1]} : vector<64x32xf32> to vector<64x8xf32>
    %19 = vector.extract_strided_slice %16 {offsets = [0, 0], sizes = [64, 8], strides = [1, 1]} : vector<64x32xf32> to vector<64x8xf32>
    %cst_13 = arith.constant dense<0.000000e+00> : vector<64x64xf32>
    %20 = tpu.matmul %17, %18, %cst_13 {dimension_numbers = #tpu.dot_dimension_numbers<[1], [1], [0], [0], [0, 0, 1, 0], [], []>, precision = #tpu.contract_precision<fp32>} : vector<64x8xf32>, vector<64x8xf32>, vector<64x64xf32> -> vector<64x64xf32>
    %cst_14 = arith.constant dense<0xFF800000> : vector<64xf32>
    %21 = vector.multi_reduction <maximumf>, %20, %cst_14 [1] : vector<64x64xf32> to vector<64xf32>
    %22 = vector.shape_cast %21 : vector<64xf32> to vector<64x1xf32>
    %23 = vector.broadcast %22 : vector<64x1xf32> to vector<64x64xf32>
    %24 = arith.subf %20, %23 : vector<64x64xf32>
    %25 = math.exp %24 : vector<64x64xf32>
    %cst_15 = arith.constant dense<0.000000e+00> : vector<64xf32>
    %26 = vector.multi_reduction <add>, %25, %cst_15 [1] : vector<64x64xf32> to vector<64xf32>
    %27 = vector.shape_cast %26 : vector<64xf32> to vector<64x1xf32>
    %28 = vector.broadcast %27 : vector<64x1xf32> to vector<64x64xf32>
    %29 = arith.divf %25, %28 : vector<64x64xf32>
    %cst_16 = arith.constant dense<0.000000e+00> : vector<64x8xf32>
    %30 = tpu.matmul %29, %19, %cst_16 {dimension_numbers = #tpu.dot_dimension_numbers<[1], [0], [0], [1], [0, 0, 1, 1], [], []>, precision = #tpu.contract_precision<fp32>} : vector<64x64xf32>, vector<64x8xf32>, vector<64x8xf32> -> vector<64x8xf32>
    %31 = vector.extract_strided_slice %14 {offsets = [0, 8], sizes = [64, 8], strides = [1, 1]} : vector<64x32xf32> to vector<64x8xf32>
    %32 = vector.extract_strided_slice %15 {offsets = [0, 8], sizes = [64, 8], strides = [1, 1]} : vector<64x32xf32> to vector<64x8xf32>
    %33 = vector.extract_strided_slice %16 {offsets = [0, 8], sizes = [64, 8], strides = [1, 1]} : vector<64x32xf32> to vector<64x8xf32>
    %cst_17 = arith.constant dense<0.000000e+00> : vector<64x64xf32>
    %34 = tpu.matmul %31, %32, %cst_17 {dimension_numbers = #tpu.dot_dimension_numbers<[1], [1], [0], [0], [0, 0, 1, 0], [], []>, precision = #tpu.contract_precision<fp32>} : vector<64x8xf32>, vector<64x8xf32>, vector<64x64xf32> -> vector<64x64xf32>
    %cst_18 = arith.constant dense<0xFF800000> : vector<64xf32>
    %35 = vector.multi_reduction <maximumf>, %34, %cst_18 [1] : vector<64x64xf32> to vector<64xf32>
    %36 = vector.shape_cast %35 : vector<64xf32> to vector<64x1xf32>
    %37 = vector.broadcast %36 : vector<64x1xf32> to vector<64x64xf32>
    %38 = arith.subf %34, %37 : vector<64x64xf32>
    %39 = math.exp %38 : vector<64x64xf32>
    %cst_19 = arith.constant dense<0.000000e+00> : vector<64xf32>
    %40 = vector.multi_reduction <add>, %39, %cst_19 [1] : vector<64x64xf32> to vector<64xf32>
    %41 = vector.shape_cast %40 : vector<64xf32> to vector<64x1xf32>
    %42 = vector.broadcast %41 : vector<64x1xf32> to vector<64x64xf32>
    %43 = arith.divf %39, %42 : vector<64x64xf32>
    %cst_20 = arith.constant dense<0.000000e+00> : vector<64x8xf32>
    %44 = tpu.matmul %43, %33, %cst_20 {dimension_numbers = #tpu.dot_dimension_numbers<[1], [0], [0], [1], [0, 0, 1, 1], [], []>, precision = #tpu.contract_precision<fp32>} : vector<64x64xf32>, vector<64x8xf32>, vector<64x8xf32> -> vector<64x8xf32>
    %45 = vector.extract_strided_slice %14 {offsets = [0, 16], sizes = [64, 8], strides = [1, 1]} : vector<64x32xf32> to vector<64x8xf32>
    %46 = vector.extract_strided_slice %15 {offsets = [0, 16], sizes = [64, 8], strides = [1, 1]} : vector<64x32xf32> to vector<64x8xf32>
    %47 = vector.extract_strided_slice %16 {offsets = [0, 16], sizes = [64, 8], strides = [1, 1]} : vector<64x32xf32> to vector<64x8xf32>
    %cst_21 = arith.constant dense<0.000000e+00> : vector<64x64xf32>
    %48 = tpu.matmul %45, %46, %cst_21 {dimension_numbers = #tpu.dot_dimension_numbers<[1], [1], [0], [0], [0, 0, 1, 0], [], []>, precision = #tpu.contract_precision<fp32>} : vector<64x8xf32>, vector<64x8xf32>, vector<64x64xf32> -> vector<64x64xf32>
    %cst_22 = arith.constant dense<0xFF800000> : vector<64xf32>
    %49 = vector.multi_reduction <maximumf>, %48, %cst_22 [1] : vector<64x64xf32> to vector<64xf32>
    %50 = vector.shape_cast %49 : vector<64xf32> to vector<64x1xf32>
    %51 = vector.broadcast %50 : vector<64x1xf32> to vector<64x64xf32>
    %52 = arith.subf %48, %51 : vector<64x64xf32>
    %53 = math.exp %52 : vector<64x64xf32>
    %cst_23 = arith.constant dense<0.000000e+00> : vector<64xf32>
    %54 = vector.multi_reduction <add>, %53, %cst_23 [1] : vector<64x64xf32> to vector<64xf32>
    %55 = vector.shape_cast %54 : vector<64xf32> to vector<64x1xf32>
    %56 = vector.broadcast %55 : vector<64x1xf32> to vector<64x64xf32>
    %57 = arith.divf %53, %56 : vector<64x64xf32>
    %cst_24 = arith.constant dense<0.000000e+00> : vector<64x8xf32>
    %58 = tpu.matmul %57, %47, %cst_24 {dimension_numbers = #tpu.dot_dimension_numbers<[1], [0], [0], [1], [0, 0, 1, 1], [], []>, precision = #tpu.contract_precision<fp32>} : vector<64x64xf32>, vector<64x8xf32>, vector<64x8xf32> -> vector<64x8xf32>
    %59 = vector.extract_strided_slice %14 {offsets = [0, 24], sizes = [64, 8], strides = [1, 1]} : vector<64x32xf32> to vector<64x8xf32>
    %60 = vector.extract_strided_slice %15 {offsets = [0, 24], sizes = [64, 8], strides = [1, 1]} : vector<64x32xf32> to vector<64x8xf32>
    %61 = vector.extract_strided_slice %16 {offsets = [0, 24], sizes = [64, 8], strides = [1, 1]} : vector<64x32xf32> to vector<64x8xf32>
    %cst_25 = arith.constant dense<0.000000e+00> : vector<64x64xf32>
    %62 = tpu.matmul %59, %60, %cst_25 {dimension_numbers = #tpu.dot_dimension_numbers<[1], [1], [0], [0], [0, 0, 1, 0], [], []>, precision = #tpu.contract_precision<fp32>} : vector<64x8xf32>, vector<64x8xf32>, vector<64x64xf32> -> vector<64x64xf32>
    %cst_26 = arith.constant dense<0xFF800000> : vector<64xf32>
    %63 = vector.multi_reduction <maximumf>, %62, %cst_26 [1] : vector<64x64xf32> to vector<64xf32>
    %64 = vector.shape_cast %63 : vector<64xf32> to vector<64x1xf32>
    %65 = vector.broadcast %64 : vector<64x1xf32> to vector<64x64xf32>
    %66 = arith.subf %62, %65 : vector<64x64xf32>
    %67 = math.exp %66 : vector<64x64xf32>
    %cst_27 = arith.constant dense<0.000000e+00> : vector<64xf32>
    %68 = vector.multi_reduction <add>, %67, %cst_27 [1] : vector<64x64xf32> to vector<64xf32>
    %69 = vector.shape_cast %68 : vector<64xf32> to vector<64x1xf32>
    %70 = vector.broadcast %69 : vector<64x1xf32> to vector<64x64xf32>
    %71 = arith.divf %67, %70 : vector<64x64xf32>
    %cst_28 = arith.constant dense<0.000000e+00> : vector<64x8xf32>
    %72 = tpu.matmul %71, %61, %cst_28 {dimension_numbers = #tpu.dot_dimension_numbers<[1], [0], [0], [1], [0, 0, 1, 1], [], []>, precision = #tpu.contract_precision<fp32>} : vector<64x64xf32>, vector<64x8xf32>, vector<64x8xf32> -> vector<64x8xf32>
    %73 = tpu.concatenate %30, %44, %58, %72 in 1 : vector<64x8xf32>, vector<64x8xf32>, vector<64x8xf32>, vector<64x8xf32> -> vector<64x32xf32>
    %c0_29 = arith.constant 0 : index
    %c0_30 = arith.constant 0 : index
    %c0_31 = arith.constant 0 : index
    %74 = vector.load %arg6[%c0_29, %c0_30, %c0_31] : memref<2x32x32xf32, #tpu.memory_space<vmem>>, vector<1x32x32xf32>
    %75 = vector.shape_cast %74 : vector<1x32x32xf32> to vector<32x32xf32>
    %cst_32 = arith.constant dense<0.000000e+00> : vector<64x32xf32>
    %76 = tpu.matmul %73, %75, %cst_32 {dimension_numbers = #tpu.dot_dimension_numbers<[1], [0], [0], [1], [0, 0, 1, 1], [], []>, precision = #tpu.contract_precision<fp32>} : vector<64x32xf32>, vector<32x32xf32>, vector<64x32xf32> -> vector<64x32xf32>
    %c0_33 = arith.constant 0 : index
    %c0_34 = arith.constant 0 : index
    %c0_35 = arith.constant 0 : index
    %77 = vector.load %arg7[%c0_33, %c0_34, %c0_35] : memref<2x1x32xf32, #tpu.memory_space<vmem>>, vector<1x1x32xf32>
    %78 = vector.shape_cast %77 : vector<1x1x32xf32> to vector<1x32xf32>
    %79 = vector.broadcast %78 : vector<1x32xf32> to vector<64x32xf32>
    %80 = arith.addf %76, %79 : vector<64x32xf32>
    %81 = arith.addf %80, %6 : vector<64x32xf32>
    %c0_36 = arith.constant 0 : index
    %c0_37 = arith.constant 0 : index
    %c0_38 = arith.constant 0 : index
    %82 = vector.load %arg8[%c0_36, %c0_37, %c0_38] : memref<2x32x32xf32, #tpu.memory_space<vmem>>, vector<1x32x32xf32>
    %83 = vector.shape_cast %82 : vector<1x32x32xf32> to vector<32x32xf32>
    %cst_39 = arith.constant dense<0.000000e+00> : vector<64x32xf32>
    %84 = tpu.matmul %81, %83, %cst_39 {dimension_numbers = #tpu.dot_dimension_numbers<[1], [0], [0], [1], [0, 0, 1, 1], [], []>, precision = #tpu.contract_precision<fp32>} : vector<64x32xf32>, vector<32x32xf32>, vector<64x32xf32> -> vector<64x32xf32>
    %c1 = arith.constant 1 : index
    %c0_40 = arith.constant 0 : index
    %c0_41 = arith.constant 0 : index
    %85 = vector.load %arg4[%c1, %c0_40, %c0_41] : memref<2x32x96xf32, #tpu.memory_space<vmem>>, vector<1x32x96xf32>
    %86 = vector.shape_cast %85 : vector<1x32x96xf32> to vector<32x96xf32>
    %cst_42 = arith.constant dense<0.000000e+00> : vector<64x96xf32>
    %87 = tpu.matmul %84, %86, %cst_42 {dimension_numbers = #tpu.dot_dimension_numbers<[1], [0], [0], [1], [0, 0, 1, 1], [], []>, precision = #tpu.contract_precision<fp32>} : vector<64x32xf32>, vector<32x96xf32>, vector<64x96xf32> -> vector<64x96xf32>
    %c1_43 = arith.constant 1 : index
    %c0_44 = arith.constant 0 : index
    %c0_45 = arith.constant 0 : index
    %88 = vector.load %arg5[%c1_43, %c0_44, %c0_45] : memref<2x1x96xf32, #tpu.memory_space<vmem>>, vector<1x1x96xf32>
    %89 = vector.shape_cast %88 : vector<1x1x96xf32> to vector<1x96xf32>
    %90 = vector.broadcast %89 : vector<1x96xf32> to vector<64x96xf32>
    %91 = arith.addf %87, %90 : vector<64x96xf32>
    %92 = vector.extract_strided_slice %91 {offsets = [0, 0], sizes = [64, 32], strides = [1, 1]} : vector<64x96xf32> to vector<64x32xf32>
    %93 = vector.extract_strided_slice %91 {offsets = [0, 32], sizes = [64, 32], strides = [1, 1]} : vector<64x96xf32> to vector<64x32xf32>
    %94 = vector.extract_strided_slice %91 {offsets = [0, 64], sizes = [64, 32], strides = [1, 1]} : vector<64x96xf32> to vector<64x32xf32>
    %95 = vector.extract_strided_slice %92 {offsets = [0, 0], sizes = [64, 8], strides = [1, 1]} : vector<64x32xf32> to vector<64x8xf32>
    %96 = vector.extract_strided_slice %93 {offsets = [0, 0], sizes = [64, 8], strides = [1, 1]} : vector<64x32xf32> to vector<64x8xf32>
    %97 = vector.extract_strided_slice %94 {offsets = [0, 0], sizes = [64, 8], strides = [1, 1]} : vector<64x32xf32> to vector<64x8xf32>
    %cst_46 = arith.constant dense<0.000000e+00> : vector<64x64xf32>
    %98 = tpu.matmul %95, %96, %cst_46 {dimension_numbers = #tpu.dot_dimension_numbers<[1], [1], [0], [0], [0, 0, 1, 0], [], []>, precision = #tpu.contract_precision<fp32>} : vector<64x8xf32>, vector<64x8xf32>, vector<64x64xf32> -> vector<64x64xf32>
    %cst_47 = arith.constant dense<0xFF800000> : vector<64xf32>
    %99 = vector.multi_reduction <maximumf>, %98, %cst_47 [1] : vector<64x64xf32> to vector<64xf32>
    %100 = vector.shape_cast %99 : vector<64xf32> to vector<64x1xf32>
    %101 = vector.broadcast %100 : vector<64x1xf32> to vector<64x64xf32>
    %102 = arith.subf %98, %101 : vector<64x64xf32>
    %103 = math.exp %102 : vector<64x64xf32>
    %cst_48 = arith.constant dense<0.000000e+00> : vector<64xf32>
    %104 = vector.multi_reduction <add>, %103, %cst_48 [1] : vector<64x64xf32> to vector<64xf32>
    %105 = vector.shape_cast %104 : vector<64xf32> to vector<64x1xf32>
    %106 = vector.broadcast %105 : vector<64x1xf32> to vector<64x64xf32>
    %107 = arith.divf %103, %106 : vector<64x64xf32>
    %cst_49 = arith.constant dense<0.000000e+00> : vector<64x8xf32>
    %108 = tpu.matmul %107, %97, %cst_49 {dimension_numbers = #tpu.dot_dimension_numbers<[1], [0], [0], [1], [0, 0, 1, 1], [], []>, precision = #tpu.contract_precision<fp32>} : vector<64x64xf32>, vector<64x8xf32>, vector<64x8xf32> -> vector<64x8xf32>
    %109 = vector.extract_strided_slice %92 {offsets = [0, 8], sizes = [64, 8], strides = [1, 1]} : vector<64x32xf32> to vector<64x8xf32>
    %110 = vector.extract_strided_slice %93 {offsets = [0, 8], sizes = [64, 8], strides = [1, 1]} : vector<64x32xf32> to vector<64x8xf32>
    %111 = vector.extract_strided_slice %94 {offsets = [0, 8], sizes = [64, 8], strides = [1, 1]} : vector<64x32xf32> to vector<64x8xf32>
    %cst_50 = arith.constant dense<0.000000e+00> : vector<64x64xf32>
    %112 = tpu.matmul %109, %110, %cst_50 {dimension_numbers = #tpu.dot_dimension_numbers<[1], [1], [0], [0], [0, 0, 1, 0], [], []>, precision = #tpu.contract_precision<fp32>} : vector<64x8xf32>, vector<64x8xf32>, vector<64x64xf32> -> vector<64x64xf32>
    %cst_51 = arith.constant dense<0xFF800000> : vector<64xf32>
    %113 = vector.multi_reduction <maximumf>, %112, %cst_51 [1] : vector<64x64xf32> to vector<64xf32>
    %114 = vector.shape_cast %113 : vector<64xf32> to vector<64x1xf32>
    %115 = vector.broadcast %114 : vector<64x1xf32> to vector<64x64xf32>
    %116 = arith.subf %112, %115 : vector<64x64xf32>
    %117 = math.exp %116 : vector<64x64xf32>
    %cst_52 = arith.constant dense<0.000000e+00> : vector<64xf32>
    %118 = vector.multi_reduction <add>, %117, %cst_52 [1] : vector<64x64xf32> to vector<64xf32>
    %119 = vector.shape_cast %118 : vector<64xf32> to vector<64x1xf32>
    %120 = vector.broadcast %119 : vector<64x1xf32> to vector<64x64xf32>
    %121 = arith.divf %117, %120 : vector<64x64xf32>
    %cst_53 = arith.constant dense<0.000000e+00> : vector<64x8xf32>
    %122 = tpu.matmul %121, %111, %cst_53 {dimension_numbers = #tpu.dot_dimension_numbers<[1], [0], [0], [1], [0, 0, 1, 1], [], []>, precision = #tpu.contract_precision<fp32>} : vector<64x64xf32>, vector<64x8xf32>, vector<64x8xf32> -> vector<64x8xf32>
    %123 = vector.extract_strided_slice %92 {offsets = [0, 16], sizes = [64, 8], strides = [1, 1]} : vector<64x32xf32> to vector<64x8xf32>
    %124 = vector.extract_strided_slice %93 {offsets = [0, 16], sizes = [64, 8], strides = [1, 1]} : vector<64x32xf32> to vector<64x8xf32>
    %125 = vector.extract_strided_slice %94 {offsets = [0, 16], sizes = [64, 8], strides = [1, 1]} : vector<64x32xf32> to vector<64x8xf32>
    %cst_54 = arith.constant dense<0.000000e+00> : vector<64x64xf32>
    %126 = tpu.matmul %123, %124, %cst_54 {dimension_numbers = #tpu.dot_dimension_numbers<[1], [1], [0], [0], [0, 0, 1, 0], [], []>, precision = #tpu.contract_precision<fp32>} : vector<64x8xf32>, vector<64x8xf32>, vector<64x64xf32> -> vector<64x64xf32>
    %cst_55 = arith.constant dense<0xFF800000> : vector<64xf32>
    %127 = vector.multi_reduction <maximumf>, %126, %cst_55 [1] : vector<64x64xf32> to vector<64xf32>
    %128 = vector.shape_cast %127 : vector<64xf32> to vector<64x1xf32>
    %129 = vector.broadcast %128 : vector<64x1xf32> to vector<64x64xf32>
    %130 = arith.subf %126, %129 : vector<64x64xf32>
    %131 = math.exp %130 : vector<64x64xf32>
    %cst_56 = arith.constant dense<0.000000e+00> : vector<64xf32>
    %132 = vector.multi_reduction <add>, %131, %cst_56 [1] : vector<64x64xf32> to vector<64xf32>
    %133 = vector.shape_cast %132 : vector<64xf32> to vector<64x1xf32>
    %134 = vector.broadcast %133 : vector<64x1xf32> to vector<64x64xf32>
    %135 = arith.divf %131, %134 : vector<64x64xf32>
    %cst_57 = arith.constant dense<0.000000e+00> : vector<64x8xf32>
    %136 = tpu.matmul %135, %125, %cst_57 {dimension_numbers = #tpu.dot_dimension_numbers<[1], [0], [0], [1], [0, 0, 1, 1], [], []>, precision = #tpu.contract_precision<fp32>} : vector<64x64xf32>, vector<64x8xf32>, vector<64x8xf32> -> vector<64x8xf32>
    %137 = vector.extract_strided_slice %92 {offsets = [0, 24], sizes = [64, 8], strides = [1, 1]} : vector<64x32xf32> to vector<64x8xf32>
    %138 = vector.extract_strided_slice %93 {offsets = [0, 24], sizes = [64, 8], strides = [1, 1]} : vector<64x32xf32> to vector<64x8xf32>
    %139 = vector.extract_strided_slice %94 {offsets = [0, 24], sizes = [64, 8], strides = [1, 1]} : vector<64x32xf32> to vector<64x8xf32>
    %cst_58 = arith.constant dense<0.000000e+00> : vector<64x64xf32>
    %140 = tpu.matmul %137, %138, %cst_58 {dimension_numbers = #tpu.dot_dimension_numbers<[1], [1], [0], [0], [0, 0, 1, 0], [], []>, precision = #tpu.contract_precision<fp32>} : vector<64x8xf32>, vector<64x8xf32>, vector<64x64xf32> -> vector<64x64xf32>
    %cst_59 = arith.constant dense<0xFF800000> : vector<64xf32>
    %141 = vector.multi_reduction <maximumf>, %140, %cst_59 [1] : vector<64x64xf32> to vector<64xf32>
    %142 = vector.shape_cast %141 : vector<64xf32> to vector<64x1xf32>
    %143 = vector.broadcast %142 : vector<64x1xf32> to vector<64x64xf32>
    %144 = arith.subf %140, %143 : vector<64x64xf32>
    %145 = math.exp %144 : vector<64x64xf32>
    %cst_60 = arith.constant dense<0.000000e+00> : vector<64xf32>
    %146 = vector.multi_reduction <add>, %145, %cst_60 [1] : vector<64x64xf32> to vector<64xf32>
    %147 = vector.shape_cast %146 : vector<64xf32> to vector<64x1xf32>
    %148 = vector.broadcast %147 : vector<64x1xf32> to vector<64x64xf32>
    %149 = arith.divf %145, %148 : vector<64x64xf32>
    %cst_61 = arith.constant dense<0.000000e+00> : vector<64x8xf32>
    %150 = tpu.matmul %149, %139, %cst_61 {dimension_numbers = #tpu.dot_dimension_numbers<[1], [0], [0], [1], [0, 0, 1, 1], [], []>, precision = #tpu.contract_precision<fp32>} : vector<64x64xf32>, vector<64x8xf32>, vector<64x8xf32> -> vector<64x8xf32>
    %151 = tpu.concatenate %108, %122, %136, %150 in 1 : vector<64x8xf32>, vector<64x8xf32>, vector<64x8xf32>, vector<64x8xf32> -> vector<64x32xf32>
    %c1_62 = arith.constant 1 : index
    %c0_63 = arith.constant 0 : index
    %c0_64 = arith.constant 0 : index
    %152 = vector.load %arg6[%c1_62, %c0_63, %c0_64] : memref<2x32x32xf32, #tpu.memory_space<vmem>>, vector<1x32x32xf32>
    %153 = vector.shape_cast %152 : vector<1x32x32xf32> to vector<32x32xf32>
    %cst_65 = arith.constant dense<0.000000e+00> : vector<64x32xf32>
    %154 = tpu.matmul %151, %153, %cst_65 {dimension_numbers = #tpu.dot_dimension_numbers<[1], [0], [0], [1], [0, 0, 1, 1], [], []>, precision = #tpu.contract_precision<fp32>} : vector<64x32xf32>, vector<32x32xf32>, vector<64x32xf32> -> vector<64x32xf32>
    %c1_66 = arith.constant 1 : index
    %c0_67 = arith.constant 0 : index
    %c0_68 = arith.constant 0 : index
    %155 = vector.load %arg7[%c1_66, %c0_67, %c0_68] : memref<2x1x32xf32, #tpu.memory_space<vmem>>, vector<1x1x32xf32>
    %156 = vector.shape_cast %155 : vector<1x1x32xf32> to vector<1x32xf32>
    %157 = vector.broadcast %156 : vector<1x32xf32> to vector<64x32xf32>
    %158 = arith.addf %154, %157 : vector<64x32xf32>
    %159 = arith.addf %158, %84 : vector<64x32xf32>
    %c1_69 = arith.constant 1 : index
    %c0_70 = arith.constant 0 : index
    %c0_71 = arith.constant 0 : index
    %160 = vector.load %arg8[%c1_69, %c0_70, %c0_71] : memref<2x32x32xf32, #tpu.memory_space<vmem>>, vector<1x32x32xf32>
    %161 = vector.shape_cast %160 : vector<1x32x32xf32> to vector<32x32xf32>
    %cst_72 = arith.constant dense<0.000000e+00> : vector<64x32xf32>
    %162 = tpu.matmul %159, %161, %cst_72 {dimension_numbers = #tpu.dot_dimension_numbers<[1], [0], [0], [1], [0, 0, 1, 1], [], []>, precision = #tpu.contract_precision<fp32>} : vector<64x32xf32>, vector<32x32xf32>, vector<64x32xf32> -> vector<64x32xf32>
    %c0_73 = arith.constant 0 : index
    %c0_74 = arith.constant 0 : index
    %c0_75 = arith.constant 0 : index
    %163 = vector.load %arg9[%c0_73, %c0_74, %c0_75] : memref<1x64x32xf32, #tpu.memory_space<vmem>>, vector<1x64x32xf32>
    %164 = vector.shape_cast %163 : vector<1x64x32xf32> to vector<64x32xf32>
    %165 = vector.shape_cast %162 : vector<64x32xf32> to vector<1x64x32xf32>
    tpu.vector_store %arg9[%c0_73, %c0_74, %c0_75], %165 {strides = array<i32>} : memref<1x64x32xf32, #tpu.memory_space<vmem>>, vector<1x64x32xf32>,
    return
  }
  func.func @transform_0(%arg0: i32) -> (i32, i32, i32) {
    %c0_i32 = arith.constant 0 : i32
    %c0_i32_0 = arith.constant 0 : i32
    %c0_i32_1 = arith.constant 0 : i32
    return %arg0, %c0_i32, %c0_i32_0 : i32, i32, i32
  }
  func.func @transform_1(%arg0: i32) -> (i32, i32) {
    %c0_i32 = arith.constant 0 : i32
    %c0_i32_0 = arith.constant 0 : i32
    %c0_i32_1 = arith.constant 0 : i32
    return %c0_i32, %c0_i32_0 : i32, i32
  }
  func.func @transform_2(%arg0: i32) -> (i32, i32) {
    %c0_i32 = arith.constant 0 : i32
    %c0_i32_0 = arith.constant 0 : i32
    %c0_i32_1 = arith.constant 0 : i32
    return %c0_i32, %c0_i32_0 : i32, i32
  }
  func.func @transform_3(%arg0: i32) -> (i32, i32, i32) {
    %c0_i32 = arith.constant 0 : i32
    %c0_i32_0 = arith.constant 0 : i32
    %c0_i32_1 = arith.constant 0 : i32
    %c0_i32_2 = arith.constant 0 : i32
    return %c0_i32, %c0_i32_0, %c0_i32_1 : i32, i32, i32
  }
  func.func @transform_4(%arg0: i32) -> (i32, i32, i32) {
    %c0_i32 = arith.constant 0 : i32
    %c0_i32_0 = arith.constant 0 : i32
    %c0_i32_1 = arith.constant 0 : i32
    %c0_i32_2 = arith.constant 0 : i32
    return %c0_i32, %c0_i32_0, %c0_i32_1 : i32, i32, i32
  }
  func.func @transform_5(%arg0: i32) -> (i32, i32, i32) {
    %c0_i32 = arith.constant 0 : i32
    %c0_i32_0 = arith.constant 0 : i32
    %c0_i32_1 = arith.constant 0 : i32
    %c0_i32_2 = arith.constant 0 : i32
    return %c0_i32, %c0_i32_0, %c0_i32_1 : i32, i32, i32
  }
  func.func @transform_6(%arg0: i32) -> (i32, i32, i32) {
    %c0_i32 = arith.constant 0 : i32
    %c0_i32_0 = arith.constant 0 : i32
    %c0_i32_1 = arith.constant 0 : i32
    %c0_i32_2 = arith.constant 0 : i32
    return %c0_i32, %c0_i32_0, %c0_i32_1 : i32, i32, i32
  }
  func.func @transform_7(%arg0: i32) -> (i32, i32, i32) {
    %c0_i32 = arith.constant 0 : i32
    %c0_i32_0 = arith.constant 0 : i32
    %c0_i32_1 = arith.constant 0 : i32
    %c0_i32_2 = arith.constant 0 : i32
    return %c0_i32, %c0_i32_0, %c0_i32_1 : i32, i32, i32
  }
  func.func @transform_8(%arg0: i32) -> (i32, i32, i32) {
    %c0_i32 = arith.constant 0 : i32
    %c0_i32_0 = arith.constant 0 : i32
    %c0_i32_1 = arith.constant 0 : i32
    return %arg0, %c0_i32, %c0_i32_0 : i32, i32, i32
  }
}

</mosaic_0001>

<bundles_post_ra>
// kernel: tpu_custom_call.1
= control target key start
LH: loop header
LB: loop body
LE: loop exit
PB: predicated region body
PF: predicated region fallthrough
CT: control target
= control target key end

     0   :  { %13 = vsyncpa [#allocation3], 0  ;;  %s30222_s27 = smov 0   ;;  %s36600_s0 = inlined_call_operand.vmem [shape: f32[2,64,32], index: 0, kind: input, shape index: {}]   ;;  %s36601_s1 = inlined_call_operand.hbm [shape: f32[32,32], index: 1, kind: input, shape index: {}]   ;;  %s36602_s2 = inlined_call_operand.vmem [shape: f32[1,32], index: 2, kind: input, shape index: {}]   ;;  %s36603_s3 = inlined_call_operand.vmem [shape: f32[2,32,96], index: 3, kind: input, shape index: {}]   ;;  %s36604_s4 = inlined_call_operand.vmem [shape: f32[2,1,96], index: 4, kind: input, shape index: {}]   ;;  %s36605_s5 = inlined_call_operand.vmem [shape: f32[2,32,32], index: 5, kind: input, shape index: {}]   ;;  %s36606_s6 = inlined_call_operand.vmem [shape: f32[2,1,32], index: 6, kind: input, shape index: {}]   ;;  %s36607_s7 = inlined_call_operand.vmem [shape: f32[2,32,32], index: 7, kind: input, shape index: {}]   ;;  %s36608_s8 = inlined_call_operand.vmem [shape: f32[2,64,32], index: 8, kind: output, shape index: {}]  }
   0x1 LB: > { %s30228_s28 = sadd.s32 4294967295, %s30158_s27   ;;  %p21397_p0 = scmp.ge.s32.totalorder %s30158_s27, 1  ;;  %s30158_s27 = sphi %s30222_s27, %s19_s27  }
   0x2   : > { %p223_p1 = scmp.lt.s32.totalorder %s30158_s27, 3  ;;  %s30160_s29 = smov [#allocation2]  }
   0x3   : > { %s235_s30 = sshll.u32 %s30160_s29, 4  ;;  %p36609_p3 = scmp.eq.s32.totalorder %s30228_s28, 0  ;;  %s236_s30 = int_to_ptr.vmem [resolvable:$true] %s235_s30 }
   0x4   : > { %p30232_p2 = pnand %p21397_p0, %p223_p1  ;;  %s30120_s13 = scalar_lea.hbm %s36601_s1, 512 }
   0x5   : > { %p30121_p6 = scmp.ne.s32.totalorder %s36601_s1, %s30120_s13  ;;  %p30127_p10 = scmp.lt.u32.totalorder %s30120_s13, %s36601_s1 }
   0x6   : > { %s36739_s9 = scalar_select %p30232_p2, 1, 0 }
   0x7   : > { %p29833_p4 = pneg %p30232_p2 }
   0x9   : > { %p30241_p5 = pnand %p36609_p3, %p29833_p4 }
   0xb   : > { %p30122_p7 = pneg %p30241_p5 }
   0xd   : > { %p30123_p8 = pnand %p30122_p7, %p30121_p6 }
   0xf   : > { %p30124_p9 = pneg %p30123_p8 }
  0x11   : > { %p30129_p11 = pnand %p30127_p10, %p30124_p9 }
  0x13   : > { %30132 = shalt.err (!%p30129_p11)
}
  0x14   : > { %s30133_s18 = scalar_lea.vmem %s236_s30, 512  ;;  %p30141_p1 = scmp.lt.s32.totalorder %s236_s30, %s236_s30 }
  0x15   : > { %p30134_p12 = scmp.ne.s32.totalorder %s236_s30, %s30133_s18  ;;  %p30142_p4 = scmp.lt.s32.totalorder %s30133_s18, %s30133_s18 }
  0x17   : > { %p30136_p13 = pnand %p30134_p12, %p30122_p7  ;;  %p30143_p3 = por %p30142_p4, %p30141_p1 }
  0x19   : > { %p30137_p0 = pneg %p30136_p13 }
  0x1b   : > { %p30144_p2 = pnand %p30143_p3, %p30137_p0 }
  0x1d   : > { %30147 = shalt.err (!%p30144_p2)
}
  0x1e   : > { %s30161_s19 = smov 128   ;;  %s30162_s20 = smov 8  }
  0x1f   : > { %29836 = dma.hbm_to_vmem [thread:$0]  (!%p30241_p5), %s36601_s1, 512, %s236_s30, [#allocation3], %s30161_s19, %s30161_s19, %s30162_s20  }
  0x20   : > { %p36741_p6 = scmp.ne.s32.totalorder %s36739_s9, 0 }
  0x22   : > { %277 = sbr.rel (%p36741_p6) target bundleno = 9990 (0x2706), region = 52 }
  0x29   : > { %p36742_p8 = scmp.eq.s32.totalorder %s30228_s28, 0 }
  0x2b   : > { %30153 = dma.done.wait (%p36742_p8), [#allocation3], 512   ;;  %p36743_p7 = pmov %p36742_p8 }
  0x2c   : > { %p311_p2 = scmp.lt.s32.totalorder %s30228_s28, 1  ;;  %vm340_vm0 = vcmask 261120   ;;  %v329_v0 = vld [vmem:[#allocation2] sm:$0xff]  ;;  %v330_v1 = vld [vmem:[#allocation2 + $0x8] sm:$0xff]  ;;  %v331_v2 = vld [vmem:[#allocation2 + $0x10] sm:$0xff]  ;;  %vm1996_vm1 = vcmask 64512  }
  0x2d   : > { %30155 = vsyncadd (%p36743_p7), [#allocation3], 4294966784  ;;  %v366_v3 = vand.u32 4294901760, %v329_v0  ;;  %v369_v4 = vand.u32 4294901760, %v330_v1  ;;  %v332_v5 = vld [vmem:[#allocation2 + $0x18] sm:$0xff]  ;;  %v372_v6 = vand.u32 4294901760, %v331_v2 }
  0x2e   : > { %s37035_s28 = smov (!%p311_p2, %s30228_s28), 1  ;;  %v375_v8 = vand.u32 4294901760, %v332_v5  ;;  %s30163_s19 = smov 96   ;;  %vm2867_vm2 = vcmask 523264   ;;  %vm9574_vm3 = vcmask 130048   ;;  %vm9583_vm4 = vcmask 195584  }
  0x2f   : > { %s36669_s23 = sshll.u32 %s37035_s28, 6  ;;  %v30281_v10 = vpack.c.bf16 %v369_v4, %v366_v3  ;;  %v30283_v11 = vsub.f32 %v329_v0, %v366_v3  ;;  %v30285_v12 = vsub.f32 %v330_v1, %v369_v4  ;;  %v30287_v13 = vsub.f32 %v331_v2, %v372_v6  ;;  %s30164_s20 = smov 64  }
  0x30   : > { %s30277_s26 = scalar_lea.vmem %s36600_s0, %s36669_s23  ;;  %v30289_v14 = vsub.f32 %v332_v5, %v375_v8  ;;  %v30296_v19 = vpack.c.bf16 %v375_v8, %v372_v6  ;;  %s30165_s21 = smov 88  }
  0x31   : > { %v321_v7 = vld [vmem:[%s30277_s26] sm:$0xff]  ;;  %v322_v16 = vld [vmem:[%s30277_s26 + $0x8] sm:$0xff]  ;;  %v517_v17 = vand.u32 4294901760, %v30283_v11  ;;  %v524_v18 = vand.u32 4294901760, %v30285_v12  ;;  %v531_v20 = vand.u32 4294901760, %v30287_v13  ;;  %v323_v21 = vld [vmem:[%s30277_s26 + $0x10] sm:$0xff]  ;;  %26998 = vmatprep.subr.bf16.mxu1 %v30281_v10  ;;  %v27013_v52 = vpack.c.bf16 %v30285_v12, %v30283_v11 }
  0x32   : > { %v342_v9 = vsel %vm340_vm0, %v321_v7, 0  ;;  %v324_v22 = vld [vmem:[%s30277_s26 + $0x18] sm:$0xff]  ;;  %v538_v23 = vand.u32 4294901760, %v30289_v14  ;;  %27000 = vmatpush3.bf16.msra.mxu1 %v30281_v10  ;;  %v345_v27 = vsel %vm340_vm0, %v322_v16, 0  ;;  %v325_v28 = vld [vmem:[%s30277_s26 + $0x20] sm:$0xff]  ;;  %v348_v30 = vsel %vm340_vm0, %v323_v21, 0 }
  0x33   : > { %v30291_v15 = vand.u32 4294901760, %v342_v9  ;;  %v518_v24 = vsub.f32 %v30283_v11, %v517_v17  ;;  %v525_v25 = vsub.f32 %v30285_v12, %v524_v18  ;;  %v532_v26 = vsub.f32 %v30287_v13, %v531_v20  ;;  %27002 = vmatprep.subr.bf16.mxu1 %v30296_v19  ;;  %v326_v35 = vld [vmem:[%s30277_s26 + $0x28] sm:$0xff]  ;;  %v327_v39 = vld [vmem:[%s30277_s26 + $0x30] sm:$0xff]  ;;  %v328_v49 = vld [vmem:[%s30277_s26 + $0x38] sm:$0xff]  ;;  %s30166_s22 = smov 120   ;;  %s30167_s24 = smov 56  }
  0x34   : > { %v539_v29 = vsub.f32 %v30289_v14, %v538_v23  ;;  %v351_v31 = vsel %vm340_vm0, %v324_v22, 0  ;;  %v30323_v37 = vand.u32 4294901760, %v345_v27  ;;  %v354_v38 = vsel %vm340_vm0, %v325_v28, 0  ;;  %v1152_v12 = vld [vmem:[%s36603_s3 + $0x8] sm:$0xff]  ;;  %s30168_s25 = smov 80   ;;  %s30169_s26 = smov 112  }
  0x35   : > { %23497 = vmatprep.mubr.f32.mxu0 %v30291_v15  ;;  %v519_v32 = vand.u32 4294901760, %v518_v24  ;;  %v526_v33 = vand.u32 4294901760, %v525_v25  ;;  %v533_v34 = vand.u32 4294901760, %v532_v26  ;;  %v30328_v41 = vand.u32 4294901760, %v348_v30  ;;  %s30170_s29 = smov 48   ;;  %s30171_s30 = smov 72  }
  0x36   : > { %v540_v36 = vand.u32 4294901760, %v539_v29  ;;  %27004 = vmatpush3.bf16.msra.mxu1 %v30296_v19  ;;  %v30330_v42 = vand.u32 4294901760, %v351_v31  ;;  %v30333_v44 = vsub.f32 %v345_v27, %v30323_v37  ;;  %v357_v45 = vsel %vm340_vm0, %v326_v35, 0  ;;  %s30172_s9 = smov 104   ;;  %s30173_s10 = smov 40  }
  0x37   : > { %v27005_v40 = vpack.c.bf16 %v526_v33, %v519_v32  ;;  %v30337_v46 = vsub.f32 %v342_v9, %v30291_v15  ;;  %v30339_v47 = vand.u32 4294901760, %v354_v38  ;;  %v360_v48 = vsel %vm340_vm0, %v327_v39, 0  ;;  %s30174_s11 = smov 8   ;;  %s36670_s12 = smov 16  }
  0x38   : > { %v27009_v43 = vpack.c.bf16 %v540_v36, %v533_v34  ;;  %v30344_v50 = vsub.f32 %v348_v30, %v30328_v41  ;;  %v30347_v51 = vsub.f32 %v351_v31, %v30330_v42  ;;  %v446_v54 = vand.u32 4294901760, %v30333_v44  ;;  %s36672_s13 = smov 24  }
  0x39   : > { %27006 = vmatprep.subr.bf16.mxu0 %v27005_v40  ;;  %v436_v53 = vand.u32 4294901760, %v30337_v46  ;;  %v30353_v55 = vand.u32 4294901760, %v357_v45  ;;  %v30356_v56 = vsub.f32 %v354_v38, %v30339_v47  ;;  %v30360_v59 = vand.u32 4294901760, %v360_v48 }
  0x3a   : > { %27008 = vmatpush3.bf16.msra.mxu0 %v27005_v40  ;;  %v456_v57 = vand.u32 4294901760, %v30344_v50  ;;  %v466_v58 = vand.u32 4294901760, %v30347_v51  ;;  %v363_v60 = vsel %vm340_vm0, %v328_v49, 0  ;;  %v447_v62 = vsub.f32 %v30333_v44, %v446_v54 }
  0x3b   : > { %27010 = vmatprep.subr.bf16.mxu0 %v27009_v43  ;;  %v437_v61 = vsub.f32 %v30337_v46, %v436_v53  ;;  %v30370_v63 = vsub.f32 %v357_v45, %v30353_v55  ;;  %v476_v0 = vand.u32 4294901760, %v30356_v56  ;;  %v27017_v3 = vpack.c.bf16 %v30289_v14, %v30287_v13 }
  0x3c   : > { %v457_v1 = vsub.f32 %v30344_v50, %v456_v57  ;;  %v467_v2 = vsub.f32 %v30347_v51, %v466_v58  ;;  %v495_v4 = vsub.f32 %v360_v48, %v30360_v59  ;;  %v448_v6 = vand.u32 4294901760, %v447_v62 }
  0x3d   : > { %v438_v5 = vand.u32 4294901760, %v437_v61  ;;  %v30382_v7 = vand.u32 4294901760, %v363_v60  ;;  %v486_v8 = vand.u32 4294901760, %v30370_v63  ;;  %v477_v16 = vsub.f32 %v30356_v56, %v476_v0 }
  0x3e   : > { %27012 = vmatpush3.bf16.msra.mxu0 %v27009_v43  ;;  %v458_v9 = vand.u32 4294901760, %v457_v1  ;;  %v496_v21 = vand.u32 4294901760, %v495_v4  ;;  %v468_v24 = vand.u32 4294901760, %v467_v2  ;;  %v27029_v33 = vpack.c.bf16 %v524_v18, %v517_v17  ;;  %v1153_v17 = vld [vmem:[%s36603_s3 + $0x10] sm:$0xff]  ;;  %v1154_v18 = vld [vmem:[%s36603_s3 + $0x18] sm:$0xff] }
  0x3f   : > { %27014 = vmatprep.subr.bf16.mxu0 %v27013_v52  ;;  %23477 = vmatprep.mubr.f32.mxu1 %v438_v5  ;;  %v505_v22 = vsub.f32 %v363_v60, %v30382_v7  ;;  %v487_v25 = vsub.f32 %v30370_v63, %v486_v8  ;;  %v478_v28 = vand.u32 4294901760, %v477_v16  ;;  %v27033_v11 = vpack.c.bf16 %v538_v23, %v531_v20 }
  0x40   : > { %23478 = vmatmul.mubr.f32.vlgmr.msra.gmra.mrb[0].mxu1 %v448_v6  ;;  %v497_v26 = vsub.f32 %v495_v4, %v496_v21  ;;  %v1190_v14 = vand.u32 4294901760, %v1152_v12  ;;  %v1196_v20 = vand.u32 4294901760, %v1154_v18 }
  0x41   : > { %23498 = vmatmul.mubr.f32.vlgmr.msra.gmra.mrb[0].mxu0 %v30323_v37  ;;  %v506_v27 = vand.u32 4294901760, %v505_v22  ;;  %23480 = vmatprep.mubr.f32.mxu1 %v458_v9  ;;  %v488_v29 = vand.u32 4294901760, %v487_v25 }
  0x42   : > { %27016 = vmatpush3.bf16.msra.mxu0 %v27013_v52  ;;  %23500 = vmatprep.mubr.f32.mxu0 %v30328_v41  ;;  %v498_v31 = vand.u32 4294901760, %v497_v26  ;;  %v1344_v35 = vsub.f32 %v1152_v12, %v1190_v14 }
  0x43   : > { %27018 = vmatprep.subr.bf16.mxu0 %v27017_v3  ;;  %v507_v30 = vsub.f32 %v505_v22, %v506_v27 }
  0x44   : > { %23481 = vmatmul.mubr.f32.gmra.mrb[2].mxu1 %v468_v24 }
  0x45   : > { %23501 = vmatmul.mubr.f32.gmra.mrb[2].mxu0 %v30330_v42  ;;  %23483 = vmatprep.mubr.f32.mxu1 %v478_v28  ;;  %v508_v32 = vand.u32 4294901760, %v507_v30 }
  0x46   : > { %23503 = vmatprep.mubr.f32.mxu0 %v30339_v47  ;;  %27020 = vmatpush3.bf16.msra.mxu0 %v27017_v3 }
  0x47   : > { %27022 = vmatprep.subr.bf16.mxu0 %v30281_v10 }
  0x48   : > { %23484 = vmatmul.mubr.f32.gmra.mrb[4].mxu1 %v488_v29 }
  0x49   : > { %23504 = vmatmul.mubr.f32.gmra.mrb[4].mxu0 %v30353_v55  ;;  %23486 = vmatprep.mubr.f32.mxu1 %v498_v31 }
  0x4a   : > { %23506 = vmatprep.mubr.f32.mxu0 %v30360_v59 }
  0x4c   : > { %23487 = vmatmul.mubr.f32.gmra.mrb[6].mxu1 %v508_v32 }
  0x4d   : > { %23507 = vmatmul.mubr.f32.gmra.mrb[6].mxu0 %v30382_v7 }
  0x4e   : > { %23517 = vmatprep.mubr.f32.mxu0 %v30337_v46 }
  0x51   : > { %23518 = vmatmul.mubr.f32.vlgmr.msra.gmra.mrb[0].mxu0 %v30333_v44 }
  0x52   : > { %27024 = vmatpush3.bf16.msra.mxu0 %v30281_v10  ;;  %23520 = vmatprep.mubr.f32.mxu0 %v30344_v50 }
  0x53   : > { %27026 = vmatprep.subr.bf16.mxu0 %v30296_v19 }
  0x55   : > { %23521 = vmatmul.mubr.f32.gmra.mrb[2].mxu0 %v30347_v51 }
  0x56   : > { %23523 = vmatprep.mubr.f32.mxu0 %v30356_v56  ;;  %27028 = vmatpush3.bf16.msra.mxu0 %v30296_v19 }
  0x57   : > { %27030 = vmatprep.subr.bf16.mxu0 %v27029_v33 }
  0x59   : > { %23524 = vmatmul.mubr.f32.gmra.mrb[4].mxu0 %v30370_v63 }
  0x5a   : > { %23526 = vmatprep.mubr.f32.mxu0 %v495_v4 }
  0x5d   : > { %23527 = vmatmul.mubr.f32.gmra.mrb[6].mxu0 %v505_v22 }
  0x5e   : > { %23537 = vmatprep.mubr.f32.mxu0 %v436_v53 }
  0x61   : > { %23538 = vmatmul.mubr.f32.vlgmr.msra.gmra.mrb[0].mxu0 %v446_v54 }
  0x62   : > { %27032 = vmatpush3.bf16.msra.mxu0 %v27029_v33  ;;  %23540 = vmatprep.mubr.f32.mxu0 %v456_v57 }
  0x63   : > { %27034 = vmatprep.subr.bf16.mxu0 %v27033_v11 }
  0x65   : > { %23541 = vmatmul.mubr.f32.gmra.mrb[2].mxu0 %v466_v58 }
  0x66   : > { %23543 = vmatprep.mubr.f32.mxu0 %v476_v0  ;;  %27036 = vmatpush3.bf16.msra.mxu0 %v27033_v11  ;;  %v21406_v0 = vld [vmem:[%s36602_s2] ss:$0 sm:$0xff] }
  0x67   : > { %27038 = vmatprep.subr.bf16.mxu0 %v30281_v10 }
  0x69   : > { %23544 = vmatmul.mubr.f32.gmra.mrb[4].mxu0 %v486_v8 }
  0x6a   : > { %23546 = vmatprep.mubr.f32.mxu0 %v496_v21 }
  0x6d   : > { %23547 = vmatmul.mubr.f32.gmra.mrb[6].mxu0 %v506_v27 }
  0x6e   : > { %23557 = vmatprep.mubr.f32.mxu0 %v30291_v15 }
  0x71   : > { %23558 = vmatmul.mubr.f32.vlgmr.msra.gmra.mrb[0].mxu0 %v30323_v37 }
  0x72   : > { %27040 = vmatpush3.bf16.msra.mxu0 %v30281_v10  ;;  %23560 = vmatprep.mubr.f32.mxu0 %v30328_v41  ;;  %v1151_v10 = vld [vmem:[%s36603_s3] sm:$0xff] }
  0x73   : > { %27042 = vmatprep.subr.bf16.mxu0 %v30296_v19  ;;  %v1187_v13 = vand.u32 4294901760, %v1151_v10 }
  0x75   : > { %23561 = vmatmul.mubr.f32.gmra.mrb[2].mxu0 %v30330_v42  ;;  %v1337_v34 = vsub.f32 %v1151_v10, %v1187_v13 }
  0x76   : > { %23563 = vmatprep.mubr.f32.mxu0 %v30339_v47  ;;  %27044 = vmatpush3.bf16.msra.mxu0 %v30296_v19  ;;  %v1193_v19 = vand.u32 4294901760, %v1153_v17 }
  0x77   : > { %v1338_v36 = vand.u32 4294901760, %v1337_v34  ;;  %v30466_v52 = vpack.c.bf16 %v1344_v35, %v1337_v34 }
  0x78   : > { %v30457_v23 = vpack.c.bf16 %v1196_v20, %v1193_v19  ;;  %v1351_v40 = vsub.f32 %v1153_v17, %v1193_v19 }
  0x79   : > { %23564 = vmatmul.mubr.f32.gmra.mrb[4].mxu0 %v30353_v55  ;;  %v1339_v38 = vsub.f32 %v1337_v34, %v1338_v36 }
  0x7a   : > { %23566 = vmatprep.mubr.f32.mxu0 %v30360_v59  ;;  %v1352_v44 = vand.u32 4294901760, %v1351_v40 }
  0x7d   : > { %23567 = vmatmul.mubr.f32.gmra.mrb[6].mxu0 %v30382_v7 }
  0x7e   : > { %23577 = vmatprep.mubr.f32.mxu0 %v30291_v15  ;;  %v30447_v15 = vpack.c.bf16 %v1190_v14, %v1187_v13 }
  0x80   : > { %27046 = vmatprep.subr.bf16.mxu1 %v30447_v15 }
  0x81   : > { %23578 = vmatmul.mubr.f32.vlgmr.msra.gmra.mrb[0].mxu0 %v30323_v37  ;;  %27048 = vmatpush3.bf16.msra.mxu1 %v30447_v15  ;;  %v1345_v37 = vand.u32 4294901760, %v1344_v35 }
  0x82   : > { %23580 = vmatprep.mubr.f32.mxu0 %v30328_v41  ;;  %27050 = vmatprep.subr.bf16.mxu1 %v30457_v23  ;;  %v1358_v41 = vsub.f32 %v1154_v18, %v1196_v20 }
  0x83   : > { %v1346_v39 = vsub.f32 %v1344_v35, %v1345_v37 }
  0x84   : > { %v1359_v45 = vand.u32 4294901760, %v1358_v41  ;;  %v30468_v53 = vpack.c.bf16 %v1358_v41, %v1351_v40 }
  0x85   : > { %23581 = vmatmul.mubr.f32.gmra.mrb[2].mxu0 %v30330_v42  ;;  %27052 = vmatpush3.bf16.msra.mxu1 %v30457_v23  ;;  %v1340_v42 = vand.u32 4294901760, %v1339_v38  ;;  %v1347_v43 = vand.u32 4294901760, %v1346_v39 }
  0x86   : > { %23583 = vmatprep.mubr.f32.mxu0 %v30339_v47  ;;  %v1353_v47 = vsub.f32 %v1351_v40, %v1352_v44  ;;  %v1360_v48 = vsub.f32 %v1358_v41, %v1359_v45  ;;  %v30472_v60 = vpack.c.bf16 %v1359_v45, %v1352_v44 }
  0x87   : > { %v30461_v46 = vpack.c.bf16 %v1347_v43, %v1340_v42 }
  0x88   : > { %v1354_v49 = vand.u32 4294901760, %v1353_v47  ;;  %v1361_v50 = vand.u32 4294901760, %v1360_v48 }
  0x89   : > { %23584 = vmatmul.mubr.f32.gmra.mrb[4].mxu0 %v30353_v55  ;;  %27054 = vmatprep.subr.bf16.mxu1 %v30461_v46  ;;  %v30470_v55 = vpack.c.bf16 %v1345_v37, %v1338_v36 }
  0x8a   : > { %23586 = vmatprep.mubr.f32.mxu0 %v30360_v59  ;;  %v30464_v51 = vpack.c.bf16 %v1361_v50, %v1354_v49 }
  0x8d   : > { %23587 = vmatmul.mubr.f32.gmra.mrb[6].mxu0 %v30382_v7 }
 0x113   : > { %v23479_v54 = vpop.f32.mrb[0].mxu1 }
 0x114   : > { %v440_v56 = vpop.f32.mrb[1].mxu1  ;;  %v451_v1 = vadd.f32 %v23479_v54, %v21406_v0 }
 0x115   : > { %v441_v2 = vadd.f32 %v21406_v0, %v440_v56 }
 0x117   : > { %v23482_v57 = vpop.f32.mrb[2].mxu1 }
 0x118   : > { %v460_v58 = vpop.f32.mrb[3].mxu1  ;;  %v471_v6 = vadd.f32 %v23482_v57, %v21406_v0 }
 0x119   : > { %v461_v8 = vadd.f32 %v21406_v0, %v460_v58 }
 0x11b   : > { %v23485_v59 = vpop.f32.mrb[4].mxu1 }
 0x11c   : > { %v480_v61 = vpop.f32.mrb[5].mxu1  ;;  %v491_v27 = vadd.f32 %v23485_v59, %v21406_v0 }
 0x11d   : > { %v481_v30 = vadd.f32 %v21406_v0, %v480_v61 }
 0x11f   : > { %v23488_v62 = vpop.f32.mrb[6].mxu1 }
 0x120   : > { %v500_v63 = vpop.f32.mrb[7].mxu1  ;;  %v511_v18 = vadd.f32 %v23488_v62, %v21406_v0 }
 0x121   : > { %v501_v36 = vadd.f32 %v21406_v0, %v500_v63 }
 0x154   : > { %v23579_v3 = vpop.f32.mrb[0].mxu0 }
 0x155   : > { %v30477_v4 = vadd.f32 %v23579_v3, %v451_v1  ;;  %v1105_v5 = vpop.f32.mrb[1].mxu0 }
 0x156   : > { %v30479_v7 = vadd.f32 %v1105_v5, %v441_v2 }
 0x157   : > { %36744 = vst [vmem:[#allocation5_spill] sm:$0xff] %v30477_v4  ;;  %v1166_v9 = vsel %vm340_vm0, %v30477_v4, 0 }
 0x158   : > { %36745 = vst [vmem:[#allocation6_spill] sm:$0xff] %v30479_v7  ;;  %v30483_v16 = vand.u32 4294901760, %v1166_v9  ;;  %v1163_v21 = vsel %vm340_vm0, %v30479_v7, 0  ;;  %v23582_v22 = vpop.f32.mrb[2].mxu0 }
 0x159   : > { %v30487_v24 = vand.u32 4294901760, %v1163_v21  ;;  %v30489_v25 = vadd.f32 %v23582_v22, %v471_v6  ;;  %v1117_v26 = vpop.f32.mrb[3].mxu0 }
 0x15a   : > { %v30492_v28 = vsub.f32 %v1166_v9, %v30483_v16  ;;  %v30494_v29 = vadd.f32 %v1117_v26, %v461_v8 }
 0x15b   : > { %36746 = vst [vmem:[#allocation7_spill] sm:$0xff] %v30489_v25  ;;  %v30497_v31 = vsub.f32 %v1163_v21, %v30487_v24  ;;  %v1172_v32 = vsel %vm340_vm0, %v30489_v25, 0 }
 0x15c   : > { %36747 = vst [vmem:[#allocation8_spill] sm:$0xff] %v30494_v29  ;;  %v1267_v33 = vand.u32 4294901760, %v30492_v28  ;;  %v30502_v11 = vand.u32 4294901760, %v1172_v32  ;;  %v1169_v10 = vsel %vm340_vm0, %v30494_v29, 0  ;;  %v23585_v12 = vpop.f32.mrb[4].mxu0 }
 0x15d   : > { %v30506_v13 = vand.u32 4294901760, %v1169_v10  ;;  %v30508_v14 = vadd.f32 %v23585_v12, %v491_v27  ;;  %v1129_v17 = vpop.f32.mrb[5].mxu0  ;;  %v1257_v19 = vand.u32 4294901760, %v30497_v31 }
 0x15e   : > { %v1268_v20 = vsub.f32 %v30492_v28, %v1267_v33  ;;  %v30515_v34 = vsub.f32 %v1172_v32, %v30502_v11  ;;  %v30517_v35 = vadd.f32 %v1129_v17, %v481_v30 }
 0x15f   : > { %36748 = vst [vmem:[#allocation9_spill] sm:$0xff] %v30508_v14  ;;  %v30520_v37 = vsub.f32 %v1169_v10, %v30506_v13  ;;  %v1178_v38 = vsel %vm340_vm0, %v30508_v14, 0  ;;  %v1258_v39 = vsub.f32 %v30497_v31, %v1257_v19 }
 0x160   : > { %36749 = vst [vmem:[#allocation10_spill] sm:$0xff] %v30517_v35  ;;  %v30527_v40 = vand.u32 4294901760, %v1178_v38  ;;  %v1175_v41 = vsel %vm340_vm0, %v30517_v35, 0  ;;  %v23588_v42 = vpop.f32.mrb[6].mxu0  ;;  %v1287_v43 = vand.u32 4294901760, %v30515_v34  ;;  %v1269_v50 = vand.u32 4294901760, %v1268_v20 }
 0x161   : > { %v30532_v44 = vand.u32 4294901760, %v1175_v41  ;;  %v30534_v45 = vadd.f32 %v23588_v42, %v511_v18  ;;  %v1141_v47 = vpop.f32.mrb[7].mxu0  ;;  %v1259_v48 = vand.u32 4294901760, %v1258_v39  ;;  %v1277_v49 = vand.u32 4294901760, %v30520_v37 }
 0x162   : > { %v30538_v54 = vsub.f32 %v1178_v38, %v30527_v40  ;;  %v30540_v56 = vadd.f32 %v1141_v47, %v501_v36  ;;  %v1288_v57 = vsub.f32 %v30515_v34, %v1287_v43 }
 0x163   : > { %36750 = vst [vmem:[#allocation11_spill] sm:$0xff] %v30534_v45  ;;  %v30546_v58 = vsub.f32 %v1175_v41, %v30532_v44  ;;  %v1184_v59 = vsel %vm340_vm0, %v30534_v45, 0  ;;  %23597 = vmatprep.mubr.f32.mxu1 %v1259_v48  ;;  %v1278_v61 = vsub.f32 %v30520_v37, %v1277_v49 }
 0x164   : > { %36751 = vst [vmem:[#allocation12_spill] sm:$0xff] %v30540_v56  ;;  %v30553_v62 = vand.u32 4294901760, %v1184_v59  ;;  %v1181_v63 = vsel %vm340_vm0, %v30540_v56, 0  ;;  %23598 = vmatmul.mubr.f32.vlgmr.msra.gmra.mrb[8].mxu1 %v1269_v50  ;;  %v1307_v0 = vand.u32 4294901760, %v30538_v54  ;;  %v1289_v6 = vand.u32 4294901760, %v1288_v57 }
 0x165   : > { %v30558_v1 = vand.u32 4294901760, %v1181_v63  ;;  %27056 = vmatpush3.bf16.msra.mxu1 %v30461_v46  ;;  %v1279_v2 = vand.u32 4294901760, %v1278_v61  ;;  %v1297_v3 = vand.u32 4294901760, %v30546_v58 }
 0x166   : > { %v1326_v5 = vsub.f32 %v1184_v59, %v30553_v62  ;;  %v1308_v8 = vsub.f32 %v30538_v54, %v1307_v0  ;;  %27058 = vmatprep.subr.bf16.mxu1 %v30464_v51 }
 0x167   : > { %v1316_v9 = vsub.f32 %v1181_v63, %v30558_v1  ;;  %23600 = vmatprep.mubr.f32.mxu1 %v1279_v2  ;;  %v1298_v21 = vsub.f32 %v30546_v58, %v1297_v3 }
 0x168   : > { %23601 = vmatmul.mubr.f32.gmra.mrb[10].mxu1 %v1289_v6  ;;  %v1327_v22 = vand.u32 4294901760, %v1326_v5  ;;  %v1309_v27 = vand.u32 4294901760, %v1308_v8 }
 0x169   : > { %v1299_v26 = vand.u32 4294901760, %v1298_v21  ;;  %27060 = vmatpush3.bf16.msra.mxu1 %v30464_v51  ;;  %v1317_v46 = vand.u32 4294901760, %v1316_v9 }
 0x16a   : > { %v1328_v30 = vsub.f32 %v1326_v5, %v1327_v22  ;;  %27062 = vmatprep.subr.bf16.mxu1 %v30466_v52 }
 0x16b   : > { %23603 = vmatprep.mubr.f32.mxu1 %v1299_v26  ;;  %v1318_v32 = vsub.f32 %v1316_v9, %v1317_v46 }
 0x16c   : > { %23604 = vmatmul.mubr.f32.gmra.mrb[12].mxu1 %v1309_v27  ;;  %v1329_v12 = vand.u32 4294901760, %v1328_v30 }
 0x16d   : > { %v1319_v10 = vand.u32 4294901760, %v1318_v32 }
 0x16f   : > { %23606 = vmatprep.mubr.f32.mxu1 %v1319_v10 }
 0x170   : > { %23607 = vmatmul.mubr.f32.gmra.mrb[14].mxu1 %v1329_v12 }
 0x171   : > { %23617 = vmatprep.mubr.f32.mxu1 %v30487_v24 }
 0x174   : > { %23618 = vmatmul.mubr.f32.vlgmr.msra.gmra.mrb[8].mxu1 %v30483_v16 }
 0x175   : > { %23620 = vmatprep.mubr.f32.mxu1 %v30506_v13  ;;  %27064 = vmatpush3.bf16.msra.mxu1 %v30466_v52 }
 0x176   : > { %27066 = vmatprep.subr.bf16.mxu1 %v30468_v53 }
 0x178   : > { %23621 = vmatmul.mubr.f32.gmra.mrb[10].mxu1 %v30502_v11 }
 0x179   : > { %23623 = vmatprep.mubr.f32.mxu1 %v30532_v44  ;;  %27068 = vmatpush3.bf16.msra.mxu1 %v30468_v53 }
 0x17a   : > { %27070 = vmatprep.subr.bf16.mxu1 %v30447_v15 }
 0x17c   : > { %23624 = vmatmul.mubr.f32.gmra.mrb[12].mxu1 %v30527_v40 }
 0x17d   : > { %23626 = vmatprep.mubr.f32.mxu1 %v30558_v1 }
 0x180   : > { %23627 = vmatmul.mubr.f32.gmra.mrb[14].mxu1 %v30553_v62 }
 0x181   : > { %23637 = vmatprep.mubr.f32.mxu1 %v30497_v31 }
 0x184   : > { %23638 = vmatmul.mubr.f32.vlgmr.msra.gmra.mrb[8].mxu1 %v30492_v28 }
 0x185   : > { %23640 = vmatprep.mubr.f32.mxu1 %v30520_v37  ;;  %27072 = vmatpush3.bf16.msra.mxu1 %v30447_v15 }
 0x186   : > { %27074 = vmatprep.subr.bf16.mxu1 %v30457_v23 }
 0x188   : > { %23641 = vmatmul.mubr.f32.gmra.mrb[10].mxu1 %v30515_v34 }
 0x189   : > { %23643 = vmatprep.mubr.f32.mxu1 %v30546_v58  ;;  %27076 = vmatpush3.bf16.msra.mxu1 %v30457_v23 }
 0x18a   : > { %27078 = vmatprep.subr.bf16.mxu1 %v30470_v55 }
 0x18c   : > { %23644 = vmatmul.mubr.f32.gmra.mrb[12].mxu1 %v30538_v54 }
 0x18d   : > { %23646 = vmatprep.mubr.f32.mxu1 %v1316_v9 }
 0x190   : > { %23647 = vmatmul.mubr.f32.gmra.mrb[14].mxu1 %v1326_v5 }
 0x191   : > { %23657 = vmatprep.mubr.f32.mxu1 %v1257_v19 }
 0x194   : > { %23658 = vmatmul.mubr.f32.vlgmr.msra.gmra.mrb[8].mxu1 %v1267_v33 }
 0x195   : > { %23660 = vmatprep.mubr.f32.mxu1 %v1277_v49  ;;  %27080 = vmatpush3.bf16.msra.mxu1 %v30470_v55 }
 0x196   : > { %27082 = vmatprep.subr.bf16.mxu1 %v30472_v60 }
 0x198   : > { %23661 = vmatmul.mubr.f32.gmra.mrb[10].mxu1 %v1287_v43 }
 0x199   : > { %23663 = vmatprep.mubr.f32.mxu1 %v1297_v3  ;;  %27084 = vmatpush3.bf16.msra.mxu1 %v30472_v60 }
 0x19a   : > { %27086 = vmatprep.subr.bf16.mxu1 %v30447_v15 }
 0x19c   : > { %23664 = vmatmul.mubr.f32.gmra.mrb[12].mxu1 %v1307_v0 }
 0x19d   : > { %23666 = vmatprep.mubr.f32.mxu1 %v1317_v46 }
 0x1a0   : > { %23667 = vmatmul.mubr.f32.gmra.mrb[14].mxu1 %v1327_v22 }
 0x1a1   : > { %23677 = vmatprep.mubr.f32.mxu1 %v30487_v24 }
 0x1a4   : > { %23678 = vmatmul.mubr.f32.vlgmr.msra.gmra.mrb[8].mxu1 %v30483_v16 }
 0x1a5   : > { %23680 = vmatprep.mubr.f32.mxu1 %v30506_v13  ;;  %27088 = vmatpush3.bf16.msra.mxu1 %v30447_v15  ;;  %v21407_v15 = vld [vmem:[%s36604_s4] ss:$0 sm:$0xff] }
 0x1a6   : > { %27090 = vmatprep.subr.bf16.mxu1 %v30457_v23 }
 0x1a8   : > { %23681 = vmatmul.mubr.f32.gmra.mrb[10].mxu1 %v30502_v11 }
 0x1a9   : > { %23683 = vmatprep.mubr.f32.mxu1 %v30532_v44  ;;  %27092 = vmatpush3.bf16.msra.mxu1 %v30457_v23 }
 0x1ac   : > { %23684 = vmatmul.mubr.f32.gmra.mrb[12].mxu1 %v30527_v40 }
 0x1ad   : > { %23686 = vmatprep.mubr.f32.mxu1 %v30558_v1 }
 0x1b0   : > { %23687 = vmatmul.mubr.f32.gmra.mrb[14].mxu1 %v30553_v62 }
 0x1b1   : > { %23697 = vmatprep.mubr.f32.mxu1 %v30487_v24 }
 0x1b4   : > { %23698 = vmatmul.mubr.f32.vlgmr.msra.gmra.mrb[8].mxu1 %v30483_v16 }
 0x1b5   : > { %23700 = vmatprep.mubr.f32.mxu1 %v30506_v13 }
 0x1b8   : > { %23701 = vmatmul.mubr.f32.gmra.mrb[10].mxu1 %v30502_v11 }
 0x1b9   : > { %23703 = vmatprep.mubr.f32.mxu1 %v30532_v44 }
 0x1bc   : > { %23704 = vmatmul.mubr.f32.gmra.mrb[12].mxu1 %v30527_v40 }
 0x1bd   : > { %23706 = vmatprep.mubr.f32.mxu1 %v30558_v1 }
 0x1c0   : > { %23707 = vmatmul.mubr.f32.gmra.mrb[14].mxu1 %v30553_v62 }
 0x287   : > { %v23699_v23 = vpop.f32.mrb[8].mxu1 }
 0x288   : > { %v1926_v51 = vpop.f32.mrb[9].mxu1  ;;  %v30633_v24 = vadd.f32 %v23699_v23, %v21407_v15 }
 0x289   : > { %v30625_v52 = vadd.f32 %v21407_v15, %v1926_v51 }
 0x28b   : > { %v23702_v53 = vpop.f32.mrb[10].mxu1  ;;  %1980 = vrot.lane.b32.xlu0 %v30625_v52, %s30163_s19  ;;  %v1997_v55 = vsel %vm1996_vm1, %v30625_v52, 0 }
 0x28c   : > { %v1938_v60 = vpop.f32.mrb[11].mxu1  ;;  %v30631_v16 = vand.u32 4294901760, %v1997_v55  ;;  %v30646_v17 = vadd.f32 %v23702_v53, %v21407_v15 }
 0x28d   : > { %v30635_v28 = vadd.f32 %v21407_v15, %v1938_v60 }
 0x28e   : > { %23753 = vmatprep.mubr.f32.mxu0 %v30631_v16  ;;  %v30639_v31 = vsub.f32 %v1997_v55, %v30631_v16 }
 0x28f   : > { %v23705_v33 = vpop.f32.mrb[12].mxu1  ;;  %1984 = vrot.lane.b32.xlu1 %v30635_v28, %s30163_s19  ;;  %1982 = vrot.lane.b32.xlu0 %v30633_v24, %s30163_s19 }
 0x290   : > { %v1950_v11 = vpop.f32.mrb[13].mxu1  ;;  %v2104_v13 = vand.u32 4294901760, %v30639_v31  ;;  %v30657_v37 = vadd.f32 %v23705_v33, %v21407_v15 }
 0x291   : > { %v30648_v18 = vadd.f32 %v21407_v15, %v1950_v11 }
 0x292   : > { %v2105_v19 = vsub.f32 %v30639_v31, %v2104_v13 }
 0x293   : > { %v23708_v20 = vpop.f32.mrb[14].mxu1  ;;  %1986 = vrot.lane.b32.xlu1 %v30646_v17, %s30163_s19  ;;  %1988 = vrot.lane.b32.xlu0 %v30648_v18, %s30163_s19 }
 0x294   : > { %v1962_v34 = vpop.f32.mrb[15].mxu1  ;;  %v2106_v36 = vand.u32 4294901760, %v2105_v19  ;;  %v30665_v39 = vadd.f32 %v23708_v20, %v21407_v15 }
 0x295   : > { %v30659_v38 = vadd.f32 %v21407_v15, %v1962_v34 }
 0x296   : > { %23725 = vmatprep.mubr.f32.mxu1 %v2106_v36  ;;  %36753 = vst [vmem:[#allocation14_spill] sm:$0xff] %v30665_v39 }
 0x297   : > { %36752 = vst [vmem:[#allocation13_spill] sm:$0xff] %v30659_v38  ;;  %1990 = vrot.lane.b32.xlu1 %v30657_v37, %s30163_s19  ;;  %1992 = vrot.lane.b32.xlu0 %v30659_v38, %s30163_s19 }
 0x29b   : > { %1994 = vrot.lane.b32.xlu1 %v30665_v39, %s30163_s19 }
 0x2fd   : > { %v1981_v40 = vpop.permute.xlu0 %1980 }
 0x2fe   : > { %v2013_v41 = vsel %vm1996_vm1, %v1981_v40, 0 }
 0x2ff   : > { %v2030_v42 = vand.u32 4294901760, %v2013_v41 }
 0x301   : > { %v30670_v43 = vsub.f32 %v2013_v41, %v2030_v42  ;;  %v1985_v44 = vpop.permute.xlu1 %1984  ;;  %v1983_v47 = vpop.permute.xlu0 %1982 }
 0x302   : > { %v2017_v48 = vsel %vm1996_vm1, %v1985_v44, 0  ;;  %v2015_v49 = vsel %vm1996_vm1, %v1983_v47, 0 }
 0x303   : > { %v2036_v50 = vand.u32 4294901760, %v2017_v48  ;;  %v2033_v54 = vand.u32 4294901760, %v2015_v49  ;;  %v2185_v57 = vand.u32 4294901760, %v30670_v43 }
 0x305   : > { %v30675_v58 = vsub.f32 %v2017_v48, %v2036_v50  ;;  %v30677_v59 = vpack.c.bf16 %v2033_v54, %v2030_v42  ;;  %v30679_v61 = vsub.f32 %v2015_v49, %v2033_v54  ;;  %v1987_v62 = vpop.permute.xlu1 %1986  ;;  %v1989_v63 = vpop.permute.xlu0 %1988  ;;  %v2186_v8 = vsub.f32 %v30670_v43, %v2185_v57 }
 0x306   : > { %v2019_v0 = vsel %vm1996_vm1, %v1987_v62, 0  ;;  %v2021_v1 = vsel %vm1996_vm1, %v1989_v63, 0  ;;  %v1999_v54 = vsel %vm1996_vm1, %v30633_v24, 0  ;;  %v2001_v63 = vsel %vm1996_vm1, %v30635_v28, 0 }
 0x307   : > { %v2199_v2 = vand.u32 4294901760, %v30675_v58  ;;  %v2192_v3 = vand.u32 4294901760, %v30679_v61  ;;  %v2039_v5 = vand.u32 4294901760, %v2019_v0  ;;  %v2042_v6 = vand.u32 4294901760, %v2021_v1  ;;  %27094 = vmatprep.subr.bf16.mxu1 %v30677_v59 }
 0x308   : > { %27096 = vmatpush3.bf16.xpose.msra.mxu1 %v30677_v59  ;;  %v2187_v53 = vand.u32 4294901760, %v2186_v8 }
 0x309   : > { %v30688_v9 = vpack.c.bf16 %v2039_v5, %v2036_v50  ;;  %v30690_v21 = vsub.f32 %v2019_v0, %v2039_v5  ;;  %v30692_v22 = vsub.f32 %v2021_v1, %v2042_v6  ;;  %v1991_v26 = vpop.permute.xlu1 %1990  ;;  %v1993_v46 = vpop.permute.xlu0 %1992  ;;  %v2193_v27 = vsub.f32 %v30679_v61, %v2192_v3 }
 0x30a   : > { %v2023_v30 = vsel %vm1996_vm1, %v1991_v26, 0  ;;  %v2025_v32 = vsel %vm1996_vm1, %v1993_v46, 0  ;;  %v2200_v10 = vsub.f32 %v30675_v58, %v2199_v2  ;;  %v30698_v12 = vpack.c.bf16 %v2192_v3, %v2185_v57 }
 0x30b   : > { %v2206_v15 = vand.u32 4294901760, %v30690_v21  ;;  %v2045_v23 = vand.u32 4294901760, %v2023_v30  ;;  %v2048_v51 = vand.u32 4294901760, %v2025_v32  ;;  %27098 = vmatprep.subr.bf16.mxu1 %v30688_v9  ;;  %v2194_v55 = vand.u32 4294901760, %v2193_v27 }
 0x30c   : > { %v2213_v60 = vand.u32 4294901760, %v30692_v22  ;;  %v2201_v19 = vand.u32 4294901760, %v2200_v10  ;;  %v30728_v5 = vand.u32 4294901760, %v1999_v54  ;;  %v2003_v46 = vsel %vm1996_vm1, %v30646_v17, 0 }
 0x30d   : > { %v30703_v33 = vsub.f32 %v2023_v30, %v2045_v23  ;;  %v1995_v11 = vpop.permute.xlu1 %1994  ;;  %v2207_v20 = vsub.f32 %v30690_v21, %v2206_v15  ;;  %v30706_v34 = vpack.c.bf16 %v2045_v23, %v2042_v6  ;;  %v27109_v40 = vpack.c.bf16 %v2194_v55, %v2187_v53 }
 0x30e   : > { %v2027_v36 = vsel %vm1996_vm1, %v1995_v11, 0  ;;  %v30709_v41 = vpack.c.bf16 %v2206_v15, %v2199_v2  ;;  %v30712_v44 = vsub.f32 %v2025_v32, %v2048_v51  ;;  %v2214_v57 = vsub.f32 %v30692_v22, %v2213_v60 }
 0x30f   : > { %v2220_v42 = vand.u32 4294901760, %v30703_v33  ;;  %v2051_v47 = vand.u32 4294901760, %v2027_v36  ;;  %v2208_v48 = vand.u32 4294901760, %v2207_v20  ;;  %27110 = vmatprep.subr.bf16.mxu0 %v27109_v40  ;;  %v30730_v6 = vand.u32 4294901760, %v2001_v63 }
 0x310   : > { %27100 = vmatpush3.bf16.xpose.msra.mxu1 %v30688_v9  ;;  %27112 = vmatpush3.bf16.xpose.msra.mxu0 %v27109_v40  ;;  %v2227_v1 = vand.u32 4294901760, %v30712_v44  ;;  %v2215_v26 = vand.u32 4294901760, %v2214_v57  ;;  %v2005_v30 = vsel %vm1996_vm1, %v30648_v18, 0  ;;  %v30744_v15 = vsub.f32 %v1999_v54, %v30728_v5 }
 0x311   : > { %v30715_v49 = vsub.f32 %v2027_v36, %v2051_v47  ;;  %27102 = vmatprep.subr.bf16.mxu1 %v30706_v34  ;;  %v27113_v50 = vpack.c.bf16 %v2208_v48, %v2201_v19  ;;  %v2221_v62 = vsub.f32 %v30703_v33, %v2220_v42  ;;  %v30724_v0 = vpack.c.bf16 %v2220_v42, %v2213_v60 }
 0x312   : > { %v30736_v27 = vpack.c.bf16 %v2051_v47, %v2048_v51  ;;  %v30747_v23 = vsub.f32 %v2001_v63, %v30730_v6  ;;  %v30749_v53 = vand.u32 4294901760, %v2003_v46  ;;  %v2228_v51 = vsub.f32 %v30712_v44, %v2227_v1 }
 0x313   : > { %v2234_v2 = vand.u32 4294901760, %v30715_v49  ;;  %27114 = vmatprep.subr.bf16.mxu0 %v27113_v50  ;;  %v2222_v3 = vand.u32 4294901760, %v2221_v62  ;;  %v30752_v55 = vand.u32 4294901760, %v2005_v30  ;;  %v2007_v60 = vsel %vm1996_vm1, %v30657_v37, 0 }
 0x314   : > { %v2009_v11 = vsel %vm1996_vm1, %v30659_v38, 0  ;;  %v2114_v20 = vand.u32 4294901760, %v30744_v15  ;;  %v36612_v36 = vand.u32 4294901760, %v30747_v23  ;;  %v30761_v40 = vsub.f32 %v2003_v46, %v30749_v53 }
 0x315   : > { %v30732_v8 = vpack.c.bf16 %v2234_v2, %v2227_v1  ;;  %v27117_v32 = vpack.c.bf16 %v2222_v3, %v2215_v26  ;;  %v2235_v10 = vsub.f32 %v30715_v49, %v2234_v2  ;;  %v30763_v42 = vand.u32 4294901760, %v2007_v60 }
 0x316   : > { %v2229_v47 = vand.u32 4294901760, %v2228_v51  ;;  %v30766_v48 = vsub.f32 %v2005_v30, %v30752_v55  ;;  %v2011_v54 = vsel %vm1996_vm1, %v30665_v39, 0  ;;  %v2115_v62 = vsub.f32 %v30744_v15, %v2114_v20 }
 0x317   : > { %v2236_v19 = vand.u32 4294901760, %v2235_v10  ;;  %v36611_v63 = vand.u32 4294901760, %v30761_v40  ;;  %v30778_v1 = vsub.f32 %v2007_v60, %v30763_v42  ;;  %v30780_v2 = vand.u32 4294901760, %v2011_v54 }
 0x318   : > { %27104 = vmatpush3.bf16.xpose.msra.mxu1 %v30706_v34  ;;  %27116 = vmatpush3.bf16.xpose.msra.mxu0 %v27113_v50  ;;  %v30768_v50 = vand.u32 4294901760, %v2009_v11  ;;  %v2125_v3 = vsub.f32 %v30747_v23, %v36612_v36  ;;  %v36613_v26 = vand.u32 4294901760, %v30766_v48  ;;  %v2116_v30 = vand.u32 4294901760, %v2115_v62 }
 0x319   : > { %27106 = vmatprep.subr.bf16.mxu1 %v30736_v27  ;;  %27118 = vmatprep.subr.bf16.mxu0 %v27117_v32  ;;  %v27121_v57 = vpack.c.bf16 %v2236_v19, %v2229_v47  ;;  %v2154_v10 = vand.u32 4294901760, %v30778_v1  ;;  %v30794_v51 = vsub.f32 %v2011_v54, %v30780_v2 }
 0x31a   : > { %v30787_v46 = vsub.f32 %v2009_v11, %v30768_v50  ;;  %v2126_v60 = vand.u32 4294901760, %v2125_v3  ;;  %v2145_v19 = vsub.f32 %v30766_v48, %v36613_v26  ;;  %v27125_v11 = vpack.c.bf16 %v30679_v61, %v30670_v43 }
 0x31b   : > { %v2174_v54 = vand.u32 4294901760, %v30794_v51  ;;  %v27129_v43 = vpack.c.bf16 %v30690_v21, %v30675_v58  ;;  %v27137_v58 = vpack.c.bf16 %v30715_v49, %v30712_v44  ;;  %v36754_v21 = vand.u32 4294901760, %v30747_v23 }
 0x31c   : > { %v2164_v47 = vand.u32 4294901760, %v30787_v46  ;;  %v2146_v3 = vand.u32 4294901760, %v2145_v19 }
 0x31e   : > { %v2165_v36 = vsub.f32 %v30787_v46, %v2164_v47 }
 0x320   : > { %27108 = vmatpush3.bf16.xpose.msra.mxu1 %v30736_v27  ;;  %27120 = vmatpush3.bf16.xpose.msra.mxu0 %v27117_v32  ;;  %v2135_v32 = vsub.f32 %v30761_v40, %v36611_v63  ;;  %v2155_v63 = vsub.f32 %v30778_v1, %v2154_v10 }
 0x321   : > { %27122 = vmatprep.subr.bf16.mxu0 %v27121_v57 }
 0x322   : > { %v2136_v62 = vand.u32 4294901760, %v2135_v32  ;;  %v2156_v26 = vand.u32 4294901760, %v2155_v63 }
 0x327   : > { %23726 = vmatmul.mubr.f32.vlgmr.msra.gmra.mrb[16].mxu1 %v2116_v30  ;;  %v2175_v30 = vsub.f32 %v30794_v51, %v2174_v54 }
 0x328   : > { %23728 = vmatprep.mubr.f32.mxu1 %v2126_v60  ;;  %27124 = vmatpush3.bf16.xpose.msra.mxu0 %v27121_v57  ;;  %v2166_v60 = vand.u32 4294901760, %v2165_v36  ;;  %v27133_v36 = vpack.c.bf16 %v30703_v33, %v30692_v22 }
 0x329   : > { %27126 = vmatprep.subr.bf16.mxu0 %v27125_v11  ;;  %v2176_v61 = vand.u32 4294901760, %v2175_v30 }
 0x32b   : > { %23729 = vmatmul.mubr.f32.gmra.mrb[18].mxu1 %v2136_v62 }
 0x32c   : > { %23731 = vmatprep.mubr.f32.mxu1 %v2146_v3 }
 0x32f   : > { %23732 = vmatmul.mubr.f32.gmra.mrb[20].mxu1 %v2156_v26  ;;  %23754 = vmatmul.mubr.f32.vlgmr.msra.gmra.mrb[8].mxu0 %v30728_v5 }
 0x330   : > { %23734 = vmatprep.mubr.f32.mxu1 %v2166_v60  ;;  %23756 = vmatprep.mubr.f32.mxu0 %v30730_v6 }
 0x331   : > { %27128 = vmatpush3.bf16.xpose.msra.mxu0 %v27125_v11 }
 0x332   : > { %27130 = vmatprep.subr.bf16.mxu0 %v27129_v43 }
 0x333   : > { %23735 = vmatmul.mubr.f32.gmra.mrb[22].mxu1 %v2176_v61  ;;  %23757 = vmatmul.mubr.f32.gmra.mrb[10].mxu0 %v30749_v53 }
 0x334   : > { %23759 = vmatprep.mubr.f32.mxu0 %v30752_v55 }
 0x337   : > { %23760 = vmatmul.mubr.f32.gmra.mrb[12].mxu0 %v30763_v42 }
 0x338   : > { %23762 = vmatprep.mubr.f32.mxu0 %v30768_v50 }
 0x339   : > { %27132 = vmatpush3.bf16.xpose.msra.mxu0 %v27129_v43 }
 0x33a   : > { %27134 = vmatprep.subr.bf16.mxu0 %v27133_v36 }
 0x33b   : > { %23763 = vmatmul.mubr.f32.gmra.mrb[14].mxu0 %v30780_v2 }
 0x33c   : > { %23781 = vmatprep.mubr.f32.mxu0 %v30639_v31  ;;  %v36755_v31 = vand.u32 4294901760, %v30761_v40 }
 0x341   : > { %27136 = vmatpush3.bf16.xpose.msra.mxu0 %v27133_v36 }
 0x342   : > { %27138 = vmatprep.subr.bf16.mxu0 %v27137_v58 }
 0x349   : > { %27140 = vmatpush3.bf16.xpose.msra.mxu0 %v27137_v58 }
 0x34a   : > { %27142 = vmatprep.subr.bf16.mxu0 %v30677_v59 }
 0x350   : > { %23782 = vmatmul.mubr.f32.vlgmr.msra.gmra.mrb[8].mxu0 %v30744_v15 }
 0x351   : > { %23784 = vmatprep.mubr.f32.mxu0 %v30747_v23  ;;  %27144 = vmatpush3.bf16.xpose.msra.mxu0 %v30677_v59 }
 0x352   : > { %27146 = vmatprep.subr.bf16.mxu0 %v30688_v9 }
 0x354   : > { %23785 = vmatmul.mubr.f32.gmra.mrb[10].mxu0 %v30761_v40 }
 0x355   : > { %23787 = vmatprep.mubr.f32.mxu0 %v30766_v48 }
 0x358   : > { %23788 = vmatmul.mubr.f32.gmra.mrb[12].mxu0 %v30778_v1 }
 0x359   : > { %23790 = vmatprep.mubr.f32.mxu0 %v30787_v46  ;;  %27148 = vmatpush3.bf16.xpose.msra.mxu0 %v30688_v9 }
 0x35a   : > { %27150 = vmatprep.subr.bf16.mxu0 %v30706_v34 }
 0x35c   : > { %23791 = vmatmul.mubr.f32.gmra.mrb[14].mxu0 %v30794_v51 }
 0x35d   : > { %23809 = vmatprep.mubr.f32.mxu0 %v2104_v13  ;;  %v36756_v13 = vand.u32 4294901760, %v30766_v48 }
 0x361   : > { %27152 = vmatpush3.bf16.xpose.msra.mxu0 %v30706_v34 }
 0x362   : > { %27154 = vmatprep.subr.bf16.mxu0 %v30736_v27 }
 0x369   : > { %27156 = vmatpush3.bf16.xpose.msra.mxu0 %v30736_v27 }
 0x36a   : > { %27158 = vmatprep.subr.bf16.mxu0 %v30698_v12 }
 0x370   : > { %23810 = vmatmul.mubr.f32.vlgmr.msra.gmra.mrb[8].mxu0 %v2114_v20 }
 0x371   : > { %23812 = vmatprep.mubr.f32.mxu0 %v36754_v21  ;;  %27160 = vmatpush3.bf16.xpose.msra.mxu0 %v30698_v12 }
 0x372   : > { %27162 = vmatprep.subr.bf16.mxu0 %v30709_v41 }
 0x374   : > { %23813 = vmatmul.mubr.f32.gmra.mrb[10].mxu0 %v36755_v31 }
 0x375   : > { %23815 = vmatprep.mubr.f32.mxu0 %v36756_v13 }
 0x378   : > { %23816 = vmatmul.mubr.f32.gmra.mrb[12].mxu0 %v2154_v10 }
 0x379   : > { %23818 = vmatprep.mubr.f32.mxu0 %v2164_v47  ;;  %27164 = vmatpush3.bf16.xpose.msra.mxu0 %v30709_v41 }
 0x37a   : > { %27166 = vmatprep.subr.bf16.mxu0 %v30724_v0 }
 0x37c   : > { %23819 = vmatmul.mubr.f32.gmra.mrb[14].mxu0 %v2174_v54 }
 0x37d   : > { %23837 = vmatprep.mubr.f32.mxu0 %v30631_v16 }
 0x381   : > { %27168 = vmatpush3.bf16.xpose.msra.mxu0 %v30724_v0 }
 0x382   : > { %27170 = vmatprep.subr.bf16.mxu0 %v30732_v8 }
 0x389   : > { %27172 = vmatpush3.bf16.xpose.msra.mxu0 %v30732_v8 }
 0x38a   : > { %27174 = vmatprep.subr.bf16.mxu0 %v30677_v59 }
 0x390   : > { %23838 = vmatmul.mubr.f32.vlgmr.msra.gmra.mrb[8].mxu0 %v30728_v5 }
 0x391   : > { %23840 = vmatprep.mubr.f32.mxu0 %v30730_v6  ;;  %27176 = vmatpush3.bf16.xpose.msra.mxu0 %v30677_v59 }
 0x392   : > { %27178 = vmatprep.subr.bf16.mxu0 %v30688_v9 }
 0x394   : > { %23841 = vmatmul.mubr.f32.gmra.mrb[10].mxu0 %v30749_v53 }
 0x395   : > { %23843 = vmatprep.mubr.f32.mxu0 %v30752_v55 }
 0x398   : > { %23844 = vmatmul.mubr.f32.gmra.mrb[12].mxu0 %v30763_v42 }
 0x399   : > { %23846 = vmatprep.mubr.f32.mxu0 %v30768_v50  ;;  %27180 = vmatpush3.bf16.xpose.msra.mxu0 %v30688_v9 }
 0x39a   : > { %27182 = vmatprep.subr.bf16.mxu0 %v30706_v34 }
 0x39c   : > { %23847 = vmatmul.mubr.f32.gmra.mrb[14].mxu0 %v30780_v2 }
 0x39d   : > { %23865 = vmatprep.mubr.f32.mxu0 %v30631_v16 }
 0x3a1   : > { %27184 = vmatpush3.bf16.xpose.msra.mxu0 %v30706_v34 }
 0x3a2   : > { %27186 = vmatprep.subr.bf16.mxu0 %v30736_v27 }
 0x3a9   : > { %27188 = vmatpush3.bf16.xpose.msra.mxu0 %v30736_v27 }
 0x3b0   : > { %23866 = vmatmul.mubr.f32.vlgmr.msra.gmra.mrb[8].mxu0 %v30728_v5 }
 0x3b1   : > { %23868 = vmatprep.mubr.f32.mxu0 %v30730_v6 }
 0x3b4   : > { %23869 = vmatmul.mubr.f32.gmra.mrb[10].mxu0 %v30749_v53 }
 0x3b5   : > { %23871 = vmatprep.mubr.f32.mxu0 %v30752_v55 }
 0x3b8   : > { %23872 = vmatmul.mubr.f32.gmra.mrb[12].mxu0 %v30763_v42 }
 0x3b9   : > { %23874 = vmatprep.mubr.f32.mxu0 %v30768_v50 }
 0x3bc   : > { %23875 = vmatmul.mubr.f32.gmra.mrb[14].mxu0 %v30780_v2 }
 0x3fa   : > { %v23727_v16 = vpop.f32.mrb[16].mxu1 }
 0x3fb   : > { %v2108_v59 = vpop.f32.mrb[17].mxu1 }
 0x3fe   : > { %v23730_v9 = vpop.f32.mrb[18].mxu1 }
 0x3ff   : > { %v2128_v22 = vpop.f32.mrb[19].mxu1 }
 0x402   : > { %v23733_v12 = vpop.f32.mrb[20].mxu1 }
 0x403   : > { %v2148_v33 = vpop.f32.mrb[21].mxu1 }
 0x406   : > { %v23736_v34 = vpop.f32.mrb[22].mxu1 }
 0x407   : > { %v2168_v41 = vpop.f32.mrb[23].mxu1 }
 0x483   : > { %v23867_v44 = vpop.f32.mrb[8].mxu0 }
 0x484   : > { %v28893_v49 = vadd.f32 %v23867_v44, %v23727_v16  ;;  %v2821_v0 = vpop.f32.mrb[9].mxu0 }
 0x485   : > { %v28894_v5 = vadd.f32 %v2821_v0, %v2108_v59 }
 0x486   : > { %v2871_v6 = vsel %vm2867_vm2, %v28893_v49, -inf }
 0x487   : > { %v23870_v8 = vpop.f32.mrb[10].mxu0  ;;  %2872 = vmax.xlane.f32.xlu1 %v2871_v6  ;;  %v2868_v27 = vsel %vm2867_vm2, %v28894_v5, -inf }
 0x488   : > { %v28895_v15 = vadd.f32 %v23870_v8, %v23730_v9  ;;  %v2833_v23 = vpop.f32.mrb[11].mxu0  ;;  %2869 = vmax.xlane.f32.xlu0 %v2868_v27 }
 0x489   : > { %v28896_v53 = vadd.f32 %v2833_v23, %v2128_v22 }
 0x48a   : > { %v2877_v57 = vsel %vm2867_vm2, %v28895_v15, -inf }
 0x48b   : > { %v23873_v55 = vpop.f32.mrb[12].mxu0  ;;  %v2874_v20 = vsel %vm2867_vm2, %v28896_v53, -inf }
 0x48c   : > { %v28897_v40 = vadd.f32 %v23873_v55, %v23733_v12  ;;  %v2845_v42 = vpop.f32.mrb[13].mxu0  ;;  %2875 = vmax.xlane.f32.xlu0 %v2874_v20 }
 0x48d   : > { %v28898_v48 = vadd.f32 %v2845_v42, %v2148_v33 }
 0x48e   : > { %v2883_v46 = vsel %vm2867_vm2, %v28897_v40, -inf }
 0x48f   : > { %v23876_v50 = vpop.f32.mrb[14].mxu0  ;;  %v2880_v63 = vsel %vm2867_vm2, %v28898_v48, -inf }
 0x490   : > { %v28899_v1 = vadd.f32 %v23876_v50, %v23736_v34  ;;  %v2857_v2 = vpop.f32.mrb[15].mxu0  ;;  %2878 = vmax.xlane.f32.xlu0 %v2877_v57  ;;  %2881 = vmax.xlane.f32.xlu1 %v2880_v63 }
 0x491   : > { %v30886_v26 = vadd.f32 %v2857_v2, %v2168_v41 }
 0x492   : > { %v2889_v32 = vsel %vm2867_vm2, %v28899_v1, -inf }
 0x493   : > { %v2886_v10 = vsel %vm2867_vm2, %v30886_v26, -inf }
 0x494   : > { %2884 = vmax.xlane.f32.xlu0 %v2883_v46 }
 0x498   : > { %2890 = vmax.xlane.f32.xlu0 %v2889_v32 }
 0x4a1   : > { %2956 = vrot.lane.b32.xlu1 %v30625_v52, %s30164_s20 }
 0x4ae   : > { %2958 = vrot.lane.b32.xlu0 %v30633_v24, %s30164_s20 }
 0x4b2   : > { %2964 = vrot.lane.b32.xlu0 %v30648_v18, %s30164_s20 }
 0x4c5   : > { %2887 = vmax.xlane.f32.xlu1 %v2886_v10 }
 0x4d6   : > { %2960 = vrot.lane.b32.xlu1 %v30635_v28, %s30164_s20 }
 0x4da   : > { %2962 = vrot.lane.b32.xlu1 %v30646_v17, %s30164_s20 }
 0x4de   : > { %2966 = vrot.lane.b32.xlu1 %v30657_v37, %s30164_s20 }
 0x514   : > { %v2873_v51 = vpop.xlane.xlu1 %2872 }
 0x515   : > { %v2893_v19 = vsub.f32 %v28893_v49, %v2873_v51  ;;  %v2870_v47 = vpop.xlane.xlu0 %2869 }
 0x516   : > { %v2892_v11 = vsub.f32 %v28894_v5, %v2870_v47 }
 0x517   : > { %v2902_v62 = vmul.f32 1.442695, %v2893_v19 }
 0x518   : > { %v2900_v54 = vmul.f32 1.442695, %v2892_v11 }
 0x519   : > { %29864 = vpow2.f32 %v2902_v62  ;;  %v2876_v3 = vpop.xlane.xlu0 %2875 }
 0x51a   : > { %29866 = vpow2.f32 %v2900_v54  ;;  %v2894_v30 = vsub.f32 %v28896_v53, %v2876_v3 }
 0x51c   : > { %v2904_v60 = vmul.f32 1.442695, %v2894_v30 }
 0x51d   : > { %v2879_v43 = vpop.xlane.xlu0 %2878  ;;  %v2882_v61 = vpop.xlane.xlu1 %2881 }
 0x51e   : > { %29868 = vpow2.f32 %v2904_v60  ;;  %v2895_v36 = vsub.f32 %v28895_v15, %v2879_v43  ;;  %v2896_v58 = vsub.f32 %v28898_v48, %v2882_v61 }
 0x520   : > { %v2906_v21 = vmul.f32 1.442695, %v2895_v36  ;;  %v2908_v31 = vmul.f32 1.442695, %v2896_v58 }
 0x521   : > { %v2885_v13 = vpop.xlane.xlu0 %2884  ;;  %v2957_v16 = vpop.permute.xlu1 %2956 }
 0x522   : > { %29870 = vpow2.f32 %v2906_v21  ;;  %v2897_v59 = vsub.f32 %v28897_v40, %v2885_v13  ;;  %v3005_v9 = vand.u32 4294901760, %v2957_v16 }
 0x523   : > { %v30904_v22 = vpop.eup %29864  ;;  %29872 = vpow2.f32 %v2908_v31 }
 0x524   : > { %v30906_v12 = vpop.eup %29866  ;;  %v2910_v33 = vmul.f32 1.442695, %v2897_v59  ;;  %v2919_v34 = vsel %vm2867_vm2, %v30904_v22, 0.0  ;;  %v3159_v49 = vsub.f32 %v2957_v16, %v3005_v9 }
 0x525   : > { %2920 = vadd.xlane.f32.xlu0 %v2919_v34  ;;  %v2891_v41 = vpop.xlane.xlu0 %2890  ;;  %v2916_v44 = vsel %vm2867_vm2, %v30906_v12, 0.0 }
 0x526   : > { %29874 = vpow2.f32 %v2910_v33  ;;  %v2899_v0 = vsub.f32 %v28899_v1, %v2891_v41  ;;  %2917 = vadd.xlane.f32.xlu1 %v2916_v44  ;;  %v3160_v15 = vand.u32 4294901760, %v3159_v49 }
 0x528   : > { %v30912_v5 = vpop.eup %29868  ;;  %v2914_v6 = vmul.f32 1.442695, %v2899_v0  ;;  %v3161_v57 = vsub.f32 %v3159_v49, %v3160_v15 }
 0x529   : > { %v2959_v8 = vpop.permute.xlu0 %2958  ;;  %v2922_v27 = vsel %vm2867_vm2, %v30912_v5, 0.0 }
 0x52a   : > { %29876 = vpow2.f32 %v2914_v6  ;;  %v3008_v23 = vand.u32 4294901760, %v2959_v8  ;;  %2923 = vadd.xlane.f32.xlu1 %v2922_v27  ;;  %v3162_v10 = vand.u32 4294901760, %v3161_v57 }
 0x52c   : > { %v30916_v53 = vpop.eup %29870  ;;  %v30918_v55 = vpack.c.bf16 %v3008_v23, %v3005_v9  ;;  %v3166_v20 = vsub.f32 %v2959_v8, %v3008_v23 }
 0x52d   : > { %v30920_v40 = vpop.eup %29872  ;;  %v2925_v42 = vsel %vm2867_vm2, %v30916_v53, 0.0  ;;  %v2965_v54 = vpop.permute.xlu0 %2964 }
 0x52e   : > { %v3167_v48 = vand.u32 4294901760, %v3166_v20  ;;  %2926 = vadd.xlane.f32.xlu0 %v2925_v42  ;;  %27190 = vmatprep.subr.bf16.mxu1 %v30918_v55  ;;  %v2928_v50 = vsel %vm2867_vm2, %v30920_v40, 0.0  ;;  %v30927_v63 = vpack.c.bf16 %v3166_v20, %v3159_v49  ;;  %v3017_v60 = vand.u32 4294901760, %v2965_v54 }
 0x52f   : > { %2929 = vadd.xlane.f32.xlu1 %v2928_v50  ;;  %27192 = vmatpush3.bf16.msra.mxu1 %v30918_v55 }
 0x530   : > { %v30930_v1 = vpop.eup %29874  ;;  %v3168_v2 = vsub.f32 %v3166_v20, %v3167_v48  ;;  %v30932_v46 = vpack.c.bf16 %v3167_v48, %v3160_v15  ;;  %v3187_v58 = vsub.f32 %v2965_v54, %v3017_v60 }
 0x531   : > { %v2931_v32 = vsel %vm2867_vm2, %v30930_v1, 0.0 }
 0x532   : > { %2932 = vadd.xlane.f32.xlu0 %v2931_v32  ;;  %v3169_v51 = vand.u32 4294901760, %v3168_v2  ;;  %v3188_v59 = vand.u32 4294901760, %v3187_v58 }
 0x534   : > { %v30936_v19 = vpop.eup %29876  ;;  %v30938_v47 = vpack.c.bf16 %v3169_v51, %v3162_v10  ;;  %v3189_v23 = vsub.f32 %v3187_v58, %v3188_v59 }
 0x535   : > { %v2937_v11 = vsel %vm2867_vm2, %v30936_v19, 0.0 }
 0x536   : > { %2938 = vadd.xlane.f32.xlu0 %v2937_v11  ;;  %v3190_v10 = vand.u32 4294901760, %v3189_v23 }
 0x54c   : > { %2968 = vrot.lane.b32.xlu0 %v30659_v38, %s30164_s20 }
 0x550   : > { %3858 = vrot.lane.b32.xlu0 %v30625_v52, %s30165_s21 }
 0x552   : > { %v2888_v62 = vpop.xlane.xlu1 %2887 }
 0x553   : > { %v2898_v3 = vsub.f32 %v30886_v26, %v2888_v62 }
 0x554   : > { %3862 = vrot.lane.b32.xlu0 %v30635_v28, %s30165_s21 }
 0x555   : > { %v2912_v30 = vmul.f32 1.442695, %v2898_v3 }
 0x556   : > { %v2961_v43 = vpop.permute.xlu1 %2960 }
 0x557   : > { %29878 = vpow2.f32 %v2912_v30  ;;  %v3011_v61 = vand.u32 4294901760, %v2961_v43 }
 0x558   : > { %3866 = vrot.lane.b32.xlu0 %v30648_v18, %s30165_s21 }
 0x559   : > { %v3173_v36 = vsub.f32 %v2961_v43, %v3011_v61 }
 0x55a   : > { %v2963_v21 = vpop.permute.xlu1 %2962 }
 0x55b   : > { %v3174_v31 = vand.u32 4294901760, %v3173_v36  ;;  %v3014_v13 = vand.u32 4294901760, %v2963_v21 }
 0x55c   : > { %3870 = vrot.lane.b32.xlu0 %v30659_v38, %s30165_s21 }
 0x55d   : > { %v30953_v26 = vpack.c.bf16 %v3014_v13, %v3011_v61  ;;  %v3180_v16 = vsub.f32 %v2963_v21, %v3014_v13  ;;  %v3175_v41 = vsub.f32 %v3173_v36, %v3174_v31 }
 0x55e   : > { %v2967_v9 = vpop.permute.xlu1 %2966 }
 0x55f   : > { %v3181_v33 = vand.u32 4294901760, %v3180_v16  ;;  %v3020_v34 = vand.u32 4294901760, %v2967_v9  ;;  %27194 = vmatprep.subr.bf16.mxu1 %v30953_v26  ;;  %v30956_v44 = vpack.c.bf16 %v3180_v16, %v3173_v36  ;;  %v3176_v42 = vand.u32 4294901760, %v3175_v41 }
 0x560   : > { %3842 = vrot.lane.b32.xlu0 %v30625_v52, %s30166_s22  ;;  %27196 = vmatpush3.bf16.msra.mxu1 %v30953_v26 }
 0x561   : > { %v30961_v49 = vpop.eup %29878  ;;  %v30963_v0 = vpack.c.bf16 %v3020_v34, %v3017_v60  ;;  %v3194_v6 = vsub.f32 %v2967_v9, %v3020_v34  ;;  %v3182_v8 = vsub.f32 %v3180_v16, %v3181_v33  ;;  %v30965_v27 = vpack.c.bf16 %v3181_v33, %v3174_v31 }
 0x562   : > { %v2934_v15 = vsel %vm2867_vm2, %v30961_v49, 0.0 }
 0x563   : > { %v3195_v20 = vand.u32 4294901760, %v3194_v6  ;;  %2935 = vadd.xlane.f32.xlu1 %v2934_v15  ;;  %27198 = vmatprep.subr.bf16.mxu1 %v30963_v0  ;;  %v3183_v48 = vand.u32 4294901760, %v3182_v8  ;;  %v30970_v50 = vpack.c.bf16 %v3194_v6, %v3187_v58 }
 0x564   : > { %3846 = vrot.lane.b32.xlu0 %v30635_v28, %s30166_s22  ;;  %27200 = vmatpush3.bf16.msra.mxu1 %v30963_v0 }
 0x565   : > { %v30975_v57 = vpack.c.bf16 %v3183_v48, %v3176_v42  ;;  %v3196_v2 = vsub.f32 %v3194_v6, %v3195_v20  ;;  %v30977_v32 = vpack.c.bf16 %v3195_v20, %v3188_v59 }
 0x567   : > { %v3197_v51 = vand.u32 4294901760, %v3196_v2 }
 0x568   : > { %3850 = vrot.lane.b32.xlu0 %v30648_v18, %s30166_s22 }
 0x569   : > { %v30981_v11 = vpack.c.bf16 %v3197_v51, %v3190_v10 }
 0x56c   : > { %3854 = vrot.lane.b32.xlu0 %v30659_v38, %s30166_s22 }
 0x574   : > { %2970 = vrot.lane.b32.xlu1 %v30665_v39, %s30164_s20 }
 0x578   : > { %3860 = vrot.lane.b32.xlu1 %v30633_v24, %s30165_s21 }
 0x57c   : > { %3864 = vrot.lane.b32.xlu1 %v30646_v17, %s30165_s21 }
 0x580   : > { %3868 = vrot.lane.b32.xlu1 %v30657_v37, %s30165_s21 }
 0x584   : > { %3872 = vrot.lane.b32.xlu1 %v30665_v39, %s30165_s21 }
 0x588   : > { %3844 = vrot.lane.b32.xlu1 %v30633_v24, %s30166_s22 }
 0x58c   : > { %3848 = vrot.lane.b32.xlu1 %v30646_v17, %s30166_s22 }
 0x590   : > { %3852 = vrot.lane.b32.xlu1 %v30657_v37, %s30166_s22 }
 0x594   : > { %3856 = vrot.lane.b32.xlu1 %v30665_v39, %s30166_s22 }
 0x5b2   : > { %v2921_v21 = vpop.xlane.xlu0 %2920 }
 0x5b3   : > { %v2918_v62 = vpop.xlane.xlu1 %2917 }
 0x5b4   : > { %29880 = vrcp.f32 %v2918_v62 }
 0x5b5   : > { %29882 = vrcp.f32 %v2921_v21 }
 0x5b7   : > { %v2924_v31 = vpop.xlane.xlu1 %2923 }
 0x5b8   : > { %29884 = vrcp.f32 %v2924_v31 }
 0x5bb   : > { %v2927_v13 = vpop.xlane.xlu0 %2926 }
 0x5bc   : > { %29886 = vrcp.f32 %v2927_v13 }
 0x5be   : > { %v29881_v54 = vpop.eup %29880 }
 0x5bf   : > { %v2941_v3 = vmul.f32 %v29881_v54, %v30906_v12  ;;  %v2930_v12 = vpop.xlane.xlu1 %2929  ;;  %v2933_v16 = vpop.xlane.xlu0 %2932 }
 0x5c0   : > { %29888 = vrcp.f32 %v2930_v12  ;;  %v29883_v9 = vpop.eup %29882 }
 0x5c1   : > { %v2981_v30 = vsel %vm2867_vm2, %v2941_v3, 0  ;;  %29890 = vrcp.f32 %v2933_v16  ;;  %v2943_v41 = vmul.f32 %v29883_v9, %v30904_v22 }
 0x5c2   : > { %v31005_v60 = vand.u32 4294901760, %v2981_v30  ;;  %v29885_v33 = vpop.eup %29884 }
 0x5c3   : > { %v2939_v59 = vpop.xlane.xlu0 %2938  ;;  %v2945_v6 = vmul.f32 %v29885_v33, %v30912_v5  ;;  %v2984_v20 = vsel %vm2867_vm2, %v2943_v41, 0 }
 0x5c4   : > { %v31008_v43 = vsub.f32 %v2981_v30, %v31005_v60  ;;  %29892 = vrcp.f32 %v2939_v59  ;;  %v31020_v10 = vand.u32 4294901760, %v2984_v20 }
 0x5c5   : > { %v2987_v42 = vsel %vm2867_vm2, %v2945_v6, 0 }
 0x5c6   : > { %v36617_v61 = vand.u32 4294901760, %v31008_v43  ;;  %v29887_v34 = vpop.eup %29886  ;;  %v31022_v62 = vand.u32 4294901760, %v2987_v42  ;;  %v31030_v30 = vsub.f32 %v2984_v20, %v31020_v10 }
 0x5c7   : > { %v2969_v8 = vpop.permute.xlu0 %2968  ;;  %v2947_v23 = vmul.f32 %v29887_v34, %v30916_v53 }
 0x5c8   : > { %v3080_v36 = vsub.f32 %v31008_v43, %v36617_v61  ;;  %v36614_v9 = vand.u32 4294901760, %v31030_v30 }
 0x5c9   : > { %v2990_v22 = vsel %vm2867_vm2, %v2947_v23, 0 }
 0x5ca   : > { %v3081_v58 = vand.u32 4294901760, %v3080_v36  ;;  %v29889_v15 = vpop.eup %29888  ;;  %v31027_v3 = vand.u32 4294901760, %v2990_v22  ;;  %v3023_v36 = vand.u32 4294901760, %v2969_v8 }
 0x5cb   : > { %v2949_v48 = vmul.f32 %v29889_v15, %v30920_v40  ;;  %v29891_v2 = vpop.eup %29890  ;;  %v3859_v51 = vpop.permute.xlu0 %3858  ;;  %v31033_v40 = vsub.f32 %v2987_v42, %v31022_v62 }
 0x5cc   : > { %23893 = vmatprep.mubr.f32.mxu1 %v3081_v58  ;;  %v2951_v54 = vmul.f32 %v29891_v2, %v30930_v1  ;;  %v31039_v12 = vsub.f32 %v2990_v22, %v31027_v3  ;;  %v31042_v16 = vsub.f32 %v2969_v8, %v3023_v36  ;;  %v31045_v59 = vsel %vm1996_vm1, %v3859_v51, 0 }
 0x5cd   : > { %v2993_v5 = vsel %vm2867_vm2, %v2949_v48, 0  ;;  %v36615_v33 = vand.u32 4294901760, %v31033_v40  ;;  %v36616_v15 = vand.u32 4294901760, %v31045_v59  ;;  %v3090_v2 = vsub.f32 %v31030_v30, %v36614_v9 }
 0x5ce   : > { %v29893_v53 = vpop.eup %29892  ;;  %v31035_v58 = vand.u32 4294901760, %v2993_v5  ;;  %v2996_v13 = vsel %vm2867_vm2, %v2951_v54, 0  ;;  %v36623_v20 = vand.u32 4294901760, %v31042_v16 }
 0x5cf   : > { %v3863_v21 = vpop.permute.xlu0 %3862  ;;  %v2955_v1 = vmul.f32 %v29893_v53, %v30936_v19  ;;  %v31052_v41 = vand.u32 4294901760, %v2996_v13  ;;  %v36618_v19 = vand.u32 4294901760, %v31039_v12  ;;  %v3100_v51 = vsub.f32 %v31033_v40, %v36615_v33 }
 0x5d0   : > { %v31050_v34 = vsub.f32 %v2993_v5, %v31035_v58  ;;  %v31059_v42 = vsel %vm1996_vm1, %v3863_v21, 0  ;;  %v3091_v33 = vand.u32 4294901760, %v3090_v2 }
 0x5d1   : > { %v3002_v8 = vsel %vm2867_vm2, %v2955_v1, 0  ;;  %v31073_v53 = vsub.f32 %v2996_v13, %v31052_v41  ;;  %v31080_v1 = vsub.f32 %v31045_v59, %v36616_v15  ;;  %v3110_v13 = vsub.f32 %v31039_v12, %v36618_v19 }
 0x5d2   : > { %v36621_v54 = vand.u32 4294901760, %v31050_v34  ;;  %v3101_v61 = vand.u32 4294901760, %v3100_v51  ;;  %v3203_v19 = vsub.f32 %v31042_v16, %v36623_v20 }
 0x5d3   : > { %v3867_v48 = vpop.permute.xlu0 %3866  ;;  %v36630_v9 = vand.u32 4294901760, %v31080_v1 }
 0x5d4   : > { %v3204_v4 = vand.u32 4294901760, %v3203_v19 }
 0x5f0   : > { %v2936_v31 = vpop.xlane.xlu1 %2935 }
 0x5f1   : > { %29894 = vrcp.f32 %v2936_v31  ;;  %v31075_v31 = vand.u32 4294901760, %v3002_v8 }
 0x5f4   : > { %v2971_v6 = vpop.permute.xlu1 %2970 }
 0x5f5   : > { %v3026_v23 = vand.u32 4294901760, %v2971_v6 }
 0x5f7   : > { %v31067_v22 = vpack.c.bf16 %v3026_v23, %v3023_v36  ;;  %v31069_v5 = vsub.f32 %v2971_v6, %v3026_v23  ;;  %v31102_v6 = vsel %vm1996_vm1, %v3867_v48, 0  ;;  %v3871_v23 = vpop.permute.xlu0 %3870  ;;  %v3111_v48 = vand.u32 4294901760, %v3110_v13 }
 0x5f8   : > { %v3861_v21 = vpop.permute.xlu1 %3860  ;;  %v31131_v13 = vsel %vm1996_vm1, %v3871_v23, 0 }
 0x5f9   : > { %v31084_v36 = vsel %vm1996_vm1, %v3861_v21, 0  ;;  %27202 = vmatprep.subr.bf16.mxu1 %v31067_v22  ;;  %v3120_v21 = vsub.f32 %v31050_v34, %v36621_v54  ;;  %v31111_v54 = vsub.f32 %v3002_v8, %v31075_v31  ;;  %v36758_v20 = vand.u32 4294901760, %v31069_v5 }
 0x5fa   : > { %27204 = vmatpush3.bf16.msra.mxu1 %v31067_v22  ;;  %v36757_v2 = vand.u32 4294901760, %v31084_v36  ;;  %v36763_v39 = vand.u32 4294901760, %v31131_v13 }
 0x5fb   : > { %v29895_v15 = vpop.eup %29894  ;;  %27206 = vmatprep.subr.bf16.mxu1 %v30938_v47  ;;  %v3210_v14 = vsub.f32 %v31069_v5, %v36758_v20  ;;  %v36760_v20 = vand.u32 4294901760, %v31073_v53 }
 0x5fc   : > { %v31107_v56 = vsub.f32 %v31084_v36, %v36757_v2  ;;  %v3865_v51 = vpop.permute.xlu1 %3864  ;;  %v2953_v45 = vmul.f32 %v29895_v15, %v30961_v49  ;;  %v36759_v2 = vand.u32 4294901760, %v31059_v42  ;;  %v31192_v38 = vsub.f32 %v31131_v13, %v36763_v39 }
 0x5fd   : > { %v31115_v35 = vsel %vm1996_vm1, %v3865_v51, 0  ;;  %23894 = vmatmul.mubr.f32.vlgmr.msra.gmra.mrb[24].mxu1 %v3091_v33  ;;  %v3130_v51 = vsub.f32 %v31073_v53, %v36760_v20  ;;  %v3211_v20 = vand.u32 4294901760, %v3210_v14 }
 0x5fe   : > { %v31123_v29 = vsub.f32 %v31059_v42, %v36759_v2  ;;  %v36631_v49 = vand.u32 4294901760, %v31107_v56  ;;  %v36628_v15 = vand.u32 4294901760, %v31115_v35  ;;  %23896 = vmatprep.mubr.f32.mxu1 %v3101_v61  ;;  %27208 = vmatpush3.bf16.msra.mxu1 %v30938_v47  ;;  %v2999_v8 = vsel %vm2867_vm2, %v2953_v45, 0 }
 0x5ff   : > { %27210 = vmatprep.subr.bf16.mxu1 %v30975_v57  ;;  %v31137_v2 = vand.u32 4294901760, %v2999_v8  ;;  %v3121_v45 = vand.u32 4294901760, %v3120_v21  ;;  %v3131_v14 = vand.u32 4294901760, %v3130_v51 }
 0x600   : > { %v31142_v61 = vsub.f32 %v31115_v35, %v36628_v15  ;;  %v3869_v47 = vpop.permute.xlu1 %3868  ;;  %v31149_v23 = vpack.c.bf16 %v36631_v49, %v36630_v9  ;;  %v36637_v9 = vand.u32 4294901760, %v31123_v29 }
 0x601   : > { %v31152_v25 = vsel %vm1996_vm1, %v3869_v47, 0  ;;  %23897 = vmatmul.mubr.f32.gmra.mrb[26].mxu1 %v3111_v48  ;;  %v31155_v7 = vsub.f32 %v2999_v8, %v31137_v2  ;;  %v36761_v47 = vand.u32 4294901760, %v31102_v6 }
 0x602   : > { %v36638_v21 = vand.u32 4294901760, %v31142_v61  ;;  %v36632_v33 = vand.u32 4294901760, %v31152_v25  ;;  %23899 = vmatprep.mubr.f32.mxu1 %v3121_v45  ;;  %27212 = vmatpush3.bf16.msra.mxu1 %v30975_v57  ;;  %v36762_v57 = vand.u32 4294901760, %v31111_v54 }
 0x603   : > { %v31165_v48 = vsub.f32 %v31102_v6, %v36761_v47  ;;  %27214 = vmatprep.subr.bf16.mxu1 %v30981_v11  ;;  %v3139_v8 = vand.u32 4294901760, %v31155_v7  ;;  %v27217_v47 = vpack.c.bf16 %v3211_v20, %v3204_v4 }
 0x604   : > { %v31172_v49 = vsub.f32 %v31152_v25, %v36632_v33  ;;  %v3873_v45 = vpop.permute.xlu1 %3872  ;;  %v3150_v19 = vsub.f32 %v31111_v54, %v36762_v57  ;;  %v31187_v33 = vpack.c.bf16 %v36638_v21, %v36637_v9  ;;  %v4104_v21 = vand.u32 4294901760, %v31192_v38 }
 0x605   : > { %v31178_v15 = vsel %vm1996_vm1, %v3873_v45, 0  ;;  %23900 = vmatmul.mubr.f32.gmra.mrb[28].mxu1 %v3131_v14  ;;  %v3140_v51 = vsub.f32 %v31155_v7, %v3139_v8  ;;  %v4090_v4 = vand.u32 4294901760, %v31165_v48 }
 0x606   : > { %v4097_v45 = vand.u32 4294901760, %v31172_v49  ;;  %v3928_v14 = vand.u32 4294901760, %v31178_v15  ;;  %27216 = vmatpush3.bf16.msra.mxu1 %v30981_v11  ;;  %v3151_v9 = vand.u32 4294901760, %v3150_v19 }
 0x607   : > { %27218 = vmatprep.subr.bf16.mxu1 %v27217_v47  ;;  %v3141_v20 = vand.u32 4294901760, %v3140_v51 }
 0x608   : > { %v31201_v57 = vsub.f32 %v31178_v15, %v3928_v14  ;;  %v31207_v39 = vpack.c.bf16 %v4097_v45, %v4090_v4 }
 0x609   : > { %23902 = vmatprep.mubr.f32.mxu1 %v3141_v20  ;;  %v36779_v20 = vand.u32 4294901760, %v31131_v13  ;;  %v36781_v13 = vand.u32 4294901760, %v31080_v1 }
 0x60a   : > { %v4111_v11 = vand.u32 4294901760, %v31201_v57  ;;  %23903 = vmatmul.mubr.f32.gmra.mrb[30].mxu1 %v3151_v9  ;;  %v27233_v9 = vpack.c.bf16 %v31069_v5, %v31042_v16 }
 0x60b   : > { %27220 = vmatpush3.bf16.msra.mxu1 %v27217_v47  ;;  %23921 = vmatprep.mubr.f32.mxu1 %v31005_v60  ;;  %v36767_v47 = vand.u32 4294901760, %v31039_v12  ;;  %v4063_v15 = vsub.f32 %v31080_v1, %v36781_v13 }
 0x60c   : > { %27222 = vmatprep.subr.bf16.mxu1 %v30927_v63  ;;  %v31217_v19 = vpack.c.bf16 %v4111_v11, %v4104_v21 }
 0x60e   : > { %23922 = vmatmul.mubr.f32.vlgmr.msra.gmra.mrb[24].mxu1 %v31020_v10 }
 0x60f   : > { %27224 = vmatpush3.bf16.msra.mxu1 %v30927_v63  ;;  %23924 = vmatprep.mubr.f32.mxu1 %v31022_v62  ;;  %v36764_v63 = vand.u32 4294901760, %v31008_v43 }
 0x610   : > { %27226 = vmatprep.subr.bf16.mxu1 %v30956_v44 }
 0x612   : > { %23925 = vmatmul.mubr.f32.gmra.mrb[26].mxu1 %v31027_v3 }
 0x613   : > { %27228 = vmatpush3.bf16.msra.mxu1 %v30956_v44  ;;  %23927 = vmatprep.mubr.f32.mxu1 %v31035_v58  ;;  %v36765_v44 = vand.u32 4294901760, %v31030_v30 }
 0x614   : > { %27230 = vmatprep.subr.bf16.mxu1 %v30970_v50 }
 0x616   : > { %23928 = vmatmul.mubr.f32.gmra.mrb[28].mxu1 %v31052_v41 }
 0x617   : > { %27232 = vmatpush3.bf16.msra.mxu1 %v30970_v50  ;;  %23930 = vmatprep.mubr.f32.mxu1 %v31137_v2  ;;  %v36766_v50 = vand.u32 4294901760, %v31033_v40 }
 0x618   : > { %27234 = vmatprep.subr.bf16.mxu1 %v27233_v9 }
 0x61a   : > { %23931 = vmatmul.mubr.f32.gmra.mrb[30].mxu1 %v31075_v31 }
 0x61b   : > { %27236 = vmatpush3.bf16.msra.mxu1 %v27233_v9  ;;  %23949 = vmatprep.mubr.f32.mxu1 %v31008_v43  ;;  %v36768_v43 = vand.u32 4294901760, %v31050_v34  ;;  %v31344_v9 = vpack.c.bf16 %v3928_v14, %v36779_v20 }
 0x61c   : > { %27238 = vmatprep.subr.bf16.mxu1 %v30918_v55 }
 0x61e   : > { %23950 = vmatmul.mubr.f32.vlgmr.msra.gmra.mrb[24].mxu1 %v31030_v30  ;;  %v36769_v30 = vand.u32 4294901760, %v31073_v53 }
 0x61f   : > { %27240 = vmatpush3.bf16.msra.mxu1 %v30918_v55  ;;  %23952 = vmatprep.mubr.f32.mxu1 %v31033_v40  ;;  %v36771_v40 = vand.u32 4294901760, %v31069_v5  ;;  %v36776_v5 = vand.u32 4294901760, %v31115_v35  ;;  %v36777_v35 = vand.u32 4294901760, %v31102_v6 }
 0x620   : > { %27242 = vmatprep.subr.bf16.mxu1 %v30953_v26 }
 0x622   : > { %23953 = vmatmul.mubr.f32.gmra.mrb[26].mxu1 %v31039_v12  ;;  %v36773_v12 = vand.u32 4294901760, %v31045_v59 }
 0x623   : > { %27244 = vmatpush3.bf16.msra.mxu1 %v30953_v26  ;;  %23955 = vmatprep.mubr.f32.mxu1 %v31050_v34  ;;  %v36775_v34 = vand.u32 4294901760, %v31059_v42 }
 0x624   : > { %27246 = vmatprep.subr.bf16.mxu1 %v30963_v0 }
 0x626   : > { %23956 = vmatmul.mubr.f32.gmra.mrb[28].mxu1 %v31073_v53 }
 0x627   : > { %27248 = vmatpush3.bf16.msra.mxu1 %v30963_v0  ;;  %23958 = vmatprep.mubr.f32.mxu1 %v31155_v7  ;;  %v3843_v7 = vpop.permute.xlu0 %3842 }
 0x628   : > { %27250 = vmatprep.subr.bf16.mxu1 %v31067_v22 }
 0x62a   : > { %23959 = vmatmul.mubr.f32.gmra.mrb[30].mxu1 %v31111_v54 }
 0x62b   : > { %27252 = vmatpush3.bf16.msra.mxu1 %v31067_v22  ;;  %23977 = vmatprep.mubr.f32.mxu1 %v36764_v63  ;;  %v36780_v63 = vand.u32 4294901760, %v31107_v56 }
 0x62c   : > { %27254 = vmatprep.subr.bf16.mxu1 %v30932_v46 }
 0x62e   : > { %23978 = vmatmul.mubr.f32.vlgmr.msra.gmra.mrb[24].mxu1 %v36765_v44  ;;  %v4070_v44 = vsub.f32 %v31107_v56, %v36780_v63 }
 0x62f   : > { %27256 = vmatpush3.bf16.msra.mxu1 %v30932_v46  ;;  %23980 = vmatprep.mubr.f32.mxu1 %v36766_v50  ;;  %v36770_v46 = vand.u32 4294901760, %v31042_v16 }
 0x630   : > { %27258 = vmatprep.subr.bf16.mxu1 %v30965_v27 }
 0x631   : > { %v27265_v51 = vpack.c.bf16 %v36771_v40, %v36770_v46 }
 0x632   : > { %23981 = vmatmul.mubr.f32.gmra.mrb[26].mxu1 %v36767_v47 }
 0x633   : > { %27260 = vmatpush3.bf16.msra.mxu1 %v30965_v27  ;;  %23983 = vmatprep.mubr.f32.mxu1 %v36768_v43  ;;  %v36772_v27 = vand.u32 4294901760, %v31111_v54 }
 0x634   : > { %27262 = vmatprep.subr.bf16.mxu1 %v30977_v32 }
 0x636   : > { %23984 = vmatmul.mubr.f32.gmra.mrb[28].mxu1 %v36769_v30 }
 0x637   : > { %27264 = vmatpush3.bf16.msra.mxu1 %v30977_v32  ;;  %23986 = vmatprep.mubr.f32.mxu1 %v3139_v8  ;;  %v3874_v32 = vsel %vm1996_vm1, %v3843_v7, 0 }
 0x638   : > { %27266 = vmatprep.subr.bf16.mxu1 %v27265_v51 }
 0x63a   : > { %23987 = vmatmul.mubr.f32.gmra.mrb[30].mxu1 %v36772_v27  ;;  %v4071_v27 = vand.u32 4294901760, %v4070_v44 }
 0x63b   : > { %27268 = vmatpush3.bf16.msra.mxu1 %v27265_v51  ;;  %24005 = vmatprep.mubr.f32.mxu1 %v31005_v60 }
 0x63c   : > { %27270 = vmatprep.subr.bf16.mxu1 %v30918_v55 }
 0x63e   : > { %24006 = vmatmul.mubr.f32.vlgmr.msra.gmra.mrb[24].mxu1 %v31020_v10 }
 0x63f   : > { %27272 = vmatpush3.bf16.msra.mxu1 %v30918_v55  ;;  %24008 = vmatprep.mubr.f32.mxu1 %v31022_v62  ;;  %v31290_v55 = vand.u32 4294901760, %v3874_v32 }
 0x640   : > { %27274 = vmatprep.subr.bf16.mxu1 %v30953_v26 }
 0x642   : > { %24009 = vmatmul.mubr.f32.gmra.mrb[26].mxu1 %v31027_v3 }
 0x643   : > { %27276 = vmatpush3.bf16.msra.mxu1 %v30953_v26  ;;  %24011 = vmatprep.mubr.f32.mxu1 %v31035_v58  ;;  %v36774_v26 = vand.u32 4294901760, %v31084_v36 }
 0x644   : > { %27278 = vmatprep.subr.bf16.mxu1 %v30963_v0 }
 0x645   : > { %v31296_v16 = vpack.c.bf16 %v36774_v26, %v36773_v12  ;;  %v4064_v26 = vand.u32 4294901760, %v4063_v15 }
 0x646   : > { %24012 = vmatmul.mubr.f32.gmra.mrb[28].mxu1 %v31052_v41 }
 0x647   : > { %27280 = vmatpush3.bf16.msra.mxu1 %v30963_v0  ;;  %24014 = vmatprep.mubr.f32.mxu1 %v31137_v2  ;;  %v31303_v0 = vsub.f32 %v3874_v32, %v31290_v55 }
 0x648   : > { %27282 = vmatprep.subr.bf16.mxu1 %v31067_v22 }
 0x649   : > { %v3981_v59 = vand.u32 4294901760, %v31303_v0 }
 0x64a   : > { %24015 = vmatmul.mubr.f32.gmra.mrb[30].mxu1 %v31075_v31 }
 0x64b   : > { %27284 = vmatpush3.bf16.msra.mxu1 %v31067_v22  ;;  %24033 = vmatprep.mubr.f32.mxu1 %v31005_v60  ;;  %v31313_v22 = vpack.c.bf16 %v36776_v5, %v36775_v34  ;;  %v3845_v60 = vpop.permute.xlu1 %3844 }
 0x64c   : > { %27286 = vmatprep.subr.bf16.mxu1 %v31296_v16 }
 0x64e   : > { %24034 = vmatmul.mubr.f32.vlgmr.msra.gmra.mrb[24].mxu1 %v31020_v10  ;;  %v3982_v10 = vsub.f32 %v31303_v0, %v3981_v59 }
 0x64f   : > { %24036 = vmatprep.mubr.f32.mxu1 %v31022_v62  ;;  %v3847_v62 = vpop.permute.xlu0 %3846  ;;  %v3849_v54 = vpop.permute.xlu1 %3848 }
 0x650   : > { %v3878_v36 = vsel %vm1996_vm1, %v3847_v62, 0  ;;  %v27301_v62 = vpack.c.bf16 %v4071_v27, %v4064_v26 }
 0x651   : > { %v31336_v8 = vand.u32 4294901760, %v3878_v36 }
 0x652   : > { %24037 = vmatmul.mubr.f32.gmra.mrb[26].mxu1 %v31027_v3  ;;  %v3983_v3 = vand.u32 4294901760, %v3982_v10 }
 0x653   : > { %24039 = vmatprep.mubr.f32.mxu1 %v31035_v58  ;;  %v36778_v58 = vand.u32 4294901760, %v31152_v25  ;;  %v3851_v53 = vpop.permute.xlu0 %3850  ;;  %v3880_v25 = vsel %vm1996_vm1, %v3849_v54, 0  ;;  %v31360_v14 = vsub.f32 %v3878_v36, %v31336_v8 }
 0x654   : > { %27288 = vmatpush3.bf16.xpose.msra.mxu1 %v31296_v16  ;;  %v3882_v6 = vsel %vm1996_vm1, %v3851_v53, 0  ;;  %v31353_v43 = vand.u32 4294901760, %v3880_v25 }
 0x655   : > { %27290 = vmatprep.subr.bf16.mxu1 %v31313_v22  ;;  %v31328_v42 = vpack.c.bf16 %v36778_v58, %v36777_v35  ;;  %v31362_v30 = vand.u32 4294901760, %v3882_v6  ;;  %v4001_v10 = vand.u32 4294901760, %v31360_v14  ;;  %v36783_v58 = vand.u32 4294901760, %v31123_v29 }
 0x656   : > { %24040 = vmatmul.mubr.f32.gmra.mrb[28].mxu1 %v31052_v41  ;;  %v3876_v41 = vsel %vm1996_vm1, %v3845_v60, 0  ;;  %v31368_v32 = vsub.f32 %v3880_v25, %v31353_v43 }
 0x657   : > { %24042 = vmatprep.mubr.f32.mxu1 %v31137_v2  ;;  %v31334_v2 = vand.u32 4294901760, %v3876_v41  ;;  %v3855_v50 = vpop.permute.xlu0 %3854  ;;  %v31373_v34 = vsub.f32 %v3882_v6, %v31362_v30  ;;  %v4077_v54 = vsub.f32 %v31123_v29, %v36783_v58  ;;  %v4002_v6 = vsub.f32 %v31360_v14, %v4001_v10 }
 0x658   : > { %v3886_v40 = vsel %vm1996_vm1, %v3855_v50, 0  ;;  %v4091_v58 = vsub.f32 %v31165_v48, %v4090_v4  ;;  %v4112_v4 = vsub.f32 %v31201_v57, %v4111_v11  ;;  %v27321_v11 = vpack.c.bf16 %v31142_v61, %v31123_v29 }
 0x659   : > { %v31351_v47 = vsub.f32 %v3876_v41, %v31334_v2  ;;  %v31375_v5 = vand.u32 4294901760, %v3886_v40  ;;  %v4021_v20 = vand.u32 4294901760, %v31373_v34  ;;  %v4078_v44 = vand.u32 4294901760, %v4077_v54 }
 0x65a   : > { %24043 = vmatmul.mubr.f32.gmra.mrb[30].mxu1 %v31075_v31  ;;  %v3853_v31 = vpop.permute.xlu1 %3852  ;;  %v27329_v29 = vpack.c.bf16 %v31201_v57, %v31192_v38 }
 0x65b   : > { %24061 = vmatprep.mubr.f32.mxu1 %v3983_v3  ;;  %v3884_v46 = vsel %vm1996_vm1, %v3853_v31, 0  ;;  %v3991_v7 = vand.u32 4294901760, %v31351_v47  ;;  %v36782_v3 = vand.u32 4294901760, %v31142_v61  ;;  %v4011_v31 = vand.u32 4294901760, %v31368_v32 }
 0x65c   : > { %27292 = vmatpush3.bf16.xpose.msra.mxu1 %v31313_v22  ;;  %v31370_v12 = vand.u32 4294901760, %v3884_v46  ;;  %v31396_v25 = vsub.f32 %v3886_v40, %v31375_v5  ;;  %v4003_v40 = vand.u32 4294901760, %v4002_v6 }
 0x65d   : > { %27294 = vmatprep.subr.bf16.mxu1 %v31328_v42  ;;  %v4084_v35 = vsub.f32 %v31142_v61, %v36782_v3  ;;  %v3992_v53 = vsub.f32 %v31351_v47, %v3991_v7  ;;  %v4012_v15 = vsub.f32 %v31368_v32, %v4011_v31 }
 0x65e   : > { %v3857_v51 = vpop.permute.xlu1 %3856  ;;  %v31390_v41 = vsub.f32 %v3884_v46, %v31370_v12  ;;  %v4041_v27 = vand.u32 4294901760, %v31396_v25 }
 0x65f   : > { %v3888_v60 = vsel %vm1996_vm1, %v3857_v51, 0  ;;  %v4085_v63 = vand.u32 4294901760, %v4084_v35  ;;  %v3993_v50 = vand.u32 4294901760, %v3992_v53  ;;  %v4022_v51 = vsub.f32 %v31373_v34, %v4021_v20 }
 0x660   : > { %v31392_v36 = vand.u32 4294901760, %v3888_v60  ;;  %v4031_v46 = vand.u32 4294901760, %v31390_v41  ;;  %v4013_v3 = vand.u32 4294901760, %v4012_v15  ;;  %v4042_v6 = vsub.f32 %v31396_v25, %v4041_v27 }
 0x661   : > { %v27305_v26 = vpack.c.bf16 %v4085_v63, %v4078_v44  ;;  %v4023_v53 = vand.u32 4294901760, %v4022_v51  ;;  %v4092_v63 = vand.u32 4294901760, %v4091_v58  ;;  %v4105_v51 = vsub.f32 %v31192_v38, %v4104_v21 }
 0x662   : > { %v31403_v13 = vsub.f32 %v3888_v60, %v31392_v36  ;;  %v4098_v60 = vsub.f32 %v31172_v49, %v4097_v45  ;;  %v4032_v35 = vsub.f32 %v31390_v41, %v4031_v46  ;;  %v27317_v58 = vpack.c.bf16 %v31107_v56, %v31080_v1 }
 0x663   : > { %v27325_v56 = vpack.c.bf16 %v31172_v49, %v31165_v48 }
 0x664   : > { %27296 = vmatpush3.bf16.xpose.msra.mxu1 %v31328_v42  ;;  %v4051_v54 = vand.u32 4294901760, %v31403_v13  ;;  %v4099_v45 = vand.u32 4294901760, %v4098_v60  ;;  %v4113_v60 = vand.u32 4294901760, %v4112_v4 }
 0x665   : > { %27298 = vmatprep.subr.bf16.mxu1 %v31344_v9 }
 0x666   : > { %v4052_v44 = vsub.f32 %v31403_v13, %v4051_v54  ;;  %v27309_v15 = vpack.c.bf16 %v4099_v45, %v4092_v63 }
 0x66c   : > { %27300 = vmatpush3.bf16.xpose.msra.mxu1 %v31344_v9 }
 0x66d   : > { %27302 = vmatprep.subr.bf16.mxu1 %v27301_v62 }
 0x673   : > { %24062 = vmatmul.mubr.f32.vlgmr.msra.gmra.mrb[32].mxu1 %v3993_v50  ;;  %v4043_v50 = vand.u32 4294901760, %v4042_v6 }
 0x674   : > { %24064 = vmatprep.mubr.f32.mxu1 %v4003_v40  ;;  %27304 = vmatpush3.bf16.xpose.msra.mxu1 %v27301_v62  ;;  %v4033_v62 = vand.u32 4294901760, %v4032_v35  ;;  %v4053_v40 = vand.u32 4294901760, %v4052_v44 }
 0x675   : > { %27306 = vmatprep.subr.bf16.mxu1 %v27305_v26 }
 0x677   : > { %24065 = vmatmul.mubr.f32.gmra.mrb[34].mxu1 %v4013_v3  ;;  %v4106_v3 = vand.u32 4294901760, %v4105_v51 }
 0x678   : > { %24067 = vmatprep.mubr.f32.mxu1 %v4023_v53 }
 0x679   : > { %v27313_v35 = vpack.c.bf16 %v4113_v60, %v4106_v3 }
 0x67b   : > { %24068 = vmatmul.mubr.f32.gmra.mrb[36].mxu1 %v4033_v62 }
 0x67c   : > { %24070 = vmatprep.mubr.f32.mxu1 %v4043_v50  ;;  %27308 = vmatpush3.bf16.xpose.msra.mxu1 %v27305_v26 }
 0x67d   : > { %27310 = vmatprep.subr.bf16.mxu1 %v27309_v15 }
 0x67f   : > { %24071 = vmatmul.mubr.f32.gmra.mrb[38].mxu1 %v4053_v40 }
 0x680   : > { %24089 = vmatprep.mubr.f32.mxu1 %v31290_v55 }
 0x684   : > { %27312 = vmatpush3.bf16.xpose.msra.mxu1 %v27309_v15 }
 0x685   : > { %27314 = vmatprep.subr.bf16.mxu1 %v27313_v35 }
 0x68c   : > { %27316 = vmatpush3.bf16.xpose.msra.mxu1 %v27313_v35 }
 0x68d   : > { %27318 = vmatprep.subr.bf16.mxu1 %v27317_v58 }
 0x693   : > { %24090 = vmatmul.mubr.f32.vlgmr.msra.gmra.mrb[32].mxu1 %v31334_v2 }
 0x694   : > { %24092 = vmatprep.mubr.f32.mxu1 %v31336_v8  ;;  %27320 = vmatpush3.bf16.xpose.msra.mxu1 %v27317_v58 }
 0x695   : > { %27322 = vmatprep.subr.bf16.mxu1 %v27321_v11 }
 0x697   : > { %24093 = vmatmul.mubr.f32.gmra.mrb[34].mxu1 %v31353_v43 }
 0x698   : > { %24095 = vmatprep.mubr.f32.mxu1 %v31362_v30 }
 0x69b   : > { %24096 = vmatmul.mubr.f32.gmra.mrb[36].mxu1 %v31370_v12 }
 0x69c   : > { %24098 = vmatprep.mubr.f32.mxu1 %v31375_v5  ;;  %27324 = vmatpush3.bf16.xpose.msra.mxu1 %v27321_v11 }
 0x69d   : > { %27326 = vmatprep.subr.bf16.mxu1 %v27325_v56 }
 0x69f   : > { %24099 = vmatmul.mubr.f32.gmra.mrb[38].mxu1 %v31392_v36 }
 0x6a0   : > { %24117 = vmatprep.mubr.f32.mxu1 %v31303_v0 }
 0x6a4   : > { %27328 = vmatpush3.bf16.xpose.msra.mxu1 %v27325_v56 }
 0x6a5   : > { %27330 = vmatprep.subr.bf16.mxu1 %v27329_v29 }
 0x6ac   : > { %27332 = vmatpush3.bf16.xpose.msra.mxu1 %v27329_v29 }
 0x6ad   : > { %27334 = vmatprep.subr.bf16.mxu1 %v31296_v16 }
 0x6b3   : > { %24118 = vmatmul.mubr.f32.vlgmr.msra.gmra.mrb[32].mxu1 %v31351_v47 }
 0x6b4   : > { %24120 = vmatprep.mubr.f32.mxu1 %v31360_v14  ;;  %27336 = vmatpush3.bf16.xpose.msra.mxu1 %v31296_v16 }
 0x6b5   : > { %27338 = vmatprep.subr.bf16.mxu1 %v31313_v22 }
 0x6b7   : > { %24121 = vmatmul.mubr.f32.gmra.mrb[34].mxu1 %v31368_v32 }
 0x6b8   : > { %24123 = vmatprep.mubr.f32.mxu1 %v31373_v34 }
 0x6bb   : > { %24124 = vmatmul.mubr.f32.gmra.mrb[36].mxu1 %v31390_v41 }
 0x6bc   : > { %24126 = vmatprep.mubr.f32.mxu1 %v31396_v25  ;;  %27340 = vmatpush3.bf16.xpose.msra.mxu1 %v31313_v22 }
 0x6bd   : > { %27342 = vmatprep.subr.bf16.mxu1 %v31328_v42 }
 0x6bf   : > { %24127 = vmatmul.mubr.f32.gmra.mrb[38].mxu1 %v31403_v13 }
 0x6c0   : > { %24145 = vmatprep.mubr.f32.mxu1 %v3981_v59 }
 0x6c4   : > { %27344 = vmatpush3.bf16.xpose.msra.mxu1 %v31328_v42 }
 0x6c5   : > { %27346 = vmatprep.subr.bf16.mxu1 %v31344_v9 }
 0x6cc   : > { %27348 = vmatpush3.bf16.xpose.msra.mxu1 %v31344_v9 }
 0x6cd   : > { %27350 = vmatprep.subr.bf16.mxu1 %v31149_v23 }
 0x6d3   : > { %24146 = vmatmul.mubr.f32.vlgmr.msra.gmra.mrb[32].mxu1 %v3991_v7 }
 0x6d4   : > { %24148 = vmatprep.mubr.f32.mxu1 %v4001_v10  ;;  %27352 = vmatpush3.bf16.xpose.msra.mxu1 %v31149_v23 }
 0x6d5   : > { %27354 = vmatprep.subr.bf16.mxu1 %v31187_v33 }
 0x6d7   : > { %24149 = vmatmul.mubr.f32.gmra.mrb[34].mxu1 %v4011_v31 }
 0x6d8   : > { %24151 = vmatprep.mubr.f32.mxu1 %v4021_v20 }
 0x6db   : > { %24152 = vmatmul.mubr.f32.gmra.mrb[36].mxu1 %v4031_v46 }
 0x6dc   : > { %24154 = vmatprep.mubr.f32.mxu1 %v4041_v27  ;;  %27356 = vmatpush3.bf16.xpose.msra.mxu1 %v31187_v33 }
 0x6dd   : > { %27358 = vmatprep.subr.bf16.mxu1 %v31207_v39 }
 0x6df   : > { %24155 = vmatmul.mubr.f32.gmra.mrb[38].mxu1 %v4051_v54 }
 0x6e0   : > { %24173 = vmatprep.mubr.f32.mxu1 %v31290_v55 }
 0x6e4   : > { %27360 = vmatpush3.bf16.xpose.msra.mxu1 %v31207_v39 }
 0x6e5   : > { %27362 = vmatprep.subr.bf16.mxu1 %v31217_v19 }
 0x6ec   : > { %27364 = vmatpush3.bf16.xpose.msra.mxu1 %v31217_v19 }
 0x6ed   : > { %27366 = vmatprep.subr.bf16.mxu1 %v31296_v16 }
 0x6f3   : > { %24174 = vmatmul.mubr.f32.vlgmr.msra.gmra.mrb[32].mxu1 %v31334_v2 }
 0x6f4   : > { %24176 = vmatprep.mubr.f32.mxu1 %v31336_v8  ;;  %27368 = vmatpush3.bf16.xpose.msra.mxu1 %v31296_v16 }
 0x6f5   : > { %27370 = vmatprep.subr.bf16.mxu1 %v31313_v22 }
 0x6f7   : > { %24177 = vmatmul.mubr.f32.gmra.mrb[34].mxu1 %v31353_v43 }
 0x6f8   : > { %24179 = vmatprep.mubr.f32.mxu1 %v31362_v30 }
 0x6fb   : > { %24180 = vmatmul.mubr.f32.gmra.mrb[36].mxu1 %v31370_v12 }
 0x6fc   : > { %24182 = vmatprep.mubr.f32.mxu1 %v31375_v5  ;;  %27372 = vmatpush3.bf16.xpose.msra.mxu1 %v31313_v22 }
 0x6fd   : > { %27374 = vmatprep.subr.bf16.mxu1 %v31328_v42 }
 0x6ff   : > { %24183 = vmatmul.mubr.f32.gmra.mrb[38].mxu1 %v31392_v36 }
 0x700   : > { %24201 = vmatprep.mubr.f32.mxu1 %v31290_v55 }
 0x704   : > { %27376 = vmatpush3.bf16.xpose.msra.mxu1 %v31328_v42 }
 0x705   : > { %27378 = vmatprep.subr.bf16.mxu1 %v31344_v9 }
 0x70c   : > { %27380 = vmatpush3.bf16.xpose.msra.mxu1 %v31344_v9 }
 0x713   : > { %24202 = vmatmul.mubr.f32.vlgmr.msra.gmra.mrb[32].mxu1 %v31334_v2 }
 0x714   : > { %24204 = vmatprep.mubr.f32.mxu1 %v31336_v8 }
 0x717   : > { %24205 = vmatmul.mubr.f32.gmra.mrb[34].mxu1 %v31353_v43 }
 0x718   : > { %24207 = vmatprep.mubr.f32.mxu1 %v31362_v30 }
 0x71b   : > { %24208 = vmatmul.mubr.f32.gmra.mrb[36].mxu1 %v31370_v12 }
 0x71c   : > { %24210 = vmatprep.mubr.f32.mxu1 %v31375_v5 }
 0x71f   : > { %24211 = vmatmul.mubr.f32.gmra.mrb[38].mxu1 %v31392_v36 }
 0x721   : > { %v31515_v38 = vpop.f32.mrb[24].mxu1 }
 0x722   : > { %36784 = vst [vmem:[#allocation15_spill] sm:$0xff] %v31515_v38  ;;  %v31517_v1 = vpop.f32.mrb[25].mxu1 }
 0x723   : > { %36785 = vst [vmem:[#allocation16_spill] sm:$0xff] %v31517_v1 }
 0x725   : > { %v31519_v49 = vpop.f32.mrb[26].mxu1 }
 0x726   : > { %36786 = vst [vmem:[#allocation17_spill] sm:$0xff] %v31519_v49  ;;  %v31521_v33 = vpop.f32.mrb[27].mxu1 }
 0x727   : > { %36787 = vst [vmem:[#allocation18_spill] sm:$0xff] %v31521_v33 }
 0x729   : > { %v31523_v61 = vpop.f32.mrb[28].mxu1 }
 0x72a   : > { %36788 = vst [vmem:[#allocation19_spill] sm:$0xff] %v31523_v61  ;;  %v31525_v23 = vpop.f32.mrb[29].mxu1 }
 0x72b   : > { %36789 = vst [vmem:[#allocation20_spill] sm:$0xff] %v31525_v23 }
 0x72d   : > { %v31527_v21 = vpop.f32.mrb[30].mxu1 }
 0x72e   : > { %36790 = vst [vmem:[#allocation21_spill] sm:$0xff] %v31527_v21  ;;  %v31529_v48 = vpop.f32.mrb[31].mxu1 }
 0x72f   : > { %36791 = vst [vmem:[#allocation22_spill] sm:$0xff] %v31529_v48 }
 0x7e6   : > { %v24203_v57 = vpop.f32.mrb[32].mxu1 }
 0x7e7   : > { %v4698_v39 = vpop.f32.mrb[33].mxu1  ;;  %v4747_v19 = vsel %vm2867_vm2, %v24203_v57, -inf }
 0x7e8   : > { %4748 = vmax.xlane.f32.xlu1 %v4747_v19  ;;  %v4744_v55 = vsel %vm2867_vm2, %v4698_v39, -inf }
 0x7e9   : > { %4745 = vmax.xlane.f32.xlu0 %v4744_v55 }
 0x7ea   : > { %v24206_v16 = vpop.f32.mrb[34].mxu1 }
 0x7eb   : > { %v4710_v0 = vpop.f32.mrb[35].mxu1  ;;  %v4753_v2 = vsel %vm2867_vm2, %v24206_v16, -inf }
 0x7ec   : > { %v4750_v59 = vsel %vm2867_vm2, %v4710_v0, -inf }
 0x7ed   : > { %4751 = vmax.xlane.f32.xlu0 %v4750_v59 }
 0x7ee   : > { %v24209_v22 = vpop.f32.mrb[36].mxu1 }
 0x7ef   : > { %v4722_v42 = vpop.f32.mrb[37].mxu1  ;;  %v4759_v43 = vsel %vm2867_vm2, %v24209_v22, -inf }
 0x7f0   : > { %v4756_v8 = vsel %vm2867_vm2, %v4722_v42, -inf }
 0x7f1   : > { %4754 = vmax.xlane.f32.xlu0 %v4753_v2  ;;  %4757 = vmax.xlane.f32.xlu1 %v4756_v8 }
 0x7f2   : > { %v24212_v9 = vpop.f32.mrb[38].mxu1 }
 0x7f3   : > { %v31536_v47 = vpop.f32.mrb[39].mxu1  ;;  %v4765_v14 = vsel %vm2867_vm2, %v24212_v9, -inf }
 0x7f4   : > { %v4762_v30 = vsel %vm2867_vm2, %v31536_v47, -inf }
 0x7f5   : > { %4760 = vmax.xlane.f32.xlu0 %v4759_v43 }
 0x7f9   : > { %4766 = vmax.xlane.f32.xlu0 %v4765_v14 }
 0x802   : > { %4832 = vrot.lane.b32.xlu1 %v30625_v52, %s30167_s24 }
 0x80f   : > { %4834 = vrot.lane.b32.xlu0 %v30633_v24, %s30167_s24 }
 0x813   : > { %4840 = vrot.lane.b32.xlu0 %v30648_v18, %s30167_s24 }
 0x826   : > { %4763 = vmax.xlane.f32.xlu1 %v4762_v30 }
 0x837   : > { %4836 = vrot.lane.b32.xlu1 %v30635_v28, %s30167_s24 }
 0x83b   : > { %4838 = vrot.lane.b32.xlu1 %v30646_v17, %s30167_s24 }
 0x83f   : > { %4842 = vrot.lane.b32.xlu1 %v30657_v37, %s30167_s24 }
 0x875   : > { %v4749_v7 = vpop.xlane.xlu1 %4748 }
 0x876   : > { %v4769_v32 = vsub.f32 %v24203_v57, %v4749_v7  ;;  %v4746_v12 = vpop.xlane.xlu0 %4745 }
 0x877   : > { %v4768_v34 = vsub.f32 %v4698_v39, %v4746_v12  ;;  %v36792_v12 = vld [vmem:[#allocation13_spill] sm:$0xff] }
 0x878   : > { %v4778_v5 = vmul.f32 1.442695, %v4769_v32 }
 0x879   : > { %v4776_v10 = vmul.f32 1.442695, %v4768_v34 }
 0x87a   : > { %29896 = vpow2.f32 %v4778_v5  ;;  %v4752_v41 = vpop.xlane.xlu0 %4751 }
 0x87b   : > { %29898 = vpow2.f32 %v4776_v10  ;;  %v4770_v36 = vsub.f32 %v4710_v0, %v4752_v41 }
 0x87d   : > { %v4780_v31 = vmul.f32 1.442695, %v4770_v36 }
 0x87e   : > { %v4755_v25 = vpop.xlane.xlu0 %4754  ;;  %v4758_v20 = vpop.xlane.xlu1 %4757 }
 0x87f   : > { %29900 = vpow2.f32 %v4780_v31  ;;  %v4771_v13 = vsub.f32 %v24206_v16, %v4755_v25  ;;  %v4772_v46 = vsub.f32 %v4722_v42, %v4758_v20 }
 0x881   : > { %v4782_v27 = vmul.f32 1.442695, %v4771_v13  ;;  %v4784_v26 = vmul.f32 1.442695, %v4772_v46 }
 0x882   : > { %v4761_v54 = vpop.xlane.xlu0 %4760  ;;  %v4833_v53 = vpop.permute.xlu1 %4832 }
 0x883   : > { %29902 = vpow2.f32 %v4782_v27  ;;  %v4773_v6 = vsub.f32 %v24209_v22, %v4761_v54  ;;  %v4881_v45 = vand.u32 4294901760, %v4833_v53 }
 0x884   : > { %v31554_v62 = vpop.eup %29896  ;;  %29904 = vpow2.f32 %v4784_v26 }
 0x885   : > { %v31556_v63 = vpop.eup %29898  ;;  %v4786_v44 = vmul.f32 1.442695, %v4773_v6  ;;  %v4795_v50 = vsel %vm2867_vm2, %v31554_v62, 0.0  ;;  %v5035_v40 = vsub.f32 %v4833_v53, %v4881_v45 }
 0x886   : > { %4796 = vadd.xlane.f32.xlu0 %v4795_v50  ;;  %v4767_v15 = vpop.xlane.xlu0 %4766  ;;  %v4792_v4 = vsel %vm2867_vm2, %v31556_v63, 0.0 }
 0x887   : > { %29906 = vpow2.f32 %v4786_v44  ;;  %v4775_v51 = vsub.f32 %v24212_v9, %v4767_v15  ;;  %4793 = vadd.xlane.f32.xlu1 %v4792_v4  ;;  %v5036_v11 = vand.u32 4294901760, %v5035_v40 }
 0x889   : > { %v31562_v60 = vpop.eup %29900  ;;  %v4790_v3 = vmul.f32 1.442695, %v4775_v51  ;;  %v5037_v59 = vsub.f32 %v5035_v40, %v5036_v11 }
 0x88a   : > { %v4835_v35 = vpop.permute.xlu0 %4834  ;;  %v4798_v58 = vsel %vm2867_vm2, %v31562_v60, 0.0 }
 0x88b   : > { %29908 = vpow2.f32 %v4790_v3  ;;  %v4884_v56 = vand.u32 4294901760, %v4835_v35  ;;  %4799 = vadd.xlane.f32.xlu1 %v4798_v58  ;;  %v5038_v43 = vand.u32 4294901760, %v5037_v59 }
 0x88d   : > { %v31566_v29 = vpop.eup %29902  ;;  %v31568_v57 = vpack.c.bf16 %v4884_v56, %v4881_v45  ;;  %v5042_v39 = vsub.f32 %v4835_v35, %v4884_v56 }
 0x88e   : > { %v31570_v19 = vpop.eup %29904  ;;  %v4801_v55 = vsel %vm2867_vm2, %v31566_v29, 0.0  ;;  %v4841_v5 = vpop.permute.xlu0 %4840 }
 0x88f   : > { %v5043_v16 = vand.u32 4294901760, %v5042_v39  ;;  %4802 = vadd.xlane.f32.xlu0 %v4801_v55  ;;  %27382 = vmatprep.subr.bf16.mxu0 %v31568_v57  ;;  %v4804_v0 = vsel %vm2867_vm2, %v31570_v19, 0.0  ;;  %v31577_v22 = vpack.c.bf16 %v5042_v39, %v5035_v40  ;;  %v4893_v36 = vand.u32 4294901760, %v4841_v5 }
 0x890   : > { %4805 = vadd.xlane.f32.xlu1 %v4804_v0  ;;  %27384 = vmatpush3.bf16.msra.mxu0 %v31568_v57 }
 0x891   : > { %v31580_v42 = vpop.eup %29906  ;;  %v5044_v2 = vsub.f32 %v5042_v39, %v5043_v16  ;;  %v31582_v8 = vpack.c.bf16 %v5043_v16, %v5036_v11  ;;  %v5063_v13 = vsub.f32 %v4841_v5, %v4893_v36 }
 0x892   : > { %v4807_v9 = vsel %vm2867_vm2, %v31580_v42, 0.0 }
 0x893   : > { %4808 = vadd.xlane.f32.xlu0 %v4807_v9  ;;  %v5045_v14 = vand.u32 4294901760, %v5044_v2  ;;  %v5064_v53 = vand.u32 4294901760, %v5063_v13 }
 0x895   : > { %v31586_v30 = vpop.eup %29908  ;;  %v31588_v7 = vpack.c.bf16 %v5045_v14, %v5038_v43  ;;  %v5065_v11 = vsub.f32 %v5063_v13, %v5064_v53 }
 0x896   : > { %v4813_v32 = vsel %vm2867_vm2, %v31586_v30, 0.0 }
 0x897   : > { %4814 = vadd.xlane.f32.xlu0 %v4813_v32  ;;  %v5066_v9 = vand.u32 4294901760, %v5065_v11  ;;  %v36793_v32 = vld [vmem:[#allocation14_spill] sm:$0xff] }
 0x8ad   : > { %4844 = vrot.lane.b32.xlu0 %v36792_v12, %s30167_s24 }
 0x8b1   : > { %5734 = vrot.lane.b32.xlu0 %v30625_v52, %s30168_s25 }
 0x8b3   : > { %v4764_v34 = vpop.xlane.xlu1 %4763 }
 0x8b4   : > { %v4774_v10 = vsub.f32 %v31536_v47, %v4764_v34 }
 0x8b5   : > { %5738 = vrot.lane.b32.xlu0 %v30635_v28, %s30168_s25 }
 0x8b6   : > { %v4788_v41 = vmul.f32 1.442695, %v4774_v10 }
 0x8b7   : > { %v4837_v31 = vpop.permute.xlu1 %4836 }
 0x8b8   : > { %29910 = vpow2.f32 %v4788_v41  ;;  %v4887_v25 = vand.u32 4294901760, %v4837_v31 }
 0x8b9   : > { %5742 = vrot.lane.b32.xlu0 %v30648_v18, %s30168_s25 }
 0x8ba   : > { %v5049_v20 = vsub.f32 %v4837_v31, %v4887_v25 }
 0x8bb   : > { %v4839_v46 = vpop.permute.xlu1 %4838 }
 0x8bc   : > { %v5050_v27 = vand.u32 4294901760, %v5049_v20  ;;  %v4890_v26 = vand.u32 4294901760, %v4839_v46 }
 0x8bd   : > { %5746 = vrot.lane.b32.xlu0 %v36792_v12, %s30168_s25 }
 0x8be   : > { %v31603_v47 = vpack.c.bf16 %v4890_v26, %v4887_v25  ;;  %v5056_v54 = vsub.f32 %v4839_v46, %v4890_v26  ;;  %v5051_v50 = vsub.f32 %v5049_v20, %v5050_v27 }
 0x8bf   : > { %v4843_v6 = vpop.permute.xlu1 %4842 }
 0x8c0   : > { %v5057_v45 = vand.u32 4294901760, %v5056_v54  ;;  %v4896_v44 = vand.u32 4294901760, %v4843_v6  ;;  %27386 = vmatprep.subr.bf16.mxu0 %v31603_v47  ;;  %v31606_v15 = vpack.c.bf16 %v5056_v54, %v5049_v20  ;;  %v5052_v39 = vand.u32 4294901760, %v5051_v50 }
 0x8c1   : > { %5718 = vrot.lane.b32.xlu0 %v30625_v52, %s30169_s26  ;;  %27388 = vmatpush3.bf16.msra.mxu0 %v31603_v47 }
 0x8c2   : > { %v31611_v4 = vpop.eup %29910  ;;  %v31613_v40 = vpack.c.bf16 %v4896_v44, %v4893_v36  ;;  %v5070_v51 = vsub.f32 %v4843_v6, %v4896_v44  ;;  %v5058_v3 = vsub.f32 %v5056_v54, %v5057_v45  ;;  %v31615_v35 = vpack.c.bf16 %v5057_v45, %v5050_v27 }
 0x8c3   : > { %v4810_v58 = vsel %vm2867_vm2, %v31611_v4, 0.0 }
 0x8c4   : > { %v5071_v56 = vand.u32 4294901760, %v5070_v51  ;;  %4811 = vadd.xlane.f32.xlu1 %v4810_v58  ;;  %27390 = vmatprep.subr.bf16.mxu0 %v31613_v40  ;;  %v5059_v55 = vand.u32 4294901760, %v5058_v3  ;;  %v31620_v16 = vpack.c.bf16 %v5070_v51, %v5063_v13 }
 0x8c5   : > { %5722 = vrot.lane.b32.xlu0 %v30635_v28, %s30169_s26  ;;  %27392 = vmatpush3.bf16.msra.mxu0 %v31613_v40 }
 0x8c6   : > { %v31625_v0 = vpack.c.bf16 %v5059_v55, %v5052_v39  ;;  %v5072_v59 = vsub.f32 %v5070_v51, %v5071_v56  ;;  %v31627_v2 = vpack.c.bf16 %v5071_v56, %v5064_v53 }
 0x8c8   : > { %v5073_v43 = vand.u32 4294901760, %v5072_v59 }
 0x8c9   : > { %5726 = vrot.lane.b32.xlu0 %v30648_v18, %s30169_s26 }
 0x8ca   : > { %v31631_v14 = vpack.c.bf16 %v5073_v43, %v5066_v9 }
 0x8cd   : > { %5730 = vrot.lane.b32.xlu0 %v36792_v12, %s30169_s26 }
 0x8d5   : > { %4846 = vrot.lane.b32.xlu1 %v36793_v32, %s30167_s24 }
 0x8d9   : > { %5736 = vrot.lane.b32.xlu1 %v30633_v24, %s30168_s25 }
 0x8dd   : > { %5740 = vrot.lane.b32.xlu1 %v30646_v17, %s30168_s25 }
 0x8e1   : > { %5744 = vrot.lane.b32.xlu1 %v30657_v37, %s30168_s25 }
 0x8e5   : > { %5748 = vrot.lane.b32.xlu1 %v36793_v32, %s30168_s25 }
 0x8e9   : > { %5720 = vrot.lane.b32.xlu1 %v30633_v24, %s30169_s26 }
 0x8ed   : > { %5724 = vrot.lane.b32.xlu1 %v30646_v17, %s30169_s26 }
 0x8f1   : > { %5728 = vrot.lane.b32.xlu1 %v30657_v37, %s30169_s26 }
 0x8f5   : > { %5732 = vrot.lane.b32.xlu1 %v36793_v32, %s30169_s26 }
 0x913   : > { %v4797_v46 = vpop.xlane.xlu0 %4796 }
 0x914   : > { %v4794_v34 = vpop.xlane.xlu1 %4793 }
 0x915   : > { %29912 = vrcp.f32 %v4794_v34 }
 0x916   : > { %29914 = vrcp.f32 %v4797_v46 }
 0x918   : > { %v4800_v27 = vpop.xlane.xlu1 %4799 }
 0x919   : > { %29916 = vrcp.f32 %v4800_v27 }
 0x91c   : > { %v4803_v26 = vpop.xlane.xlu0 %4802 }
 0x91d   : > { %29918 = vrcp.f32 %v4803_v26 }
 0x91f   : > { %v29913_v5 = vpop.eup %29912 }
 0x920   : > { %v4817_v10 = vmul.f32 %v29913_v5, %v31556_v63  ;;  %v4806_v63 = vpop.xlane.xlu1 %4805  ;;  %v4809_v54 = vpop.xlane.xlu0 %4808 }
 0x921   : > { %29920 = vrcp.f32 %v4806_v63  ;;  %v29915_v6 = vpop.eup %29914 }
 0x922   : > { %v4857_v41 = vsel %vm2867_vm2, %v4817_v10, 0  ;;  %29922 = vrcp.f32 %v4809_v54  ;;  %v4819_v50 = vmul.f32 %v29915_v6, %v31554_v62 }
 0x923   : > { %v31655_v36 = vand.u32 4294901760, %v4857_v41  ;;  %v29917_v45 = vpop.eup %29916 }
 0x924   : > { %v4815_v53 = vpop.xlane.xlu0 %4814  ;;  %v4821_v51 = vmul.f32 %v29917_v45, %v31562_v60  ;;  %v4860_v56 = vsel %vm2867_vm2, %v4819_v50, 0 }
 0x925   : > { %v31658_v31 = vsub.f32 %v4857_v41, %v31655_v36  ;;  %29924 = vrcp.f32 %v4815_v53  ;;  %v31670_v9 = vand.u32 4294901760, %v4860_v56 }
 0x926   : > { %v4863_v39 = vsel %vm2867_vm2, %v4821_v51, 0 }
 0x927   : > { %v36642_v25 = vand.u32 4294901760, %v31658_v31  ;;  %v29919_v44 = vpop.eup %29918  ;;  %v31672_v34 = vand.u32 4294901760, %v4863_v39  ;;  %v31680_v41 = vsub.f32 %v4860_v56, %v31670_v9 }
 0x928   : > { %v4845_v3 = vpop.permute.xlu0 %4844  ;;  %v4823_v11 = vmul.f32 %v29919_v44, %v31566_v29 }
 0x929   : > { %v4956_v20 = vsub.f32 %v31658_v31, %v36642_v25  ;;  %v36639_v6 = vand.u32 4294901760, %v31680_v41 }
 0x92a   : > { %v4866_v62 = vsel %vm2867_vm2, %v4823_v11, 0 }
 0x92b   : > { %v4957_v13 = vand.u32 4294901760, %v4956_v20  ;;  %v29921_v58 = vpop.eup %29920  ;;  %v31677_v10 = vand.u32 4294901760, %v4866_v62  ;;  %v4899_v20 = vand.u32 4294901760, %v4845_v3 }
 0x92c   : > { %v4825_v55 = vmul.f32 %v29921_v58, %v31570_v19  ;;  %v29923_v59 = vpop.eup %29922  ;;  %v5735_v43 = vpop.permute.xlu0 %5734  ;;  %v31683_v19 = vsub.f32 %v4863_v39, %v31672_v34 }
 0x92d   : > { %24229 = vmatprep.mubr.f32.mxu0 %v4957_v13  ;;  %v4827_v5 = vmul.f32 %v29923_v59, %v31580_v42  ;;  %v31689_v63 = vsub.f32 %v4866_v62, %v31677_v10  ;;  %v31692_v54 = vsub.f32 %v4845_v3, %v4899_v20  ;;  %v31695_v53 = vsel %vm1996_vm1, %v5735_v43, 0 }
 0x92e   : > { %v4869_v60 = vsel %vm2867_vm2, %v4825_v55, 0  ;;  %v36640_v45 = vand.u32 4294901760, %v31683_v19  ;;  %v36641_v58 = vand.u32 4294901760, %v31695_v53  ;;  %v4966_v59 = vsub.f32 %v31680_v41, %v36639_v6 }
 0x92f   : > { %v29925_v29 = vpop.eup %29924  ;;  %v31685_v13 = vand.u32 4294901760, %v4869_v60  ;;  %v4872_v26 = vsel %vm2867_vm2, %v4827_v5, 0  ;;  %v36645_v56 = vand.u32 4294901760, %v31692_v54 }
 0x930   : > { %v5739_v46 = vpop.permute.xlu0 %5738  ;;  %v4831_v42 = vmul.f32 %v29925_v29, %v31586_v30  ;;  %v31702_v50 = vand.u32 4294901760, %v4872_v26  ;;  %v36643_v30 = vand.u32 4294901760, %v31689_v63  ;;  %v4976_v43 = vsub.f32 %v31683_v19, %v36640_v45 }
 0x931   : > { %v31700_v44 = vsub.f32 %v4869_v60, %v31685_v13  ;;  %v31709_v39 = vsel %vm1996_vm1, %v5739_v46, 0  ;;  %v4967_v45 = vand.u32 4294901760, %v4966_v59 }
 0x932   : > { %v4878_v3 = vsel %vm2867_vm2, %v4831_v42, 0  ;;  %v31723_v29 = vsub.f32 %v4872_v26, %v31702_v50  ;;  %v31730_v42 = vsub.f32 %v31695_v53, %v36641_v58  ;;  %v4986_v26 = vsub.f32 %v31689_v63, %v36643_v30 }
 0x933   : > { %v36644_v5 = vand.u32 4294901760, %v31700_v44  ;;  %v4977_v25 = vand.u32 4294901760, %v4976_v43  ;;  %v5079_v30 = vsub.f32 %v31692_v54, %v36645_v56 }
 0x934   : > { %v5743_v55 = vpop.permute.xlu0 %5742  ;;  %v36647_v6 = vand.u32 4294901760, %v31730_v42 }
 0x935   : > { %v5080_v38 = vand.u32 4294901760, %v5079_v30 }
 0x951   : > { %v4812_v27 = vpop.xlane.xlu1 %4811 }
 0x952   : > { %29926 = vrcp.f32 %v4812_v27  ;;  %v31725_v27 = vand.u32 4294901760, %v4878_v3 }
 0x955   : > { %v4847_v51 = vpop.permute.xlu1 %4846 }
 0x956   : > { %v4902_v11 = vand.u32 4294901760, %v4847_v51 }
 0x958   : > { %v31717_v62 = vpack.c.bf16 %v4902_v11, %v4899_v20  ;;  %v31719_v60 = vsub.f32 %v4847_v51, %v4902_v11  ;;  %v31752_v51 = vsel %vm1996_vm1, %v5743_v55, 0  ;;  %v5747_v11 = vpop.permute.xlu0 %5746  ;;  %v4987_v55 = vand.u32 4294901760, %v4986_v26 }
 0x959   : > { %v5737_v46 = vpop.permute.xlu1 %5736  ;;  %v31781_v26 = vsel %vm1996_vm1, %v5747_v11, 0 }
 0x95a   : > { %v31734_v20 = vsel %vm1996_vm1, %v5737_v46, 0  ;;  %27394 = vmatprep.subr.bf16.mxu0 %v31717_v62  ;;  %v4996_v46 = vsub.f32 %v31700_v44, %v36644_v5  ;;  %v31761_v5 = vsub.f32 %v4878_v3, %v31725_v27  ;;  %v36795_v56 = vand.u32 4294901760, %v31719_v60 }
 0x95b   : > { %27396 = vmatpush3.bf16.msra.mxu0 %v31717_v62  ;;  %v36794_v59 = vand.u32 4294901760, %v31734_v20  ;;  %v36800_v32 = vand.u32 4294901760, %v31781_v26 }
 0x95c   : > { %v29927_v58 = vpop.eup %29926  ;;  %27398 = vmatprep.subr.bf16.mxu0 %v31588_v7  ;;  %v5086_v23 = vsub.f32 %v31719_v60, %v36795_v56  ;;  %v36797_v56 = vand.u32 4294901760, %v31723_v29 }
 0x95d   : > { %v31757_v21 = vsub.f32 %v31734_v20, %v36794_v59  ;;  %v5741_v43 = vpop.permute.xlu1 %5740  ;;  %v4829_v48 = vmul.f32 %v29927_v58, %v31611_v4  ;;  %v36796_v59 = vand.u32 4294901760, %v31709_v39  ;;  %v31842_v12 = vsub.f32 %v31781_v26, %v36800_v32 }
 0x95e   : > { %v31765_v61 = vsel %vm1996_vm1, %v5741_v43, 0  ;;  %24230 = vmatmul.mubr.f32.vlgmr.msra.gmra.mrb[16].mxu0 %v4967_v45  ;;  %v5006_v43 = vsub.f32 %v31723_v29, %v36797_v56  ;;  %v5087_v56 = vand.u32 4294901760, %v5086_v23 }
 0x95f   : > { %v31773_v33 = vsub.f32 %v31709_v39, %v36796_v59  ;;  %v36648_v4 = vand.u32 4294901760, %v31757_v21  ;;  %v36646_v58 = vand.u32 4294901760, %v31765_v61  ;;  %24232 = vmatprep.mubr.f32.mxu0 %v4977_v25  ;;  %27400 = vmatpush3.bf16.msra.mxu0 %v31588_v7  ;;  %v4875_v3 = vsel %vm2867_vm2, %v4829_v48, 0 }
 0x960   : > { %27402 = vmatprep.subr.bf16.mxu0 %v31625_v0  ;;  %v31787_v59 = vand.u32 4294901760, %v4875_v3  ;;  %v4997_v48 = vand.u32 4294901760, %v4996_v46  ;;  %v5007_v23 = vand.u32 4294901760, %v5006_v43 }
 0x961   : > { %v31792_v25 = vsub.f32 %v31765_v61, %v36646_v58  ;;  %v5745_v7 = vpop.permute.xlu1 %5744  ;;  %v31799_v11 = vpack.c.bf16 %v36648_v4, %v36647_v6  ;;  %v36652_v6 = vand.u32 4294901760, %v31773_v33 }
 0x962   : > { %v31802_v49 = vsel %vm1996_vm1, %v5745_v7, 0  ;;  %24233 = vmatmul.mubr.f32.gmra.mrb[18].mxu0 %v4987_v55  ;;  %v31805_v1 = vsub.f32 %v4875_v3, %v31787_v59  ;;  %v36798_v7 = vand.u32 4294901760, %v31752_v51 }
 0x963   : > { %v36653_v46 = vand.u32 4294901760, %v31792_v25  ;;  %v36649_v45 = vand.u32 4294901760, %v31802_v49  ;;  %24235 = vmatprep.mubr.f32.mxu0 %v4997_v48  ;;  %27404 = vmatpush3.bf16.msra.mxu0 %v31625_v0  ;;  %v36799_v0 = vand.u32 4294901760, %v31761_v5 }
 0x964   : > { %v31815_v55 = vsub.f32 %v31752_v51, %v36798_v7  ;;  %27406 = vmatprep.subr.bf16.mxu0 %v31631_v14  ;;  %v5015_v3 = vand.u32 4294901760, %v31805_v1  ;;  %v27409_v7 = vpack.c.bf16 %v5087_v56, %v5080_v38 }
 0x965   : > { %v31822_v4 = vsub.f32 %v31802_v49, %v36649_v45  ;;  %v5749_v48 = vpop.permute.xlu1 %5748  ;;  %v5026_v30 = vsub.f32 %v31761_v5, %v36799_v0  ;;  %v31837_v45 = vpack.c.bf16 %v36653_v46, %v36652_v6  ;;  %v5980_v46 = vand.u32 4294901760, %v31842_v12 }
 0x966   : > { %v31828_v58 = vsel %vm1996_vm1, %v5749_v48, 0  ;;  %24236 = vmatmul.mubr.f32.gmra.mrb[20].mxu0 %v5007_v23  ;;  %v5016_v43 = vsub.f32 %v31805_v1, %v5015_v3  ;;  %v5966_v38 = vand.u32 4294901760, %v31815_v55 }
 0x967   : > { %v5973_v48 = vand.u32 4294901760, %v31822_v4  ;;  %v5804_v23 = vand.u32 4294901760, %v31828_v58  ;;  %27408 = vmatpush3.bf16.msra.mxu0 %v31631_v14  ;;  %v5027_v6 = vand.u32 4294901760, %v5026_v30 }
 0x968   : > { %27410 = vmatprep.subr.bf16.mxu0 %v27409_v7  ;;  %v5017_v56 = vand.u32 4294901760, %v5016_v43 }
 0x969   : > { %v31851_v0 = vsub.f32 %v31828_v58, %v5804_v23  ;;  %v31857_v32 = vpack.c.bf16 %v5973_v48, %v5966_v38 }
 0x96a   : > { %24238 = vmatprep.mubr.f32.mxu0 %v5017_v56  ;;  %v36816_v56 = vand.u32 4294901760, %v31781_v26  ;;  %v36818_v26 = vand.u32 4294901760, %v31730_v42 }
 0x96b   : > { %v5987_v14 = vand.u32 4294901760, %v31851_v0  ;;  %24239 = vmatmul.mubr.f32.gmra.mrb[22].mxu0 %v5027_v6  ;;  %v27425_v6 = vpack.c.bf16 %v31719_v60, %v31692_v54 }
 0x96c   : > { %27412 = vmatpush3.bf16.msra.mxu0 %v27409_v7  ;;  %24257 = vmatprep.mubr.f32.mxu0 %v31655_v36  ;;  %v36804_v7 = vand.u32 4294901760, %v31689_v63  ;;  %v5939_v58 = vsub.f32 %v31730_v42, %v36818_v26 }
 0x96d   : > { %27414 = vmatprep.subr.bf16.mxu0 %v31577_v22  ;;  %v31867_v30 = vpack.c.bf16 %v5987_v14, %v5980_v46 }
 0x96f   : > { %24258 = vmatmul.mubr.f32.vlgmr.msra.gmra.mrb[16].mxu0 %v31670_v9 }
 0x970   : > { %27416 = vmatpush3.bf16.msra.mxu0 %v31577_v22  ;;  %24260 = vmatprep.mubr.f32.mxu0 %v31672_v34  ;;  %v36801_v22 = vand.u32 4294901760, %v31658_v31 }
 0x971   : > { %27418 = vmatprep.subr.bf16.mxu0 %v31606_v15 }
 0x973   : > { %24261 = vmatmul.mubr.f32.gmra.mrb[18].mxu0 %v31677_v10 }
 0x974   : > { %27420 = vmatpush3.bf16.msra.mxu0 %v31606_v15  ;;  %24263 = vmatprep.mubr.f32.mxu0 %v31685_v13  ;;  %v36802_v15 = vand.u32 4294901760, %v31680_v41 }
 0x975   : > { %27422 = vmatprep.subr.bf16.mxu0 %v31620_v16 }
 0x977   : > { %24264 = vmatmul.mubr.f32.gmra.mrb[20].mxu0 %v31702_v50 }
 0x978   : > { %27424 = vmatpush3.bf16.msra.mxu0 %v31620_v16  ;;  %24266 = vmatprep.mubr.f32.mxu0 %v31787_v59  ;;  %v36803_v16 = vand.u32 4294901760, %v31683_v19 }
 0x979   : > { %27426 = vmatprep.subr.bf16.mxu0 %v27425_v6 }
 0x97b   : > { %24267 = vmatmul.mubr.f32.gmra.mrb[22].mxu0 %v31725_v27 }
 0x97c   : > { %27428 = vmatpush3.bf16.msra.mxu0 %v27425_v6  ;;  %24285 = vmatprep.mubr.f32.mxu0 %v31658_v31  ;;  %v36805_v31 = vand.u32 4294901760, %v31700_v44  ;;  %v31994_v6 = vpack.c.bf16 %v5804_v23, %v36816_v56 }
 0x97d   : > { %27430 = vmatprep.subr.bf16.mxu0 %v31568_v57 }
 0x97f   : > { %24286 = vmatmul.mubr.f32.vlgmr.msra.gmra.mrb[16].mxu0 %v31680_v41  ;;  %v36806_v41 = vand.u32 4294901760, %v31723_v29 }
 0x980   : > { %27432 = vmatpush3.bf16.msra.mxu0 %v31568_v57  ;;  %24288 = vmatprep.mubr.f32.mxu0 %v31683_v19  ;;  %v36808_v19 = vand.u32 4294901760, %v31719_v60  ;;  %v36813_v60 = vand.u32 4294901760, %v31765_v61  ;;  %v36814_v61 = vand.u32 4294901760, %v31752_v51 }
 0x981   : > { %27434 = vmatprep.subr.bf16.mxu0 %v31603_v47 }
 0x983   : > { %24289 = vmatmul.mubr.f32.gmra.mrb[18].mxu0 %v31689_v63  ;;  %v36810_v63 = vand.u32 4294901760, %v31695_v53 }
 0x984   : > { %27436 = vmatpush3.bf16.msra.mxu0 %v31603_v47  ;;  %24291 = vmatprep.mubr.f32.mxu0 %v31700_v44  ;;  %v36812_v44 = vand.u32 4294901760, %v31709_v39 }
 0x985   : > { %27438 = vmatprep.subr.bf16.mxu0 %v31613_v40 }
 0x987   : > { %24292 = vmatmul.mubr.f32.gmra.mrb[20].mxu0 %v31723_v29 }
 0x988   : > { %27440 = vmatpush3.bf16.msra.mxu0 %v31613_v40  ;;  %24294 = vmatprep.mubr.f32.mxu0 %v31805_v1  ;;  %v5719_v1 = vpop.permute.xlu0 %5718 }
 0x989   : > { %27442 = vmatprep.subr.bf16.mxu0 %v31717_v62 }
 0x98b   : > { %24295 = vmatmul.mubr.f32.gmra.mrb[22].mxu0 %v31761_v5 }
 0x98c   : > { %27444 = vmatpush3.bf16.msra.mxu0 %v31717_v62  ;;  %24313 = vmatprep.mubr.f32.mxu0 %v36801_v22  ;;  %v36817_v22 = vand.u32 4294901760, %v31757_v21 }
 0x98d   : > { %27446 = vmatprep.subr.bf16.mxu0 %v31582_v8 }
 0x98f   : > { %24314 = vmatmul.mubr.f32.vlgmr.msra.gmra.mrb[16].mxu0 %v36802_v15  ;;  %v5946_v15 = vsub.f32 %v31757_v21, %v36817_v22 }
 0x990   : > { %27448 = vmatpush3.bf16.msra.mxu0 %v31582_v8  ;;  %24316 = vmatprep.mubr.f32.mxu0 %v36803_v16  ;;  %v36807_v8 = vand.u32 4294901760, %v31692_v54 }
 0x991   : > { %27450 = vmatprep.subr.bf16.mxu0 %v31615_v35 }
 0x992   : > { %v27457_v43 = vpack.c.bf16 %v36808_v19, %v36807_v8 }
 0x993   : > { %24317 = vmatmul.mubr.f32.gmra.mrb[18].mxu0 %v36804_v7 }
 0x994   : > { %27452 = vmatpush3.bf16.msra.mxu0 %v31615_v35  ;;  %24319 = vmatprep.mubr.f32.mxu0 %v36805_v31  ;;  %v36809_v35 = vand.u32 4294901760, %v31761_v5 }
 0x995   : > { %27454 = vmatprep.subr.bf16.mxu0 %v31627_v2 }
 0x997   : > { %24320 = vmatmul.mubr.f32.gmra.mrb[20].mxu0 %v36806_v41 }
 0x998   : > { %27456 = vmatpush3.bf16.msra.mxu0 %v31627_v2  ;;  %24322 = vmatprep.mubr.f32.mxu0 %v5015_v3  ;;  %v5750_v2 = vsel %vm1996_vm1, %v5719_v1, 0 }
 0x999   : > { %27458 = vmatprep.subr.bf16.mxu0 %v27457_v43 }
 0x99b   : > { %24323 = vmatmul.mubr.f32.gmra.mrb[22].mxu0 %v36809_v35  ;;  %v5947_v35 = vand.u32 4294901760, %v5946_v15 }
 0x99c   : > { %27460 = vmatpush3.bf16.msra.mxu0 %v27457_v43  ;;  %24341 = vmatprep.mubr.f32.mxu0 %v31655_v36 }
 0x99d   : > { %27462 = vmatprep.subr.bf16.mxu0 %v31568_v57 }
 0x99f   : > { %24342 = vmatmul.mubr.f32.vlgmr.msra.gmra.mrb[16].mxu0 %v31670_v9 }
 0x9a0   : > { %27464 = vmatpush3.bf16.msra.mxu0 %v31568_v57  ;;  %24344 = vmatprep.mubr.f32.mxu0 %v31672_v34  ;;  %v31940_v57 = vand.u32 4294901760, %v5750_v2 }
 0x9a1   : > { %27466 = vmatprep.subr.bf16.mxu0 %v31603_v47 }
 0x9a3   : > { %24345 = vmatmul.mubr.f32.gmra.mrb[18].mxu0 %v31677_v10 }
 0x9a4   : > { %27468 = vmatpush3.bf16.msra.mxu0 %v31603_v47  ;;  %24347 = vmatprep.mubr.f32.mxu0 %v31685_v13  ;;  %v36811_v47 = vand.u32 4294901760, %v31734_v20 }
 0x9a5   : > { %27470 = vmatprep.subr.bf16.mxu0 %v31613_v40 }
 0x9a6   : > { %v31946_v54 = vpack.c.bf16 %v36811_v47, %v36810_v63  ;;  %v5940_v47 = vand.u32 4294901760, %v5939_v58 }
 0x9a7   : > { %24348 = vmatmul.mubr.f32.gmra.mrb[20].mxu0 %v31702_v50 }
 0x9a8   : > { %27472 = vmatpush3.bf16.msra.mxu0 %v31613_v40  ;;  %24350 = vmatprep.mubr.f32.mxu0 %v31787_v59  ;;  %v31953_v40 = vsub.f32 %v5750_v2, %v31940_v57 }
 0x9a9   : > { %27474 = vmatprep.subr.bf16.mxu0 %v31717_v62 }
 0x9aa   : > { %v5857_v53 = vand.u32 4294901760, %v31953_v40 }
 0x9ab   : > { %24351 = vmatmul.mubr.f32.gmra.mrb[22].mxu0 %v31725_v27 }
 0x9ac   : > { %27476 = vmatpush3.bf16.msra.mxu0 %v31717_v62  ;;  %24369 = vmatprep.mubr.f32.mxu0 %v31655_v36  ;;  %v31963_v62 = vpack.c.bf16 %v36813_v60, %v36812_v44  ;;  %v5721_v36 = vpop.permute.xlu1 %5720 }
 0x9ad   : > { %27478 = vmatprep.subr.bf16.mxu0 %v31946_v54 }
 0x9af   : > { %24370 = vmatmul.mubr.f32.vlgmr.msra.gmra.mrb[16].mxu0 %v31670_v9  ;;  %v5858_v9 = vsub.f32 %v31953_v40, %v5857_v53 }
 0x9b0   : > { %24372 = vmatprep.mubr.f32.mxu0 %v31672_v34  ;;  %v5723_v34 = vpop.permute.xlu0 %5722  ;;  %v5725_v5 = vpop.permute.xlu1 %5724 }
 0x9b1   : > { %v5754_v20 = vsel %vm1996_vm1, %v5723_v34, 0  ;;  %v27493_v34 = vpack.c.bf16 %v5947_v35, %v5940_v47 }
 0x9b2   : > { %v31986_v3 = vand.u32 4294901760, %v5754_v20 }
 0x9b3   : > { %24373 = vmatmul.mubr.f32.gmra.mrb[18].mxu0 %v31677_v10  ;;  %v5859_v10 = vand.u32 4294901760, %v5858_v9 }
 0x9b4   : > { %24375 = vmatprep.mubr.f32.mxu0 %v31685_v13  ;;  %v36815_v13 = vand.u32 4294901760, %v31802_v49  ;;  %v5727_v29 = vpop.permute.xlu0 %5726  ;;  %v5756_v49 = vsel %vm1996_vm1, %v5725_v5, 0  ;;  %v32010_v23 = vsub.f32 %v5754_v20, %v31986_v3 }
 0x9b5   : > { %27480 = vmatpush3.bf16.xpose.msra.mxu0 %v31946_v54  ;;  %v5758_v51 = vsel %vm1996_vm1, %v5727_v29, 0  ;;  %v32003_v31 = vand.u32 4294901760, %v5756_v49 }
 0x9b6   : > { %27482 = vmatprep.subr.bf16.mxu0 %v31963_v62  ;;  %v31978_v39 = vpack.c.bf16 %v36815_v13, %v36814_v61  ;;  %v32012_v41 = vand.u32 4294901760, %v5758_v51  ;;  %v5877_v9 = vand.u32 4294901760, %v32010_v23  ;;  %v36820_v13 = vand.u32 4294901760, %v31773_v33 }
 0x9b7   : > { %24376 = vmatmul.mubr.f32.gmra.mrb[20].mxu0 %v31702_v50  ;;  %v5752_v50 = vsel %vm1996_vm1, %v5721_v36, 0  ;;  %v32018_v2 = vsub.f32 %v5756_v49, %v32003_v31 }
 0x9b8   : > { %24378 = vmatprep.mubr.f32.mxu0 %v31787_v59  ;;  %v31984_v59 = vand.u32 4294901760, %v5752_v50  ;;  %v5731_v16 = vpop.permute.xlu0 %5730  ;;  %v32023_v44 = vsub.f32 %v5758_v51, %v32012_v41  ;;  %v5953_v5 = vsub.f32 %v31773_v33, %v36820_v13  ;;  %v5878_v51 = vsub.f32 %v32010_v23, %v5877_v9 }
 0x9b9   : > { %v5762_v19 = vsel %vm1996_vm1, %v5731_v16, 0  ;;  %v5967_v13 = vsub.f32 %v31815_v55, %v5966_v38  ;;  %v5988_v38 = vsub.f32 %v31851_v0, %v5987_v14  ;;  %v27513_v14 = vpack.c.bf16 %v31792_v25, %v31773_v33 }
 0x9ba   : > { %v32001_v7 = vsub.f32 %v5752_v50, %v31984_v59  ;;  %v32025_v60 = vand.u32 4294901760, %v5762_v19  ;;  %v5897_v56 = vand.u32 4294901760, %v32023_v44  ;;  %v5954_v15 = vand.u32 4294901760, %v5953_v5 }
 0x9bb   : > { %24379 = vmatmul.mubr.f32.gmra.mrb[22].mxu0 %v31725_v27  ;;  %v5729_v27 = vpop.permute.xlu1 %5728  ;;  %v27521_v33 = vpack.c.bf16 %v31851_v0, %v31842_v12 }
 0x9bc   : > { %24397 = vmatprep.mubr.f32.mxu0 %v5859_v10  ;;  %v5760_v8 = vsel %vm1996_vm1, %v5729_v27, 0  ;;  %v5867_v1 = vand.u32 4294901760, %v32001_v7  ;;  %v36819_v10 = vand.u32 4294901760, %v31792_v25  ;;  %v5887_v27 = vand.u32 4294901760, %v32018_v2 }
 0x9bd   : > { %27484 = vmatpush3.bf16.xpose.msra.mxu0 %v31963_v62  ;;  %v32020_v63 = vand.u32 4294901760, %v5760_v8  ;;  %v32046_v49 = vsub.f32 %v5762_v19, %v32025_v60  ;;  %v5879_v19 = vand.u32 4294901760, %v5878_v51 }
 0x9be   : > { %27486 = vmatprep.subr.bf16.mxu0 %v31978_v39  ;;  %v5960_v61 = vsub.f32 %v31792_v25, %v36819_v10  ;;  %v5868_v29 = vsub.f32 %v32001_v7, %v5867_v1  ;;  %v5888_v58 = vsub.f32 %v32018_v2, %v5887_v27 }
 0x9bf   : > { %v5733_v43 = vpop.permute.xlu1 %5732  ;;  %v32040_v50 = vsub.f32 %v5760_v8, %v32020_v63  ;;  %v5917_v35 = vand.u32 4294901760, %v32046_v49 }
 0x9c0   : > { %v5764_v36 = vsel %vm1996_vm1, %v5733_v43, 0  ;;  %v5961_v22 = vand.u32 4294901760, %v5960_v61  ;;  %v5869_v16 = vand.u32 4294901760, %v5868_v29  ;;  %v5898_v43 = vsub.f32 %v32023_v44, %v5897_v56 }
 0x9c1   : > { %v32042_v20 = vand.u32 4294901760, %v5764_v36  ;;  %v5907_v8 = vand.u32 4294901760, %v32040_v50  ;;  %v5889_v10 = vand.u32 4294901760, %v5888_v58  ;;  %v5918_v51 = vsub.f32 %v32046_v49, %v5917_v35 }
 0x9c2   : > { %v27497_v47 = vpack.c.bf16 %v5961_v22, %v5954_v15  ;;  %v5899_v29 = vand.u32 4294901760, %v5898_v43  ;;  %v5968_v22 = vand.u32 4294901760, %v5967_v13  ;;  %v5981_v43 = vsub.f32 %v31842_v12, %v5980_v46 }
 0x9c3   : > { %v32053_v26 = vsub.f32 %v5764_v36, %v32042_v20  ;;  %v5974_v36 = vsub.f32 %v31822_v4, %v5973_v48  ;;  %v5908_v61 = vsub.f32 %v32040_v50, %v5907_v8  ;;  %v27509_v13 = vpack.c.bf16 %v31757_v21, %v31730_v42 }
 0x9c4   : > { %v27517_v21 = vpack.c.bf16 %v31822_v4, %v31815_v55 }
 0x9c5   : > { %27488 = vmatpush3.bf16.xpose.msra.mxu0 %v31978_v39  ;;  %v5927_v5 = vand.u32 4294901760, %v32053_v26  ;;  %v5975_v48 = vand.u32 4294901760, %v5974_v36  ;;  %v5989_v36 = vand.u32 4294901760, %v5988_v38 }
 0x9c6   : > { %27490 = vmatprep.subr.bf16.mxu0 %v31994_v6 }
 0x9c7   : > { %v5928_v15 = vsub.f32 %v32053_v26, %v5927_v5  ;;  %v27501_v58 = vpack.c.bf16 %v5975_v48, %v5968_v22 }
 0x9cd   : > { %27492 = vmatpush3.bf16.xpose.msra.mxu0 %v31994_v6 }
 0x9ce   : > { %27494 = vmatprep.subr.bf16.mxu0 %v27493_v34 }
 0x9d4   : > { %24398 = vmatmul.mubr.f32.vlgmr.msra.gmra.mrb[24].mxu0 %v5869_v16  ;;  %v5919_v16 = vand.u32 4294901760, %v5918_v51 }
 0x9d5   : > { %24400 = vmatprep.mubr.f32.mxu0 %v5879_v19  ;;  %27496 = vmatpush3.bf16.xpose.msra.mxu0 %v27493_v34  ;;  %v5909_v34 = vand.u32 4294901760, %v5908_v61  ;;  %v5929_v19 = vand.u32 4294901760, %v5928_v15 }
 0x9d6   : > { %27498 = vmatprep.subr.bf16.mxu0 %v27497_v47 }
 0x9d8   : > { %24401 = vmatmul.mubr.f32.gmra.mrb[26].mxu0 %v5889_v10  ;;  %v5982_v10 = vand.u32 4294901760, %v5981_v43 }
 0x9d9   : > { %24403 = vmatprep.mubr.f32.mxu0 %v5899_v29 }
 0x9da   : > { %v27505_v61 = vpack.c.bf16 %v5989_v36, %v5982_v10 }
 0x9dc   : > { %24404 = vmatmul.mubr.f32.gmra.mrb[28].mxu0 %v5909_v34 }
 0x9dd   : > { %24406 = vmatprep.mubr.f32.mxu0 %v5919_v16  ;;  %27500 = vmatpush3.bf16.xpose.msra.mxu0 %v27497_v47 }
 0x9de   : > { %27502 = vmatprep.subr.bf16.mxu0 %v27501_v58 }
 0x9e0   : > { %24407 = vmatmul.mubr.f32.gmra.mrb[30].mxu0 %v5929_v19 }
 0x9e1   : > { %24425 = vmatprep.mubr.f32.mxu0 %v31940_v57 }
 0x9e5   : > { %27504 = vmatpush3.bf16.xpose.msra.mxu0 %v27501_v58 }
 0x9e6   : > { %27506 = vmatprep.subr.bf16.mxu0 %v27505_v61 }
 0x9ed   : > { %27508 = vmatpush3.bf16.xpose.msra.mxu0 %v27505_v61 }
 0x9ee   : > { %27510 = vmatprep.subr.bf16.mxu0 %v27509_v13 }
 0x9f4   : > { %24426 = vmatmul.mubr.f32.vlgmr.msra.gmra.mrb[24].mxu0 %v31984_v59 }
 0x9f5   : > { %24428 = vmatprep.mubr.f32.mxu0 %v31986_v3  ;;  %27512 = vmatpush3.bf16.xpose.msra.mxu0 %v27509_v13 }
 0x9f6   : > { %27514 = vmatprep.subr.bf16.mxu0 %v27513_v14 }
 0x9f8   : > { %24429 = vmatmul.mubr.f32.gmra.mrb[26].mxu0 %v32003_v31 }
 0x9f9   : > { %24431 = vmatprep.mubr.f32.mxu0 %v32012_v41 }
 0x9fc   : > { %24432 = vmatmul.mubr.f32.gmra.mrb[28].mxu0 %v32020_v63 }
 0x9fd   : > { %24434 = vmatprep.mubr.f32.mxu0 %v32025_v60  ;;  %27516 = vmatpush3.bf16.xpose.msra.mxu0 %v27513_v14 }
 0x9fe   : > { %27518 = vmatprep.subr.bf16.mxu0 %v27517_v21 }
 0xa00   : > { %24435 = vmatmul.mubr.f32.gmra.mrb[30].mxu0 %v32042_v20 }
 0xa01   : > { %24453 = vmatprep.mubr.f32.mxu0 %v31953_v40 }
 0xa05   : > { %27520 = vmatpush3.bf16.xpose.msra.mxu0 %v27517_v21 }
 0xa06   : > { %27522 = vmatprep.subr.bf16.mxu0 %v27521_v33 }
 0xa0d   : > { %27524 = vmatpush3.bf16.xpose.msra.mxu0 %v27521_v33 }
 0xa0e   : > { %27526 = vmatprep.subr.bf16.mxu0 %v31946_v54 }
 0xa14   : > { %24454 = vmatmul.mubr.f32.vlgmr.msra.gmra.mrb[24].mxu0 %v32001_v7 }
 0xa15   : > { %24456 = vmatprep.mubr.f32.mxu0 %v32010_v23  ;;  %27528 = vmatpush3.bf16.xpose.msra.mxu0 %v31946_v54 }
 0xa16   : > { %27530 = vmatprep.subr.bf16.mxu0 %v31963_v62 }
 0xa18   : > { %24457 = vmatmul.mubr.f32.gmra.mrb[26].mxu0 %v32018_v2 }
 0xa19   : > { %24459 = vmatprep.mubr.f32.mxu0 %v32023_v44 }
 0xa1c   : > { %24460 = vmatmul.mubr.f32.gmra.mrb[28].mxu0 %v32040_v50 }
 0xa1d   : > { %24462 = vmatprep.mubr.f32.mxu0 %v32046_v49  ;;  %27532 = vmatpush3.bf16.xpose.msra.mxu0 %v31963_v62 }
 0xa1e   : > { %27534 = vmatprep.subr.bf16.mxu0 %v31978_v39 }
 0xa20   : > { %24463 = vmatmul.mubr.f32.gmra.mrb[30].mxu0 %v32053_v26 }
 0xa21   : > { %24481 = vmatprep.mubr.f32.mxu0 %v5857_v53 }
 0xa25   : > { %27536 = vmatpush3.bf16.xpose.msra.mxu0 %v31978_v39 }
 0xa26   : > { %27538 = vmatprep.subr.bf16.mxu0 %v31994_v6 }
 0xa2d   : > { %27540 = vmatpush3.bf16.xpose.msra.mxu0 %v31994_v6 }
 0xa2e   : > { %27542 = vmatprep.subr.bf16.mxu0 %v31799_v11 }
 0xa34   : > { %24482 = vmatmul.mubr.f32.vlgmr.msra.gmra.mrb[24].mxu0 %v5867_v1 }
 0xa35   : > { %24484 = vmatprep.mubr.f32.mxu0 %v5877_v9  ;;  %27544 = vmatpush3.bf16.xpose.msra.mxu0 %v31799_v11 }
 0xa36   : > { %27546 = vmatprep.subr.bf16.mxu0 %v31837_v45 }
 0xa38   : > { %24485 = vmatmul.mubr.f32.gmra.mrb[26].mxu0 %v5887_v27 }
 0xa39   : > { %24487 = vmatprep.mubr.f32.mxu0 %v5897_v56 }
 0xa3c   : > { %24488 = vmatmul.mubr.f32.gmra.mrb[28].mxu0 %v5907_v8 }
 0xa3d   : > { %24490 = vmatprep.mubr.f32.mxu0 %v5917_v35  ;;  %27548 = vmatpush3.bf16.xpose.msra.mxu0 %v31837_v45 }
 0xa3e   : > { %27550 = vmatprep.subr.bf16.mxu0 %v31857_v32 }
 0xa40   : > { %24491 = vmatmul.mubr.f32.gmra.mrb[30].mxu0 %v5927_v5 }
 0xa41   : > { %24509 = vmatprep.mubr.f32.mxu0 %v31940_v57 }
 0xa45   : > { %27552 = vmatpush3.bf16.xpose.msra.mxu0 %v31857_v32 }
 0xa46   : > { %27554 = vmatprep.subr.bf16.mxu0 %v31867_v30 }
 0xa4d   : > { %27556 = vmatpush3.bf16.xpose.msra.mxu0 %v31867_v30 }
 0xa4e   : > { %27558 = vmatprep.subr.bf16.mxu0 %v31946_v54 }
 0xa54   : > { %24510 = vmatmul.mubr.f32.vlgmr.msra.gmra.mrb[24].mxu0 %v31984_v59 }
 0xa55   : > { %24512 = vmatprep.mubr.f32.mxu0 %v31986_v3  ;;  %27560 = vmatpush3.bf16.xpose.msra.mxu0 %v31946_v54 }
 0xa56   : > { %27562 = vmatprep.subr.bf16.mxu0 %v31963_v62 }
 0xa58   : > { %24513 = vmatmul.mubr.f32.gmra.mrb[26].mxu0 %v32003_v31 }
 0xa59   : > { %24515 = vmatprep.mubr.f32.mxu0 %v32012_v41 }
 0xa5c   : > { %24516 = vmatmul.mubr.f32.gmra.mrb[28].mxu0 %v32020_v63 }
 0xa5d   : > { %24518 = vmatprep.mubr.f32.mxu0 %v32025_v60  ;;  %27564 = vmatpush3.bf16.xpose.msra.mxu0 %v31963_v62 }
 0xa5e   : > { %27566 = vmatprep.subr.bf16.mxu0 %v31978_v39 }
 0xa60   : > { %24519 = vmatmul.mubr.f32.gmra.mrb[30].mxu0 %v32042_v20 }
 0xa61   : > { %24537 = vmatprep.mubr.f32.mxu0 %v31940_v57 }
 0xa65   : > { %27568 = vmatpush3.bf16.xpose.msra.mxu0 %v31978_v39 }
 0xa66   : > { %27570 = vmatprep.subr.bf16.mxu0 %v31994_v6 }
 0xa6d   : > { %27572 = vmatpush3.bf16.xpose.msra.mxu0 %v31994_v6 }
 0xa74   : > { %24538 = vmatmul.mubr.f32.vlgmr.msra.gmra.mrb[24].mxu0 %v31984_v59 }
 0xa75   : > { %24540 = vmatprep.mubr.f32.mxu0 %v31986_v3 }
 0xa78   : > { %24541 = vmatmul.mubr.f32.gmra.mrb[26].mxu0 %v32003_v31 }
 0xa79   : > { %24543 = vmatprep.mubr.f32.mxu0 %v32012_v41 }
 0xa7c   : > { %24544 = vmatmul.mubr.f32.gmra.mrb[28].mxu0 %v32020_v63 }
 0xa7d   : > { %24546 = vmatprep.mubr.f32.mxu0 %v32025_v60 }
 0xa80   : > { %24547 = vmatmul.mubr.f32.gmra.mrb[30].mxu0 %v32042_v20 }
 0xa82   : > { %v32165_v12 = vpop.f32.mrb[16].mxu0 }
 0xa83   : > { %36821 = vst [vmem:[#allocation23_spill] sm:$0xff] %v32165_v12  ;;  %v32167_v42 = vpop.f32.mrb[17].mxu0 }
 0xa84   : > { %36822 = vst [vmem:[#allocation24_spill] sm:$0xff] %v32167_v42 }
 0xa86   : > { %v32169_v4 = vpop.f32.mrb[18].mxu0 }
 0xa87   : > { %36823 = vst [vmem:[#allocation25_spill] sm:$0xff] %v32169_v4  ;;  %v32171_v45 = vpop.f32.mrb[19].mxu0 }
 0xa88   : > { %36824 = vst [vmem:[#allocation26_spill] sm:$0xff] %v32171_v45 }
 0xa8a   : > { %v32173_v25 = vpop.f32.mrb[20].mxu0 }
 0xa8b   : > { %36825 = vst [vmem:[#allocation27_spill] sm:$0xff] %v32173_v25  ;;  %v32175_v11 = vpop.f32.mrb[21].mxu0 }
 0xa8c   : > { %36826 = vst [vmem:[#allocation28_spill] sm:$0xff] %v32175_v11 }
 0xa8e   : > { %v32177_v46 = vpop.f32.mrb[22].mxu0 }
 0xa8f   : > { %36827 = vst [vmem:[#allocation29_spill] sm:$0xff] %v32177_v46  ;;  %v32179_v55 = vpop.f32.mrb[23].mxu0 }
 0xa90   : > { %36828 = vst [vmem:[#allocation30_spill] sm:$0xff] %v32179_v55 }
 0xb47   : > { %v24539_v0 = vpop.f32.mrb[24].mxu0 }
 0xb48   : > { %v6574_v32 = vpop.f32.mrb[25].mxu0  ;;  %v6623_v30 = vsel %vm2867_vm2, %v24539_v0, -inf }
 0xb49   : > { %6624 = vmax.xlane.f32.xlu1 %v6623_v30  ;;  %v6620_v57 = vsel %vm2867_vm2, %v6574_v32, -inf }
 0xb4a   : > { %6621 = vmax.xlane.f32.xlu0 %v6620_v57 }
 0xb4b   : > { %v24542_v54 = vpop.f32.mrb[26].mxu0 }
 0xb4c   : > { %v6586_v40 = vpop.f32.mrb[27].mxu0  ;;  %v6629_v59 = vsel %vm2867_vm2, %v24542_v54, -inf }
 0xb4d   : > { %v6626_v53 = vsel %vm2867_vm2, %v6586_v40, -inf }
 0xb4e   : > { %6627 = vmax.xlane.f32.xlu0 %v6626_v53 }
 0xb4f   : > { %v24545_v62 = vpop.f32.mrb[28].mxu0 }
 0xb50   : > { %v6598_v39 = vpop.f32.mrb[29].mxu0  ;;  %v6635_v31 = vsel %vm2867_vm2, %v24545_v62, -inf }
 0xb51   : > { %v6632_v3 = vsel %vm2867_vm2, %v6598_v39, -inf }
 0xb52   : > { %6630 = vmax.xlane.f32.xlu0 %v6629_v59  ;;  %6633 = vmax.xlane.f32.xlu1 %v6632_v3 }
 0xb53   : > { %v24548_v6 = vpop.f32.mrb[30].mxu0 }
 0xb54   : > { %v32186_v7 = vpop.f32.mrb[31].mxu0  ;;  %v6641_v23 = vsel %vm2867_vm2, %v24548_v6, -inf }
 0xb55   : > { %v6638_v41 = vsel %vm2867_vm2, %v32186_v7, -inf }
 0xb56   : > { %6636 = vmax.xlane.f32.xlu0 %v6635_v31 }
 0xb5a   : > { %6642 = vmax.xlane.f32.xlu0 %v6641_v23 }
 0xb63   : > { %6708 = vrot.lane.b32.xlu1 %v30625_v52, %s30170_s29 }
 0xb70   : > { %6710 = vrot.lane.b32.xlu0 %v30633_v24, %s30170_s29 }
 0xb74   : > { %6716 = vrot.lane.b32.xlu0 %v30648_v18, %s30170_s29 }
 0xb87   : > { %6639 = vmax.xlane.f32.xlu1 %v6638_v41 }
 0xb98   : > { %6712 = vrot.lane.b32.xlu1 %v30635_v28, %s30170_s29 }
 0xb9c   : > { %6714 = vrot.lane.b32.xlu1 %v30646_v17, %s30170_s29 }
 0xba0   : > { %6718 = vrot.lane.b32.xlu1 %v30657_v37, %s30170_s29 }
 0xbd6   : > { %v6625_v1 = vpop.xlane.xlu1 %6624 }
 0xbd7   : > { %v6645_v2 = vsub.f32 %v24539_v0, %v6625_v1  ;;  %v6622_v63 = vpop.xlane.xlu0 %6621 }
 0xbd8   : > { %v6644_v44 = vsub.f32 %v6574_v32, %v6622_v63  ;;  %v36829_v63 = vld [vmem:[#allocation13_spill] sm:$0xff] }
 0xbd9   : > { %v6654_v60 = vmul.f32 1.442695, %v6645_v2 }
 0xbda   : > { %v6652_v9 = vmul.f32 1.442695, %v6644_v44 }
 0xbdb   : > { %29928 = vpow2.f32 %v6654_v60  ;;  %v6628_v50 = vpop.xlane.xlu0 %6627 }
 0xbdc   : > { %29930 = vpow2.f32 %v6652_v9  ;;  %v6646_v20 = vsub.f32 %v6586_v40, %v6628_v50 }
 0xbde   : > { %v6656_v27 = vmul.f32 1.442695, %v6646_v20 }
 0xbdf   : > { %v6631_v49 = vpop.xlane.xlu0 %6630  ;;  %v6634_v56 = vpop.xlane.xlu1 %6633 }
 0xbe0   : > { %29932 = vpow2.f32 %v6656_v27  ;;  %v6647_v26 = vsub.f32 %v24542_v54, %v6631_v49  ;;  %v6648_v8 = vsub.f32 %v6598_v39, %v6634_v56 }
 0xbe2   : > { %v6658_v35 = vmul.f32 1.442695, %v6647_v26  ;;  %v6660_v47 = vmul.f32 1.442695, %v6648_v8 }
 0xbe3   : > { %v6637_v5 = vpop.xlane.xlu0 %6636  ;;  %v6709_v29 = vpop.permute.xlu1 %6708 }
 0xbe4   : > { %29934 = vpow2.f32 %v6658_v35  ;;  %v6649_v51 = vsub.f32 %v24545_v62, %v6637_v5  ;;  %v6757_v48 = vand.u32 4294901760, %v6709_v29 }
 0xbe5   : > { %v32204_v34 = vpop.eup %29928  ;;  %29936 = vpow2.f32 %v6660_v47 }
 0xbe6   : > { %v32206_v22 = vpop.eup %29930  ;;  %v6662_v15 = vmul.f32 1.442695, %v6649_v51  ;;  %v6671_v16 = vsel %vm2867_vm2, %v32204_v34, 0.0  ;;  %v6911_v19 = vsub.f32 %v6709_v29, %v6757_v48 }
 0xbe7   : > { %6672 = vadd.xlane.f32.xlu0 %v6671_v16  ;;  %v6643_v58 = vpop.xlane.xlu0 %6642  ;;  %v6668_v38 = vsel %vm2867_vm2, %v32206_v22, 0.0 }
 0xbe8   : > { %29938 = vpow2.f32 %v6662_v15  ;;  %v6651_v43 = vsub.f32 %v24548_v6, %v6643_v58  ;;  %6669 = vadd.xlane.f32.xlu1 %v6668_v38  ;;  %v6912_v14 = vand.u32 4294901760, %v6911_v19 }
 0xbea   : > { %v32212_v36 = vpop.eup %29932  ;;  %v6666_v10 = vmul.f32 1.442695, %v6651_v43  ;;  %v6913_v53 = vsub.f32 %v6911_v19, %v6912_v14 }
 0xbeb   : > { %v6711_v61 = vpop.permute.xlu0 %6710  ;;  %v6674_v13 = vsel %vm2867_vm2, %v32212_v36, 0.0 }
 0xbec   : > { %29940 = vpow2.f32 %v6666_v10  ;;  %v6760_v21 = vand.u32 4294901760, %v6711_v61  ;;  %6675 = vadd.xlane.f32.xlu1 %v6674_v13  ;;  %v6914_v31 = vand.u32 4294901760, %v6913_v53 }
 0xbee   : > { %v32216_v33 = vpop.eup %29934  ;;  %v32218_v0 = vpack.c.bf16 %v6760_v21, %v6757_v48  ;;  %v6918_v32 = vsub.f32 %v6711_v61, %v6760_v21 }
 0xbef   : > { %v32220_v30 = vpop.eup %29936  ;;  %v6677_v57 = vsel %vm2867_vm2, %v32216_v33, 0.0  ;;  %v6717_v60 = vpop.permute.xlu0 %6716 }
 0xbf0   : > { %v6919_v54 = vand.u32 4294901760, %v6918_v32  ;;  %6678 = vadd.xlane.f32.xlu0 %v6677_v57  ;;  %27574 = vmatprep.subr.bf16.mxu1 %v32218_v0  ;;  %v6680_v40 = vsel %vm2867_vm2, %v32220_v30, 0.0  ;;  %v32227_v62 = vpack.c.bf16 %v6918_v32, %v6911_v19  ;;  %v6769_v20 = vand.u32 4294901760, %v6717_v60 }
 0xbf1   : > { %6681 = vadd.xlane.f32.xlu1 %v6680_v40  ;;  %27576 = vmatpush3.bf16.msra.mxu1 %v32218_v0 }
 0xbf2   : > { %v32230_v39 = vpop.eup %29938  ;;  %v6920_v59 = vsub.f32 %v6918_v32, %v6919_v54  ;;  %v32232_v3 = vpack.c.bf16 %v6919_v54, %v6912_v14  ;;  %v6939_v26 = vsub.f32 %v6717_v60, %v6769_v20 }
 0xbf3   : > { %v6683_v6 = vsel %vm2867_vm2, %v32230_v39, 0.0 }
 0xbf4   : > { %6684 = vadd.xlane.f32.xlu0 %v6683_v6  ;;  %v6921_v23 = vand.u32 4294901760, %v6920_v59  ;;  %v6940_v29 = vand.u32 4294901760, %v6939_v26 }
 0xbf6   : > { %v32236_v41 = vpop.eup %29940  ;;  %v32238_v1 = vpack.c.bf16 %v6921_v23, %v6914_v31  ;;  %v6941_v14 = vsub.f32 %v6939_v26, %v6940_v29 }
 0xbf7   : > { %v6689_v2 = vsel %vm2867_vm2, %v32236_v41, 0.0 }
 0xbf8   : > { %6690 = vadd.xlane.f32.xlu0 %v6689_v2  ;;  %v6942_v6 = vand.u32 4294901760, %v6941_v14  ;;  %v36830_v2 = vld [vmem:[#allocation14_spill] sm:$0xff] }
 0xc0e   : > { %6720 = vrot.lane.b32.xlu0 %v36829_v63, %s30170_s29 }
 0xc12   : > { %7610 = vrot.lane.b32.xlu0 %v30625_v52, %s30171_s30 }
 0xc14   : > { %v6640_v44 = vpop.xlane.xlu1 %6639 }
 0xc15   : > { %v6650_v9 = vsub.f32 %v32186_v7, %v6640_v44 }
 0xc16   : > { %7614 = vrot.lane.b32.xlu0 %v30635_v28, %s30171_s30 }
 0xc17   : > { %v6664_v50 = vmul.f32 1.442695, %v6650_v9 }
 0xc18   : > { %v6713_v27 = vpop.permute.xlu1 %6712 }
 0xc19   : > { %29942 = vpow2.f32 %v6664_v50  ;;  %v6763_v49 = vand.u32 4294901760, %v6713_v27 }
 0xc1a   : > { %7618 = vrot.lane.b32.xlu0 %v30648_v18, %s30171_s30 }
 0xc1b   : > { %v6925_v56 = vsub.f32 %v6713_v27, %v6763_v49 }
 0xc1c   : > { %v6715_v8 = vpop.permute.xlu1 %6714 }
 0xc1d   : > { %v6926_v35 = vand.u32 4294901760, %v6925_v56  ;;  %v6766_v47 = vand.u32 4294901760, %v6715_v8 }
 0xc1e   : > { %7622 = vrot.lane.b32.xlu0 %v36829_v63, %s30171_s30 }
 0xc1f   : > { %v32253_v7 = vpack.c.bf16 %v6766_v47, %v6763_v49  ;;  %v6932_v5 = vsub.f32 %v6715_v8, %v6766_v47  ;;  %v6927_v16 = vsub.f32 %v6925_v56, %v6926_v35 }
 0xc20   : > { %v6719_v51 = vpop.permute.xlu1 %6718 }
 0xc21   : > { %v6933_v48 = vand.u32 4294901760, %v6932_v5  ;;  %v6772_v15 = vand.u32 4294901760, %v6719_v51  ;;  %27578 = vmatprep.subr.bf16.mxu1 %v32253_v7  ;;  %v32256_v58 = vpack.c.bf16 %v6932_v5, %v6925_v56  ;;  %v6928_v32 = vand.u32 4294901760, %v6927_v16 }
 0xc22   : > { %7594 = vrot.lane.b32.xlu0 %v30625_v52, %s30172_s9  ;;  %27580 = vmatpush3.bf16.msra.mxu1 %v32253_v7 }
 0xc23   : > { %v32261_v38 = vpop.eup %29942  ;;  %v32263_v19 = vpack.c.bf16 %v6772_v15, %v6769_v20  ;;  %v6946_v43 = vsub.f32 %v6719_v51, %v6772_v15  ;;  %v6934_v10 = vsub.f32 %v6932_v5, %v6933_v48  ;;  %v32265_v61 = vpack.c.bf16 %v6933_v48, %v6926_v35 }
 0xc24   : > { %v6686_v13 = vsel %vm2867_vm2, %v32261_v38, 0.0 }
 0xc25   : > { %v6947_v21 = vand.u32 4294901760, %v6946_v43  ;;  %6687 = vadd.xlane.f32.xlu1 %v6686_v13  ;;  %27582 = vmatprep.subr.bf16.mxu1 %v32263_v19  ;;  %v6935_v57 = vand.u32 4294901760, %v6934_v10  ;;  %v32270_v54 = vpack.c.bf16 %v6946_v43, %v6939_v26 }
 0xc26   : > { %7598 = vrot.lane.b32.xlu0 %v30635_v28, %s30172_s9  ;;  %27584 = vmatpush3.bf16.msra.mxu1 %v32263_v19 }
 0xc27   : > { %v32275_v40 = vpack.c.bf16 %v6935_v57, %v6928_v32  ;;  %v6948_v53 = vsub.f32 %v6946_v43, %v6947_v21  ;;  %v32277_v59 = vpack.c.bf16 %v6947_v21, %v6940_v29 }
 0xc29   : > { %v6949_v31 = vand.u32 4294901760, %v6948_v53 }
 0xc2a   : > { %7602 = vrot.lane.b32.xlu0 %v30648_v18, %s30172_s9 }
 0xc2b   : > { %v32281_v23 = vpack.c.bf16 %v6949_v31, %v6942_v6 }
 0xc2e   : > { %7606 = vrot.lane.b32.xlu0 %v36829_v63, %s30172_s9 }
 0xc36   : > { %6722 = vrot.lane.b32.xlu1 %v36830_v2, %s30170_s29 }
 0xc3a   : > { %7612 = vrot.lane.b32.xlu1 %v30633_v24, %s30171_s30 }
 0xc3e   : > { %7616 = vrot.lane.b32.xlu1 %v30646_v17, %s30171_s30 }
 0xc42   : > { %7620 = vrot.lane.b32.xlu1 %v30657_v37, %s30171_s30 }
 0xc46   : > { %7624 = vrot.lane.b32.xlu1 %v36830_v2, %s30171_s30 }
 0xc4a   : > { %7596 = vrot.lane.b32.xlu1 %v30633_v24, %s30172_s9 }
 0xc4e   : > { %7600 = vrot.lane.b32.xlu1 %v30646_v17, %s30172_s9 }
 0xc52   : > { %7604 = vrot.lane.b32.xlu1 %v30657_v37, %s30172_s9 }
 0xc56   : > { %7608 = vrot.lane.b32.xlu1 %v36830_v2, %s30172_s9 }
 0xc74   : > { %v6673_v8 = vpop.xlane.xlu0 %6672 }
 0xc75   : > { %v6670_v44 = vpop.xlane.xlu1 %6669 }
 0xc76   : > { %29944 = vrcp.f32 %v6670_v44 }
 0xc77   : > { %29946 = vrcp.f32 %v6673_v8 }
 0xc79   : > { %v6676_v35 = vpop.xlane.xlu1 %6675 }
 0xc7a   : > { %29948 = vrcp.f32 %v6676_v35 }
 0xc7d   : > { %v6679_v47 = vpop.xlane.xlu0 %6678 }
 0xc7e   : > { %29950 = vrcp.f32 %v6679_v47 }
 0xc80   : > { %v29945_v60 = vpop.eup %29944 }
 0xc81   : > { %v6693_v9 = vmul.f32 %v29945_v60, %v32206_v22  ;;  %v6682_v22 = vpop.xlane.xlu1 %6681  ;;  %v6685_v5 = vpop.xlane.xlu0 %6684 }
 0xc82   : > { %29952 = vrcp.f32 %v6682_v22  ;;  %v29947_v51 = vpop.eup %29946 }
 0xc83   : > { %v6733_v50 = vsel %vm2867_vm2, %v6693_v9, 0  ;;  %29954 = vrcp.f32 %v6685_v5  ;;  %v6695_v16 = vmul.f32 %v29947_v51, %v32204_v34 }
 0xc84   : > { %v32305_v20 = vand.u32 4294901760, %v6733_v50  ;;  %v29949_v48 = vpop.eup %29948 }
 0xc85   : > { %v6691_v29 = vpop.xlane.xlu0 %6690  ;;  %v6697_v43 = vmul.f32 %v29949_v48, %v32212_v36  ;;  %v6736_v21 = vsel %vm2867_vm2, %v6695_v16, 0 }
 0xc86   : > { %v32308_v27 = vsub.f32 %v6733_v50, %v32305_v20  ;;  %29956 = vrcp.f32 %v6691_v29  ;;  %v32320_v6 = vand.u32 4294901760, %v6736_v21 }
 0xc87   : > { %v6739_v32 = vsel %vm2867_vm2, %v6697_v43, 0 }
 0xc88   : > { %v36657_v49 = vand.u32 4294901760, %v32308_v27  ;;  %v29951_v15 = vpop.eup %29950  ;;  %v32322_v44 = vand.u32 4294901760, %v6739_v32  ;;  %v32330_v50 = vsub.f32 %v6736_v21, %v32320_v6 }
 0xc89   : > { %v6721_v10 = vpop.permute.xlu0 %6720  ;;  %v6699_v14 = vmul.f32 %v29951_v15, %v32216_v33 }
 0xc8a   : > { %v6832_v56 = vsub.f32 %v32308_v27, %v36657_v49  ;;  %v36654_v51 = vand.u32 4294901760, %v32330_v50 }
 0xc8b   : > { %v6742_v34 = vsel %vm2867_vm2, %v6699_v14, 0 }
 0xc8c   : > { %v6833_v26 = vand.u32 4294901760, %v6832_v56  ;;  %v29953_v13 = vpop.eup %29952  ;;  %v32327_v9 = vand.u32 4294901760, %v6742_v34  ;;  %v6775_v56 = vand.u32 4294901760, %v6721_v10 }
 0xc8d   : > { %v6701_v57 = vmul.f32 %v29953_v13, %v32220_v30  ;;  %v29955_v53 = vpop.eup %29954  ;;  %v7611_v31 = vpop.permute.xlu0 %7610  ;;  %v32333_v30 = vsub.f32 %v6739_v32, %v32322_v44 }
 0xc8e   : > { %24565 = vmatprep.mubr.f32.mxu1 %v6833_v26  ;;  %v6703_v60 = vmul.f32 %v29955_v53, %v32230_v39  ;;  %v32339_v22 = vsub.f32 %v6742_v34, %v32327_v9  ;;  %v32342_v5 = vsub.f32 %v6721_v10, %v6775_v56  ;;  %v32345_v29 = vsel %vm1996_vm1, %v7611_v31, 0 }
 0xc8f   : > { %v6745_v36 = vsel %vm2867_vm2, %v6701_v57, 0  ;;  %v36655_v48 = vand.u32 4294901760, %v32333_v30  ;;  %v36656_v13 = vand.u32 4294901760, %v32345_v29  ;;  %v6842_v53 = vsub.f32 %v32330_v50, %v36654_v51 }
 0xc90   : > { %v29957_v33 = vpop.eup %29956  ;;  %v32335_v26 = vand.u32 4294901760, %v6745_v36  ;;  %v6748_v47 = vsel %vm2867_vm2, %v6703_v60, 0  ;;  %v36660_v21 = vand.u32 4294901760, %v32342_v5 }
 0xc91   : > { %v7615_v8 = vpop.permute.xlu0 %7614  ;;  %v6707_v39 = vmul.f32 %v29957_v33, %v32236_v41  ;;  %v32352_v16 = vand.u32 4294901760, %v6748_v47  ;;  %v36658_v41 = vand.u32 4294901760, %v32339_v22  ;;  %v6852_v31 = vsub.f32 %v32333_v30, %v36655_v48 }
 0xc92   : > { %v32350_v15 = vsub.f32 %v6745_v36, %v32335_v26  ;;  %v32359_v32 = vsel %vm1996_vm1, %v7615_v8, 0  ;;  %v6843_v48 = vand.u32 4294901760, %v6842_v53 }
 0xc93   : > { %v6754_v10 = vsel %vm2867_vm2, %v6707_v39, 0  ;;  %v32373_v33 = vsub.f32 %v6748_v47, %v32352_v16  ;;  %v32380_v39 = vsub.f32 %v32345_v29, %v36656_v13  ;;  %v6862_v47 = vsub.f32 %v32339_v22, %v36658_v41 }
 0xc94   : > { %v36659_v60 = vand.u32 4294901760, %v32350_v15  ;;  %v6853_v49 = vand.u32 4294901760, %v6852_v31  ;;  %v6955_v41 = vsub.f32 %v32342_v5, %v36660_v21 }
 0xc95   : > { %v7619_v57 = vpop.permute.xlu0 %7618  ;;  %v36663_v51 = vand.u32 4294901760, %v32380_v39 }
 0xc96   : > { %v6956_v45 = vand.u32 4294901760, %v6955_v41 }
 0xcb2   : > { %v6688_v35 = vpop.xlane.xlu1 %6687 }
 0xcb3   : > { %29958 = vrcp.f32 %v6688_v35  ;;  %v32375_v35 = vand.u32 4294901760, %v6754_v10 }
 0xcb6   : > { %v6723_v43 = vpop.permute.xlu1 %6722 }
 0xcb7   : > { %v6778_v14 = vand.u32 4294901760, %v6723_v43 }
 0xcb9   : > { %v32367_v34 = vpack.c.bf16 %v6778_v14, %v6775_v56  ;;  %v32369_v36 = vsub.f32 %v6723_v43, %v6778_v14  ;;  %v32402_v43 = vsel %vm1996_vm1, %v7619_v57, 0  ;;  %v7623_v14 = vpop.permute.xlu0 %7622  ;;  %v6863_v57 = vand.u32 4294901760, %v6862_v47 }
 0xcba   : > { %v7613_v8 = vpop.permute.xlu1 %7612  ;;  %v32431_v47 = vsel %vm1996_vm1, %v7623_v14, 0 }
 0xcbb   : > { %v32384_v56 = vsel %vm1996_vm1, %v7613_v8, 0  ;;  %27586 = vmatprep.subr.bf16.mxu1 %v32367_v34  ;;  %v6872_v8 = vsub.f32 %v32350_v15, %v36659_v60  ;;  %v32411_v60 = vsub.f32 %v6754_v10, %v32375_v35  ;;  %v36832_v21 = vand.u32 4294901760, %v32369_v36 }
 0xcbc   : > { %27588 = vmatpush3.bf16.msra.mxu1 %v32367_v34  ;;  %v36831_v53 = vand.u32 4294901760, %v32384_v56  ;;  %v36837_v42 = vand.u32 4294901760, %v32431_v47 }
 0xcbd   : > { %v29959_v13 = vpop.eup %29958  ;;  %27590 = vmatprep.subr.bf16.mxu1 %v32238_v1  ;;  %v6962_v12 = vsub.f32 %v32369_v36, %v36832_v21  ;;  %v36834_v21 = vand.u32 4294901760, %v32373_v33 }
 0xcbe   : > { %v32407_v46 = vsub.f32 %v32384_v56, %v36831_v53  ;;  %v7617_v31 = vpop.permute.xlu1 %7616  ;;  %v6705_v25 = vmul.f32 %v29959_v13, %v32261_v38  ;;  %v36833_v53 = vand.u32 4294901760, %v32359_v32  ;;  %v32492_v63 = vsub.f32 %v32431_v47, %v36837_v42 }
 0xcbf   : > { %v32415_v4 = vsel %vm1996_vm1, %v7617_v31, 0  ;;  %24566 = vmatmul.mubr.f32.vlgmr.msra.gmra.mrb[40].mxu1 %v6843_v48  ;;  %v6882_v31 = vsub.f32 %v32373_v33, %v36834_v21  ;;  %v6963_v21 = vand.u32 4294901760, %v6962_v12 }
 0xcc0   : > { %v32423_v2 = vsub.f32 %v32359_v32, %v36833_v53  ;;  %v36664_v38 = vand.u32 4294901760, %v32407_v46  ;;  %v36662_v13 = vand.u32 4294901760, %v32415_v4  ;;  %24568 = vmatprep.mubr.f32.mxu1 %v6853_v49  ;;  %27592 = vmatpush3.bf16.msra.mxu1 %v32238_v1  ;;  %v6751_v10 = vsel %vm2867_vm2, %v6705_v25, 0 }
 0xcc1   : > { %27594 = vmatprep.subr.bf16.mxu1 %v32275_v40  ;;  %v32437_v53 = vand.u32 4294901760, %v6751_v10  ;;  %v6873_v25 = vand.u32 4294901760, %v6872_v8  ;;  %v6883_v12 = vand.u32 4294901760, %v6882_v31 }
 0xcc2   : > { %v32442_v49 = vsub.f32 %v32415_v4, %v36662_v13  ;;  %v7621_v1 = vpop.permute.xlu1 %7620  ;;  %v32449_v14 = vpack.c.bf16 %v36664_v38, %v36663_v51  ;;  %v36667_v51 = vand.u32 4294901760, %v32423_v2 }
 0xcc3   : > { %v32452_v55 = vsel %vm1996_vm1, %v7621_v1, 0  ;;  %24569 = vmatmul.mubr.f32.gmra.mrb[42].mxu1 %v6863_v57  ;;  %v32455_v11 = vsub.f32 %v6751_v10, %v32437_v53  ;;  %v36835_v1 = vand.u32 4294901760, %v32402_v43 }
 0xcc4   : > { %v36668_v8 = vand.u32 4294901760, %v32442_v49  ;;  %v36665_v48 = vand.u32 4294901760, %v32452_v55  ;;  %24571 = vmatprep.mubr.f32.mxu1 %v6873_v25  ;;  %27596 = vmatpush3.bf16.msra.mxu1 %v32275_v40  ;;  %v36836_v40 = vand.u32 4294901760, %v32411_v60 }
 0xcc5   : > { %v32465_v57 = vsub.f32 %v32402_v43, %v36835_v1  ;;  %27598 = vmatprep.subr.bf16.mxu1 %v32281_v23  ;;  %v6891_v10 = vand.u32 4294901760, %v32455_v11  ;;  %v27601_v1 = vpack.c.bf16 %v6963_v21, %v6956_v45 }
 0xcc6   : > { %v32472_v38 = vsub.f32 %v32452_v55, %v36665_v48  ;;  %v7625_v25 = vpop.permute.xlu1 %7624  ;;  %v6902_v41 = vsub.f32 %v32411_v60, %v36836_v40  ;;  %v32487_v48 = vpack.c.bf16 %v36668_v8, %v36667_v51  ;;  %v7856_v8 = vand.u32 4294901760, %v32492_v63 }
 0xcc7   : > { %v32478_v13 = vsel %vm1996_vm1, %v7625_v25, 0  ;;  %24572 = vmatmul.mubr.f32.gmra.mrb[44].mxu1 %v6883_v12  ;;  %v6892_v31 = vsub.f32 %v32455_v11, %v6891_v10  ;;  %v7842_v45 = vand.u32 4294901760, %v32465_v57 }
 0xcc8   : > { %v7849_v25 = vand.u32 4294901760, %v32472_v38  ;;  %v7680_v12 = vand.u32 4294901760, %v32478_v13  ;;  %27600 = vmatpush3.bf16.msra.mxu1 %v32281_v23  ;;  %v6903_v51 = vand.u32 4294901760, %v6902_v41 }
 0xcc9   : > { %27602 = vmatprep.subr.bf16.mxu1 %v27601_v1  ;;  %v6893_v21 = vand.u32 4294901760, %v6892_v31 }
 0xcca   : > { %v32501_v40 = vsub.f32 %v32478_v13, %v7680_v12  ;;  %v32507_v42 = vpack.c.bf16 %v7849_v25, %v7842_v45 }
 0xccb   : > { %24574 = vmatprep.mubr.f32.mxu1 %v6893_v21  ;;  %v36853_v21 = vand.u32 4294901760, %v32431_v47  ;;  %v36855_v47 = vand.u32 4294901760, %v32380_v39 }
 0xccc   : > { %v7863_v23 = vand.u32 4294901760, %v32501_v40  ;;  %24575 = vmatmul.mubr.f32.gmra.mrb[46].mxu1 %v6903_v51  ;;  %v27617_v51 = vpack.c.bf16 %v32369_v36, %v32342_v5 }
 0xccd   : > { %27604 = vmatpush3.bf16.msra.mxu1 %v27601_v1  ;;  %24593 = vmatprep.mubr.f32.mxu1 %v32305_v20  ;;  %v36841_v1 = vand.u32 4294901760, %v32339_v22  ;;  %v7815_v13 = vsub.f32 %v32380_v39, %v36855_v47 }
 0xcce   : > { %27606 = vmatprep.subr.bf16.mxu1 %v32227_v62  ;;  %v32517_v41 = vpack.c.bf16 %v7863_v23, %v7856_v8 }
 0xcd0   : > { %24594 = vmatmul.mubr.f32.vlgmr.msra.gmra.mrb[40].mxu1 %v32320_v6 }
 0xcd1   : > { %27608 = vmatpush3.bf16.msra.mxu1 %v32227_v62  ;;  %24596 = vmatprep.mubr.f32.mxu1 %v32322_v44  ;;  %v36838_v62 = vand.u32 4294901760, %v32308_v27 }
 0xcd2   : > { %27610 = vmatprep.subr.bf16.mxu1 %v32256_v58 }
 0xcd4   : > { %24597 = vmatmul.mubr.f32.gmra.mrb[42].mxu1 %v32327_v9 }
 0xcd5   : > { %27612 = vmatpush3.bf16.msra.mxu1 %v32256_v58  ;;  %24599 = vmatprep.mubr.f32.mxu1 %v32335_v26  ;;  %v36839_v58 = vand.u32 4294901760, %v32330_v50 }
 0xcd6   : > { %27614 = vmatprep.subr.bf16.mxu1 %v32270_v54 }
 0xcd8   : > { %24600 = vmatmul.mubr.f32.gmra.mrb[44].mxu1 %v32352_v16 }
 0xcd9   : > { %27616 = vmatpush3.bf16.msra.mxu1 %v32270_v54  ;;  %24602 = vmatprep.mubr.f32.mxu1 %v32437_v53  ;;  %v36840_v54 = vand.u32 4294901760, %v32333_v30 }
 0xcda   : > { %27618 = vmatprep.subr.bf16.mxu1 %v27617_v51 }
 0xcdc   : > { %24603 = vmatmul.mubr.f32.gmra.mrb[46].mxu1 %v32375_v35 }
 0xcdd   : > { %27620 = vmatpush3.bf16.msra.mxu1 %v27617_v51  ;;  %24621 = vmatprep.mubr.f32.mxu1 %v32308_v27  ;;  %v36842_v27 = vand.u32 4294901760, %v32350_v15  ;;  %v32644_v51 = vpack.c.bf16 %v7680_v12, %v36853_v21 }
 0xcde   : > { %27622 = vmatprep.subr.bf16.mxu1 %v32218_v0 }
 0xce0   : > { %24622 = vmatmul.mubr.f32.vlgmr.msra.gmra.mrb[40].mxu1 %v32330_v50  ;;  %v36843_v50 = vand.u32 4294901760, %v32373_v33 }
 0xce1   : > { %27624 = vmatpush3.bf16.msra.mxu1 %v32218_v0  ;;  %24624 = vmatprep.mubr.f32.mxu1 %v32333_v30  ;;  %v36845_v30 = vand.u32 4294901760, %v32369_v36  ;;  %v36850_v36 = vand.u32 4294901760, %v32415_v4  ;;  %v36851_v4 = vand.u32 4294901760, %v32402_v43 }
 0xce2   : > { %27626 = vmatprep.subr.bf16.mxu1 %v32253_v7 }
 0xce4   : > { %24625 = vmatmul.mubr.f32.gmra.mrb[42].mxu1 %v32339_v22  ;;  %v36847_v22 = vand.u32 4294901760, %v32345_v29 }
 0xce5   : > { %27628 = vmatpush3.bf16.msra.mxu1 %v32253_v7  ;;  %24627 = vmatprep.mubr.f32.mxu1 %v32350_v15  ;;  %v36849_v15 = vand.u32 4294901760, %v32359_v32 }
 0xce6   : > { %27630 = vmatprep.subr.bf16.mxu1 %v32263_v19 }
 0xce8   : > { %24628 = vmatmul.mubr.f32.gmra.mrb[44].mxu1 %v32373_v33 }
 0xce9   : > { %27632 = vmatpush3.bf16.msra.mxu1 %v32263_v19  ;;  %24630 = vmatprep.mubr.f32.mxu1 %v32455_v11  ;;  %v7595_v11 = vpop.permute.xlu0 %7594 }
 0xcea   : > { %27634 = vmatprep.subr.bf16.mxu1 %v32367_v34 }
 0xcec   : > { %24631 = vmatmul.mubr.f32.gmra.mrb[46].mxu1 %v32411_v60 }
 0xced   : > { %27636 = vmatpush3.bf16.msra.mxu1 %v32367_v34  ;;  %24649 = vmatprep.mubr.f32.mxu1 %v36838_v62  ;;  %v36854_v62 = vand.u32 4294901760, %v32407_v46 }
 0xcee   : > { %27638 = vmatprep.subr.bf16.mxu1 %v32232_v3 }
 0xcf0   : > { %24650 = vmatmul.mubr.f32.vlgmr.msra.gmra.mrb[40].mxu1 %v36839_v58  ;;  %v7822_v58 = vsub.f32 %v32407_v46, %v36854_v62 }
 0xcf1   : > { %27640 = vmatpush3.bf16.msra.mxu1 %v32232_v3  ;;  %24652 = vmatprep.mubr.f32.mxu1 %v36840_v54  ;;  %v36844_v3 = vand.u32 4294901760, %v32342_v5 }
 0xcf2   : > { %27642 = vmatprep.subr.bf16.mxu1 %v32265_v61 }
 0xcf3   : > { %v27649_v31 = vpack.c.bf16 %v36845_v30, %v36844_v3 }
 0xcf4   : > { %24653 = vmatmul.mubr.f32.gmra.mrb[42].mxu1 %v36841_v1 }
 0xcf5   : > { %27644 = vmatpush3.bf16.msra.mxu1 %v32265_v61  ;;  %24655 = vmatprep.mubr.f32.mxu1 %v36842_v27  ;;  %v36846_v61 = vand.u32 4294901760, %v32411_v60 }
 0xcf6   : > { %27646 = vmatprep.subr.bf16.mxu1 %v32277_v59 }
 0xcf8   : > { %24656 = vmatmul.mubr.f32.gmra.mrb[44].mxu1 %v36843_v50 }
 0xcf9   : > { %27648 = vmatpush3.bf16.msra.mxu1 %v32277_v59  ;;  %24658 = vmatprep.mubr.f32.mxu1 %v6891_v10  ;;  %v7626_v59 = vsel %vm1996_vm1, %v7595_v11, 0 }
 0xcfa   : > { %27650 = vmatprep.subr.bf16.mxu1 %v27649_v31 }
 0xcfc   : > { %24659 = vmatmul.mubr.f32.gmra.mrb[46].mxu1 %v36846_v61  ;;  %v7823_v61 = vand.u32 4294901760, %v7822_v58 }
 0xcfd   : > { %27652 = vmatpush3.bf16.msra.mxu1 %v27649_v31  ;;  %24677 = vmatprep.mubr.f32.mxu1 %v32305_v20 }
 0xcfe   : > { %27654 = vmatprep.subr.bf16.mxu1 %v32218_v0 }
 0xd00   : > { %24678 = vmatmul.mubr.f32.vlgmr.msra.gmra.mrb[40].mxu1 %v32320_v6 }
 0xd01   : > { %27656 = vmatpush3.bf16.msra.mxu1 %v32218_v0  ;;  %24680 = vmatprep.mubr.f32.mxu1 %v32322_v44  ;;  %v32590_v0 = vand.u32 4294901760, %v7626_v59 }
 0xd02   : > { %27658 = vmatprep.subr.bf16.mxu1 %v32253_v7 }
 0xd04   : > { %24681 = vmatmul.mubr.f32.gmra.mrb[42].mxu1 %v32327_v9 }
 0xd05   : > { %27660 = vmatpush3.bf16.msra.mxu1 %v32253_v7  ;;  %24683 = vmatprep.mubr.f32.mxu1 %v32335_v26  ;;  %v36848_v7 = vand.u32 4294901760, %v32384_v56 }
 0xd06   : > { %27662 = vmatprep.subr.bf16.mxu1 %v32263_v19 }
 0xd07   : > { %v32596_v5 = vpack.c.bf16 %v36848_v7, %v36847_v22  ;;  %v7816_v7 = vand.u32 4294901760, %v7815_v13 }
 0xd08   : > { %24684 = vmatmul.mubr.f32.gmra.mrb[44].mxu1 %v32352_v16 }
 0xd09   : > { %27664 = vmatpush3.bf16.msra.mxu1 %v32263_v19  ;;  %24686 = vmatprep.mubr.f32.mxu1 %v32437_v53  ;;  %v32603_v19 = vsub.f32 %v7626_v59, %v32590_v0 }
 0xd0a   : > { %27666 = vmatprep.subr.bf16.mxu1 %v32367_v34 }
 0xd0b   : > { %v7733_v29 = vand.u32 4294901760, %v32603_v19 }
 0xd0c   : > { %24687 = vmatmul.mubr.f32.gmra.mrb[46].mxu1 %v32375_v35 }
 0xd0d   : > { %27668 = vmatpush3.bf16.msra.mxu1 %v32367_v34  ;;  %24705 = vmatprep.mubr.f32.mxu1 %v32305_v20  ;;  %v32613_v34 = vpack.c.bf16 %v36850_v36, %v36849_v15  ;;  %v7597_v20 = vpop.permute.xlu1 %7596 }
 0xd0e   : > { %27670 = vmatprep.subr.bf16.mxu1 %v32596_v5 }
 0xd10   : > { %24706 = vmatmul.mubr.f32.vlgmr.msra.gmra.mrb[40].mxu1 %v32320_v6  ;;  %v7734_v6 = vsub.f32 %v32603_v19, %v7733_v29 }
 0xd11   : > { %24708 = vmatprep.mubr.f32.mxu1 %v32322_v44  ;;  %v7599_v44 = vpop.permute.xlu0 %7598  ;;  %v7601_v60 = vpop.permute.xlu1 %7600 }
 0xd12   : > { %v7630_v56 = vsel %vm1996_vm1, %v7599_v44, 0  ;;  %v27685_v44 = vpack.c.bf16 %v7823_v61, %v7816_v7 }
 0xd13   : > { %v32636_v10 = vand.u32 4294901760, %v7630_v56 }
 0xd14   : > { %24709 = vmatmul.mubr.f32.gmra.mrb[42].mxu1 %v32327_v9  ;;  %v7735_v9 = vand.u32 4294901760, %v7734_v6 }
 0xd15   : > { %24711 = vmatprep.mubr.f32.mxu1 %v32335_v26  ;;  %v36852_v26 = vand.u32 4294901760, %v32452_v55  ;;  %v7603_v33 = vpop.permute.xlu0 %7602  ;;  %v7632_v55 = vsel %vm1996_vm1, %v7601_v60, 0  ;;  %v32660_v12 = vsub.f32 %v7630_v56, %v32636_v10 }
 0xd16   : > { %27672 = vmatpush3.bf16.xpose.msra.mxu1 %v32596_v5  ;;  %v7634_v43 = vsel %vm1996_vm1, %v7603_v33, 0  ;;  %v32653_v27 = vand.u32 4294901760, %v7632_v55 }
 0xd17   : > { %27674 = vmatprep.subr.bf16.mxu1 %v32613_v34  ;;  %v32628_v32 = vpack.c.bf16 %v36852_v26, %v36851_v4  ;;  %v32662_v50 = vand.u32 4294901760, %v7634_v43  ;;  %v7753_v6 = vand.u32 4294901760, %v32660_v12  ;;  %v36857_v26 = vand.u32 4294901760, %v32423_v2 }
 0xd18   : > { %24712 = vmatmul.mubr.f32.gmra.mrb[44].mxu1 %v32352_v16  ;;  %v7628_v16 = vsel %vm1996_vm1, %v7597_v20, 0  ;;  %v32668_v59 = vsub.f32 %v7632_v55, %v32653_v27 }
 0xd19   : > { %24714 = vmatprep.mubr.f32.mxu1 %v32437_v53  ;;  %v32634_v53 = vand.u32 4294901760, %v7628_v16  ;;  %v7607_v54 = vpop.permute.xlu0 %7606  ;;  %v32673_v15 = vsub.f32 %v7634_v43, %v32662_v50  ;;  %v7829_v60 = vsub.f32 %v32423_v2, %v36857_v26  ;;  %v7754_v43 = vsub.f32 %v32660_v12, %v7753_v6 }
 0xd1a   : > { %v7638_v30 = vsel %vm1996_vm1, %v7607_v54, 0  ;;  %v7843_v26 = vsub.f32 %v32465_v57, %v7842_v45  ;;  %v7864_v45 = vsub.f32 %v32501_v40, %v7863_v23  ;;  %v27705_v23 = vpack.c.bf16 %v32442_v49, %v32423_v2 }
 0xd1b   : > { %v32651_v1 = vsub.f32 %v7628_v16, %v32634_v53  ;;  %v32675_v36 = vand.u32 4294901760, %v7638_v30  ;;  %v7773_v21 = vand.u32 4294901760, %v32673_v15  ;;  %v7830_v58 = vand.u32 4294901760, %v7829_v60 }
 0xd1c   : > { %24715 = vmatmul.mubr.f32.gmra.mrb[46].mxu1 %v32375_v35  ;;  %v7605_v35 = vpop.permute.xlu1 %7604  ;;  %v27713_v2 = vpack.c.bf16 %v32501_v40, %v32492_v63 }
 0xd1d   : > { %24733 = vmatprep.mubr.f32.mxu1 %v7735_v9  ;;  %v7636_v3 = vsel %vm1996_vm1, %v7605_v35, 0  ;;  %v7743_v11 = vand.u32 4294901760, %v32651_v1  ;;  %v36856_v9 = vand.u32 4294901760, %v32442_v49  ;;  %v7763_v35 = vand.u32 4294901760, %v32668_v59 }
 0xd1e   : > { %27676 = vmatpush3.bf16.xpose.msra.mxu1 %v32613_v34  ;;  %v32670_v22 = vand.u32 4294901760, %v7636_v3  ;;  %v32696_v55 = vsub.f32 %v7638_v30, %v32675_v36  ;;  %v7755_v30 = vand.u32 4294901760, %v7754_v43 }
 0xd1f   : > { %27678 = vmatprep.subr.bf16.mxu1 %v32628_v32  ;;  %v7836_v4 = vsub.f32 %v32442_v49, %v36856_v9  ;;  %v7744_v33 = vsub.f32 %v32651_v1, %v7743_v11  ;;  %v7764_v13 = vsub.f32 %v32668_v59, %v7763_v35 }
 0xd20   : > { %v7609_v31 = vpop.permute.xlu1 %7608  ;;  %v32690_v16 = vsub.f32 %v7636_v3, %v32670_v22  ;;  %v7793_v61 = vand.u32 4294901760, %v32696_v55 }
 0xd21   : > { %v7640_v20 = vsel %vm1996_vm1, %v7609_v31, 0  ;;  %v7837_v62 = vand.u32 4294901760, %v7836_v4  ;;  %v7745_v54 = vand.u32 4294901760, %v7744_v33  ;;  %v7774_v31 = vsub.f32 %v32673_v15, %v7773_v21 }
 0xd22   : > { %v32692_v56 = vand.u32 4294901760, %v7640_v20  ;;  %v7783_v3 = vand.u32 4294901760, %v32690_v16  ;;  %v7765_v9 = vand.u32 4294901760, %v7764_v13  ;;  %v7794_v43 = vsub.f32 %v32696_v55, %v7793_v61 }
 0xd23   : > { %v27689_v7 = vpack.c.bf16 %v7837_v62, %v7830_v58  ;;  %v7775_v33 = vand.u32 4294901760, %v7774_v31  ;;  %v7844_v62 = vand.u32 4294901760, %v7843_v26  ;;  %v7857_v31 = vsub.f32 %v32492_v63, %v7856_v8 }
 0xd24   : > { %v32703_v47 = vsub.f32 %v7640_v20, %v32692_v56  ;;  %v7850_v20 = vsub.f32 %v32472_v38, %v7849_v25  ;;  %v7784_v4 = vsub.f32 %v32690_v16, %v7783_v3  ;;  %v27701_v26 = vpack.c.bf16 %v32407_v46, %v32380_v39 }
 0xd25   : > { %v27709_v46 = vpack.c.bf16 %v32472_v38, %v32465_v57 }
 0xd26   : > { %27680 = vmatpush3.bf16.xpose.msra.mxu1 %v32628_v32  ;;  %v7803_v60 = vand.u32 4294901760, %v32703_v47  ;;  %v7851_v25 = vand.u32 4294901760, %v7850_v20  ;;  %v7865_v20 = vand.u32 4294901760, %v7864_v45 }
 0xd27   : > { %27682 = vmatprep.subr.bf16.mxu1 %v32644_v51 }
 0xd28   : > { %v7804_v58 = vsub.f32 %v32703_v47, %v7803_v60  ;;  %v27693_v13 = vpack.c.bf16 %v7851_v25, %v7844_v62 }
 0xd2e   : > { %27684 = vmatpush3.bf16.xpose.msra.mxu1 %v32644_v51 }
 0xd2f   : > { %27686 = vmatprep.subr.bf16.mxu1 %v27685_v44 }
 0xd35   : > { %24734 = vmatmul.mubr.f32.vlgmr.msra.gmra.mrb[48].mxu1 %v7745_v54  ;;  %v7795_v54 = vand.u32 4294901760, %v7794_v43 }
 0xd36   : > { %24736 = vmatprep.mubr.f32.mxu1 %v7755_v30  ;;  %27688 = vmatpush3.bf16.xpose.msra.mxu1 %v27685_v44  ;;  %v7785_v44 = vand.u32 4294901760, %v7784_v4  ;;  %v7805_v30 = vand.u32 4294901760, %v7804_v58 }
 0xd37   : > { %27690 = vmatprep.subr.bf16.mxu1 %v27689_v7 }
 0xd39   : > { %24737 = vmatmul.mubr.f32.gmra.mrb[50].mxu1 %v7765_v9  ;;  %v7858_v9 = vand.u32 4294901760, %v7857_v31 }
 0xd3a   : > { %24739 = vmatprep.mubr.f32.mxu1 %v7775_v33 }
 0xd3b   : > { %v27697_v4 = vpack.c.bf16 %v7865_v20, %v7858_v9 }
 0xd3d   : > { %24740 = vmatmul.mubr.f32.gmra.mrb[52].mxu1 %v7785_v44 }
 0xd3e   : > { %24742 = vmatprep.mubr.f32.mxu1 %v7795_v54  ;;  %27692 = vmatpush3.bf16.xpose.msra.mxu1 %v27689_v7 }
 0xd3f   : > { %27694 = vmatprep.subr.bf16.mxu1 %v27693_v13 }
 0xd41   : > { %24743 = vmatmul.mubr.f32.gmra.mrb[54].mxu1 %v7805_v30 }
 0xd42   : > { %24761 = vmatprep.mubr.f32.mxu1 %v32590_v0 }
 0xd46   : > { %27696 = vmatpush3.bf16.xpose.msra.mxu1 %v27693_v13 }
 0xd47   : > { %27698 = vmatprep.subr.bf16.mxu1 %v27697_v4 }
 0xd4e   : > { %27700 = vmatpush3.bf16.xpose.msra.mxu1 %v27697_v4 }
 0xd4f   : > { %27702 = vmatprep.subr.bf16.mxu1 %v27701_v26 }
 0xd55   : > { %24762 = vmatmul.mubr.f32.vlgmr.msra.gmra.mrb[48].mxu1 %v32634_v53 }
 0xd56   : > { %24764 = vmatprep.mubr.f32.mxu1 %v32636_v10  ;;  %27704 = vmatpush3.bf16.xpose.msra.mxu1 %v27701_v26 }
 0xd57   : > { %27706 = vmatprep.subr.bf16.mxu1 %v27705_v23 }
 0xd59   : > { %24765 = vmatmul.mubr.f32.gmra.mrb[50].mxu1 %v32653_v27 }
 0xd5a   : > { %24767 = vmatprep.mubr.f32.mxu1 %v32662_v50 }
 0xd5d   : > { %24768 = vmatmul.mubr.f32.gmra.mrb[52].mxu1 %v32670_v22 }
 0xd5e   : > { %24770 = vmatprep.mubr.f32.mxu1 %v32675_v36  ;;  %27708 = vmatpush3.bf16.xpose.msra.mxu1 %v27705_v23 }
 0xd5f   : > { %27710 = vmatprep.subr.bf16.mxu1 %v27709_v46 }
 0xd61   : > { %24771 = vmatmul.mubr.f32.gmra.mrb[54].mxu1 %v32692_v56 }
 0xd62   : > { %24789 = vmatprep.mubr.f32.mxu1 %v32603_v19 }
 0xd66   : > { %27712 = vmatpush3.bf16.xpose.msra.mxu1 %v27709_v46 }
 0xd67   : > { %27714 = vmatprep.subr.bf16.mxu1 %v27713_v2 }
 0xd6e   : > { %27716 = vmatpush3.bf16.xpose.msra.mxu1 %v27713_v2 }
 0xd6f   : > { %27718 = vmatprep.subr.bf16.mxu1 %v32596_v5 }
 0xd75   : > { %24790 = vmatmul.mubr.f32.vlgmr.msra.gmra.mrb[48].mxu1 %v32651_v1 }
 0xd76   : > { %24792 = vmatprep.mubr.f32.mxu1 %v32660_v12  ;;  %27720 = vmatpush3.bf16.xpose.msra.mxu1 %v32596_v5 }
 0xd77   : > { %27722 = vmatprep.subr.bf16.mxu1 %v32613_v34 }
 0xd79   : > { %24793 = vmatmul.mubr.f32.gmra.mrb[50].mxu1 %v32668_v59 }
 0xd7a   : > { %24795 = vmatprep.mubr.f32.mxu1 %v32673_v15 }
 0xd7d   : > { %24796 = vmatmul.mubr.f32.gmra.mrb[52].mxu1 %v32690_v16 }
 0xd7e   : > { %24798 = vmatprep.mubr.f32.mxu1 %v32696_v55  ;;  %27724 = vmatpush3.bf16.xpose.msra.mxu1 %v32613_v34 }
 0xd7f   : > { %27726 = vmatprep.subr.bf16.mxu1 %v32628_v32 }
 0xd81   : > { %24799 = vmatmul.mubr.f32.gmra.mrb[54].mxu1 %v32703_v47 }
 0xd82   : > { %24817 = vmatprep.mubr.f32.mxu1 %v7733_v29 }
 0xd86   : > { %27728 = vmatpush3.bf16.xpose.msra.mxu1 %v32628_v32 }
 0xd87   : > { %27730 = vmatprep.subr.bf16.mxu1 %v32644_v51 }
 0xd8e   : > { %27732 = vmatpush3.bf16.xpose.msra.mxu1 %v32644_v51 }
 0xd8f   : > { %27734 = vmatprep.subr.bf16.mxu1 %v32449_v14 }
 0xd95   : > { %24818 = vmatmul.mubr.f32.vlgmr.msra.gmra.mrb[48].mxu1 %v7743_v11 }
 0xd96   : > { %24820 = vmatprep.mubr.f32.mxu1 %v7753_v6  ;;  %27736 = vmatpush3.bf16.xpose.msra.mxu1 %v32449_v14 }
 0xd97   : > { %27738 = vmatprep.subr.bf16.mxu1 %v32487_v48 }
 0xd99   : > { %24821 = vmatmul.mubr.f32.gmra.mrb[50].mxu1 %v7763_v35 }
 0xd9a   : > { %24823 = vmatprep.mubr.f32.mxu1 %v7773_v21 }
 0xd9d   : > { %24824 = vmatmul.mubr.f32.gmra.mrb[52].mxu1 %v7783_v3 }
 0xd9e   : > { %24826 = vmatprep.mubr.f32.mxu1 %v7793_v61  ;;  %27740 = vmatpush3.bf16.xpose.msra.mxu1 %v32487_v48 }
 0xd9f   : > { %27742 = vmatprep.subr.bf16.mxu1 %v32507_v42 }
 0xda1   : > { %24827 = vmatmul.mubr.f32.gmra.mrb[54].mxu1 %v7803_v60 }
 0xda2   : > { %24845 = vmatprep.mubr.f32.mxu1 %v32590_v0 }
 0xda6   : > { %27744 = vmatpush3.bf16.xpose.msra.mxu1 %v32507_v42 }
 0xda7   : > { %27746 = vmatprep.subr.bf16.mxu1 %v32517_v41 }
 0xdae   : > { %27748 = vmatpush3.bf16.xpose.msra.mxu1 %v32517_v41 }
 0xdaf   : > { %27750 = vmatprep.subr.bf16.mxu1 %v32596_v5 }
 0xdb5   : > { %24846 = vmatmul.mubr.f32.vlgmr.msra.gmra.mrb[48].mxu1 %v32634_v53 }
 0xdb6   : > { %24848 = vmatprep.mubr.f32.mxu1 %v32636_v10  ;;  %27752 = vmatpush3.bf16.xpose.msra.mxu1 %v32596_v5 }
 0xdb7   : > { %27754 = vmatprep.subr.bf16.mxu1 %v32613_v34 }
 0xdb9   : > { %24849 = vmatmul.mubr.f32.gmra.mrb[50].mxu1 %v32653_v27 }
 0xdba   : > { %24851 = vmatprep.mubr.f32.mxu1 %v32662_v50 }
 0xdbd   : > { %24852 = vmatmul.mubr.f32.gmra.mrb[52].mxu1 %v32670_v22 }
 0xdbe   : > { %24854 = vmatprep.mubr.f32.mxu1 %v32675_v36  ;;  %27756 = vmatpush3.bf16.xpose.msra.mxu1 %v32613_v34 }
 0xdbf   : > { %27758 = vmatprep.subr.bf16.mxu1 %v32628_v32 }
 0xdc1   : > { %24855 = vmatmul.mubr.f32.gmra.mrb[54].mxu1 %v32692_v56 }
 0xdc2   : > { %24873 = vmatprep.mubr.f32.mxu1 %v32590_v0 }
 0xdc6   : > { %27760 = vmatpush3.bf16.xpose.msra.mxu1 %v32628_v32 }
 0xdc7   : > { %27762 = vmatprep.subr.bf16.mxu1 %v32644_v51 }
 0xdce   : > { %27764 = vmatpush3.bf16.xpose.msra.mxu1 %v32644_v51 }
 0xdd5   : > { %24874 = vmatmul.mubr.f32.vlgmr.msra.gmra.mrb[48].mxu1 %v32634_v53 }
 0xdd6   : > { %24876 = vmatprep.mubr.f32.mxu1 %v32636_v10 }
 0xdd9   : > { %24877 = vmatmul.mubr.f32.gmra.mrb[50].mxu1 %v32653_v27 }
 0xdda   : > { %24879 = vmatprep.mubr.f32.mxu1 %v32662_v50 }
 0xddd   : > { %24880 = vmatmul.mubr.f32.gmra.mrb[52].mxu1 %v32670_v22 }
 0xdde   : > { %24882 = vmatprep.mubr.f32.mxu1 %v32675_v36 }
 0xde1   : > { %24883 = vmatmul.mubr.f32.gmra.mrb[54].mxu1 %v32692_v56 }
 0xde3   : > { %v32815_v63 = vpop.f32.mrb[40].mxu1 }
 0xde4   : > { %v32817_v39 = vpop.f32.mrb[41].mxu1 }
 0xde7   : > { %v32819_v38 = vpop.f32.mrb[42].mxu1 }
 0xde8   : > { %v32821_v48 = vpop.f32.mrb[43].mxu1 }
 0xdeb   : > { %v32823_v49 = vpop.f32.mrb[44].mxu1 }
 0xdec   : > { %v32825_v14 = vpop.f32.mrb[45].mxu1 }
 0xdef   : > { %v32827_v8 = vpop.f32.mrb[46].mxu1 }
 0xdf0   : > { %v32829_v57 = vpop.f32.mrb[47].mxu1 }
 0xea8   : > { %v24875_v40 = vpop.f32.mrb[48].mxu1 }
 0xea9   : > { %v8450_v42 = vpop.f32.mrb[49].mxu1  ;;  %v8499_v41 = vsel %vm2867_vm2, %v24875_v40, -inf }
 0xeaa   : > { %8500 = vmax.xlane.f32.xlu1 %v8499_v41  ;;  %v8496_v0 = vsel %vm2867_vm2, %v8450_v42, -inf }
 0xeab   : > { %8497 = vmax.xlane.f32.xlu0 %v8496_v0 }
 0xeac   : > { %v24878_v5 = vpop.f32.mrb[50].mxu1 }
 0xead   : > { %v8462_v19 = vpop.f32.mrb[51].mxu1  ;;  %v8505_v53 = vsel %vm2867_vm2, %v24878_v5, -inf }
 0xeae   : > { %v8502_v29 = vsel %vm2867_vm2, %v8462_v19, -inf }
 0xeaf   : > { %8503 = vmax.xlane.f32.xlu0 %v8502_v29 }
 0xeb0   : > { %v24881_v34 = vpop.f32.mrb[52].mxu1 }
 0xeb1   : > { %v8474_v32 = vpop.f32.mrb[53].mxu1  ;;  %v8511_v27 = vsel %vm2867_vm2, %v24881_v34, -inf }
 0xeb2   : > { %v8508_v10 = vsel %vm2867_vm2, %v8474_v32, -inf }
 0xeb3   : > { %8506 = vmax.xlane.f32.xlu0 %v8505_v53  ;;  %8509 = vmax.xlane.f32.xlu1 %v8508_v10 }
 0xeb4   : > { %v24884_v51 = vpop.f32.mrb[54].mxu1 }
 0xeb5   : > { %v32836_v1 = vpop.f32.mrb[55].mxu1  ;;  %v8517_v12 = vsel %vm2867_vm2, %v24884_v51, -inf }
 0xeb6   : > { %v8514_v50 = vsel %vm2867_vm2, %v32836_v1, -inf }
 0xeb7   : > { %8512 = vmax.xlane.f32.xlu0 %v8511_v27  ;;  %v36859_v27 = vld [vmem:[#allocation24_spill] sm:$0xff] }
 0xebb   : > { %8518 = vmax.xlane.f32.xlu0 %v8517_v12 }
 0xec4   : > { %8584 = vrot.lane.b32.xlu1 %v30625_v52, %s30173_s10 }
 0xed1   : > { %8586 = vrot.lane.b32.xlu0 %v30633_v24, %s30173_s10 }
 0xed5   : > { %8592 = vrot.lane.b32.xlu0 %v30648_v18, %s30173_s10 }
 0xee8   : > { %8515 = vmax.xlane.f32.xlu1 %v8514_v50 }
 0xef9   : > { %8588 = vrot.lane.b32.xlu1 %v30635_v28, %s30173_s10 }
 0xefd   : > { %8590 = vrot.lane.b32.xlu1 %v30646_v17, %s30173_s10 }
 0xf01   : > { %8594 = vrot.lane.b32.xlu1 %v30657_v37, %s30173_s10 }
 0xf37   : > { %v8501_v52 = vpop.xlane.xlu1 %8500 }
 0xf38   : > { %v8521_v11 = vsub.f32 %v24875_v40, %v8501_v52  ;;  %v8498_v59 = vpop.xlane.xlu0 %8497 }
 0xf39   : > { %v8520_v24 = vsub.f32 %v8450_v42, %v8498_v59 }
 0xf3a   : > { %v8530_v22 = vmul.f32 1.442695, %v8521_v11 }
 0xf3b   : > { %v8528_v15 = vmul.f32 1.442695, %v8520_v24 }
 0xf3c   : > { %29960 = vpow2.f32 %v8530_v22  ;;  %v8504_v18 = vpop.xlane.xlu0 %8503 }
 0xf3d   : > { %29962 = vpow2.f32 %v8528_v15  ;;  %v8522_v36 = vsub.f32 %v8462_v19, %v8504_v18  ;;  %v36860_v15 = vld [vmem:[#allocation26_spill] sm:$0xff] }
 0xf3f   : > { %v8532_v6 = vmul.f32 1.442695, %v8522_v36 }
 0xf40   : > { %v8507_v16 = vpop.xlane.xlu0 %8506  ;;  %v8510_v56 = vpop.xlane.xlu1 %8509 }
 0xf41   : > { %29964 = vpow2.f32 %v8532_v6  ;;  %v8523_v28 = vsub.f32 %v24878_v5, %v8507_v16  ;;  %v8524_v35 = vsub.f32 %v8474_v32, %v8510_v56 }
 0xf43   : > { %v8534_v17 = vmul.f32 1.442695, %v8523_v28  ;;  %v8536_v55 = vmul.f32 1.442695, %v8524_v35 }
 0xf44   : > { %v8513_v21 = vpop.xlane.xlu0 %8512  ;;  %v8585_v37 = vpop.permute.xlu1 %8584 }
 0xf45   : > { %29966 = vpow2.f32 %v8534_v17  ;;  %v8525_v47 = vsub.f32 %v24881_v34, %v8513_v21  ;;  %v8633_v3 = vand.u32 4294901760, %v8585_v37 }
 0xf46   : > { %v32854_v61 = vpop.eup %29960  ;;  %29968 = vpow2.f32 %v8536_v55 }
 0xf47   : > { %v32856_v7 = vpop.eup %29962  ;;  %v8538_v60 = vmul.f32 1.442695, %v8525_v47  ;;  %v8547_v33 = vsel %vm2867_vm2, %v32854_v61, 0.0  ;;  %v8787_v44 = vsub.f32 %v8585_v37, %v8633_v3  ;;  %v36861_v47 = vld [vmem:[#allocation28_spill] sm:$0xff] }
 0xf48   : > { %8548 = vadd.xlane.f32.xlu0 %v8547_v33  ;;  %v8519_v43 = vpop.xlane.xlu0 %8518  ;;  %v8544_v25 = vsel %vm2867_vm2, %v32856_v7, 0.0 }
 0xf49   : > { %29970 = vpow2.f32 %v8538_v60  ;;  %v8527_v62 = vsub.f32 %v24884_v51, %v8519_v43  ;;  %8545 = vadd.xlane.f32.xlu1 %v8544_v25  ;;  %v8788_v30 = vand.u32 4294901760, %v8787_v44  ;;  %v36858_v51 = vld [vmem:[#allocation13_spill] sm:$0xff] }
 0xf4b   : > { %v32862_v58 = vpop.eup %29964  ;;  %v8542_v54 = vmul.f32 1.442695, %v8527_v62  ;;  %v8789_v40 = vsub.f32 %v8787_v44, %v8788_v30 }
 0xf4c   : > { %v8587_v13 = vpop.permute.xlu0 %8586  ;;  %v8550_v45 = vsel %vm2867_vm2, %v32862_v58, 0.0 }
 0xf4d   : > { %29972 = vpow2.f32 %v8542_v54  ;;  %v8636_v31 = vand.u32 4294901760, %v8587_v13  ;;  %8551 = vadd.xlane.f32.xlu1 %v8550_v45  ;;  %v8790_v29 = vand.u32 4294901760, %v8789_v40 }
 0xf4f   : > { %v32866_v20 = vpop.eup %29966  ;;  %v32868_v9 = vpack.c.bf16 %v8636_v31, %v8633_v3  ;;  %v8794_v4 = vsub.f32 %v8587_v13, %v8636_v31 }
 0xf50   : > { %v32870_v26 = vpop.eup %29968  ;;  %v8553_v23 = vsel %vm2867_vm2, %v32866_v20, 0.0  ;;  %v8593_v50 = vpop.permute.xlu0 %8592 }
 0xf51   : > { %v8795_v46 = vand.u32 4294901760, %v8794_v4  ;;  %8554 = vadd.xlane.f32.xlu0 %v8553_v23  ;;  %27766 = vmatprep.subr.bf16.mxu0 %v32868_v9  ;;  %v8556_v2 = vsel %vm2867_vm2, %v32870_v26, 0.0  ;;  %v32877_v42 = vpack.c.bf16 %v8794_v4, %v8787_v44  ;;  %v8645_v59 = vand.u32 4294901760, %v8593_v50 }
 0xf52   : > { %8557 = vadd.xlane.f32.xlu1 %v8556_v2  ;;  %27768 = vmatpush3.bf16.msra.mxu0 %v32868_v9  ;;  %v36862_v2 = vld [vmem:[#allocation30_spill] sm:$0xff] }
 0xf53   : > { %v32880_v41 = vpop.eup %29970  ;;  %v8796_v0 = vsub.f32 %v8794_v4, %v8795_v46  ;;  %v32882_v5 = vpack.c.bf16 %v8795_v46, %v8788_v30  ;;  %v8815_v36 = vsub.f32 %v8593_v50, %v8645_v59 }
 0xf54   : > { %v8559_v19 = vsel %vm2867_vm2, %v32880_v41, 0.0 }
 0xf55   : > { %8560 = vadd.xlane.f32.xlu0 %v8559_v19  ;;  %v8797_v34 = vand.u32 4294901760, %v8796_v0  ;;  %v36863_v0 = vld [vmem:[#allocation14_spill] sm:$0xff]  ;;  %v36865_v19 = vld [vmem:[#allocation25_spill] sm:$0xff] }
 0xf57   : > { %v32886_v32 = vpop.eup %29972  ;;  %v32888_v53 = vpack.c.bf16 %v8797_v34, %v8790_v29  ;;  %v36866_v29 = vld [vmem:[#allocation27_spill] sm:$0xff] }
 0xf58   : > { %v8565_v10 = vsel %vm2867_vm2, %v32886_v32, 0.0 }
 0xf59   : > { %8566 = vadd.xlane.f32.xlu0 %v8565_v10 }
 0xf6f   : > { %8596 = vrot.lane.b32.xlu0 %v36858_v51, %s30173_s10 }
 0xf73   : > { %9478 = vrot.lane.b32.xlu0 %v36859_v27, %s30174_s11 }
 0xf75   : > { %v8516_v12 = vpop.xlane.xlu1 %8515 }
 0xf76   : > { %v8526_v52 = vsub.f32 %v32836_v1, %v8516_v12 }
 0xf77   : > { %9510 = vrot.lane.b32.xlu0 %v32817_v39, %s36670_s12  ;;  %v8816_v39 = vand.u32 4294901760, %v8815_v36 }
 0xf78   : > { %v8540_v11 = vmul.f32 1.442695, %v8526_v52 }
 0xf79   : > { %v8589_v24 = vpop.permute.xlu1 %8588  ;;  %v8817_v44 = vsub.f32 %v8815_v36, %v8816_v39 }
 0xf7a   : > { %29974 = vpow2.f32 %v8540_v11  ;;  %v8639_v22 = vand.u32 4294901760, %v8589_v24 }
 0xf7b   : > { %9482 = vrot.lane.b32.xlu0 %v36860_v15, %s30174_s11  ;;  %v8818_v23 = vand.u32 4294901760, %v8817_v44 }
 0xf7c   : > { %v8801_v18 = vsub.f32 %v8589_v24, %v8639_v22 }
 0xf7d   : > { %v8591_v6 = vpop.permute.xlu1 %8590 }
 0xf7e   : > { %v8802_v16 = vand.u32 4294901760, %v8801_v18  ;;  %v8642_v56 = vand.u32 4294901760, %v8591_v6 }
 0xf7f   : > { %9514 = vrot.lane.b32.xlu0 %v32821_v48, %s36670_s12 }
 0xf80   : > { %v32903_v1 = vpack.c.bf16 %v8642_v56, %v8639_v22  ;;  %v8808_v28 = vsub.f32 %v8591_v6, %v8642_v56  ;;  %v8803_v21 = vsub.f32 %v8801_v18, %v8802_v16 }
 0xf81   : > { %v8595_v35 = vpop.permute.xlu1 %8594 }
 0xf82   : > { %v8809_v17 = vand.u32 4294901760, %v8808_v28  ;;  %v8648_v55 = vand.u32 4294901760, %v8595_v35  ;;  %27770 = vmatprep.subr.bf16.mxu0 %v32903_v1  ;;  %v32906_v37 = vpack.c.bf16 %v8808_v28, %v8801_v18  ;;  %v8804_v54 = vand.u32 4294901760, %v8803_v21 }
 0xf83   : > { %9486 = vrot.lane.b32.xlu0 %v36861_v47, %s30174_s11  ;;  %27772 = vmatpush3.bf16.msra.mxu0 %v32903_v1 }
 0xf84   : > { %v32911_v3 = vpop.eup %29974  ;;  %v32913_v48 = vpack.c.bf16 %v8648_v55, %v8645_v59  ;;  %v8822_v60 = vsub.f32 %v8595_v35, %v8648_v55  ;;  %v8810_v33 = vsub.f32 %v8808_v28, %v8809_v17  ;;  %v32915_v43 = vpack.c.bf16 %v8809_v17, %v8802_v16 }
 0xf85   : > { %v8562_v25 = vsel %vm2867_vm2, %v32911_v3, 0.0 }
 0xf86   : > { %v8823_v62 = vand.u32 4294901760, %v8822_v60  ;;  %8563 = vadd.xlane.f32.xlu1 %v8562_v25  ;;  %27774 = vmatprep.subr.bf16.mxu0 %v32913_v48  ;;  %v8811_v13 = vand.u32 4294901760, %v8810_v33  ;;  %v32920_v45 = vpack.c.bf16 %v8822_v60, %v8815_v36 }
 0xf87   : > { %9518 = vrot.lane.b32.xlu0 %v32825_v14, %s36670_s12  ;;  %27776 = vmatpush3.bf16.msra.mxu0 %v32913_v48  ;;  %v36864_v14 = vld [vmem:[#allocation23_spill] sm:$0xff] }
 0xf88   : > { %v32925_v30 = vpack.c.bf16 %v8811_v13, %v8804_v54  ;;  %v8824_v31 = vsub.f32 %v8822_v60, %v8823_v62  ;;  %v32927_v4 = vpack.c.bf16 %v8823_v62, %v8816_v39 }
 0xf8a   : > { %v8825_v46 = vand.u32 4294901760, %v8824_v31 }
 0xf8b   : > { %9490 = vrot.lane.b32.xlu0 %v36862_v2, %s30174_s11 }
 0xf8c   : > { %v32931_v40 = vpack.c.bf16 %v8825_v46, %v8818_v23 }
 0xf8f   : > { %9522 = vrot.lane.b32.xlu0 %v32829_v57, %s36670_s12  ;;  %v36867_v57 = vld [vmem:[#allocation29_spill] sm:$0xff] }
 0xf97   : > { %8598 = vrot.lane.b32.xlu1 %v36863_v0, %s30173_s10 }
 0xf9b   : > { %9480 = vrot.lane.b32.xlu1 %v36864_v14, %s30174_s11 }
 0xf9f   : > { %9512 = vrot.lane.b32.xlu1 %v32815_v63, %s36670_s12 }
 0xfa3   : > { %9484 = vrot.lane.b32.xlu1 %v36865_v19, %s30174_s11 }
 0xfa7   : > { %9516 = vrot.lane.b32.xlu1 %v32819_v38, %s36670_s12 }
 0xfab   : > { %9488 = vrot.lane.b32.xlu1 %v36866_v29, %s30174_s11 }
 0xfaf   : > { %9520 = vrot.lane.b32.xlu1 %v32823_v49, %s36670_s12 }
 0xfb3   : > { %9492 = vrot.lane.b32.xlu1 %v36867_v57, %s30174_s11 }
 0xfb7   : > { %9524 = vrot.lane.b32.xlu1 %v32827_v8, %s36670_s12 }
 0xfd5   : > { %v8549_v8 = vpop.xlane.xlu0 %8548 }
 0xfd6   : > { %v8546_v34 = vpop.xlane.xlu1 %8545 }
 0xfd7   : > { %29976 = vrcp.f32 %v8546_v34 }
 0xfd8   : > { %29978 = vrcp.f32 %v8549_v8 }
 0xfda   : > { %v8552_v52 = vpop.xlane.xlu1 %8551 }
 0xfdb   : > { %29980 = vrcp.f32 %v8552_v52 }
 0xfde   : > { %v8555_v11 = vpop.xlane.xlu0 %8554 }
 0xfdf   : > { %29982 = vrcp.f32 %v8555_v11 }
 0xfe1   : > { %v29977_v63 = vpop.eup %29976 }
 0xfe2   : > { %v8569_v10 = vmul.f32 %v29977_v63, %v32856_v7  ;;  %v8558_v7 = vpop.xlane.xlu1 %8557  ;;  %v8561_v59 = vpop.xlane.xlu0 %8560 }
 0xfe3   : > { %29984 = vrcp.f32 %v8558_v7  ;;  %v29979_v24 = vpop.eup %29978 }
 0xfe4   : > { %v8609_v51 = vsel %vm2867_vm2, %v8569_v10, 0  ;;  %29986 = vrcp.f32 %v8561_v59  ;;  %v8571_v18 = vmul.f32 %v29979_v24, %v32854_v61 }
 0xfe5   : > { %v32955_v38 = vand.u32 4294901760, %v8609_v51  ;;  %v29981_v15 = vpop.eup %29980 }
 0xfe6   : > { %v8567_v22 = vpop.xlane.xlu0 %8566  ;;  %v8573_v6 = vmul.f32 %v29981_v15, %v32862_v58  ;;  %v8612_v56 = vsel %vm2867_vm2, %v8571_v18, 0 }
 0xfe7   : > { %v32958_v27 = vsub.f32 %v8609_v51, %v32955_v38  ;;  %29988 = vrcp.f32 %v8567_v22  ;;  %v32970_v55 = vand.u32 4294901760, %v8612_v56 }
 0xfe8   : > { %v8615_v35 = vsel %vm2867_vm2, %v8573_v6, 0 }
 0xfe9   : > { %v8707_v49 = vand.u32 4294901760, %v32958_v27  ;;  %v29983_v36 = vpop.eup %29982  ;;  %v32972_v21 = vand.u32 4294901760, %v8615_v35  ;;  %v32978_v33 = vsub.f32 %v8612_v56, %v32970_v55 }
 0xfea   : > { %v8575_v28 = vmul.f32 %v29983_v36, %v32866_v20  ;;  %v8597_v20 = vpop.permute.xlu0 %8596 }
 0xfeb   : > { %v8708_v12 = vsub.f32 %v32958_v27, %v8707_v49  ;;  %v8651_v13 = vand.u32 4294901760, %v8597_v20  ;;  %v8717_v31 = vand.u32 4294901760, %v32978_v33 }
 0xfec   : > { %v8618_v61 = vsel %vm2867_vm2, %v8575_v28, 0 }
 0xfed   : > { %v8709_v50 = vand.u32 4294901760, %v8708_v12  ;;  %v29985_v16 = vpop.eup %29984  ;;  %v32980_v25 = vand.u32 4294901760, %v8618_v61  ;;  %v33000_v57 = vsub.f32 %v8597_v20, %v8651_v13 }
 0xfee   : > { %v29987_v39 = vpop.eup %29986  ;;  %v8577_v17 = vmul.f32 %v29985_v16, %v32870_v26  ;;  %v32983_v26 = vsub.f32 %v8615_v35, %v32972_v21 }
 0xfef   : > { %24901 = vmatprep.mubr.f32.mxu0 %v8709_v50  ;;  %v8579_v47 = vmul.f32 %v29987_v39, %v32880_v41  ;;  %v32991_v23 = vsub.f32 %v8618_v61, %v32980_v25  ;;  %v8830_v7 = vand.u32 4294901760, %v33000_v57 }
 0xff0   : > { %v8621_v58 = vsel %vm2867_vm2, %v8577_v17, 0  ;;  %v8727_v0 = vand.u32 4294901760, %v32983_v26 }
 0xff1   : > { %v29989_v60 = vpop.eup %29988  ;;  %v32985_v62 = vand.u32 4294901760, %v8621_v58  ;;  %v8624_v54 = vsel %vm2867_vm2, %v8579_v47, 0  ;;  %v8737_v10 = vand.u32 4294901760, %v32991_v23  ;;  %v8831_v39 = vsub.f32 %v33000_v57, %v8830_v7 }
 0xff2   : > { %v8583_v41 = vmul.f32 %v29989_v60, %v32886_v32  ;;  %v32993_v46 = vand.u32 4294901760, %v8624_v54  ;;  %v8718_v32 = vsub.f32 %v32978_v33, %v8717_v31  ;;  %v8728_v12 = vsub.f32 %v32983_v26, %v8727_v0 }
 0xff3   : > { %v32997_v14 = vsub.f32 %v8621_v58, %v32985_v62  ;;  %v8738_v24 = vsub.f32 %v32991_v23, %v8737_v10  ;;  %v8832_v60 = vand.u32 4294901760, %v8831_v39 }
 0xff4   : > { %v8630_v29 = vsel %vm2867_vm2, %v8583_v41, 0  ;;  %v33011_v51 = vsub.f32 %v8624_v54, %v32993_v46  ;;  %v8719_v59 = vand.u32 4294901760, %v8718_v32  ;;  %v8729_v15 = vand.u32 4294901760, %v8728_v12 }
 0xff5   : > { %v8747_v50 = vand.u32 4294901760, %v32997_v14  ;;  %v33017_v8 = vand.u32 4294901760, %v8630_v29  ;;  %v8739_v28 = vand.u32 4294901760, %v8738_v24 }
 0xff6   : > { %v8757_v22 = vand.u32 4294901760, %v33011_v51 }
 0xff7   : > { %v8748_v18 = vsub.f32 %v32997_v14, %v8747_v50  ;;  %v33033_v6 = vsub.f32 %v8630_v29, %v33017_v8 }
 0xff9   : > { %v8749_v17 = vand.u32 4294901760, %v8748_v18  ;;  %v8777_v61 = vand.u32 4294901760, %v33033_v6  ;;  %v9479_v18 = vpop.permute.xlu0 %9478 }
0x1013   : > { %v8564_v44 = vpop.xlane.xlu1 %8563 }
0x1014   : > { %29990 = vrcp.f32 %v8564_v44  ;;  %v8778_v44 = vsub.f32 %v33033_v6, %v8777_v61 }
0x1017   : > { %v8599_v2 = vpop.permute.xlu1 %8598 }
0x1018   : > { %v8654_v19 = vand.u32 4294901760, %v8599_v2 }
0x101a   : > { %v33005_v34 = vpack.c.bf16 %v8654_v19, %v8651_v13  ;;  %v33007_v63 = vsub.f32 %v8599_v2, %v8654_v19  ;;  %v8779_v2 = vand.u32 4294901760, %v8778_v44 }
0x101c   : > { %v8837_v52 = vand.u32 4294901760, %v33007_v63  ;;  %27778 = vmatprep.subr.bf16.mxu0 %v33005_v34 }
0x101d   : > { %27780 = vmatpush3.bf16.msra.mxu0 %v33005_v34 }
0x101e   : > { %v29991_v11 = vpop.eup %29990  ;;  %27782 = vmatprep.subr.bf16.mxu0 %v32888_v53  ;;  %v8838_v16 = vsub.f32 %v33007_v63, %v8837_v52 }
0x101f   : > { %v8581_v36 = vmul.f32 %v29991_v11, %v32911_v3  ;;  %v8758_v3 = vsub.f32 %v33011_v51, %v8757_v22 }
0x1020   : > { %24902 = vmatmul.mubr.f32.vlgmr.msra.gmra.mrb[32].mxu0 %v8719_v59 }
0x1021   : > { %24904 = vmatprep.mubr.f32.mxu0 %v8729_v15  ;;  %27784 = vmatpush3.bf16.msra.mxu0 %v32888_v53  ;;  %v8627_v56 = vsel %vm2867_vm2, %v8581_v36, 0  ;;  %v8839_v53 = vand.u32 4294901760, %v8838_v16  ;;  %v8759_v58 = vand.u32 4294901760, %v8758_v3  ;;  %v9481_v15 = vpop.permute.xlu1 %9480 }
0x1022   : > { %27786 = vmatprep.subr.bf16.mxu0 %v32925_v30  ;;  %v33047_v35 = vand.u32 4294901760, %v8627_v56 }
0x1023   : > { %v27793_v54 = vpack.c.bf16 %v8839_v53, %v8832_v60 }
0x1024   : > { %24905 = vmatmul.mubr.f32.gmra.mrb[34].mxu0 %v8739_v28  ;;  %v33051_v47 = vsub.f32 %v8627_v56, %v33047_v35 }
0x1025   : > { %24907 = vmatprep.mubr.f32.mxu0 %v8749_v17  ;;  %27788 = vmatpush3.bf16.msra.mxu0 %v32925_v30  ;;  %v27809_v30 = vpack.c.bf16 %v33007_v63, %v33000_v57  ;;  %v9513_v36 = vpop.permute.xlu1 %9512 }
0x1026   : > { %27790 = vmatprep.subr.bf16.mxu0 %v32931_v40  ;;  %v8767_v20 = vand.u32 4294901760, %v33051_v47 }
0x1028   : > { %24908 = vmatmul.mubr.f32.gmra.mrb[36].mxu0 %v8759_v58  ;;  %v8768_v41 = vsub.f32 %v33051_v47, %v8767_v20 }
0x1029   : > { %27792 = vmatpush3.bf16.msra.mxu0 %v32931_v40  ;;  %v9485_v16 = vpop.permute.xlu1 %9484 }
0x102a   : > { %27794 = vmatprep.subr.bf16.mxu0 %v27793_v54  ;;  %v8769_v13 = vand.u32 4294901760, %v8768_v41 }
0x102c   : > { %24910 = vmatprep.mubr.f32.mxu0 %v8769_v13 }
0x102d   : > { %24911 = vmatmul.mubr.f32.gmra.mrb[38].mxu0 %v8779_v2  ;;  %v9517_v28 = vpop.permute.xlu1 %9516 }
0x102e   : > { %27796 = vmatpush3.bf16.msra.mxu0 %v27793_v54  ;;  %24929 = vmatprep.mubr.f32.mxu0 %v32955_v38  ;;  %v36869_v54 = vld [vmem:[#allocation16_spill] sm:$0xff] }
0x102f   : > { %27798 = vmatprep.subr.bf16.mxu0 %v32877_v42  ;;  %v9566_v41 = vsel %vm1996_vm1, %v36869_v54, %v9479_v18 }
0x1031   : > { %24930 = vmatmul.mubr.f32.vlgmr.msra.gmra.mrb[32].mxu0 %v32970_v55  ;;  %v9489_v39 = vpop.permute.xlu1 %9488 }
0x1032   : > { %27800 = vmatpush3.bf16.msra.mxu0 %v32877_v42  ;;  %24932 = vmatprep.mubr.f32.mxu0 %v32972_v21  ;;  %v27841_v42 = vpack.c.bf16 %v8837_v52, %v8830_v7 }
0x1033   : > { %27802 = vmatprep.subr.bf16.mxu0 %v32906_v37 }
0x1035   : > { %24933 = vmatmul.mubr.f32.gmra.mrb[34].mxu0 %v32980_v25  ;;  %v9521_v17 = vpop.permute.xlu1 %9520 }
0x1036   : > { %27804 = vmatpush3.bf16.msra.mxu0 %v32906_v37  ;;  %24935 = vmatprep.mubr.f32.mxu0 %v32985_v62 }
0x1037   : > { %27806 = vmatprep.subr.bf16.mxu0 %v32920_v45 }
0x1039   : > { %24936 = vmatmul.mubr.f32.gmra.mrb[36].mxu0 %v32993_v46  ;;  %v9493_v53 = vpop.permute.xlu1 %9492 }
0x103a   : > { %27808 = vmatpush3.bf16.msra.mxu0 %v32920_v45  ;;  %24938 = vmatprep.mubr.f32.mxu0 %v33047_v35  ;;  %v9595_v45 = vld [vmem:[%s36605_s5 + $0x18] sm:$0xff] }
0x103b   : > { %27810 = vmatprep.subr.bf16.mxu0 %v27809_v30  ;;  %v9637_v40 = vand.u32 4294901760, %v9595_v45 }
0x103d   : > { %24939 = vmatmul.mubr.f32.gmra.mrb[38].mxu0 %v33017_v8  ;;  %v9525_v58 = vpop.permute.xlu1 %9524 }
0x103e   : > { %27812 = vmatpush3.bf16.msra.mxu0 %v27809_v30  ;;  %24957 = vmatprep.mubr.f32.mxu0 %v32958_v27 }
0x103f   : > { %27814 = vmatprep.subr.bf16.mxu0 %v32868_v9 }
0x1041   : > { %24958 = vmatmul.mubr.f32.vlgmr.msra.gmra.mrb[32].mxu0 %v32978_v33 }
0x1042   : > { %27816 = vmatpush3.bf16.msra.mxu0 %v32868_v9  ;;  %24960 = vmatprep.mubr.f32.mxu0 %v32983_v26 }
0x1043   : > { %27818 = vmatprep.subr.bf16.mxu0 %v32903_v1 }
0x1045   : > { %24961 = vmatmul.mubr.f32.gmra.mrb[34].mxu0 %v32991_v23 }
0x1046   : > { %27820 = vmatpush3.bf16.msra.mxu0 %v32903_v1  ;;  %24963 = vmatprep.mubr.f32.mxu0 %v32997_v14 }
0x1047   : > { %27822 = vmatprep.subr.bf16.mxu0 %v32913_v48 }
0x1049   : > { %24964 = vmatmul.mubr.f32.gmra.mrb[36].mxu0 %v33011_v51 }
0x104a   : > { %27824 = vmatpush3.bf16.msra.mxu0 %v32913_v48  ;;  %24966 = vmatprep.mubr.f32.mxu0 %v33051_v47 }
0x104b   : > { %27826 = vmatprep.subr.bf16.mxu0 %v33005_v34 }
0x104d   : > { %24967 = vmatmul.mubr.f32.gmra.mrb[38].mxu0 %v33033_v6  ;;  %v9511_v6 = vpop.permute.xlu0 %9510 }
0x104e   : > { %27828 = vmatpush3.bf16.msra.mxu0 %v33005_v34  ;;  %24985 = vmatprep.mubr.f32.mxu0 %v8707_v49  ;;  %v9575_v30 = vsel %vm9574_vm3, %v9566_v41, %v9511_v6 }
0x104f   : > { %27830 = vmatprep.subr.bf16.mxu0 %v32882_v5 }
0x1051   : > { %24986 = vmatmul.mubr.f32.vlgmr.msra.gmra.mrb[32].mxu0 %v8717_v31  ;;  %v9483_v56 = vpop.permute.xlu0 %9482 }
0x1052   : > { %27832 = vmatpush3.bf16.msra.mxu0 %v32882_v5  ;;  %24988 = vmatprep.mubr.f32.mxu0 %v8727_v0  ;;  %v9593_v5 = vld [vmem:[%s36605_s5 + $0x8] sm:$0xff]  ;;  %v9799_v0 = vsub.f32 %v9595_v45, %v9637_v40 }
0x1053   : > { %27834 = vmatprep.subr.bf16.mxu0 %v32915_v43  ;;  %v9631_v37 = vand.u32 4294901760, %v9593_v5 }
0x1055   : > { %24989 = vmatmul.mubr.f32.gmra.mrb[34].mxu0 %v8737_v10  ;;  %v9515_v3 = vpop.permute.xlu0 %9514 }
0x1056   : > { %27836 = vmatpush3.bf16.msra.mxu0 %v32915_v43  ;;  %24991 = vmatprep.mubr.f32.mxu0 %v8747_v50  ;;  %v9594_v43 = vld [vmem:[%s36605_s5 + $0x10] sm:$0xff] }
0x1057   : > { %27838 = vmatprep.subr.bf16.mxu0 %v32927_v4 }
0x1059   : > { %24992 = vmatmul.mubr.f32.gmra.mrb[36].mxu0 %v8757_v22 }
0x105a   : > { %27840 = vmatpush3.bf16.msra.mxu0 %v32927_v4  ;;  %24994 = vmatprep.mubr.f32.mxu0 %v8767_v20  ;;  %v9634_v4 = vand.u32 4294901760, %v9594_v43  ;;  %v36868_v20 = vld [vmem:[#allocation15_spill] sm:$0xff] }
0x105b   : > { %27842 = vmatprep.subr.bf16.mxu0 %v27841_v42  ;;  %v9567_v44 = vsel %vm1996_vm1, %v36868_v20, %v9481_v15 }
0x105c   : > { %v9576_v13 = vsel %vm9574_vm3, %v9567_v44, %v9513_v36 }
0x105d   : > { %24995 = vmatmul.mubr.f32.gmra.mrb[38].mxu0 %v8777_v61 }
0x105e   : > { %27844 = vmatpush3.bf16.msra.mxu0 %v27841_v42  ;;  %25013 = vmatprep.mubr.f32.mxu0 %v32955_v38 }
0x105f   : > { %27846 = vmatprep.subr.bf16.mxu0 %v32868_v9 }
0x1061   : > { %25014 = vmatmul.mubr.f32.vlgmr.msra.gmra.mrb[32].mxu0 %v32970_v55 }
0x1062   : > { %27848 = vmatpush3.bf16.msra.mxu0 %v32868_v9  ;;  %25016 = vmatprep.mubr.f32.mxu0 %v32972_v21  ;;  %v9592_v9 = vld [vmem:[%s36605_s5] sm:$0xff] }
0x1063   : > { %27850 = vmatprep.subr.bf16.mxu0 %v32903_v1 }
0x1065   : > { %25017 = vmatmul.mubr.f32.gmra.mrb[34].mxu0 %v32980_v25 }
0x1066   : > { %27852 = vmatpush3.bf16.msra.mxu0 %v32903_v1  ;;  %25019 = vmatprep.mubr.f32.mxu0 %v32985_v62  ;;  %v9628_v1 = vand.u32 4294901760, %v9592_v9 }
0x1067   : > { %27854 = vmatprep.subr.bf16.mxu0 %v32913_v48 }
0x1069   : > { %25020 = vmatmul.mubr.f32.gmra.mrb[36].mxu0 %v32993_v46 }
0x106a   : > { %27856 = vmatpush3.bf16.msra.mxu0 %v32913_v48  ;;  %25022 = vmatprep.mubr.f32.mxu0 %v33047_v35  ;;  %v33147_v48 = vpack.c.bf16 %v9631_v37, %v9628_v1 }
0x106b   : > { %27858 = vmatprep.subr.bf16.mxu0 %v33005_v34 }
0x106d   : > { %25023 = vmatmul.mubr.f32.gmra.mrb[38].mxu0 %v33017_v8 }
0x106e   : > { %27860 = vmatpush3.bf16.msra.mxu0 %v33005_v34  ;;  %25041 = vmatprep.mubr.f32.mxu0 %v32955_v38  ;;  %v33157_v38 = vpack.c.bf16 %v9637_v40, %v9634_v4  ;;  %v9800_v34 = vand.u32 4294901760, %v9799_v0  ;;  %v36871_v40 = vld [vmem:[#allocation18_spill] sm:$0xff] }
0x106f   : > { %27862 = vmatprep.subr.bf16.mxu0 %v33147_v48 }
0x1070   : > { %v9801_v51 = vsub.f32 %v9799_v0, %v9800_v34 }
0x1071   : > { %25042 = vmatmul.mubr.f32.vlgmr.msra.gmra.mrb[32].mxu0 %v32970_v55  ;;  %v9778_v55 = vsub.f32 %v9592_v9, %v9628_v1 }
0x1072   : > { %25044 = vmatprep.mubr.f32.mxu0 %v32972_v21  ;;  %27864 = vmatpush3.bf16.msra.mxu0 %v33147_v48  ;;  %v9785_v21 = vsub.f32 %v9593_v5, %v9631_v37  ;;  %v9802_v52 = vand.u32 4294901760, %v9801_v51  ;;  %v36870_v37 = vld [vmem:[#allocation17_spill] sm:$0xff]  ;;  %v36874_v51 = vld [vmem:[#allocation22_spill] sm:$0xff] }
0x1073   : > { %27866 = vmatprep.subr.bf16.mxu0 %v33157_v38  ;;  %v9779_v26 = vand.u32 4294901760, %v9778_v55 }
0x1074   : > { %v33174_v7 = vpack.c.bf16 %v9785_v21, %v9778_v55 }
0x1075   : > { %25045 = vmatmul.mubr.f32.gmra.mrb[34].mxu0 %v32980_v25  ;;  %v9780_v31 = vsub.f32 %v9778_v55, %v9779_v26 }
0x1076   : > { %25047 = vmatprep.mubr.f32.mxu0 %v32985_v62  ;;  %27868 = vmatpush3.bf16.msra.mxu0 %v33157_v38  ;;  %v9786_v62 = vand.u32 4294901760, %v9785_v21 }
0x1077   : > { %v9781_v29 = vand.u32 4294901760, %v9780_v31 }
0x1078   : > { %v9787_v23 = vsub.f32 %v9785_v21, %v9786_v62  ;;  %v33178_v24 = vpack.c.bf16 %v9786_v62, %v9779_v26 }
0x1079   : > { %25048 = vmatmul.mubr.f32.gmra.mrb[36].mxu0 %v32993_v46  ;;  %v9792_v46 = vsub.f32 %v9594_v43, %v9634_v4  ;;  %v9569_v43 = vsel %vm1996_vm1, %v36870_v37, %v9485_v16 }
0x107a   : > { %25050 = vmatprep.mubr.f32.mxu0 %v33047_v35  ;;  %v9788_v57 = vand.u32 4294901760, %v9787_v23  ;;  %v9487_v35 = vpop.permute.xlu0 %9486 }
0x107b   : > { %v9793_v32 = vand.u32 4294901760, %v9792_v46  ;;  %v33176_v59 = vpack.c.bf16 %v9799_v0, %v9792_v46 }
0x107c   : > { %v33167_v63 = vpack.c.bf16 %v9788_v57, %v9781_v29  ;;  %v36873_v29 = vld [vmem:[#allocation19_spill] sm:$0xff] }
0x107d   : > { %25051 = vmatmul.mubr.f32.gmra.mrb[38].mxu0 %v33017_v8  ;;  %v9794_v10 = vsub.f32 %v9792_v46, %v9793_v32  ;;  %v33180_v22 = vpack.c.bf16 %v9800_v34, %v9793_v32  ;;  %v9571_v57 = vsel %vm1996_vm1, %v36873_v29, %v9489_v39 }
0x107e   : > { %27870 = vmatprep.subr.bf16.mxu0 %v33167_v63  ;;  %v9519_v61 = vpop.permute.xlu0 %9518 }
0x107f   : > { %v9795_v8 = vand.u32 4294901760, %v9794_v10 }
0x1081   : > { %v33172_v11 = vpack.c.bf16 %v9802_v52, %v9795_v8 }
0x1082   : > { %v9491_v47 = vpop.permute.xlu0 %9490 }
0x1086   : > { %v9523_v60 = vpop.permute.xlu0 %9522 }
0x1144   : > { %v25043_v27 = vpop.f32.mrb[32].mxu0 }
0x1145   : > { %9544 = vrot.lane.b32.xlu1 %v25043_v27, %s36672_s13  ;;  %v9424_v49 = vpop.f32.mrb[33].mxu0  ;;  %v9568_v27 = vsel %vm1996_vm1, %v36871_v40, %v9483_v56 }
0x1146   : > { %9542 = vrot.lane.b32.xlu0 %v9424_v49, %s36672_s13  ;;  %v9578_v49 = vsel %vm9574_vm3, %v9569_v43, %v9517_v28 }
0x1148   : > { %v25046_v33 = vpop.f32.mrb[34].mxu0 }
0x1149   : > { %9548 = vrot.lane.b32.xlu1 %v25046_v33, %s36672_s13  ;;  %v9436_v25 = vpop.f32.mrb[35].mxu0  ;;  %v9577_v33 = vsel %vm9574_vm3, %v9568_v27, %v9515_v3 }
0x114a   : > { %9546 = vrot.lane.b32.xlu0 %v9436_v25, %s36672_s13  ;;  %v36872_v25 = vld [vmem:[#allocation20_spill] sm:$0xff] }
0x114b   : > { %v9570_v26 = vsel %vm1996_vm1, %v36872_v25, %v9487_v35 }
0x114c   : > { %v25049_v14 = vpop.f32.mrb[36].mxu0  ;;  %v9579_v46 = vsel %vm9574_vm3, %v9570_v26, %v9519_v61 }
0x114d   : > { %9552 = vrot.lane.b32.xlu1 %v25049_v14, %s36672_s13  ;;  %v9448_v19 = vpop.f32.mrb[37].mxu0 }
0x114e   : > { %9550 = vrot.lane.b32.xlu0 %v9448_v19, %s36672_s13 }
0x1150   : > { %v25052_v12 = vpop.f32.mrb[38].mxu0 }
0x1151   : > { %9556 = vrot.lane.b32.xlu1 %v25052_v12, %s36672_s13  ;;  %v9460_v50 = vpop.f32.mrb[39].mxu0  ;;  %v9572_v12 = vsel %vm1996_vm1, %v36874_v51, %v9491_v47 }
0x1152   : > { %9554 = vrot.lane.b32.xlu0 %v9460_v50, %s36672_s13  ;;  %v9580_v50 = vsel %vm9574_vm3, %v9571_v57, %v9521_v17  ;;  %v9581_v18 = vsel %vm9574_vm3, %v9572_v12, %v9523_v60  ;;  %v36875_v17 = vld [vmem:[#allocation21_spill] sm:$0xff] }
0x1153   : > { %v9573_v61 = vsel %vm1996_vm1, %v36875_v17, %v9493_v53 }
0x1154   : > { %v9582_v44 = vsel %vm9574_vm3, %v9573_v61, %v9525_v58 }
0x11b7   : > { %v9545_v2 = vpop.permute.xlu1 %9544 }
0x11b8   : > { %v9585_v42 = vsel %vm9583_vm4, %v9576_v13, %v9545_v2  ;;  %v9543_v9 = vpop.permute.xlu0 %9542 }
0x11b9   : > { %v9607_v5 = vsel %vm340_vm0, %v9585_v42, 0  ;;  %v9584_v1 = vsel %vm9583_vm4, %v9575_v30, %v9543_v9 }
0x11ba   : > { %v33193_v45 = vand.u32 4294901760, %v9607_v5  ;;  %v9604_v4 = vsel %vm340_vm0, %v9584_v1, 0 }
0x11bb   : > { %v33199_v55 = vand.u32 4294901760, %v9604_v4  ;;  %v9549_v21 = vpop.permute.xlu1 %9548 }
0x11bc   : > { %v33205_v62 = vsub.f32 %v9607_v5, %v33193_v45  ;;  %v9587_v31 = vsel %vm9583_vm4, %v9578_v49, %v9549_v21  ;;  %v9547_v23 = vpop.permute.xlu0 %9546 }
0x11bd   : > { %v33210_v0 = vsub.f32 %v9604_v4, %v33199_v55  ;;  %v9613_v14 = vsel %vm340_vm0, %v9587_v31, 0  ;;  %v9586_v19 = vsel %vm9583_vm4, %v9577_v33, %v9547_v23 }
0x11be   : > { %v9708_v32 = vand.u32 4294901760, %v33205_v62  ;;  %v33217_v34 = vand.u32 4294901760, %v9613_v14  ;;  %v9610_v10 = vsel %vm340_vm0, %v9586_v19, 0 }
0x11bf   : > { %v33223_v8 = vand.u32 4294901760, %v9610_v10  ;;  %v9553_v52 = vpop.permute.xlu1 %9552  ;;  %v9698_v15 = vand.u32 4294901760, %v33210_v0 }
0x11c0   : > { %v9709_v36 = vsub.f32 %v33205_v62, %v9708_v32  ;;  %v33231_v6 = vsub.f32 %v9613_v14, %v33217_v34  ;;  %v9589_v16 = vsel %vm9583_vm4, %v9580_v50, %v9553_v52  ;;  %v9551_v56 = vpop.permute.xlu0 %9550 }
0x11c1   : > { %v33235_v28 = vsub.f32 %v9610_v10, %v33223_v8  ;;  %v9619_v3 = vsel %vm340_vm0, %v9589_v16, 0  ;;  %v9588_v39 = vsel %vm9583_vm4, %v9579_v46, %v9551_v56  ;;  %v9699_v35 = vsub.f32 %v33210_v0, %v9698_v15 }
0x11c2   : > { %v33244_v47 = vand.u32 4294901760, %v9619_v3  ;;  %v9616_v60 = vsel %vm340_vm0, %v9588_v39, 0  ;;  %v9728_v20 = vand.u32 4294901760, %v33231_v6  ;;  %v9710_v30 = vand.u32 4294901760, %v9709_v36 }
0x11c3   : > { %v33249_v54 = vand.u32 4294901760, %v9616_v60  ;;  %v9557_v41 = vpop.permute.xlu1 %9556  ;;  %v9700_v13 = vand.u32 4294901760, %v9699_v35  ;;  %v9718_v2 = vand.u32 4294901760, %v33235_v28 }
0x11c4   : > { %v33253_v42 = vsub.f32 %v9619_v3, %v33244_v47  ;;  %v9591_v53 = vsel %vm9583_vm4, %v9582_v44, %v9557_v41  ;;  %v9555_v9 = vpop.permute.xlu0 %9554  ;;  %v9729_v5 = vsub.f32 %v33231_v6, %v9728_v20  ;;  %v33376_v41 = vld [vmem:[%s36603_s3 + $0x28] sm:$0xff] }
0x11c5   : > { %v33260_v1 = vsub.f32 %v9616_v60, %v33249_v54  ;;  %v9625_v58 = vsel %vm340_vm0, %v9591_v53, 0  ;;  %v9590_v37 = vsel %vm9583_vm4, %v9581_v18, %v9555_v9  ;;  %25061 = vmatprep.mubr.f32.mxu0 %v9700_v13  ;;  %v9719_v43 = vsub.f32 %v33235_v28, %v9718_v2 }
0x11c6   : > { %v33267_v4 = vand.u32 4294901760, %v9625_v58  ;;  %v9622_v40 = vsel %vm340_vm0, %v9590_v37, 0  ;;  %25062 = vmatmul.mubr.f32.vlgmr.msra.gmra.mrb[40].mxu0 %v9710_v30  ;;  %v9748_v27 = vand.u32 4294901760, %v33253_v42  ;;  %v9730_v26 = vand.u32 4294901760, %v9729_v5 }
0x11c7   : > { %v33271_v49 = vand.u32 4294901760, %v9622_v40  ;;  %27872 = vmatpush3.bf16.msra.mxu0 %v33167_v63  ;;  %v9720_v21 = vand.u32 4294901760, %v9719_v43  ;;  %v9738_v33 = vand.u32 4294901760, %v33260_v1  ;;  %v36877_v43 = vld [vmem:[#allocation6_spill] sm:$0xff] }
0x11c8   : > { %v9767_v25 = vsub.f32 %v9625_v58, %v33267_v4  ;;  %v9749_v31 = vsub.f32 %v33253_v42, %v9748_v27  ;;  %27874 = vmatprep.subr.bf16.mxu0 %v33172_v11  ;;  %v36876_v58 = vld [vmem:[#allocation5_spill] sm:$0xff] }
0x11c9   : > { %v9757_v23 = vsub.f32 %v9622_v40, %v33271_v49  ;;  %25064 = vmatprep.mubr.f32.mxu0 %v9720_v21  ;;  %v9739_v46 = vsub.f32 %v33260_v1, %v9738_v33 }
0x11ca   : > { %25065 = vmatmul.mubr.f32.gmra.mrb[42].mxu0 %v9730_v26  ;;  %v9768_v14 = vand.u32 4294901760, %v9767_v25  ;;  %v9750_v29 = vand.u32 4294901760, %v9749_v31 }
0x11cb   : > { %v9740_v19 = vand.u32 4294901760, %v9739_v46  ;;  %27876 = vmatpush3.bf16.msra.mxu0 %v33172_v11  ;;  %v9758_v63 = vand.u32 4294901760, %v9757_v23 }
0x11cc   : > { %v9769_v57 = vsub.f32 %v9767_v25, %v9768_v14  ;;  %27878 = vmatprep.subr.bf16.mxu0 %v33174_v7 }
0x11cd   : > { %25067 = vmatprep.mubr.f32.mxu0 %v9740_v19  ;;  %v9759_v10 = vsub.f32 %v9757_v23, %v9758_v63  ;;  %v36879_v19 = vld [vmem:[#allocation8_spill] sm:$0xff] }
0x11ce   : > { %25068 = vmatmul.mubr.f32.gmra.mrb[44].mxu0 %v9750_v29  ;;  %v9770_v12 = vand.u32 4294901760, %v9769_v57 }
0x11cf   : > { %v9760_v51 = vand.u32 4294901760, %v9759_v10 }
0x11d1   : > { %25070 = vmatprep.mubr.f32.mxu0 %v9760_v51 }
0x11d2   : > { %25071 = vmatmul.mubr.f32.gmra.mrb[46].mxu0 %v9770_v12 }
0x11d3   : > { %25081 = vmatprep.mubr.f32.mxu0 %v33199_v55 }
0x11d6   : > { %25082 = vmatmul.mubr.f32.vlgmr.msra.gmra.mrb[40].mxu0 %v33193_v45 }
0x11d7   : > { %25084 = vmatprep.mubr.f32.mxu0 %v33223_v8  ;;  %27880 = vmatpush3.bf16.msra.mxu0 %v33174_v7 }
0x11d8   : > { %27882 = vmatprep.subr.bf16.mxu0 %v33176_v59 }
0x11da   : > { %25085 = vmatmul.mubr.f32.gmra.mrb[42].mxu0 %v33217_v34 }
0x11db   : > { %25087 = vmatprep.mubr.f32.mxu0 %v33249_v54  ;;  %27884 = vmatpush3.bf16.msra.mxu0 %v33176_v59 }
0x11dc   : > { %27886 = vmatprep.subr.bf16.mxu0 %v33147_v48 }
0x11de   : > { %25088 = vmatmul.mubr.f32.gmra.mrb[44].mxu0 %v33244_v47 }
0x11df   : > { %25090 = vmatprep.mubr.f32.mxu0 %v33271_v49 }
0x11e2   : > { %25091 = vmatmul.mubr.f32.gmra.mrb[46].mxu0 %v33267_v4 }
0x11e3   : > { %25101 = vmatprep.mubr.f32.mxu0 %v33210_v0 }
0x11e6   : > { %25102 = vmatmul.mubr.f32.vlgmr.msra.gmra.mrb[40].mxu0 %v33205_v62 }
0x11e7   : > { %25104 = vmatprep.mubr.f32.mxu0 %v33235_v28  ;;  %27888 = vmatpush3.bf16.msra.mxu0 %v33147_v48 }
0x11e8   : > { %27890 = vmatprep.subr.bf16.mxu0 %v33157_v38 }
0x11ea   : > { %25105 = vmatmul.mubr.f32.gmra.mrb[42].mxu0 %v33231_v6 }
0x11eb   : > { %25107 = vmatprep.mubr.f32.mxu0 %v33260_v1  ;;  %27892 = vmatpush3.bf16.msra.mxu0 %v33157_v38 }
0x11ec   : > { %27894 = vmatprep.subr.bf16.mxu0 %v33178_v24 }
0x11ee   : > { %25108 = vmatmul.mubr.f32.gmra.mrb[44].mxu0 %v33253_v42  ;;  %v21408_v42 = vld [vmem:[%s36606_s6] ss:$0 sm:$0xff] }
0x11ef   : > { %25110 = vmatprep.mubr.f32.mxu0 %v9757_v23  ;;  %v36878_v23 = vld [vmem:[#allocation7_spill] sm:$0xff] }
0x11f2   : > { %25111 = vmatmul.mubr.f32.gmra.mrb[46].mxu0 %v9767_v25 }
0x11f3   : > { %25121 = vmatprep.mubr.f32.mxu0 %v9698_v15 }
0x11f6   : > { %25122 = vmatmul.mubr.f32.vlgmr.msra.gmra.mrb[40].mxu0 %v9708_v32 }
0x11f7   : > { %25124 = vmatprep.mubr.f32.mxu0 %v9718_v2  ;;  %27896 = vmatpush3.bf16.msra.mxu0 %v33178_v24  ;;  %v10423_v24 = vld [vmem:[%s36607_s7 + $0x10] sm:$0xff]  ;;  %v11276_v2 = vand.u32 4294901760, %v33376_v41 }
0x11f8   : > { %27898 = vmatprep.subr.bf16.mxu0 %v33180_v22 }
0x11fa   : > { %25125 = vmatmul.mubr.f32.gmra.mrb[42].mxu0 %v9728_v20 }
0x11fb   : > { %25127 = vmatprep.mubr.f32.mxu0 %v9738_v33  ;;  %27900 = vmatpush3.bf16.msra.mxu0 %v33180_v22  ;;  %v10424_v22 = vld [vmem:[%s36607_s7 + $0x18] sm:$0xff] }
0x11fc   : > { %27902 = vmatprep.subr.bf16.mxu0 %v33147_v48 }
0x11fe   : > { %25128 = vmatmul.mubr.f32.gmra.mrb[44].mxu0 %v9748_v27 }
0x11ff   : > { %25130 = vmatprep.mubr.f32.mxu0 %v9758_v63 }
0x1202   : > { %25131 = vmatmul.mubr.f32.gmra.mrb[46].mxu0 %v9768_v14 }
0x1203   : > { %25141 = vmatprep.mubr.f32.mxu0 %v33199_v55 }
0x1206   : > { %25142 = vmatmul.mubr.f32.vlgmr.msra.gmra.mrb[40].mxu0 %v33193_v45 }
0x1207   : > { %25144 = vmatprep.mubr.f32.mxu0 %v33223_v8  ;;  %27904 = vmatpush3.bf16.msra.mxu0 %v33147_v48  ;;  %v10421_v48 = vld [vmem:[%s36607_s7] sm:$0xff] }
0x1208   : > { %27906 = vmatprep.subr.bf16.mxu0 %v33157_v38  ;;  %v10450_v11 = vand.u32 4294901760, %v10421_v48 }
0x120a   : > { %25145 = vmatmul.mubr.f32.gmra.mrb[42].mxu0 %v33217_v34  ;;  %v10600_v0 = vsub.f32 %v10421_v48, %v10450_v11 }
0x120b   : > { %25147 = vmatprep.mubr.f32.mxu0 %v33249_v54  ;;  %27908 = vmatpush3.bf16.msra.mxu0 %v33157_v38  ;;  %v10422_v38 = vld [vmem:[%s36607_s7 + $0x8] sm:$0xff] }
0x120c   : > { %v10453_v7 = vand.u32 4294901760, %v10422_v38 }
0x120e   : > { %25148 = vmatmul.mubr.f32.gmra.mrb[44].mxu0 %v33244_v47  ;;  %v33341_v59 = vpack.c.bf16 %v10453_v7, %v10450_v11  ;;  %v10607_v32 = vsub.f32 %v10422_v38, %v10453_v7 }
0x120f   : > { %25150 = vmatprep.mubr.f32.mxu0 %v33271_v49 }
0x1210   : > { %27910 = vmatprep.subr.bf16.mxu1 %v33341_v59  ;;  %v10608_v50 = vand.u32 4294901760, %v10607_v32 }
0x1211   : > { %27912 = vmatpush3.bf16.msra.mxu1 %v33341_v59 }
0x1212   : > { %25151 = vmatmul.mubr.f32.gmra.mrb[46].mxu0 %v33267_v4  ;;  %v10609_v52 = vsub.f32 %v10607_v32, %v10608_v50 }
0x1213   : > { %25161 = vmatprep.mubr.f32.mxu0 %v33199_v55  ;;  %v10459_v55 = vand.u32 4294901760, %v10424_v22 }
0x1214   : > { %v10610_v6 = vand.u32 4294901760, %v10609_v52 }
0x1215   : > { %v10621_v18 = vsub.f32 %v10424_v22, %v10459_v55  ;;  %v36880_v22 = vld [vmem:[#allocation9_spill] sm:$0xff] }
0x1216   : > { %25162 = vmatmul.mubr.f32.vlgmr.msra.gmra.mrb[40].mxu0 %v33193_v45  ;;  %v10456_v45 = vand.u32 4294901760, %v10423_v24 }
0x1217   : > { %25164 = vmatprep.mubr.f32.mxu0 %v33223_v8  ;;  %v10622_v56 = vand.u32 4294901760, %v10621_v18 }
0x1218   : > { %v33351_v62 = vpack.c.bf16 %v10459_v55, %v10456_v45  ;;  %v10614_v15 = vsub.f32 %v10423_v24, %v10456_v45 }
0x1219   : > { %v10623_v39 = vsub.f32 %v10621_v18, %v10622_v56 }
0x121a   : > { %25165 = vmatmul.mubr.f32.gmra.mrb[42].mxu0 %v33217_v34  ;;  %27914 = vmatprep.subr.bf16.mxu1 %v33351_v62  ;;  %v10601_v34 = vand.u32 4294901760, %v10600_v0  ;;  %v10615_v16 = vand.u32 4294901760, %v10614_v15  ;;  %v33362_v60 = vpack.c.bf16 %v10621_v18, %v10614_v15 }
0x121b   : > { %25167 = vmatprep.mubr.f32.mxu0 %v33249_v54  ;;  %27916 = vmatpush3.bf16.msra.mxu1 %v33351_v62  ;;  %v10624_v17 = vand.u32 4294901760, %v10623_v39  ;;  %v33371_v54 = vld [vmem:[%s36603_s3 + $0x20] sm:$0xff] }
0x121c   : > { %v10602_v8 = vsub.f32 %v10600_v0, %v10601_v34  ;;  %v10616_v3 = vsub.f32 %v10614_v15, %v10615_v16  ;;  %v33364_v20 = vpack.c.bf16 %v10608_v50, %v10601_v34  ;;  %v33366_v44 = vpack.c.bf16 %v10622_v56, %v10615_v16  ;;  %v36881_v34 = vld [vmem:[#allocation10_spill] sm:$0xff] }
0x121d   : > { %v11273_v13 = vand.u32 4294901760, %v33371_v54 }
0x121e   : > { %25168 = vmatmul.mubr.f32.gmra.mrb[44].mxu0 %v33244_v47  ;;  %v10603_v36 = vand.u32 4294901760, %v10602_v8  ;;  %v10617_v35 = vand.u32 4294901760, %v10616_v3  ;;  %v33360_v47 = vpack.c.bf16 %v10607_v32, %v10600_v0 }
0x121f   : > { %25170 = vmatprep.mubr.f32.mxu0 %v33271_v49  ;;  %v33384_v30 = vpack.c.bf16 %v11276_v2, %v11273_v13 }
0x1220   : > { %v33355_v28 = vpack.c.bf16 %v10610_v6, %v10603_v36  ;;  %v33358_v61 = vpack.c.bf16 %v10624_v17, %v10617_v35  ;;  %v36882_v35 = vld [vmem:[#allocation11_spill] sm:$0xff] }
0x1221   : > { %27958 = vmatprep.subr.bf16.mxu0 %v33384_v30 }
0x1222   : > { %25171 = vmatmul.mubr.f32.gmra.mrb[46].mxu0 %v33267_v4  ;;  %27918 = vmatprep.subr.bf16.mxu1 %v33355_v28 }
0x1223   : > { %27960 = vmatpush3.bf16.msra.mxu0 %v33384_v30 }
0x12e9   : > { %v25163_v53 = vpop.f32.mrb[40].mxu0 }
0x12ea   : > { %v28901_v9 = vadd.f32 %v25163_v53, %v21408_v42  ;;  %v10367_v5 = vpop.f32.mrb[41].mxu0 }
0x12eb   : > { %v28902_v1 = vadd.f32 %v21408_v42, %v10367_v5 }
0x12ec   : > { %v10414_v37 = vadd.f32 %v28901_v9, %v36876_v58  ;;  %v36883_v58 = vld [vmem:[#allocation12_spill] sm:$0xff] }
0x12ed   : > { %v10413_v4 = vadd.f32 %v28902_v1, %v36877_v43  ;;  %v25166_v40 = vpop.f32.mrb[42].mxu0 }
0x12ee   : > { %v10429_v27 = vsel %vm340_vm0, %v10414_v37, 0  ;;  %v28903_v49 = vadd.f32 %v25166_v40, %v21408_v42  ;;  %v10379_v21 = vpop.f32.mrb[43].mxu0 }
0x12ef   : > { %v33394_v33 = vand.u32 4294901760, %v10429_v27  ;;  %v10426_v25 = vsel %vm340_vm0, %v10413_v4, 0  ;;  %v28904_v26 = vadd.f32 %v21408_v42, %v10379_v21 }
0x12f0   : > { %v33397_v31 = vand.u32 4294901760, %v10426_v25  ;;  %v10416_v46 = vadd.f32 %v28903_v49, %v36878_v23 }
0x12f1   : > { %v33401_v14 = vsub.f32 %v10429_v27, %v33394_v33  ;;  %v10415_v63 = vadd.f32 %v28904_v26, %v36879_v19  ;;  %v25169_v29 = vpop.f32.mrb[44].mxu0 }
0x12f2   : > { %v33405_v57 = vsub.f32 %v10426_v25, %v33397_v31  ;;  %v10435_v10 = vsel %vm340_vm0, %v10416_v46, 0  ;;  %v28905_v51 = vadd.f32 %v25169_v29, %v21408_v42  ;;  %v10391_v12 = vpop.f32.mrb[45].mxu0 }
0x12f3   : > { %v10530_v48 = vand.u32 4294901760, %v33401_v14  ;;  %v33409_v38 = vand.u32 4294901760, %v10435_v10  ;;  %v10432_v11 = vsel %vm340_vm0, %v10415_v63, 0  ;;  %v28906_v7 = vadd.f32 %v21408_v42, %v10391_v12 }
0x12f4   : > { %v33412_v24 = vand.u32 4294901760, %v10432_v11  ;;  %v10418_v45 = vadd.f32 %v28905_v51, %v36880_v22  ;;  %v10520_v55 = vand.u32 4294901760, %v33405_v57 }
0x12f5   : > { %v10531_v0 = vsub.f32 %v33401_v14, %v10530_v48  ;;  %v33420_v32 = vsub.f32 %v10435_v10, %v33409_v38  ;;  %v10417_v50 = vadd.f32 %v28906_v7, %v36881_v34  ;;  %v25172_v8 = vpop.f32.mrb[46].mxu0 }
0x12f6   : > { %v33424_v52 = vsub.f32 %v10432_v11, %v33412_v24  ;;  %v10441_v15 = vsel %vm340_vm0, %v10418_v45, 0  ;;  %v28907_v18 = vadd.f32 %v25172_v8, %v21408_v42  ;;  %v10403_v36 = vpop.f32.mrb[47].mxu0  ;;  %v10521_v6 = vsub.f32 %v33405_v57, %v10520_v55 }
0x12f7   : > { %v33430_v16 = vand.u32 4294901760, %v10441_v15  ;;  %v10438_v56 = vsel %vm340_vm0, %v10417_v50, 0  ;;  %v28908_v3 = vadd.f32 %v21408_v42, %v10403_v36  ;;  %v10532_v5 = vand.u32 4294901760, %v10531_v0 }
0x12f8   : > { %v33433_v39 = vand.u32 4294901760, %v10438_v56  ;;  %v10420_v17 = vadd.f32 %v28907_v18, %v36882_v35  ;;  %v10522_v53 = vand.u32 4294901760, %v10521_v6  ;;  %v10540_v9 = vand.u32 4294901760, %v33424_v52 }
0x12f9   : > { %v33438_v1 = vsub.f32 %v10441_v15, %v33430_v16  ;;  %v10419_v37 = vadd.f32 %v28908_v3, %v36883_v58  ;;  %v10550_v43 = vand.u32 4294901760, %v33420_v32 }
0x12fa   : > { %v33443_v4 = vsub.f32 %v10438_v56, %v33433_v39  ;;  %v10447_v42 = vsel %vm340_vm0, %v10420_v17, 0  ;;  %25181 = vmatprep.mubr.f32.mxu1 %v10522_v53  ;;  %v10541_v40 = vsub.f32 %v33424_v52, %v10540_v9 }
0x12fb   : > { %v33449_v27 = vand.u32 4294901760, %v10447_v42  ;;  %v10444_v49 = vsel %vm340_vm0, %v10419_v37, 0  ;;  %25182 = vmatmul.mubr.f32.vlgmr.msra.gmra.mrb[56].mxu1 %v10532_v5  ;;  %v10551_v21 = vsub.f32 %v33420_v32, %v10550_v43  ;;  %v10570_v25 = vand.u32 4294901760, %v33438_v1 }
0x12fc   : > { %v33456_v26 = vand.u32 4294901760, %v10444_v49  ;;  %27920 = vmatpush3.bf16.msra.mxu1 %v33355_v28  ;;  %v10542_v23 = vand.u32 4294901760, %v10541_v40  ;;  %v10560_v46 = vand.u32 4294901760, %v33443_v4 }
0x12fd   : > { %v10589_v19 = vsub.f32 %v10447_v42, %v33449_v27  ;;  %v10552_v63 = vand.u32 4294901760, %v10551_v21  ;;  %v10571_v29 = vsub.f32 %v33438_v1, %v10570_v25  ;;  %27922 = vmatprep.subr.bf16.mxu1 %v33358_v61 }
0x12fe   : > { %v10579_v10 = vsub.f32 %v10444_v49, %v33456_v26  ;;  %25184 = vmatprep.mubr.f32.mxu1 %v10542_v23  ;;  %v10561_v51 = vsub.f32 %v33443_v4, %v10560_v46 }
0x12ff   : > { %25185 = vmatmul.mubr.f32.gmra.mrb[58].mxu1 %v10552_v63  ;;  %v10590_v12 = vand.u32 4294901760, %v10589_v19  ;;  %v10572_v7 = vand.u32 4294901760, %v10571_v29 }
0x1300   : > { %v10562_v11 = vand.u32 4294901760, %v10561_v51  ;;  %27924 = vmatpush3.bf16.msra.mxu1 %v33358_v61  ;;  %v10580_v28 = vand.u32 4294901760, %v10579_v10 }
0x1301   : > { %v10591_v22 = vsub.f32 %v10589_v19, %v10590_v12  ;;  %27926 = vmatprep.subr.bf16.mxu1 %v33360_v47 }
0x1302   : > { %25187 = vmatprep.mubr.f32.mxu1 %v10562_v11  ;;  %v10581_v45 = vsub.f32 %v10579_v10, %v10580_v28 }
0x1303   : > { %25188 = vmatmul.mubr.f32.gmra.mrb[60].mxu1 %v10572_v7  ;;  %v10592_v34 = vand.u32 4294901760, %v10591_v22 }
0x1304   : > { %v10582_v0 = vand.u32 4294901760, %v10581_v45 }
0x1306   : > { %25190 = vmatprep.mubr.f32.mxu1 %v10582_v0 }
0x1307   : > { %25191 = vmatmul.mubr.f32.gmra.mrb[62].mxu1 %v10592_v34 }
0x1308   : > { %25201 = vmatprep.mubr.f32.mxu1 %v33397_v31 }
0x130b   : > { %25202 = vmatmul.mubr.f32.vlgmr.msra.gmra.mrb[56].mxu1 %v33394_v33 }
0x130c   : > { %25204 = vmatprep.mubr.f32.mxu1 %v33412_v24  ;;  %27928 = vmatpush3.bf16.msra.mxu1 %v33360_v47 }
0x130d   : > { %27930 = vmatprep.subr.bf16.mxu1 %v33362_v60 }
0x130f   : > { %25205 = vmatmul.mubr.f32.gmra.mrb[58].mxu1 %v33409_v38 }
0x1310   : > { %25207 = vmatprep.mubr.f32.mxu1 %v33433_v39  ;;  %27932 = vmatpush3.bf16.msra.mxu1 %v33362_v60 }
0x1311   : > { %27934 = vmatprep.subr.bf16.mxu1 %v33341_v59 }
0x1313   : > { %25208 = vmatmul.mubr.f32.gmra.mrb[60].mxu1 %v33430_v16 }
0x1314   : > { %25210 = vmatprep.mubr.f32.mxu1 %v33456_v26 }
0x1317   : > { %25211 = vmatmul.mubr.f32.gmra.mrb[62].mxu1 %v33449_v27 }
0x1318   : > { %25221 = vmatprep.mubr.f32.mxu1 %v33405_v57 }
0x131b   : > { %25222 = vmatmul.mubr.f32.vlgmr.msra.gmra.mrb[56].mxu1 %v33401_v14 }
0x131c   : > { %25224 = vmatprep.mubr.f32.mxu1 %v33424_v52  ;;  %27936 = vmatpush3.bf16.msra.mxu1 %v33341_v59 }
0x131d   : > { %27938 = vmatprep.subr.bf16.mxu1 %v33351_v62 }
0x131f   : > { %25225 = vmatmul.mubr.f32.gmra.mrb[58].mxu1 %v33420_v32 }
0x1320   : > { %25227 = vmatprep.mubr.f32.mxu1 %v33443_v4  ;;  %27940 = vmatpush3.bf16.msra.mxu1 %v33351_v62 }
0x1321   : > { %27942 = vmatprep.subr.bf16.mxu1 %v33364_v20 }
0x1323   : > { %25228 = vmatmul.mubr.f32.gmra.mrb[60].mxu1 %v33438_v1 }
0x1324   : > { %25230 = vmatprep.mubr.f32.mxu1 %v10579_v10 }
0x1327   : > { %25231 = vmatmul.mubr.f32.gmra.mrb[62].mxu1 %v10589_v19 }
0x1328   : > { %25241 = vmatprep.mubr.f32.mxu1 %v10520_v55 }
0x132b   : > { %25242 = vmatmul.mubr.f32.vlgmr.msra.gmra.mrb[56].mxu1 %v10530_v48 }
0x132c   : > { %25244 = vmatprep.mubr.f32.mxu1 %v10540_v9  ;;  %27944 = vmatpush3.bf16.msra.mxu1 %v33364_v20  ;;  %v11423_v20 = vsub.f32 %v33371_v54, %v11273_v13 }
0x132d   : > { %27946 = vmatprep.subr.bf16.mxu1 %v33366_v44 }
0x132f   : > { %25245 = vmatmul.mubr.f32.gmra.mrb[58].mxu1 %v10550_v43 }
0x1330   : > { %25247 = vmatprep.mubr.f32.mxu1 %v10560_v46  ;;  %27948 = vmatpush3.bf16.msra.mxu1 %v33366_v44  ;;  %v11430_v44 = vsub.f32 %v33376_v41, %v11276_v2 }
0x1331   : > { %27950 = vmatprep.subr.bf16.mxu1 %v33341_v59 }
0x1332   : > { %v33536_v36 = vpack.c.bf16 %v11430_v44, %v11423_v20 }
0x1333   : > { %25248 = vmatmul.mubr.f32.gmra.mrb[60].mxu1 %v10570_v25 }
0x1334   : > { %25250 = vmatprep.mubr.f32.mxu1 %v10580_v28 }
0x1337   : > { %25251 = vmatmul.mubr.f32.gmra.mrb[62].mxu1 %v10590_v12 }
0x1338   : > { %25261 = vmatprep.mubr.f32.mxu1 %v33397_v31 }
0x133b   : > { %25262 = vmatmul.mubr.f32.vlgmr.msra.gmra.mrb[56].mxu1 %v33394_v33 }
0x133c   : > { %25264 = vmatprep.mubr.f32.mxu1 %v33412_v24  ;;  %27952 = vmatpush3.bf16.msra.mxu1 %v33341_v59  ;;  %v21411_v59 = vld [vmem:[%s36603_s3 + $0x30] sm:$0xff] }
0x133d   : > { %27954 = vmatprep.subr.bf16.mxu1 %v33351_v62  ;;  %v11279_v61 = vand.u32 4294901760, %v21411_v59 }
0x133f   : > { %25265 = vmatmul.mubr.f32.gmra.mrb[58].mxu1 %v33409_v38  ;;  %v11437_v48 = vsub.f32 %v21411_v59, %v11279_v61 }
0x1340   : > { %25267 = vmatprep.mubr.f32.mxu1 %v33433_v39  ;;  %27956 = vmatpush3.bf16.msra.mxu1 %v33351_v62  ;;  %v21412_v62 = vld [vmem:[%s36603_s3 + $0x38] sm:$0xff] }
0x1341   : > { %v11282_v47 = vand.u32 4294901760, %v21412_v62  ;;  %v11438_v32 = vand.u32 4294901760, %v11437_v48 }
0x1343   : > { %25268 = vmatmul.mubr.f32.gmra.mrb[60].mxu1 %v33430_v16  ;;  %v33526_v60 = vpack.c.bf16 %v11282_v47, %v11279_v61  ;;  %v11439_v52 = vsub.f32 %v11437_v48, %v11438_v32 }
0x1344   : > { %25270 = vmatprep.mubr.f32.mxu1 %v33456_v26 }
0x1345   : > { %27962 = vmatprep.subr.bf16.mxu0 %v33526_v60  ;;  %v11440_v18 = vand.u32 4294901760, %v11439_v52 }
0x1346   : > { %27964 = vmatpush3.bf16.msra.mxu0 %v33526_v60 }
0x1347   : > { %25271 = vmatmul.mubr.f32.gmra.mrb[62].mxu1 %v33449_v27 }
0x1348   : > { %25281 = vmatprep.mubr.f32.mxu1 %v33397_v31  ;;  %v11431_v31 = vand.u32 4294901760, %v11430_v44 }
0x134a   : > { %v11432_v57 = vsub.f32 %v11430_v44, %v11431_v31 }
0x134b   : > { %25282 = vmatmul.mubr.f32.vlgmr.msra.gmra.mrb[56].mxu1 %v33394_v33  ;;  %v11424_v33 = vand.u32 4294901760, %v11423_v20 }
0x134c   : > { %25284 = vmatprep.mubr.f32.mxu1 %v33412_v24  ;;  %v11433_v55 = vand.u32 4294901760, %v11432_v57 }
0x134d   : > { %v11425_v14 = vsub.f32 %v11423_v20, %v11424_v33  ;;  %v33540_v2 = vpack.c.bf16 %v11431_v31, %v11424_v33 }
0x134f   : > { %25285 = vmatmul.mubr.f32.gmra.mrb[58].mxu1 %v33409_v38  ;;  %v11444_v38 = vsub.f32 %v21412_v62, %v11282_v47  ;;  %v11426_v24 = vand.u32 4294901760, %v11425_v14 }
0x1350   : > { %25287 = vmatprep.mubr.f32.mxu1 %v33433_v39 }
0x1351   : > { %v11445_v50 = vand.u32 4294901760, %v11444_v38  ;;  %v27965_v8 = vpack.c.bf16 %v11433_v55, %v11426_v24  ;;  %v33538_v41 = vpack.c.bf16 %v11444_v38, %v11437_v48 }
0x1353   : > { %25288 = vmatmul.mubr.f32.gmra.mrb[60].mxu1 %v33430_v16  ;;  %v11446_v15 = vsub.f32 %v11444_v38, %v11445_v50  ;;  %27966 = vmatprep.subr.bf16.mxu0 %v27965_v8  ;;  %v33542_v6 = vpack.c.bf16 %v11445_v50, %v11438_v32 }
0x1354   : > { %25290 = vmatprep.mubr.f32.mxu1 %v33456_v26 }
0x1355   : > { %v11447_v54 = vand.u32 4294901760, %v11446_v15 }
0x1357   : > { %25291 = vmatmul.mubr.f32.gmra.mrb[62].mxu1 %v33449_v27  ;;  %v27969_v13 = vpack.c.bf16 %v11447_v54, %v11440_v18 }
0x141e   : > { %v33544_v16 = vpop.f32.mrb[56].mxu1 }
0x141f   : > { %36884 = vst [vmem:[#allocation13_spill] sm:$0xff] %v33544_v16  ;;  %v11252_v56 = vsel %vm340_vm0, %v33544_v16, 0  ;;  %v33548_v3 = vpop.f32.mrb[57].mxu1 }
0x1420   : > { %36885 = vst [vmem:[#allocation24_spill] sm:$0xff] %v33548_v3  ;;  %v33550_v39 = vand.u32 4294901760, %v11252_v56  ;;  %v11249_v35 = vsel %vm340_vm0, %v33548_v3, 0 }
0x1421   : > { %v33554_v17 = vand.u32 4294901760, %v11249_v35 }
0x1422   : > { %v33557_v53 = vsub.f32 %v11252_v56, %v33550_v39  ;;  %v33559_v9 = vpop.f32.mrb[58].mxu1 }
0x1423   : > { %36886 = vst [vmem:[#allocation26_spill] sm:$0xff] %v33559_v9  ;;  %v33562_v5 = vsub.f32 %v11249_v35, %v33554_v17  ;;  %v11258_v1 = vsel %vm340_vm0, %v33559_v9, 0  ;;  %v33566_v58 = vpop.f32.mrb[59].mxu1 }
0x1424   : > { %36887 = vst [vmem:[#allocation28_spill] sm:$0xff] %v33566_v58  ;;  %v11353_v37 = vand.u32 4294901760, %v33557_v53  ;;  %v33569_v43 = vand.u32 4294901760, %v11258_v1  ;;  %v11255_v4 = vsel %vm340_vm0, %v33566_v58, 0 }
0x1425   : > { %v33573_v42 = vand.u32 4294901760, %v11255_v4  ;;  %v11343_v40 = vand.u32 4294901760, %v33562_v5 }
0x1426   : > { %v11354_v27 = vsub.f32 %v33557_v53, %v11353_v37  ;;  %v33580_v49 = vsub.f32 %v11258_v1, %v33569_v43  ;;  %v33582_v21 = vpop.f32.mrb[60].mxu1 }
0x1427   : > { %36888 = vst [vmem:[#allocation30_spill] sm:$0xff] %v33582_v21  ;;  %v33585_v25 = vsub.f32 %v11255_v4, %v33573_v42  ;;  %v11264_v26 = vsel %vm340_vm0, %v33582_v21, 0  ;;  %v33589_v23 = vpop.f32.mrb[61].mxu1  ;;  %v11344_v46 = vsub.f32 %v33562_v5, %v11343_v40 }
0x1428   : > { %36889 = vst [vmem:[#allocation14_spill] sm:$0xff] %v33589_v23  ;;  %v33594_v19 = vand.u32 4294901760, %v11264_v26  ;;  %v11261_v63 = vsel %vm340_vm0, %v33589_v23, 0  ;;  %v11373_v29 = vand.u32 4294901760, %v33580_v49  ;;  %v11355_v11 = vand.u32 4294901760, %v11354_v27 }
0x1429   : > { %v33599_v10 = vand.u32 4294901760, %v11261_v63  ;;  %v11345_v51 = vand.u32 4294901760, %v11344_v46  ;;  %v11363_v12 = vand.u32 4294901760, %v33585_v25 }
0x142a   : > { %v33603_v28 = vsub.f32 %v11264_v26, %v33594_v19  ;;  %v33605_v7 = vpop.f32.mrb[62].mxu1  ;;  %v11374_v22 = vsub.f32 %v33580_v49, %v11373_v29 }
0x142b   : > { %36890 = vst [vmem:[#allocation23_spill] sm:$0xff] %v33605_v7  ;;  %v33611_v45 = vsub.f32 %v11261_v63, %v33599_v10  ;;  %v11270_v0 = vsel %vm340_vm0, %v33605_v7, 0  ;;  %v33615_v34 = vpop.f32.mrb[63].mxu1  ;;  %25301 = vmatprep.mubr.f32.mxu0 %v11345_v51  ;;  %v11364_v59 = vsub.f32 %v33585_v25, %v11363_v12 }
0x142c   : > { %36891 = vst [vmem:[#allocation25_spill] sm:$0xff] %v33615_v34  ;;  %v33620_v62 = vand.u32 4294901760, %v11270_v0  ;;  %v11267_v61 = vsel %vm340_vm0, %v33615_v34, 0  ;;  %25302 = vmatmul.mubr.f32.vlgmr.msra.gmra.mrb[48].mxu0 %v11355_v11  ;;  %v11393_v47 = vand.u32 4294901760, %v33603_v28  ;;  %v11375_v14 = vand.u32 4294901760, %v11374_v22 }
0x142d   : > { %v33625_v20 = vand.u32 4294901760, %v11267_v61  ;;  %27968 = vmatpush3.bf16.msra.mxu0 %v27965_v8  ;;  %v11365_v44 = vand.u32 4294901760, %v11364_v59  ;;  %v11383_v33 = vand.u32 4294901760, %v33611_v45 }
0x142e   : > { %v11412_v31 = vsub.f32 %v11270_v0, %v33620_v62  ;;  %v11394_v57 = vsub.f32 %v33603_v28, %v11393_v47  ;;  %27970 = vmatprep.subr.bf16.mxu0 %v27969_v13 }
0x142f   : > { %v11402_v48 = vsub.f32 %v11267_v61, %v33625_v20  ;;  %25304 = vmatprep.mubr.f32.mxu0 %v11365_v44  ;;  %v11384_v38 = vsub.f32 %v33611_v45, %v11383_v33 }
0x1430   : > { %25305 = vmatmul.mubr.f32.gmra.mrb[50].mxu0 %v11375_v14  ;;  %v11413_v24 = vand.u32 4294901760, %v11412_v31  ;;  %v11395_v50 = vand.u32 4294901760, %v11394_v57 }
0x1431   : > { %v11385_v55 = vand.u32 4294901760, %v11384_v38  ;;  %27972 = vmatpush3.bf16.msra.mxu0 %v27969_v13  ;;  %v11403_v32 = vand.u32 4294901760, %v11402_v48 }
0x1432   : > { %v11414_v8 = vsub.f32 %v11412_v31, %v11413_v24  ;;  %27974 = vmatprep.subr.bf16.mxu0 %v33536_v36 }
0x1433   : > { %25307 = vmatprep.mubr.f32.mxu0 %v11385_v55  ;;  %v11404_v52 = vsub.f32 %v11402_v48, %v11403_v32 }
0x1434   : > { %25308 = vmatmul.mubr.f32.gmra.mrb[52].mxu0 %v11395_v50  ;;  %v11415_v18 = vand.u32 4294901760, %v11414_v8 }
0x1435   : > { %v11405_v15 = vand.u32 4294901760, %v11404_v52 }
0x1437   : > { %25310 = vmatprep.mubr.f32.mxu0 %v11405_v15 }
0x1438   : > { %25311 = vmatmul.mubr.f32.gmra.mrb[54].mxu0 %v11415_v18 }
0x1439   : > { %25321 = vmatprep.mubr.f32.mxu0 %v33554_v17 }
0x143c   : > { %25322 = vmatmul.mubr.f32.vlgmr.msra.gmra.mrb[48].mxu0 %v33550_v39 }
0x143d   : > { %25324 = vmatprep.mubr.f32.mxu0 %v33573_v42  ;;  %27976 = vmatpush3.bf16.msra.mxu0 %v33536_v36 }
0x143e   : > { %27978 = vmatprep.subr.bf16.mxu0 %v33538_v41 }
0x1440   : > { %25325 = vmatmul.mubr.f32.gmra.mrb[50].mxu0 %v33569_v43 }
0x1441   : > { %25327 = vmatprep.mubr.f32.mxu0 %v33599_v10  ;;  %27980 = vmatpush3.bf16.msra.mxu0 %v33538_v41 }
0x1442   : > { %27982 = vmatprep.subr.bf16.mxu0 %v33384_v30 }
0x1444   : > { %25328 = vmatmul.mubr.f32.gmra.mrb[52].mxu0 %v33594_v19 }
0x1445   : > { %25330 = vmatprep.mubr.f32.mxu0 %v33625_v20 }
0x1448   : > { %25331 = vmatmul.mubr.f32.gmra.mrb[54].mxu0 %v33620_v62 }
0x1449   : > { %25341 = vmatprep.mubr.f32.mxu0 %v33562_v5 }
0x144c   : > { %25342 = vmatmul.mubr.f32.vlgmr.msra.gmra.mrb[48].mxu0 %v33557_v53 }
0x144d   : > { %25344 = vmatprep.mubr.f32.mxu0 %v33585_v25  ;;  %27984 = vmatpush3.bf16.msra.mxu0 %v33384_v30 }
0x144e   : > { %27986 = vmatprep.subr.bf16.mxu0 %v33526_v60 }
0x1450   : > { %25345 = vmatmul.mubr.f32.gmra.mrb[50].mxu0 %v33580_v49 }
0x1451   : > { %25347 = vmatprep.mubr.f32.mxu0 %v33611_v45  ;;  %27988 = vmatpush3.bf16.msra.mxu0 %v33526_v60 }
0x1452   : > { %27990 = vmatprep.subr.bf16.mxu0 %v33540_v2 }
0x1454   : > { %25348 = vmatmul.mubr.f32.gmra.mrb[52].mxu0 %v33603_v28 }
0x1455   : > { %25350 = vmatprep.mubr.f32.mxu0 %v11402_v48 }
0x1458   : > { %25351 = vmatmul.mubr.f32.gmra.mrb[54].mxu0 %v11412_v31 }
0x1459   : > { %25361 = vmatprep.mubr.f32.mxu0 %v11343_v40 }
0x145c   : > { %25362 = vmatmul.mubr.f32.vlgmr.msra.gmra.mrb[48].mxu0 %v11353_v37 }
0x145d   : > { %25364 = vmatprep.mubr.f32.mxu0 %v11363_v12  ;;  %27992 = vmatpush3.bf16.msra.mxu0 %v33540_v2 }
0x145e   : > { %27994 = vmatprep.subr.bf16.mxu0 %v33542_v6 }
0x1460   : > { %25365 = vmatmul.mubr.f32.gmra.mrb[50].mxu0 %v11373_v29 }
0x1461   : > { %25367 = vmatprep.mubr.f32.mxu0 %v11383_v33  ;;  %27996 = vmatpush3.bf16.msra.mxu0 %v33542_v6 }
0x1462   : > { %27998 = vmatprep.subr.bf16.mxu0 %v33384_v30 }
0x1464   : > { %25368 = vmatmul.mubr.f32.gmra.mrb[52].mxu0 %v11393_v47 }
0x1465   : > { %25370 = vmatprep.mubr.f32.mxu0 %v11403_v32 }
0x1468   : > { %25371 = vmatmul.mubr.f32.gmra.mrb[54].mxu0 %v11413_v24 }
0x1469   : > { %25381 = vmatprep.mubr.f32.mxu0 %v33554_v17 }
0x146c   : > { %25382 = vmatmul.mubr.f32.vlgmr.msra.gmra.mrb[48].mxu0 %v33550_v39 }
0x146d   : > { %25384 = vmatprep.mubr.f32.mxu0 %v33573_v42  ;;  %28000 = vmatpush3.bf16.msra.mxu0 %v33384_v30  ;;  %v21414_v30 = vld [vmem:[%s36604_s4 + $0x1] ss:$0 sm:$0xff] }
0x146e   : > { %28002 = vmatprep.subr.bf16.mxu0 %v33526_v60 }
0x1470   : > { %25385 = vmatmul.mubr.f32.gmra.mrb[50].mxu0 %v33569_v43 }
0x1471   : > { %25387 = vmatprep.mubr.f32.mxu0 %v33599_v10  ;;  %28004 = vmatpush3.bf16.msra.mxu0 %v33526_v60 }
0x1474   : > { %25388 = vmatmul.mubr.f32.gmra.mrb[52].mxu0 %v33594_v19 }
0x1475   : > { %25390 = vmatprep.mubr.f32.mxu0 %v33625_v20 }
0x1478   : > { %25391 = vmatmul.mubr.f32.gmra.mrb[54].mxu0 %v33620_v62 }
0x1479   : > { %25401 = vmatprep.mubr.f32.mxu0 %v33554_v17 }
0x147c   : > { %25402 = vmatmul.mubr.f32.vlgmr.msra.gmra.mrb[48].mxu0 %v33550_v39 }
0x147d   : > { %25404 = vmatprep.mubr.f32.mxu0 %v33573_v42 }
0x1480   : > { %25405 = vmatmul.mubr.f32.gmra.mrb[50].mxu0 %v33569_v43 }
0x1481   : > { %25407 = vmatprep.mubr.f32.mxu0 %v33599_v10 }
0x1484   : > { %25408 = vmatmul.mubr.f32.gmra.mrb[52].mxu0 %v33594_v19 }
0x1485   : > { %25410 = vmatprep.mubr.f32.mxu0 %v33625_v20 }
0x1488   : > { %25411 = vmatmul.mubr.f32.gmra.mrb[54].mxu0 %v33620_v62 }
0x154f   : > { %v25403_v60 = vpop.f32.mrb[48].mxu0 }
0x1550   : > { %v33689_v54 = vadd.f32 %v25403_v60, %v21414_v30  ;;  %v12012_v13 = vpop.f32.mrb[49].mxu0 }
0x1551   : > { %v33691_v36 = vadd.f32 %v21414_v30, %v12012_v13 }
0x1552   : > { %12068 = vrot.lane.b32.xlu1 %v33689_v54, %s30163_s19 }
0x1553   : > { %v25406_v41 = vpop.f32.mrb[50].mxu0  ;;  %12066 = vrot.lane.b32.xlu0 %v33691_v36, %s30163_s19  ;;  %v12082_v2 = vsel %vm1996_vm1, %v33691_v36, 0 }
0x1554   : > { %v33699_v6 = vadd.f32 %v25406_v41, %v21414_v30  ;;  %v12024_v56 = vpop.f32.mrb[51].mxu0  ;;  %v33701_v39 = vand.u32 4294901760, %v12082_v2 }
0x1555   : > { %v33703_v35 = vadd.f32 %v21414_v30, %v12024_v56 }
0x1556   : > { %12072 = vrot.lane.b32.xlu1 %v33699_v6, %s30163_s19  ;;  %v33708_v17 = vsub.f32 %v12082_v2, %v33701_v39 }
0x1557   : > { %v25409_v53 = vpop.f32.mrb[52].mxu0  ;;  %12070 = vrot.lane.b32.xlu0 %v33703_v35, %s30163_s19 }
0x1558   : > { %v33712_v5 = vadd.f32 %v25409_v53, %v21414_v30  ;;  %v12036_v1 = vpop.f32.mrb[53].mxu0  ;;  %v36674_v37 = vand.u32 4294901760, %v33708_v17 }
0x1559   : > { %v33715_v43 = vadd.f32 %v21414_v30, %v12036_v1 }
0x155a   : > { %12076 = vrot.lane.b32.xlu1 %v33712_v5, %s30163_s19  ;;  %v12190_v4 = vsub.f32 %v33708_v17, %v36674_v37 }
0x155b   : > { %v25412_v42 = vpop.f32.mrb[54].mxu0  ;;  %12074 = vrot.lane.b32.xlu0 %v33715_v43, %s30163_s19 }
0x155c   : > { %v33724_v40 = vadd.f32 %v25412_v42, %v21414_v30  ;;  %v12048_v27 = vpop.f32.mrb[55].mxu0  ;;  %v12191_v49 = vand.u32 4294901760, %v12190_v4 }
0x155d   : > { %v33726_v25 = vadd.f32 %v21414_v30, %v12048_v27 }
0x155e   : > { %36892 = vst [vmem:[#allocation27_spill] sm:$0xff] %v33724_v40  ;;  %12080 = vrot.lane.b32.xlu1 %v33724_v40, %s30163_s19  ;;  %25429 = vmatprep.mubr.f32.mxu1 %v12191_v49 }
0x155f   : > { %36893 = vst [vmem:[#allocation29_spill] sm:$0xff] %v33726_v25  ;;  %12078 = vrot.lane.b32.xlu0 %v33726_v25, %s30163_s19  ;;  %s37007_s19 = smov 16  }
0x15c4   : > { %v12069_v26 = vpop.permute.xlu1 %12068 }
0x15c5   : > { %v12100_v46 = vsel %vm1996_vm1, %v12069_v26, 0  ;;  %v12067_v19 = vpop.permute.xlu0 %12066  ;;  %v12084_v26 = vsel %vm1996_vm1, %v33689_v54, 0 }
0x15c6   : > { %v12118_v63 = vand.u32 4294901760, %v12100_v46  ;;  %v12098_v29 = vsel %vm1996_vm1, %v12067_v19, 0  ;;  %v12086_v19 = vsel %vm1996_vm1, %v33703_v35, 0 }
0x15c7   : > { %v12115_v10 = vand.u32 4294901760, %v12098_v29 }
0x15c8   : > { %v33734_v51 = vsub.f32 %v12100_v46, %v12118_v63  ;;  %v12073_v12 = vpop.permute.xlu1 %12072 }
0x15c9   : > { %v33736_v11 = vpack.c.bf16 %v12118_v63, %v12115_v10  ;;  %v33738_v28 = vsub.f32 %v12098_v29, %v12115_v10  ;;  %v12104_v22 = vsel %vm1996_vm1, %v12073_v12, 0  ;;  %v12071_v45 = vpop.permute.xlu0 %12070  ;;  %v33787_v63 = vand.u32 4294901760, %v12084_v26 }
0x15ca   : > { %v12124_v0 = vand.u32 4294901760, %v12104_v22  ;;  %v12102_v59 = vsel %vm1996_vm1, %v12071_v45, 0  ;;  %v12277_v61 = vand.u32 4294901760, %v33734_v51  ;;  %v33795_v10 = vand.u32 4294901760, %v12086_v19 }
0x15cb   : > { %v12121_v62 = vand.u32 4294901760, %v12102_v59  ;;  %28006 = vmatprep.subr.bf16.mxu1 %v33736_v11  ;;  %v12270_v47 = vand.u32 4294901760, %v33738_v28  ;;  %v12088_v12 = vsel %vm1996_vm1, %v33699_v6, 0 }
0x15cc   : > { %v33745_v20 = vsub.f32 %v12104_v22, %v12124_v0  ;;  %v12077_v44 = vpop.permute.xlu1 %12076  ;;  %28008 = vmatpush3.bf16.xpose.msra.mxu1 %v33736_v11 }
0x15cd   : > { %v33748_v33 = vpack.c.bf16 %v12124_v0, %v12121_v62  ;;  %v33750_v31 = vsub.f32 %v12102_v59, %v12121_v62  ;;  %v12108_v14 = vsel %vm1996_vm1, %v12077_v44, 0  ;;  %v12075_v57 = vpop.permute.xlu0 %12074  ;;  %v33759_v52 = vpack.c.bf16 %v12277_v61, %v12270_v47 }
0x15ce   : > { %v12130_v48 = vand.u32 4294901760, %v12108_v14  ;;  %v12106_v38 = vsel %vm1996_vm1, %v12075_v57, 0  ;;  %v12291_v55 = vand.u32 4294901760, %v33745_v20  ;;  %v12271_v45 = vsub.f32 %v33738_v28, %v12270_v47 }
0x15cf   : > { %v12127_v24 = vand.u32 4294901760, %v12106_v38  ;;  %28010 = vmatprep.subr.bf16.mxu1 %v33748_v33  ;;  %v12284_v32 = vand.u32 4294901760, %v33750_v31  ;;  %v12278_v0 = vsub.f32 %v33734_v51, %v12277_v61  ;;  %v12090_v59 = vsel %vm1996_vm1, %v33715_v43, 0 }
0x15d0   : > { %v33757_v50 = vsub.f32 %v12108_v14, %v12130_v48  ;;  %v12081_v8 = vpop.permute.xlu1 %12080  ;;  %v33808_v62 = vsub.f32 %v12084_v26, %v33787_v63  ;;  %v33810_v44 = vand.u32 4294901760, %v12088_v12  ;;  %v33813_v14 = vsub.f32 %v12086_v19, %v33795_v10 }
0x15d1   : > { %v33761_v15 = vsub.f32 %v12106_v38, %v12127_v24  ;;  %v12112_v18 = vsel %vm1996_vm1, %v12081_v8, 0  ;;  %v12079_v30 = vpop.permute.xlu0 %12078  ;;  %v33766_v2 = vpack.c.bf16 %v12130_v48, %v12127_v24  ;;  %v33772_v4 = vpack.c.bf16 %v12291_v55, %v12284_v32 }
0x15d2   : > { %v36678_v60 = vand.u32 4294901760, %v33757_v50  ;;  %v12136_v13 = vand.u32 4294901760, %v12112_v18  ;;  %v12110_v41 = vsel %vm1996_vm1, %v12079_v30, 0  ;;  %v33815_v57 = vand.u32 4294901760, %v12090_v59 }
0x15d3   : > { %v12298_v56 = vand.u32 4294901760, %v33761_v15  ;;  %v12133_v53 = vand.u32 4294901760, %v12110_v41  ;;  %v12092_v61 = vsel %vm1996_vm1, %v33712_v5, 0  ;;  %v12272_v47 = vand.u32 4294901760, %v12271_v45 }
0x15d4   : > { %v33769_v1 = vsub.f32 %v12112_v18, %v12136_v13  ;;  %28012 = vmatpush3.bf16.xpose.msra.mxu1 %v33748_v33  ;;  %v12279_v48 = vand.u32 4294901760, %v12278_v0  ;;  %v12094_v38 = vsel %vm1996_vm1, %v33726_v25, 0  ;;  %v36677_v24 = vand.u32 4294901760, %v33808_v62 }
0x15d5   : > { %v33774_v42 = vsub.f32 %v12110_v41, %v12133_v53  ;;  %28014 = vmatprep.subr.bf16.mxu1 %v33766_v2  ;;  %v33779_v27 = vpack.c.bf16 %v36678_v60, %v12298_v56  ;;  %v33799_v22 = vpack.c.bf16 %v12136_v13, %v12133_v53  ;;  %v33823_v8 = vsub.f32 %v12088_v12, %v33810_v44 }
0x15d6   : > { %v36675_v49 = vand.u32 4294901760, %v33769_v1  ;;  %v33825_v18 = vand.u32 4294901760, %v12092_v61  ;;  %v36680_v30 = vand.u32 4294901760, %v33813_v14  ;;  %v33829_v13 = vsub.f32 %v12090_v59, %v33815_v57 }
0x15d7   : > { %v36676_v46 = vand.u32 4294901760, %v33774_v42  ;;  %v33831_v41 = vand.u32 4294901760, %v12094_v38  ;;  %v12096_v53 = vsel %vm1996_vm1, %v33724_v40, 0  ;;  %v28021_v26 = vpack.c.bf16 %v12279_v48, %v12272_v47 }
0x15d8   : > { %v12285_v19 = vsub.f32 %v33750_v31, %v12284_v32  ;;  %v12292_v45 = vsub.f32 %v33745_v20, %v12291_v55  ;;  %v12200_v12 = vsub.f32 %v33808_v62, %v36677_v24  ;;  %v36681_v0 = vand.u32 4294901760, %v33823_v8 }
0x15d9   : > { %v33793_v29 = vpack.c.bf16 %v36675_v49, %v36676_v46  ;;  %v33843_v59 = vsub.f32 %v12092_v61, %v33825_v18  ;;  %v33845_v37 = vand.u32 4294901760, %v12096_v53  ;;  %v12210_v32 = vsub.f32 %v33813_v14, %v36680_v30 }
0x15da   : > { %v36682_v55 = vand.u32 4294901760, %v33829_v13  ;;  %v33852_v47 = vsub.f32 %v12094_v38, %v33831_v41  ;;  %v12286_v48 = vand.u32 4294901760, %v12285_v19  ;;  %v12293_v49 = vand.u32 4294901760, %v12292_v45 }
0x15db   : > { %v12201_v46 = vand.u32 4294901760, %v12200_v12  ;;  %v12220_v24 = vsub.f32 %v33823_v8, %v36681_v0  ;;  %v36684_v61 = vand.u32 4294901760, %v33843_v59  ;;  %v33859_v60 = vsub.f32 %v12096_v53, %v33845_v37 }
0x15dc   : > { %28016 = vmatpush3.bf16.xpose.msra.mxu1 %v33766_v2  ;;  %v12211_v34 = vand.u32 4294901760, %v12210_v32  ;;  %v12230_v30 = vsub.f32 %v33829_v13, %v36682_v55  ;;  %v36685_v38 = vand.u32 4294901760, %v33852_v47  ;;  %v28025_v19 = vpack.c.bf16 %v12293_v49, %v12286_v48 }
0x15dd   : > { %28018 = vmatprep.subr.bf16.mxu1 %v33799_v22  ;;  %v12299_v45 = vsub.f32 %v33761_v15, %v12298_v56  ;;  %v36894_v12 = vand.u32 4294901760, %v33757_v50  ;;  %v12221_v53 = vand.u32 4294901760, %v12220_v24  ;;  %v12240_v32 = vsub.f32 %v33843_v59, %v36684_v61 }
0x15de   : > { %v12259_v55 = vand.u32 4294901760, %v33859_v60  ;;  %v12231_v7 = vand.u32 4294901760, %v12230_v30  ;;  %v12250_v49 = vsub.f32 %v33852_v47, %v36685_v38  ;;  %v36896_v61 = vand.u32 4294901760, %v33769_v1 }
0x15df   : > { %v12306_v0 = vsub.f32 %v33757_v50, %v36894_v12  ;;  %v12300_v56 = vand.u32 4294901760, %v12299_v45  ;;  %v12241_v48 = vand.u32 4294901760, %v12240_v32  ;;  %v36895_v12 = vand.u32 4294901760, %v33774_v42 }
0x15e0   : > { %v12251_v24 = vand.u32 4294901760, %v12250_v49  ;;  %v12320_v38 = vsub.f32 %v33769_v1, %v36896_v61  ;;  %v28037_v32 = vpack.c.bf16 %v33734_v51, %v33738_v28  ;;  %v28041_v61 = vpack.c.bf16 %v33745_v20, %v33750_v31 }
0x15e1   : > { %v12313_v30 = vsub.f32 %v33774_v42, %v36895_v12  ;;  %v28045_v51 = vpack.c.bf16 %v33757_v50, %v33761_v15  ;;  %v28049_v28 = vpack.c.bf16 %v33769_v1, %v33774_v42  ;;  %v36897_v20 = vand.u32 4294901760, %v33708_v17 }
0x15e2   : > { %v12321_v45 = vand.u32 4294901760, %v12320_v38  ;;  %v36898_v31 = vand.u32 4294901760, %v33808_v62  ;;  %v36899_v50 = vand.u32 4294901760, %v33813_v14  ;;  %v36901_v15 = vand.u32 4294901760, %v33829_v13 }
0x15e3   : > { %v36902_v1 = vand.u32 4294901760, %v33843_v59  ;;  %v36903_v42 = vand.u32 4294901760, %v33852_v47 }
0x15e4   : > { %28020 = vmatpush3.bf16.xpose.msra.mxu1 %v33799_v22 }
0x15e5   : > { %28022 = vmatprep.subr.bf16.mxu1 %v28021_v26 }
0x15eb   : > { %25430 = vmatmul.mubr.f32.vlgmr.msra.gmra.mrb[64].mxu1 %v12201_v46  ;;  %v12307_v46 = vand.u32 4294901760, %v12306_v0  ;;  %v12314_v0 = vand.u32 4294901760, %v12313_v30 }
0x15ec   : > { %25432 = vmatprep.mubr.f32.mxu1 %v12211_v34  ;;  %28024 = vmatpush3.bf16.xpose.msra.mxu1 %v28021_v26  ;;  %v12260_v34 = vsub.f32 %v33859_v60, %v12259_v55 }
0x15ed   : > { %28026 = vmatprep.subr.bf16.mxu1 %v28025_v19  ;;  %v28029_v26 = vpack.c.bf16 %v12307_v46, %v12300_v56 }
0x15ef   : > { %25433 = vmatmul.mubr.f32.gmra.mrb[66].mxu1 %v12221_v53  ;;  %v28033_v53 = vpack.c.bf16 %v12321_v45, %v12314_v0 }
0x15f0   : > { %25435 = vmatprep.mubr.f32.mxu1 %v12231_v7  ;;  %v12261_v7 = vand.u32 4294901760, %v12260_v34 }
0x15f3   : > { %25436 = vmatmul.mubr.f32.gmra.mrb[68].mxu1 %v12241_v48 }
0x15f4   : > { %25438 = vmatprep.mubr.f32.mxu1 %v12251_v24  ;;  %28028 = vmatpush3.bf16.xpose.msra.mxu1 %v28025_v19 }
0x15f5   : > { %28030 = vmatprep.subr.bf16.mxu1 %v28029_v26 }
0x15f7   : > { %25439 = vmatmul.mubr.f32.gmra.mrb[70].mxu1 %v12261_v7 }
0x15f8   : > { %25457 = vmatprep.mubr.f32.mxu1 %v33701_v39 }
0x15fc   : > { %28032 = vmatpush3.bf16.xpose.msra.mxu1 %v28029_v26 }
0x15fd   : > { %28034 = vmatprep.subr.bf16.mxu1 %v28033_v53 }
0x1604   : > { %28036 = vmatpush3.bf16.xpose.msra.mxu1 %v28033_v53 }
0x1605   : > { %28038 = vmatprep.subr.bf16.mxu1 %v28037_v32 }
0x160b   : > { %25458 = vmatmul.mubr.f32.vlgmr.msra.gmra.mrb[64].mxu1 %v33787_v63 }
0x160c   : > { %25460 = vmatprep.mubr.f32.mxu1 %v33795_v10  ;;  %28040 = vmatpush3.bf16.xpose.msra.mxu1 %v28037_v32 }
0x160d   : > { %28042 = vmatprep.subr.bf16.mxu1 %v28041_v61 }
0x160f   : > { %25461 = vmatmul.mubr.f32.gmra.mrb[66].mxu1 %v33810_v44 }
0x1610   : > { %25463 = vmatprep.mubr.f32.mxu1 %v33815_v57 }
0x1613   : > { %25464 = vmatmul.mubr.f32.gmra.mrb[68].mxu1 %v33825_v18 }
0x1614   : > { %25466 = vmatprep.mubr.f32.mxu1 %v33831_v41  ;;  %28044 = vmatpush3.bf16.xpose.msra.mxu1 %v28041_v61 }
0x1615   : > { %28046 = vmatprep.subr.bf16.mxu1 %v28045_v51 }
0x1617   : > { %25467 = vmatmul.mubr.f32.gmra.mrb[70].mxu1 %v33845_v37 }
0x1618   : > { %25485 = vmatprep.mubr.f32.mxu1 %v33708_v17  ;;  %v36900_v17 = vand.u32 4294901760, %v33823_v8 }
0x161c   : > { %28048 = vmatpush3.bf16.xpose.msra.mxu1 %v28045_v51 }
0x161d   : > { %28050 = vmatprep.subr.bf16.mxu1 %v28049_v28 }
0x1624   : > { %28052 = vmatpush3.bf16.xpose.msra.mxu1 %v28049_v28 }
0x1625   : > { %28054 = vmatprep.subr.bf16.mxu1 %v33736_v11 }
0x162b   : > { %25486 = vmatmul.mubr.f32.vlgmr.msra.gmra.mrb[64].mxu1 %v33808_v62 }
0x162c   : > { %25488 = vmatprep.mubr.f32.mxu1 %v33813_v14  ;;  %28056 = vmatpush3.bf16.xpose.msra.mxu1 %v33736_v11 }
0x162d   : > { %28058 = vmatprep.subr.bf16.mxu1 %v33748_v33 }
0x162f   : > { %25489 = vmatmul.mubr.f32.gmra.mrb[66].mxu1 %v33823_v8 }
0x1630   : > { %25491 = vmatprep.mubr.f32.mxu1 %v33829_v13 }
0x1633   : > { %25492 = vmatmul.mubr.f32.gmra.mrb[68].mxu1 %v33843_v59 }
0x1634   : > { %25494 = vmatprep.mubr.f32.mxu1 %v33852_v47  ;;  %28060 = vmatpush3.bf16.xpose.msra.mxu1 %v33748_v33 }
0x1635   : > { %28062 = vmatprep.subr.bf16.mxu1 %v33766_v2 }
0x1637   : > { %25495 = vmatmul.mubr.f32.gmra.mrb[70].mxu1 %v33859_v60 }
0x1638   : > { %25513 = vmatprep.mubr.f32.mxu1 %v36897_v20 }
0x163c   : > { %28064 = vmatpush3.bf16.xpose.msra.mxu1 %v33766_v2 }
0x163d   : > { %28066 = vmatprep.subr.bf16.mxu1 %v33799_v22 }
0x1644   : > { %28068 = vmatpush3.bf16.xpose.msra.mxu1 %v33799_v22 }
0x1645   : > { %28070 = vmatprep.subr.bf16.mxu1 %v33759_v52 }
0x164b   : > { %25514 = vmatmul.mubr.f32.vlgmr.msra.gmra.mrb[64].mxu1 %v36898_v31 }
0x164c   : > { %25516 = vmatprep.mubr.f32.mxu1 %v36899_v50  ;;  %28072 = vmatpush3.bf16.xpose.msra.mxu1 %v33759_v52 }
0x164d   : > { %28074 = vmatprep.subr.bf16.mxu1 %v33772_v4 }
0x164f   : > { %25517 = vmatmul.mubr.f32.gmra.mrb[66].mxu1 %v36900_v17 }
0x1650   : > { %25519 = vmatprep.mubr.f32.mxu1 %v36901_v15 }
0x1653   : > { %25520 = vmatmul.mubr.f32.gmra.mrb[68].mxu1 %v36902_v1 }
0x1654   : > { %25522 = vmatprep.mubr.f32.mxu1 %v36903_v42  ;;  %28076 = vmatpush3.bf16.xpose.msra.mxu1 %v33772_v4 }
0x1655   : > { %28078 = vmatprep.subr.bf16.mxu1 %v33779_v27 }
0x1657   : > { %25523 = vmatmul.mubr.f32.gmra.mrb[70].mxu1 %v12259_v55 }
0x1658   : > { %25541 = vmatprep.mubr.f32.mxu1 %v33701_v39 }
0x165c   : > { %28080 = vmatpush3.bf16.xpose.msra.mxu1 %v33779_v27 }
0x165d   : > { %28082 = vmatprep.subr.bf16.mxu1 %v33793_v29 }
0x1664   : > { %28084 = vmatpush3.bf16.xpose.msra.mxu1 %v33793_v29 }
0x1665   : > { %28086 = vmatprep.subr.bf16.mxu1 %v33736_v11 }
0x166b   : > { %25542 = vmatmul.mubr.f32.vlgmr.msra.gmra.mrb[64].mxu1 %v33787_v63 }
0x166c   : > { %25544 = vmatprep.mubr.f32.mxu1 %v33795_v10  ;;  %28088 = vmatpush3.bf16.xpose.msra.mxu1 %v33736_v11 }
0x166d   : > { %28090 = vmatprep.subr.bf16.mxu1 %v33748_v33 }
0x166f   : > { %25545 = vmatmul.mubr.f32.gmra.mrb[66].mxu1 %v33810_v44 }
0x1670   : > { %25547 = vmatprep.mubr.f32.mxu1 %v33815_v57 }
0x1673   : > { %25548 = vmatmul.mubr.f32.gmra.mrb[68].mxu1 %v33825_v18 }
0x1674   : > { %25550 = vmatprep.mubr.f32.mxu1 %v33831_v41  ;;  %28092 = vmatpush3.bf16.xpose.msra.mxu1 %v33748_v33 }
0x1675   : > { %28094 = vmatprep.subr.bf16.mxu1 %v33766_v2 }
0x1677   : > { %25551 = vmatmul.mubr.f32.gmra.mrb[70].mxu1 %v33845_v37 }
0x1678   : > { %25569 = vmatprep.mubr.f32.mxu1 %v33701_v39 }
0x167c   : > { %28096 = vmatpush3.bf16.xpose.msra.mxu1 %v33766_v2 }
0x167d   : > { %28098 = vmatprep.subr.bf16.mxu1 %v33799_v22 }
0x1684   : > { %28100 = vmatpush3.bf16.xpose.msra.mxu1 %v33799_v22 }
0x168b   : > { %25570 = vmatmul.mubr.f32.vlgmr.msra.gmra.mrb[64].mxu1 %v33787_v63 }
0x168c   : > { %25572 = vmatprep.mubr.f32.mxu1 %v33795_v10 }
0x168f   : > { %25573 = vmatmul.mubr.f32.gmra.mrb[66].mxu1 %v33810_v44 }
0x1690   : > { %25575 = vmatprep.mubr.f32.mxu1 %v33815_v57 }
0x1693   : > { %25576 = vmatmul.mubr.f32.gmra.mrb[68].mxu1 %v33825_v18 }
0x1694   : > { %25578 = vmatprep.mubr.f32.mxu1 %v33831_v41 }
0x1697   : > { %25579 = vmatmul.mubr.f32.gmra.mrb[70].mxu1 %v33845_v37 }
0x175e   : > { %v25571_v39 = vpop.f32.mrb[64].mxu1 }
0x175f   : > { %v12906_v11 = vpop.f32.mrb[65].mxu1  ;;  %v12955_v33 = vsel %vm2867_vm2, %v25571_v39, -inf }
0x1760   : > { %12956 = vmax.xlane.f32.xlu1 %v12955_v33  ;;  %v12952_v52 = vsel %vm2867_vm2, %v12906_v11, -inf }
0x1761   : > { %12953 = vmax.xlane.f32.xlu0 %v12952_v52 }
0x1762   : > { %v25574_v60 = vpop.f32.mrb[66].mxu1 }
0x1763   : > { %v12918_v2 = vpop.f32.mrb[67].mxu1  ;;  %v12961_v29 = vsel %vm2867_vm2, %v25574_v60, -inf }
0x1764   : > { %v12958_v4 = vsel %vm2867_vm2, %v12918_v2, -inf }
0x1765   : > { %12959 = vmax.xlane.f32.xlu0 %v12958_v4 }
0x1766   : > { %v25577_v27 = vpop.f32.mrb[68].mxu1 }
0x1767   : > { %v12930_v63 = vpop.f32.mrb[69].mxu1  ;;  %v12967_v62 = vsel %vm2867_vm2, %v25577_v27, -inf }
0x1768   : > { %v12964_v10 = vsel %vm2867_vm2, %v12930_v63, -inf }
0x1769   : > { %12962 = vmax.xlane.f32.xlu0 %v12961_v29  ;;  %12965 = vmax.xlane.f32.xlu1 %v12964_v10 }
0x176a   : > { %v25580_v37 = vpop.f32.mrb[70].mxu1 }
0x176b   : > { %v33970_v22 = vpop.f32.mrb[71].mxu1  ;;  %v12973_v44 = vsel %vm2867_vm2, %v25580_v37, -inf }
0x176c   : > { %v12970_v14 = vsel %vm2867_vm2, %v33970_v22, -inf }
0x176d   : > { %12968 = vmax.xlane.f32.xlu0 %v12967_v62 }
0x1771   : > { %12974 = vmax.xlane.f32.xlu0 %v12973_v44 }
0x177a   : > { %13040 = vrot.lane.b32.xlu1 %v33691_v36, %s30164_s20 }
0x1787   : > { %13042 = vrot.lane.b32.xlu0 %v33689_v54, %s30164_s20 }
0x178b   : > { %13048 = vrot.lane.b32.xlu0 %v33715_v43, %s30164_s20 }
0x179e   : > { %12971 = vmax.xlane.f32.xlu1 %v12970_v14 }
0x17af   : > { %13044 = vrot.lane.b32.xlu1 %v33703_v35, %s30164_s20 }
0x17b3   : > { %13046 = vrot.lane.b32.xlu1 %v33699_v6, %s30164_s20 }
0x17b7   : > { %13050 = vrot.lane.b32.xlu1 %v33712_v5, %s30164_s20 }
0x17ed   : > { %v12957_v57 = vpop.xlane.xlu1 %12956 }
0x17ee   : > { %v12977_v8 = vsub.f32 %v25571_v39, %v12957_v57  ;;  %v12954_v18 = vpop.xlane.xlu0 %12953 }
0x17ef   : > { %v12976_v13 = vsub.f32 %v12906_v11, %v12954_v18 }
0x17f0   : > { %v12986_v41 = vmul.f32 1.442695, %v12977_v8 }
0x17f1   : > { %v12984_v59 = vmul.f32 1.442695, %v12976_v13 }
0x17f2   : > { %29992 = vpow2.f32 %v12986_v41  ;;  %v12960_v55 = vpop.xlane.xlu0 %12959 }
0x17f3   : > { %29994 = vpow2.f32 %v12984_v59  ;;  %v12978_v47 = vsub.f32 %v12918_v2, %v12960_v55 }
0x17f5   : > { %v12988_v38 = vmul.f32 1.442695, %v12978_v47 }
0x17f6   : > { %v12963_v19 = vpop.xlane.xlu0 %12962  ;;  %v12966_v49 = vpop.xlane.xlu1 %12965 }
0x17f7   : > { %29996 = vpow2.f32 %v12988_v38  ;;  %v12979_v56 = vsub.f32 %v25574_v60, %v12963_v19  ;;  %v12980_v46 = vsub.f32 %v12930_v63, %v12966_v49 }
0x17f9   : > { %v12990_v48 = vmul.f32 1.442695, %v12979_v56  ;;  %v12992_v34 = vmul.f32 1.442695, %v12980_v46 }
0x17fa   : > { %v12969_v24 = vpop.xlane.xlu0 %12968  ;;  %v13041_v26 = vpop.permute.xlu1 %13040 }
0x17fb   : > { %29998 = vpow2.f32 %v12990_v48  ;;  %v12981_v12 = vsub.f32 %v25577_v27, %v12969_v24  ;;  %v13089_v30 = vand.u32 4294901760, %v13041_v26 }
0x17fc   : > { %v33988_v7 = vpop.eup %29992  ;;  %30000 = vpow2.f32 %v12992_v34 }
0x17fd   : > { %v33990_v0 = vpop.eup %29994  ;;  %v12994_v45 = vmul.f32 1.442695, %v12981_v12  ;;  %v13003_v53 = vsel %vm2867_vm2, %v33988_v7, 0.0  ;;  %v13243_v51 = vsub.f32 %v13041_v26, %v13089_v30 }
0x17fe   : > { %13004 = vadd.xlane.f32.xlu0 %v13003_v53  ;;  %v12975_v32 = vpop.xlane.xlu0 %12974  ;;  %v13000_v61 = vsel %vm2867_vm2, %v33990_v0, 0.0 }
0x17ff   : > { %30002 = vpow2.f32 %v12994_v45  ;;  %v12983_v28 = vsub.f32 %v25580_v37, %v12975_v32  ;;  %13001 = vadd.xlane.f32.xlu1 %v13000_v61  ;;  %v13244_v15 = vand.u32 4294901760, %v13243_v51 }
0x1801   : > { %v33996_v20 = vpop.eup %29996  ;;  %v12998_v31 = vmul.f32 1.442695, %v12983_v28  ;;  %v13245_v4 = vsub.f32 %v13243_v51, %v13244_v15 }
0x1802   : > { %v13043_v50 = vpop.permute.xlu0 %13042  ;;  %v13006_v17 = vsel %vm2867_vm2, %v33996_v20, 0.0 }
0x1803   : > { %30004 = vpow2.f32 %v12998_v31  ;;  %v13092_v1 = vand.u32 4294901760, %v13043_v50  ;;  %13007 = vadd.xlane.f32.xlu1 %v13006_v17  ;;  %v13246_v62 = vand.u32 4294901760, %v13245_v4 }
0x1805   : > { %v34000_v42 = vpop.eup %29998  ;;  %v34002_v39 = vpack.c.bf16 %v13092_v1, %v13089_v30  ;;  %v13250_v11 = vsub.f32 %v13043_v50, %v13092_v1 }
0x1806   : > { %v34004_v33 = vpop.eup %30000  ;;  %v13009_v52 = vsel %vm2867_vm2, %v34000_v42, 0.0  ;;  %v13049_v13 = vpop.permute.xlu0 %13048 }
0x1807   : > { %v13251_v60 = vand.u32 4294901760, %v13250_v11  ;;  %13010 = vadd.xlane.f32.xlu0 %v13009_v52  ;;  %28102 = vmatprep.subr.bf16.mxu0 %v34002_v39  ;;  %v13012_v2 = vsel %vm2867_vm2, %v34004_v33, 0.0  ;;  %v34011_v27 = vpack.c.bf16 %v13250_v11, %v13243_v51  ;;  %v13101_v55 = vand.u32 4294901760, %v13049_v13 }
0x1808   : > { %13013 = vadd.xlane.f32.xlu1 %v13012_v2  ;;  %28104 = vmatpush3.bf16.msra.mxu0 %v34002_v39 }
0x1809   : > { %v34014_v63 = vpop.eup %30002  ;;  %v13252_v29 = vsub.f32 %v13250_v11, %v13251_v60  ;;  %v34016_v10 = vpack.c.bf16 %v13251_v60, %v13244_v15  ;;  %v13271_v49 = vsub.f32 %v13049_v13, %v13101_v55 }
0x180a   : > { %v13015_v37 = vsel %vm2867_vm2, %v34014_v63, 0.0 }
0x180b   : > { %13016 = vadd.xlane.f32.xlu0 %v13015_v37  ;;  %v13253_v44 = vand.u32 4294901760, %v13252_v29  ;;  %v13272_v24 = vand.u32 4294901760, %v13271_v49 }
0x180d   : > { %v34020_v14 = vpop.eup %30004  ;;  %v34022_v57 = vpack.c.bf16 %v13253_v44, %v13246_v62  ;;  %v13273_v17 = vsub.f32 %v13271_v49, %v13272_v24 }
0x180e   : > { %v13021_v8 = vsel %vm2867_vm2, %v34020_v14, 0.0 }
0x180f   : > { %13022 = vadd.xlane.f32.xlu0 %v13021_v8  ;;  %v13274_v29 = vand.u32 4294901760, %v13273_v17 }
0x1825   : > { %13052 = vrot.lane.b32.xlu0 %v33726_v25, %s30164_s20 }
0x1829   : > { %13942 = vrot.lane.b32.xlu0 %v33691_v36, %s30165_s21 }
0x182b   : > { %v12972_v18 = vpop.xlane.xlu1 %12971 }
0x182c   : > { %v12982_v41 = vsub.f32 %v33970_v22, %v12972_v18 }
0x182d   : > { %13946 = vrot.lane.b32.xlu0 %v33703_v35, %s30165_s21 }
0x182e   : > { %v12996_v59 = vmul.f32 1.442695, %v12982_v41 }
0x182f   : > { %v13045_v47 = vpop.permute.xlu1 %13044 }
0x1830   : > { %30006 = vpow2.f32 %v12996_v59  ;;  %v13095_v38 = vand.u32 4294901760, %v13045_v47 }
0x1831   : > { %13950 = vrot.lane.b32.xlu0 %v33715_v43, %s30165_s21 }
0x1832   : > { %v13257_v19 = vsub.f32 %v13045_v47, %v13095_v38 }
0x1833   : > { %v13047_v56 = vpop.permute.xlu1 %13046 }
0x1834   : > { %v13258_v46 = vand.u32 4294901760, %v13257_v19  ;;  %v13098_v48 = vand.u32 4294901760, %v13047_v56 }
0x1835   : > { %13954 = vrot.lane.b32.xlu0 %v33726_v25, %s30165_s21 }
0x1836   : > { %v34037_v22 = vpack.c.bf16 %v13098_v48, %v13095_v38  ;;  %v13264_v34 = vsub.f32 %v13047_v56, %v13098_v48  ;;  %v13259_v45 = vsub.f32 %v13257_v19, %v13258_v46 }
0x1837   : > { %v13051_v26 = vpop.permute.xlu1 %13050 }
0x1838   : > { %v13265_v12 = vand.u32 4294901760, %v13264_v34  ;;  %v13104_v30 = vand.u32 4294901760, %v13051_v26  ;;  %28106 = vmatprep.subr.bf16.mxu0 %v34037_v22  ;;  %v34040_v53 = vpack.c.bf16 %v13264_v34, %v13257_v19  ;;  %v13260_v1 = vand.u32 4294901760, %v13259_v45 }
0x1839   : > { %13926 = vrot.lane.b32.xlu0 %v33691_v36, %s30166_s22  ;;  %28108 = vmatpush3.bf16.msra.mxu0 %v34037_v22 }
0x183a   : > { %v34045_v32 = vpop.eup %30006  ;;  %v34047_v61 = vpack.c.bf16 %v13104_v30, %v13101_v55  ;;  %v13278_v51 = vsub.f32 %v13051_v26, %v13104_v30  ;;  %v13266_v28 = vsub.f32 %v13264_v34, %v13265_v12  ;;  %v34049_v31 = vpack.c.bf16 %v13265_v12, %v13258_v46 }
0x183b   : > { %v13018_v50 = vsel %vm2867_vm2, %v34045_v32, 0.0 }
0x183c   : > { %v13279_v15 = vand.u32 4294901760, %v13278_v51  ;;  %13019 = vadd.xlane.f32.xlu1 %v13018_v50  ;;  %28110 = vmatprep.subr.bf16.mxu0 %v34047_v61  ;;  %v13267_v11 = vand.u32 4294901760, %v13266_v28  ;;  %v34054_v52 = vpack.c.bf16 %v13278_v51, %v13271_v49 }
0x183d   : > { %13930 = vrot.lane.b32.xlu0 %v33703_v35, %s30166_s22  ;;  %28112 = vmatpush3.bf16.msra.mxu0 %v34047_v61 }
0x183e   : > { %v34059_v60 = vpack.c.bf16 %v13267_v11, %v13260_v1  ;;  %v13280_v2 = vsub.f32 %v13278_v51, %v13279_v15  ;;  %v34061_v4 = vpack.c.bf16 %v13279_v15, %v13272_v24 }
0x1840   : > { %v13281_v37 = vand.u32 4294901760, %v13280_v2 }
0x1841   : > { %13934 = vrot.lane.b32.xlu0 %v33715_v43, %s30166_s22 }
0x1842   : > { %v34065_v62 = vpack.c.bf16 %v13281_v37, %v13274_v29 }
0x1845   : > { %13938 = vrot.lane.b32.xlu0 %v33726_v25, %s30166_s22 }
0x184d   : > { %13054 = vrot.lane.b32.xlu1 %v33724_v40, %s30164_s20 }
0x1851   : > { %13944 = vrot.lane.b32.xlu1 %v33689_v54, %s30165_s21 }
0x1855   : > { %13948 = vrot.lane.b32.xlu1 %v33699_v6, %s30165_s21 }
0x1859   : > { %13952 = vrot.lane.b32.xlu1 %v33712_v5, %s30165_s21 }
0x185d   : > { %13956 = vrot.lane.b32.xlu1 %v33724_v40, %s30165_s21 }
0x1861   : > { %13928 = vrot.lane.b32.xlu1 %v33689_v54, %s30166_s22 }
0x1865   : > { %13932 = vrot.lane.b32.xlu1 %v33699_v6, %s30166_s22 }
0x1869   : > { %13936 = vrot.lane.b32.xlu1 %v33712_v5, %s30166_s22 }
0x186d   : > { %13940 = vrot.lane.b32.xlu1 %v33724_v40, %s30166_s22 }
0x188b   : > { %v13005_v19 = vpop.xlane.xlu0 %13004 }
0x188c   : > { %v13002_v44 = vpop.xlane.xlu1 %13001 }
0x188d   : > { %30008 = vrcp.f32 %v13002_v44 }
0x188e   : > { %30010 = vrcp.f32 %v13005_v19 }
0x1890   : > { %v13008_v49 = vpop.xlane.xlu1 %13007 }
0x1891   : > { %30012 = vrcp.f32 %v13008_v49 }
0x1894   : > { %v13011_v56 = vpop.xlane.xlu0 %13010 }
0x1895   : > { %30014 = vrcp.f32 %v13011_v56 }
0x1897   : > { %v30009_v8 = vpop.eup %30008 }
0x1898   : > { %v13025_v18 = vmul.f32 %v30009_v8, %v33990_v0  ;;  %v13014_v0 = vpop.xlane.xlu1 %13013  ;;  %v13017_v46 = vpop.xlane.xlu0 %13016 }
0x1899   : > { %30016 = vrcp.f32 %v13014_v0  ;;  %v30011_v34 = vpop.eup %30010 }
0x189a   : > { %v13065_v13 = vsel %vm2867_vm2, %v13025_v18, 0  ;;  %30018 = vrcp.f32 %v13017_v46  ;;  %v13027_v12 = vmul.f32 %v30011_v34, %v33988_v7 }
0x189b   : > { %v34089_v41 = vand.u32 4294901760, %v13065_v13  ;;  %v30013_v24 = vpop.eup %30012 }
0x189c   : > { %v13023_v48 = vpop.xlane.xlu0 %13022  ;;  %v13029_v30 = vmul.f32 %v30013_v24, %v33996_v20  ;;  %v13068_v50 = vsel %vm2867_vm2, %v13027_v12, 0 }
0x189d   : > { %v34092_v59 = vsub.f32 %v13065_v13, %v34089_v41  ;;  %30020 = vrcp.f32 %v13023_v48  ;;  %v34104_v11 = vand.u32 4294901760, %v13068_v50 }
0x189e   : > { %v13071_v17 = vsel %vm2867_vm2, %v13029_v30, 0 }
0x189f   : > { %v36690_v55 = vand.u32 4294901760, %v34092_v59  ;;  %v30015_v26 = vpop.eup %30014  ;;  %v34106_v29 = vand.u32 4294901760, %v13071_v17  ;;  %v34114_v8 = vsub.f32 %v13068_v50, %v34104_v11 }
0x18a0   : > { %v13053_v45 = vpop.permute.xlu0 %13052  ;;  %v13031_v28 = vmul.f32 %v30015_v26, %v34000_v42 }
0x18a1   : > { %v13164_v47 = vsub.f32 %v34092_v59, %v36690_v55  ;;  %v13107_v18 = vand.u32 4294901760, %v13053_v45  ;;  %v36688_v46 = vand.u32 4294901760, %v34114_v8 }
0x18a2   : > { %v13074_v7 = vsel %vm2867_vm2, %v13031_v28, 0 }
0x18a3   : > { %v13165_v38 = vand.u32 4294901760, %v13164_v47  ;;  %v30017_v51 = vpop.eup %30016  ;;  %v34111_v44 = vand.u32 4294901760, %v13074_v7  ;;  %v34126_v56 = vsub.f32 %v13053_v45, %v13107_v18 }
0x18a4   : > { %v13033_v15 = vmul.f32 %v30017_v51, %v34004_v33  ;;  %v30019_v1 = vpop.eup %30018  ;;  %v13943_v2 = vpop.permute.xlu0 %13942  ;;  %v34117_v33 = vsub.f32 %v13071_v17, %v34106_v29  ;;  %v13174_v17 = vsub.f32 %v34114_v8, %v36688_v46 }
0x18a5   : > { %25597 = vmatprep.mubr.f32.mxu0 %v13165_v38  ;;  %v13035_v37 = vmul.f32 %v30019_v1, %v34014_v63  ;;  %v34123_v49 = vsub.f32 %v13074_v7, %v34111_v44  ;;  %v34129_v0 = vsel %vm1996_vm1, %v13943_v2, 0  ;;  %v36693_v51 = vand.u32 4294901760, %v34126_v56 }
0x18a6   : > { %v13077_v20 = vsel %vm2867_vm2, %v13033_v15, 0  ;;  %v36687_v48 = vand.u32 4294901760, %v34117_v33  ;;  %v36686_v12 = vand.u32 4294901760, %v34129_v0 }
0x18a7   : > { %v30021_v42 = vpop.eup %30020  ;;  %v34119_v13 = vand.u32 4294901760, %v13077_v20  ;;  %v13080_v19 = vsel %vm2867_vm2, %v13035_v37, 0 }
0x18a8   : > { %v13947_v47 = vpop.permute.xlu0 %13946  ;;  %v13039_v63 = vmul.f32 %v30021_v42, %v34020_v14  ;;  %v34136_v24 = vand.u32 4294901760, %v13080_v19  ;;  %v36689_v14 = vand.u32 4294901760, %v34123_v49  ;;  %v13184_v15 = vsub.f32 %v34117_v33, %v36687_v48 }
0x18a9   : > { %v34134_v34 = vsub.f32 %v13077_v20, %v34119_v13  ;;  %v34143_v28 = vsel %vm1996_vm1, %v13947_v47, 0  ;;  %v34164_v47 = vsub.f32 %v34129_v0, %v36686_v12 }
0x18aa   : > { %v13086_v45 = vsel %vm2867_vm2, %v13039_v63, 0  ;;  %v34157_v20 = vsub.f32 %v13080_v19, %v34136_v24  ;;  %v13194_v19 = vsub.f32 %v34123_v49, %v36689_v14  ;;  %v13185_v48 = vand.u32 4294901760, %v13184_v15 }
0x18ab   : > { %v36691_v7 = vand.u32 4294901760, %v34134_v34  ;;  %v34159_v42 = vand.u32 4294901760, %v13086_v45  ;;  %v13287_v14 = vsub.f32 %v34126_v56, %v36693_v51  ;;  %v36701_v46 = vand.u32 4294901760, %v34164_v47 }
0x18ac   : > { %v13951_v50 = vpop.permute.xlu0 %13950 }
0x18ad   : > { %v34186_v55 = vsel %vm1996_vm1, %v13951_v50, 0  ;;  %v13195_v50 = vand.u32 4294901760, %v13194_v19  ;;  %v13288_v16 = vand.u32 4294901760, %v13287_v14 }
0x18b0   : > { %v13955_v63 = vpop.permute.xlu0 %13954 }
0x18c9   : > { %v13020_v38 = vpop.xlane.xlu1 %13019 }
0x18ca   : > { %30022 = vrcp.f32 %v13020_v38 }
0x18cd   : > { %v13055_v26 = vpop.permute.xlu1 %13054 }
0x18ce   : > { %v13110_v30 = vand.u32 4294901760, %v13055_v26 }
0x18d0   : > { %v34151_v1 = vpack.c.bf16 %v13110_v30, %v13107_v18  ;;  %v34153_v2 = vsub.f32 %v13055_v26, %v13110_v30  ;;  %v13175_v30 = vand.u32 4294901760, %v13174_v17 }
0x18d1   : > { %v13945_v37 = vpop.permute.xlu1 %13944 }
0x18d2   : > { %v34168_v18 = vsel %vm1996_vm1, %v13945_v37, 0  ;;  %28114 = vmatprep.subr.bf16.mxu0 %v34151_v1  ;;  %v13204_v37 = vsub.f32 %v34134_v34, %v36691_v7  ;;  %v34195_v7 = vsub.f32 %v13086_v45, %v34159_v42  ;;  %v36904_v51 = vand.u32 4294901760, %v34153_v2 }
0x18d3   : > { %v36695_v26 = vand.u32 4294901760, %v34168_v18  ;;  %28116 = vmatpush3.bf16.msra.mxu0 %v34151_v1 }
0x18d4   : > { %v30023_v12 = vpop.eup %30022  ;;  %28118 = vmatprep.subr.bf16.mxu0 %v34022_v57  ;;  %v13294_v21 = vsub.f32 %v34153_v2, %v36904_v51  ;;  %v36906_v51 = vand.u32 4294901760, %v34157_v20 }
0x18d5   : > { %v34191_v17 = vsub.f32 %v34168_v18, %v36695_v26  ;;  %v13949_v15 = vpop.permute.xlu1 %13948  ;;  %v13037_v38 = vmul.f32 %v30023_v12, %v34045_v32  ;;  %v36905_v26 = vand.u32 4294901760, %v34143_v28 }
0x18d6   : > { %v34199_v23 = vsel %vm1996_vm1, %v13949_v15, 0  ;;  %25598 = vmatmul.mubr.f32.vlgmr.msra.gmra.mrb[56].mxu0 %v13175_v30  ;;  %v34215_v30 = vsel %vm1996_vm1, %v13955_v63, 0 }
0x18d7   : > { %v34207_v58 = vsub.f32 %v34143_v28, %v36905_v26  ;;  %v36702_v32 = vand.u32 4294901760, %v34191_v17  ;;  %v36699_v12 = vand.u32 4294901760, %v34199_v23  ;;  %25600 = vmatprep.mubr.f32.mxu0 %v13185_v48  ;;  %28120 = vmatpush3.bf16.msra.mxu0 %v34022_v57  ;;  %v13083_v45 = vsel %vm2867_vm2, %v13037_v38, 0 }
0x18d8   : > { %28122 = vmatprep.subr.bf16.mxu0 %v34059_v60  ;;  %v13214_v26 = vsub.f32 %v34157_v20, %v36906_v51  ;;  %v34221_v15 = vand.u32 4294901760, %v13083_v45  ;;  %v13205_v38 = vand.u32 4294901760, %v13204_v37  ;;  %v13295_v51 = vand.u32 4294901760, %v13294_v21 }
0x18d9   : > { %v34226_v48 = vsub.f32 %v34199_v23, %v36699_v12  ;;  %v13953_v57 = vpop.permute.xlu1 %13952  ;;  %v34233_v63 = vpack.c.bf16 %v36702_v32, %v36701_v46  ;;  %v36708_v46 = vand.u32 4294901760, %v34207_v58  ;;  %v36909_v40 = vand.u32 4294901760, %v34215_v30 }
0x18da   : > { %v34236_v9 = vsel %vm1996_vm1, %v13953_v57, 0  ;;  %25601 = vmatmul.mubr.f32.gmra.mrb[58].mxu0 %v13195_v50  ;;  %v34239_v3 = vsub.f32 %v13083_v45, %v34221_v15  ;;  %v36907_v57 = vand.u32 4294901760, %v34186_v55  ;;  %v13215_v21 = vand.u32 4294901760, %v13214_v26 }
0x18db   : > { %v36709_v37 = vand.u32 4294901760, %v34226_v48  ;;  %v36703_v19 = vand.u32 4294901760, %v34236_v9  ;;  %25603 = vmatprep.mubr.f32.mxu0 %v13205_v38  ;;  %28124 = vmatpush3.bf16.msra.mxu0 %v34059_v60  ;;  %v36908_v60 = vand.u32 4294901760, %v34195_v7  ;;  %v34276_v25 = vsub.f32 %v34215_v30, %v36909_v40 }
0x18dc   : > { %v34249_v50 = vsub.f32 %v34186_v55, %v36907_v57  ;;  %28126 = vmatprep.subr.bf16.mxu0 %v34065_v62  ;;  %v13223_v45 = vand.u32 4294901760, %v34239_v3  ;;  %v28129_v57 = vpack.c.bf16 %v13295_v51, %v13288_v16 }
0x18dd   : > { %v34256_v32 = vsub.f32 %v34236_v9, %v36703_v19  ;;  %v13957_v38 = vpop.permute.xlu1 %13956  ;;  %v13234_v14 = vsub.f32 %v34195_v7, %v36908_v60  ;;  %v34271_v19 = vpack.c.bf16 %v36709_v37, %v36708_v46  ;;  %v14188_v37 = vand.u32 4294901760, %v34276_v25 }
0x18de   : > { %v34262_v12 = vsel %vm1996_vm1, %v13957_v38, 0  ;;  %25604 = vmatmul.mubr.f32.gmra.mrb[60].mxu0 %v13215_v21  ;;  %v13224_v26 = vsub.f32 %v34239_v3, %v13223_v45  ;;  %v14174_v16 = vand.u32 4294901760, %v34249_v50 }
0x18df   : > { %v14181_v38 = vand.u32 4294901760, %v34256_v32  ;;  %v14012_v21 = vand.u32 4294901760, %v34262_v12  ;;  %28128 = vmatpush3.bf16.msra.mxu0 %v34065_v62  ;;  %v13235_v46 = vand.u32 4294901760, %v13234_v14 }
0x18e0   : > { %28130 = vmatprep.subr.bf16.mxu0 %v28129_v57  ;;  %v13225_v51 = vand.u32 4294901760, %v13224_v26 }
0x18e1   : > { %v34285_v60 = vsub.f32 %v34262_v12, %v14012_v21  ;;  %v34291_v40 = vpack.c.bf16 %v14181_v38, %v14174_v16 }
0x18e2   : > { %25606 = vmatprep.mubr.f32.mxu0 %v13225_v51  ;;  %v36925_v51 = vand.u32 4294901760, %v34215_v30  ;;  %v36927_v30 = vand.u32 4294901760, %v34164_v47 }
0x18e3   : > { %v14195_v62 = vand.u32 4294901760, %v34285_v60  ;;  %25607 = vmatmul.mubr.f32.gmra.mrb[62].mxu0 %v13235_v46  ;;  %v28145_v46 = vpack.c.bf16 %v34153_v2, %v34126_v56 }
0x18e4   : > { %28132 = vmatpush3.bf16.msra.mxu0 %v28129_v57  ;;  %25625 = vmatprep.mubr.f32.mxu0 %v34089_v41  ;;  %v36913_v57 = vand.u32 4294901760, %v34123_v49  ;;  %v14147_v12 = vsub.f32 %v34164_v47, %v36927_v30 }
0x18e5   : > { %28134 = vmatprep.subr.bf16.mxu0 %v34011_v27  ;;  %v34301_v14 = vpack.c.bf16 %v14195_v62, %v14188_v37 }
0x18e7   : > { %25626 = vmatmul.mubr.f32.vlgmr.msra.gmra.mrb[56].mxu0 %v34104_v11 }
0x18e8   : > { %28136 = vmatpush3.bf16.msra.mxu0 %v34011_v27  ;;  %25628 = vmatprep.mubr.f32.mxu0 %v34106_v29  ;;  %v36910_v27 = vand.u32 4294901760, %v34092_v59 }
0x18e9   : > { %28138 = vmatprep.subr.bf16.mxu0 %v34040_v53 }
0x18eb   : > { %25629 = vmatmul.mubr.f32.gmra.mrb[58].mxu0 %v34111_v44 }
0x18ec   : > { %28140 = vmatpush3.bf16.msra.mxu0 %v34040_v53  ;;  %25631 = vmatprep.mubr.f32.mxu0 %v34119_v13  ;;  %v36911_v53 = vand.u32 4294901760, %v34114_v8 }
0x18ed   : > { %28142 = vmatprep.subr.bf16.mxu0 %v34054_v52 }
0x18ef   : > { %25632 = vmatmul.mubr.f32.gmra.mrb[60].mxu0 %v34136_v24 }
0x18f0   : > { %28144 = vmatpush3.bf16.msra.mxu0 %v34054_v52  ;;  %25634 = vmatprep.mubr.f32.mxu0 %v34221_v15  ;;  %v36912_v52 = vand.u32 4294901760, %v34117_v33 }
0x18f1   : > { %28146 = vmatprep.subr.bf16.mxu0 %v28145_v46 }
0x18f3   : > { %25635 = vmatmul.mubr.f32.gmra.mrb[62].mxu0 %v34159_v42 }
0x18f4   : > { %28148 = vmatpush3.bf16.msra.mxu0 %v28145_v46  ;;  %25653 = vmatprep.mubr.f32.mxu0 %v34092_v59  ;;  %v36914_v59 = vand.u32 4294901760, %v34134_v34  ;;  %v34428_v46 = vpack.c.bf16 %v14012_v21, %v36925_v51 }
0x18f5   : > { %28150 = vmatprep.subr.bf16.mxu0 %v34002_v39 }
0x18f7   : > { %25654 = vmatmul.mubr.f32.vlgmr.msra.gmra.mrb[56].mxu0 %v34114_v8  ;;  %v36915_v8 = vand.u32 4294901760, %v34157_v20 }
0x18f8   : > { %28152 = vmatpush3.bf16.msra.mxu0 %v34002_v39  ;;  %25656 = vmatprep.mubr.f32.mxu0 %v34117_v33  ;;  %v36917_v33 = vand.u32 4294901760, %v34153_v2  ;;  %v36922_v2 = vand.u32 4294901760, %v34199_v23  ;;  %v36923_v23 = vand.u32 4294901760, %v34186_v55 }
0x18f9   : > { %28154 = vmatprep.subr.bf16.mxu0 %v34037_v22 }
0x18fb   : > { %25657 = vmatmul.mubr.f32.gmra.mrb[58].mxu0 %v34123_v49  ;;  %v36919_v49 = vand.u32 4294901760, %v34129_v0 }
0x18fc   : > { %28156 = vmatpush3.bf16.msra.mxu0 %v34037_v22  ;;  %25659 = vmatprep.mubr.f32.mxu0 %v34134_v34  ;;  %v36921_v34 = vand.u32 4294901760, %v34143_v28 }
0x18fd   : > { %28158 = vmatprep.subr.bf16.mxu0 %v34047_v61 }
0x18ff   : > { %25660 = vmatmul.mubr.f32.gmra.mrb[60].mxu0 %v34157_v20 }
0x1900   : > { %28160 = vmatpush3.bf16.msra.mxu0 %v34047_v61  ;;  %25662 = vmatprep.mubr.f32.mxu0 %v34239_v3  ;;  %v13927_v3 = vpop.permute.xlu0 %13926 }
0x1901   : > { %28162 = vmatprep.subr.bf16.mxu0 %v34151_v1 }
0x1903   : > { %25663 = vmatmul.mubr.f32.gmra.mrb[62].mxu0 %v34195_v7 }
0x1904   : > { %28164 = vmatpush3.bf16.msra.mxu0 %v34151_v1  ;;  %25681 = vmatprep.mubr.f32.mxu0 %v36910_v27  ;;  %v36926_v27 = vand.u32 4294901760, %v34191_v17 }
0x1905   : > { %28166 = vmatprep.subr.bf16.mxu0 %v34016_v10 }
0x1907   : > { %25682 = vmatmul.mubr.f32.vlgmr.msra.gmra.mrb[56].mxu0 %v36911_v53  ;;  %v14154_v53 = vsub.f32 %v34191_v17, %v36926_v27 }
0x1908   : > { %28168 = vmatpush3.bf16.msra.mxu0 %v34016_v10  ;;  %25684 = vmatprep.mubr.f32.mxu0 %v36912_v52  ;;  %v36916_v10 = vand.u32 4294901760, %v34126_v56 }
0x1909   : > { %28170 = vmatprep.subr.bf16.mxu0 %v34049_v31 }
0x190a   : > { %v28177_v26 = vpack.c.bf16 %v36917_v33, %v36916_v10 }
0x190b   : > { %25685 = vmatmul.mubr.f32.gmra.mrb[58].mxu0 %v36913_v57 }
0x190c   : > { %28172 = vmatpush3.bf16.msra.mxu0 %v34049_v31  ;;  %25687 = vmatprep.mubr.f32.mxu0 %v36914_v59  ;;  %v36918_v31 = vand.u32 4294901760, %v34195_v7 }
0x190d   : > { %28174 = vmatprep.subr.bf16.mxu0 %v34061_v4 }
0x190f   : > { %25688 = vmatmul.mubr.f32.gmra.mrb[60].mxu0 %v36915_v8 }
0x1910   : > { %28176 = vmatpush3.bf16.msra.mxu0 %v34061_v4  ;;  %25690 = vmatprep.mubr.f32.mxu0 %v13223_v45  ;;  %v13958_v4 = vsel %vm1996_vm1, %v13927_v3, 0 }
0x1911   : > { %28178 = vmatprep.subr.bf16.mxu0 %v28177_v26 }
0x1913   : > { %25691 = vmatmul.mubr.f32.gmra.mrb[62].mxu0 %v36918_v31  ;;  %v14155_v31 = vand.u32 4294901760, %v14154_v53 }
0x1914   : > { %28180 = vmatpush3.bf16.msra.mxu0 %v28177_v26  ;;  %25709 = vmatprep.mubr.f32.mxu0 %v34089_v41 }
0x1915   : > { %28182 = vmatprep.subr.bf16.mxu0 %v34002_v39 }
0x1917   : > { %25710 = vmatmul.mubr.f32.vlgmr.msra.gmra.mrb[56].mxu0 %v34104_v11 }
0x1918   : > { %28184 = vmatpush3.bf16.msra.mxu0 %v34002_v39  ;;  %25712 = vmatprep.mubr.f32.mxu0 %v34106_v29  ;;  %v34374_v39 = vand.u32 4294901760, %v13958_v4 }
0x1919   : > { %28186 = vmatprep.subr.bf16.mxu0 %v34037_v22 }
0x191b   : > { %25713 = vmatmul.mubr.f32.gmra.mrb[58].mxu0 %v34111_v44 }
0x191c   : > { %28188 = vmatpush3.bf16.msra.mxu0 %v34037_v22  ;;  %25715 = vmatprep.mubr.f32.mxu0 %v34119_v13  ;;  %v36920_v22 = vand.u32 4294901760, %v34168_v18 }
0x191d   : > { %28190 = vmatprep.subr.bf16.mxu0 %v34047_v61 }
0x191e   : > { %v34380_v56 = vpack.c.bf16 %v36920_v22, %v36919_v49  ;;  %v14148_v22 = vand.u32 4294901760, %v14147_v12 }
0x191f   : > { %25716 = vmatmul.mubr.f32.gmra.mrb[60].mxu0 %v34136_v24 }
0x1920   : > { %28192 = vmatpush3.bf16.msra.mxu0 %v34047_v61  ;;  %25718 = vmatprep.mubr.f32.mxu0 %v34221_v15  ;;  %v34387_v61 = vsub.f32 %v13958_v4, %v34374_v39 }
0x1921   : > { %28194 = vmatprep.subr.bf16.mxu0 %v34151_v1 }
0x1922   : > { %v14065_v0 = vand.u32 4294901760, %v34387_v61 }
0x1923   : > { %25719 = vmatmul.mubr.f32.gmra.mrb[62].mxu0 %v34159_v42 }
0x1924   : > { %28196 = vmatpush3.bf16.msra.mxu0 %v34151_v1  ;;  %25737 = vmatprep.mubr.f32.mxu0 %v34089_v41  ;;  %v34397_v1 = vpack.c.bf16 %v36922_v2, %v36921_v34  ;;  %v13929_v41 = vpop.permute.xlu1 %13928 }
0x1925   : > { %28198 = vmatprep.subr.bf16.mxu0 %v34380_v56 }
0x1927   : > { %25738 = vmatmul.mubr.f32.vlgmr.msra.gmra.mrb[56].mxu0 %v34104_v11  ;;  %v14066_v11 = vsub.f32 %v34387_v61, %v14065_v0 }
0x1928   : > { %25740 = vmatprep.mubr.f32.mxu0 %v34106_v29  ;;  %v13931_v29 = vpop.permute.xlu0 %13930  ;;  %v13933_v7 = vpop.permute.xlu1 %13932 }
0x1929   : > { %v13962_v18 = vsel %vm1996_vm1, %v13931_v29, 0  ;;  %v28213_v29 = vpack.c.bf16 %v14155_v31, %v14148_v22 }
0x192a   : > { %v34420_v45 = vand.u32 4294901760, %v13962_v18 }
0x192b   : > { %25741 = vmatmul.mubr.f32.gmra.mrb[58].mxu0 %v34111_v44  ;;  %v14067_v44 = vand.u32 4294901760, %v14066_v11 }
0x192c   : > { %25743 = vmatprep.mubr.f32.mxu0 %v34119_v13  ;;  %v36924_v13 = vand.u32 4294901760, %v34236_v9  ;;  %v13935_v20 = vpop.permute.xlu0 %13934  ;;  %v13964_v9 = vsel %vm1996_vm1, %v13933_v7, 0  ;;  %v34444_v21 = vsub.f32 %v13962_v18, %v34420_v45 }
0x192d   : > { %28200 = vmatpush3.bf16.xpose.msra.mxu0 %v34380_v56  ;;  %v13966_v55 = vsel %vm1996_vm1, %v13935_v20, 0  ;;  %v34437_v59 = vand.u32 4294901760, %v13964_v9 }
0x192e   : > { %28202 = vmatprep.subr.bf16.mxu0 %v34397_v1  ;;  %v34412_v28 = vpack.c.bf16 %v36924_v13, %v36923_v23  ;;  %v34446_v8 = vand.u32 4294901760, %v13966_v55  ;;  %v14085_v11 = vand.u32 4294901760, %v34444_v21  ;;  %v36929_v13 = vand.u32 4294901760, %v34207_v58 }
0x192f   : > { %25744 = vmatmul.mubr.f32.gmra.mrb[60].mxu0 %v34136_v24  ;;  %v13960_v24 = vsel %vm1996_vm1, %v13929_v41, 0  ;;  %v34452_v4 = vsub.f32 %v13964_v9, %v34437_v59 }
0x1930   : > { %25746 = vmatprep.mubr.f32.mxu0 %v34221_v15  ;;  %v34418_v15 = vand.u32 4294901760, %v13960_v24  ;;  %v13939_v52 = vpop.permute.xlu0 %13938  ;;  %v34457_v34 = vsub.f32 %v13966_v55, %v34446_v8  ;;  %v14161_v7 = vsub.f32 %v34207_v58, %v36929_v13  ;;  %v14086_v55 = vsub.f32 %v34444_v21, %v14085_v11 }
0x1931   : > { %v13970_v33 = vsel %vm1996_vm1, %v13939_v52, 0  ;;  %v14175_v13 = vsub.f32 %v34249_v50, %v14174_v16  ;;  %v14196_v16 = vsub.f32 %v34285_v60, %v14195_v62  ;;  %v28233_v62 = vpack.c.bf16 %v34226_v48, %v34207_v58 }
0x1932   : > { %v34435_v57 = vsub.f32 %v13960_v24, %v34418_v15  ;;  %v34459_v2 = vand.u32 4294901760, %v13970_v33  ;;  %v14105_v51 = vand.u32 4294901760, %v34457_v34  ;;  %v14162_v53 = vand.u32 4294901760, %v14161_v7 }
0x1933   : > { %25747 = vmatmul.mubr.f32.gmra.mrb[62].mxu0 %v34159_v42  ;;  %v13937_v42 = vpop.permute.xlu1 %13936  ;;  %v28241_v58 = vpack.c.bf16 %v34285_v60, %v34276_v25 }
0x1934   : > { %25765 = vmatprep.mubr.f32.mxu0 %v14067_v44  ;;  %v13968_v10 = vsel %vm1996_vm1, %v13937_v42, 0  ;;  %v14075_v3 = vand.u32 4294901760, %v34435_v57  ;;  %v36928_v44 = vand.u32 4294901760, %v34226_v48  ;;  %v14095_v42 = vand.u32 4294901760, %v34452_v4 }
0x1935   : > { %28204 = vmatpush3.bf16.xpose.msra.mxu0 %v34397_v1  ;;  %v34454_v49 = vand.u32 4294901760, %v13968_v10  ;;  %v34480_v9 = vsub.f32 %v13970_v33, %v34459_v2  ;;  %v14087_v33 = vand.u32 4294901760, %v14086_v55 }
0x1936   : > { %28206 = vmatprep.subr.bf16.mxu0 %v34412_v28  ;;  %v14168_v23 = vsub.f32 %v34226_v48, %v36928_v44  ;;  %v14076_v20 = vsub.f32 %v34435_v57, %v14075_v3  ;;  %v14096_v12 = vsub.f32 %v34452_v4, %v14095_v42 }
0x1937   : > { %v13941_v26 = vpop.permute.xlu1 %13940  ;;  %v34474_v24 = vsub.f32 %v13968_v10, %v34454_v49  ;;  %v14125_v31 = vand.u32 4294901760, %v34480_v9 }
0x1938   : > { %v13972_v41 = vsel %vm1996_vm1, %v13941_v26, 0  ;;  %v14169_v27 = vand.u32 4294901760, %v14168_v23  ;;  %v14077_v52 = vand.u32 4294901760, %v14076_v20  ;;  %v14106_v26 = vsub.f32 %v34457_v34, %v14105_v51 }
0x1939   : > { %v34476_v18 = vand.u32 4294901760, %v13972_v41  ;;  %v14115_v10 = vand.u32 4294901760, %v34474_v24  ;;  %v14097_v44 = vand.u32 4294901760, %v14096_v12  ;;  %v14126_v55 = vsub.f32 %v34480_v9, %v14125_v31 }
0x193a   : > { %v28217_v22 = vpack.c.bf16 %v14169_v27, %v14162_v53  ;;  %v14107_v20 = vand.u32 4294901760, %v14106_v26  ;;  %v14176_v27 = vand.u32 4294901760, %v14175_v13  ;;  %v14189_v26 = vsub.f32 %v34276_v25, %v14188_v37 }
0x193b   : > { %v34487_v30 = vsub.f32 %v13972_v41, %v34476_v18  ;;  %v14182_v41 = vsub.f32 %v34256_v32, %v14181_v38  ;;  %v14116_v23 = vsub.f32 %v34474_v24, %v14115_v10  ;;  %v28229_v13 = vpack.c.bf16 %v34191_v17, %v34164_v47 }
0x193c   : > { %v28237_v47 = vpack.c.bf16 %v34256_v32, %v34249_v50 }
0x193d   : > { %28208 = vmatpush3.bf16.xpose.msra.mxu0 %v34412_v28  ;;  %v14135_v7 = vand.u32 4294901760, %v34487_v30  ;;  %v14183_v38 = vand.u32 4294901760, %v14182_v41  ;;  %v14197_v41 = vand.u32 4294901760, %v14196_v16 }
0x193e   : > { %28210 = vmatprep.subr.bf16.mxu0 %v34428_v46 }
0x193f   : > { %v14136_v53 = vsub.f32 %v34487_v30, %v14135_v7  ;;  %v28221_v12 = vpack.c.bf16 %v14183_v38, %v14176_v27 }
0x1945   : > { %28212 = vmatpush3.bf16.xpose.msra.mxu0 %v34428_v46 }
0x1946   : > { %28214 = vmatprep.subr.bf16.mxu0 %v28213_v29 }
0x194c   : > { %25766 = vmatmul.mubr.f32.vlgmr.msra.gmra.mrb[64].mxu0 %v14077_v52  ;;  %v14127_v52 = vand.u32 4294901760, %v14126_v55 }
0x194d   : > { %25768 = vmatprep.mubr.f32.mxu0 %v14087_v33  ;;  %28216 = vmatpush3.bf16.xpose.msra.mxu0 %v28213_v29  ;;  %v14117_v29 = vand.u32 4294901760, %v14116_v23  ;;  %v14137_v33 = vand.u32 4294901760, %v14136_v53 }
0x194e   : > { %28218 = vmatprep.subr.bf16.mxu0 %v28217_v22 }
0x1950   : > { %25769 = vmatmul.mubr.f32.gmra.mrb[66].mxu0 %v14097_v44  ;;  %v14190_v44 = vand.u32 4294901760, %v14189_v26 }
0x1951   : > { %25771 = vmatprep.mubr.f32.mxu0 %v14107_v20 }
0x1952   : > { %v28225_v23 = vpack.c.bf16 %v14197_v41, %v14190_v44 }
0x1954   : > { %25772 = vmatmul.mubr.f32.gmra.mrb[68].mxu0 %v14117_v29 }
0x1955   : > { %25774 = vmatprep.mubr.f32.mxu0 %v14127_v52  ;;  %28220 = vmatpush3.bf16.xpose.msra.mxu0 %v28217_v22 }
0x1956   : > { %28222 = vmatprep.subr.bf16.mxu0 %v28221_v12 }
0x1958   : > { %25775 = vmatmul.mubr.f32.gmra.mrb[70].mxu0 %v14137_v33 }
0x1959   : > { %25793 = vmatprep.mubr.f32.mxu0 %v34374_v39 }
0x195d   : > { %28224 = vmatpush3.bf16.xpose.msra.mxu0 %v28221_v12 }
0x195e   : > { %28226 = vmatprep.subr.bf16.mxu0 %v28225_v23 }
0x1965   : > { %28228 = vmatpush3.bf16.xpose.msra.mxu0 %v28225_v23 }
0x1966   : > { %28230 = vmatprep.subr.bf16.mxu0 %v28229_v13 }
0x196c   : > { %25794 = vmatmul.mubr.f32.vlgmr.msra.gmra.mrb[64].mxu0 %v34418_v15 }
0x196d   : > { %25796 = vmatprep.mubr.f32.mxu0 %v34420_v45  ;;  %28232 = vmatpush3.bf16.xpose.msra.mxu0 %v28229_v13 }
0x196e   : > { %28234 = vmatprep.subr.bf16.mxu0 %v28233_v62 }
0x1970   : > { %25797 = vmatmul.mubr.f32.gmra.mrb[66].mxu0 %v34437_v59 }
0x1971   : > { %25799 = vmatprep.mubr.f32.mxu0 %v34446_v8 }
0x1974   : > { %25800 = vmatmul.mubr.f32.gmra.mrb[68].mxu0 %v34454_v49 }
0x1975   : > { %25802 = vmatprep.mubr.f32.mxu0 %v34459_v2  ;;  %28236 = vmatpush3.bf16.xpose.msra.mxu0 %v28233_v62 }
0x1976   : > { %28238 = vmatprep.subr.bf16.mxu0 %v28237_v47 }
0x1978   : > { %25803 = vmatmul.mubr.f32.gmra.mrb[70].mxu0 %v34476_v18 }
0x1979   : > { %25821 = vmatprep.mubr.f32.mxu0 %v34387_v61 }
0x197d   : > { %28240 = vmatpush3.bf16.xpose.msra.mxu0 %v28237_v47 }
0x197e   : > { %28242 = vmatprep.subr.bf16.mxu0 %v28241_v58 }
0x1985   : > { %28244 = vmatpush3.bf16.xpose.msra.mxu0 %v28241_v58 }
0x1986   : > { %28246 = vmatprep.subr.bf16.mxu0 %v34380_v56 }
0x198c   : > { %25822 = vmatmul.mubr.f32.vlgmr.msra.gmra.mrb[64].mxu0 %v34435_v57 }
0x198d   : > { %25824 = vmatprep.mubr.f32.mxu0 %v34444_v21  ;;  %28248 = vmatpush3.bf16.xpose.msra.mxu0 %v34380_v56 }
0x198e   : > { %28250 = vmatprep.subr.bf16.mxu0 %v34397_v1 }
0x1990   : > { %25825 = vmatmul.mubr.f32.gmra.mrb[66].mxu0 %v34452_v4 }
0x1991   : > { %25827 = vmatprep.mubr.f32.mxu0 %v34457_v34 }
0x1994   : > { %25828 = vmatmul.mubr.f32.gmra.mrb[68].mxu0 %v34474_v24 }
0x1995   : > { %25830 = vmatprep.mubr.f32.mxu0 %v34480_v9  ;;  %28252 = vmatpush3.bf16.xpose.msra.mxu0 %v34397_v1 }
0x1996   : > { %28254 = vmatprep.subr.bf16.mxu0 %v34412_v28 }
0x1998   : > { %25831 = vmatmul.mubr.f32.gmra.mrb[70].mxu0 %v34487_v30 }
0x1999   : > { %25849 = vmatprep.mubr.f32.mxu0 %v14065_v0 }
0x199d   : > { %28256 = vmatpush3.bf16.xpose.msra.mxu0 %v34412_v28 }
0x199e   : > { %28258 = vmatprep.subr.bf16.mxu0 %v34428_v46 }
0x19a5   : > { %28260 = vmatpush3.bf16.xpose.msra.mxu0 %v34428_v46 }
0x19a6   : > { %28262 = vmatprep.subr.bf16.mxu0 %v34233_v63 }
0x19ac   : > { %25850 = vmatmul.mubr.f32.vlgmr.msra.gmra.mrb[64].mxu0 %v14075_v3 }
0x19ad   : > { %25852 = vmatprep.mubr.f32.mxu0 %v14085_v11  ;;  %28264 = vmatpush3.bf16.xpose.msra.mxu0 %v34233_v63 }
0x19ae   : > { %28266 = vmatprep.subr.bf16.mxu0 %v34271_v19 }
0x19b0   : > { %25853 = vmatmul.mubr.f32.gmra.mrb[66].mxu0 %v14095_v42 }
0x19b1   : > { %25855 = vmatprep.mubr.f32.mxu0 %v14105_v51 }
0x19b4   : > { %25856 = vmatmul.mubr.f32.gmra.mrb[68].mxu0 %v14115_v10 }
0x19b5   : > { %25858 = vmatprep.mubr.f32.mxu0 %v14125_v31  ;;  %28268 = vmatpush3.bf16.xpose.msra.mxu0 %v34271_v19 }
0x19b6   : > { %28270 = vmatprep.subr.bf16.mxu0 %v34291_v40 }
0x19b8   : > { %25859 = vmatmul.mubr.f32.gmra.mrb[70].mxu0 %v14135_v7 }
0x19b9   : > { %25877 = vmatprep.mubr.f32.mxu0 %v34374_v39 }
0x19bd   : > { %28272 = vmatpush3.bf16.xpose.msra.mxu0 %v34291_v40 }
0x19be   : > { %28274 = vmatprep.subr.bf16.mxu0 %v34301_v14 }
0x19c5   : > { %28276 = vmatpush3.bf16.xpose.msra.mxu0 %v34301_v14 }
0x19c6   : > { %28278 = vmatprep.subr.bf16.mxu0 %v34380_v56 }
0x19cc   : > { %25878 = vmatmul.mubr.f32.vlgmr.msra.gmra.mrb[64].mxu0 %v34418_v15 }
0x19cd   : > { %25880 = vmatprep.mubr.f32.mxu0 %v34420_v45  ;;  %28280 = vmatpush3.bf16.xpose.msra.mxu0 %v34380_v56 }
0x19ce   : > { %28282 = vmatprep.subr.bf16.mxu0 %v34397_v1 }
0x19d0   : > { %25881 = vmatmul.mubr.f32.gmra.mrb[66].mxu0 %v34437_v59 }
0x19d1   : > { %25883 = vmatprep.mubr.f32.mxu0 %v34446_v8 }
0x19d4   : > { %25884 = vmatmul.mubr.f32.gmra.mrb[68].mxu0 %v34454_v49 }
0x19d5   : > { %25886 = vmatprep.mubr.f32.mxu0 %v34459_v2  ;;  %28284 = vmatpush3.bf16.xpose.msra.mxu0 %v34397_v1 }
0x19d6   : > { %28286 = vmatprep.subr.bf16.mxu0 %v34412_v28 }
0x19d8   : > { %25887 = vmatmul.mubr.f32.gmra.mrb[70].mxu0 %v34476_v18 }
0x19d9   : > { %25905 = vmatprep.mubr.f32.mxu0 %v34374_v39 }
0x19dd   : > { %28288 = vmatpush3.bf16.xpose.msra.mxu0 %v34412_v28 }
0x19de   : > { %28290 = vmatprep.subr.bf16.mxu0 %v34428_v46 }
0x19e5   : > { %28292 = vmatpush3.bf16.xpose.msra.mxu0 %v34428_v46 }
0x19ec   : > { %25906 = vmatmul.mubr.f32.vlgmr.msra.gmra.mrb[64].mxu0 %v34418_v15 }
0x19ed   : > { %25908 = vmatprep.mubr.f32.mxu0 %v34420_v45 }
0x19f0   : > { %25909 = vmatmul.mubr.f32.gmra.mrb[66].mxu0 %v34437_v59 }
0x19f1   : > { %25911 = vmatprep.mubr.f32.mxu0 %v34446_v8 }
0x19f4   : > { %25912 = vmatmul.mubr.f32.gmra.mrb[68].mxu0 %v34454_v49 }
0x19f5   : > { %25914 = vmatprep.mubr.f32.mxu0 %v34459_v2 }
0x19f8   : > { %25915 = vmatmul.mubr.f32.gmra.mrb[70].mxu0 %v34476_v18 }
0x19fa   : > { %v34599_v25 = vpop.f32.mrb[56].mxu0 }
0x19fb   : > { %36930 = vst [vmem:[#allocation15_spill] sm:$0xff] %v34599_v25  ;;  %v34601_v17 = vpop.f32.mrb[57].mxu0 }
0x19fc   : > { %36931 = vst [vmem:[#allocation16_spill] sm:$0xff] %v34601_v17 }
0x19fe   : > { %v34603_v32 = vpop.f32.mrb[58].mxu0 }
0x19ff   : > { %36932 = vst [vmem:[#allocation17_spill] sm:$0xff] %v34603_v32  ;;  %v34605_v19 = vpop.f32.mrb[59].mxu0 }
0x1a00   : > { %36933 = vst [vmem:[#allocation18_spill] sm:$0xff] %v34605_v19 }
0x1a02   : > { %v34607_v48 = vpop.f32.mrb[60].mxu0 }
0x1a03   : > { %36934 = vst [vmem:[#allocation20_spill] sm:$0xff] %v34607_v48  ;;  %v34609_v63 = vpop.f32.mrb[61].mxu0 }
0x1a04   : > { %36935 = vst [vmem:[#allocation19_spill] sm:$0xff] %v34609_v63 }
0x1a06   : > { %v34611_v37 = vpop.f32.mrb[62].mxu0 }
0x1a07   : > { %36936 = vst [vmem:[#allocation22_spill] sm:$0xff] %v34611_v37  ;;  %v34613_v50 = vpop.f32.mrb[63].mxu0 }
0x1a08   : > { %36937 = vst [vmem:[#allocation21_spill] sm:$0xff] %v34613_v50 }
0x1abf   : > { %v25907_v60 = vpop.f32.mrb[64].mxu0 }
0x1ac0   : > { %v14782_v40 = vpop.f32.mrb[65].mxu0  ;;  %v14831_v14 = vsel %vm2867_vm2, %v25907_v60, -inf }
0x1ac1   : > { %14832 = vmax.xlane.f32.xlu1 %v14831_v14  ;;  %v14828_v39 = vsel %vm2867_vm2, %v14782_v40, -inf }
0x1ac2   : > { %14829 = vmax.xlane.f32.xlu0 %v14828_v39 }
0x1ac3   : > { %v25910_v56 = vpop.f32.mrb[66].mxu0 }
0x1ac4   : > { %v14794_v61 = vpop.f32.mrb[67].mxu0  ;;  %v14837_v15 = vsel %vm2867_vm2, %v25910_v56, -inf }
0x1ac5   : > { %v14834_v0 = vsel %vm2867_vm2, %v14794_v61, -inf }
0x1ac6   : > { %14835 = vmax.xlane.f32.xlu0 %v14834_v0 }
0x1ac7   : > { %v25913_v1 = vpop.f32.mrb[68].mxu0 }
0x1ac8   : > { %v14806_v28 = vpop.f32.mrb[69].mxu0  ;;  %v14843_v59 = vsel %vm2867_vm2, %v25913_v1, -inf }
0x1ac9   : > { %v14840_v45 = vsel %vm2867_vm2, %v14806_v28, -inf }
0x1aca   : > { %14838 = vmax.xlane.f32.xlu0 %v14837_v15  ;;  %14841 = vmax.xlane.f32.xlu1 %v14840_v45 }
0x1acb   : > { %v25916_v46 = vpop.f32.mrb[70].mxu0 }
0x1acc   : > { %v34620_v57 = vpop.f32.mrb[71].mxu0  ;;  %v14849_v21 = vsel %vm2867_vm2, %v25916_v46, -inf }
0x1acd   : > { %v14846_v8 = vsel %vm2867_vm2, %v34620_v57, -inf }
0x1ace   : > { %14844 = vmax.xlane.f32.xlu0 %v14843_v59 }
0x1ad2   : > { %14850 = vmax.xlane.f32.xlu0 %v14849_v21 }
0x1adb   : > { %14916 = vrot.lane.b32.xlu1 %v33691_v36, %s30167_s24 }
0x1ae8   : > { %14918 = vrot.lane.b32.xlu0 %v33689_v54, %s30167_s24 }
0x1aec   : > { %14924 = vrot.lane.b32.xlu0 %v33715_v43, %s30167_s24 }
0x1aff   : > { %14847 = vmax.xlane.f32.xlu1 %v14846_v8 }
0x1b10   : > { %14920 = vrot.lane.b32.xlu1 %v33703_v35, %s30167_s24 }
0x1b14   : > { %14922 = vrot.lane.b32.xlu1 %v33699_v6, %s30167_s24 }
0x1b18   : > { %14926 = vrot.lane.b32.xlu1 %v33712_v5, %s30167_s24 }
0x1b4e   : > { %v14833_v3 = vpop.xlane.xlu1 %14832 }
0x1b4f   : > { %v14853_v4 = vsub.f32 %v25907_v60, %v14833_v3  ;;  %v14830_v49 = vpop.xlane.xlu0 %14829 }
0x1b50   : > { %v14852_v34 = vsub.f32 %v14782_v40, %v14830_v49  ;;  %v36938_v49 = vld [vmem:[#allocation29_spill] sm:$0xff] }
0x1b51   : > { %v14862_v2 = vmul.f32 1.442695, %v14853_v4 }
0x1b52   : > { %v14860_v11 = vmul.f32 1.442695, %v14852_v34 }
0x1b53   : > { %30024 = vpow2.f32 %v14862_v2  ;;  %v14836_v24 = vpop.xlane.xlu0 %14835 }
0x1b54   : > { %30026 = vpow2.f32 %v14860_v11  ;;  %v14854_v18 = vsub.f32 %v14794_v61, %v14836_v24 }
0x1b56   : > { %v14864_v42 = vmul.f32 1.442695, %v14854_v18 }
0x1b57   : > { %v14839_v9 = vpop.xlane.xlu0 %14838  ;;  %v14842_v51 = vpop.xlane.xlu1 %14841 }
0x1b58   : > { %30028 = vpow2.f32 %v14864_v42  ;;  %v14855_v30 = vsub.f32 %v25910_v56, %v14839_v9  ;;  %v14856_v10 = vsub.f32 %v14806_v28, %v14842_v51 }
0x1b5a   : > { %v14866_v31 = vmul.f32 1.442695, %v14855_v30  ;;  %v14868_v22 = vmul.f32 1.442695, %v14856_v10 }
0x1b5b   : > { %v14845_v7 = vpop.xlane.xlu0 %14844  ;;  %v14917_v20 = vpop.permute.xlu1 %14916 }
0x1b5c   : > { %30030 = vpow2.f32 %v14866_v31  ;;  %v14857_v55 = vsub.f32 %v25913_v1, %v14845_v7  ;;  %v14965_v38 = vand.u32 4294901760, %v14917_v20 }
0x1b5d   : > { %v34638_v29 = vpop.eup %30024  ;;  %30032 = vpow2.f32 %v14868_v22 }
0x1b5e   : > { %v34640_v27 = vpop.eup %30026  ;;  %v14870_v53 = vmul.f32 1.442695, %v14857_v55  ;;  %v14879_v52 = vsel %vm2867_vm2, %v34638_v29, 0.0  ;;  %v15119_v33 = vsub.f32 %v14917_v20, %v14965_v38 }
0x1b5f   : > { %14880 = vadd.xlane.f32.xlu0 %v14879_v52  ;;  %v14851_v12 = vpop.xlane.xlu0 %14850  ;;  %v14876_v16 = vsel %vm2867_vm2, %v34640_v27, 0.0 }
0x1b60   : > { %30034 = vpow2.f32 %v14870_v53  ;;  %v14859_v26 = vsub.f32 %v25916_v46, %v14851_v12  ;;  %14877 = vadd.xlane.f32.xlu1 %v14876_v16  ;;  %v15120_v62 = vand.u32 4294901760, %v15119_v33 }
0x1b62   : > { %v34646_v41 = vpop.eup %30028  ;;  %v14874_v44 = vmul.f32 1.442695, %v14859_v26  ;;  %v15121_v0 = vsub.f32 %v15119_v33, %v15120_v62 }
0x1b63   : > { %v14919_v23 = vpop.permute.xlu0 %14918  ;;  %v14882_v13 = vsel %vm2867_vm2, %v34646_v41, 0.0 }
0x1b64   : > { %30036 = vpow2.f32 %v14874_v44  ;;  %v14968_v47 = vand.u32 4294901760, %v14919_v23  ;;  %14883 = vadd.xlane.f32.xlu1 %v14882_v13  ;;  %v15122_v59 = vand.u32 4294901760, %v15121_v0 }
0x1b66   : > { %v34650_v58 = vpop.eup %30030  ;;  %v34652_v60 = vpack.c.bf16 %v14968_v47, %v14965_v38  ;;  %v15126_v40 = vsub.f32 %v14919_v23, %v14968_v47 }
0x1b67   : > { %v34654_v14 = vpop.eup %30032  ;;  %v14885_v39 = vsel %vm2867_vm2, %v34650_v58, 0.0  ;;  %v14925_v2 = vpop.permute.xlu0 %14924 }
0x1b68   : > { %v15127_v56 = vand.u32 4294901760, %v15126_v40  ;;  %14886 = vadd.xlane.f32.xlu0 %v14885_v39  ;;  %28294 = vmatprep.subr.bf16.mxu1 %v34652_v60  ;;  %v14888_v61 = vsel %vm2867_vm2, %v34654_v14, 0.0  ;;  %v34661_v1 = vpack.c.bf16 %v15126_v40, %v15119_v33  ;;  %v14977_v18 = vand.u32 4294901760, %v14925_v2 }
0x1b69   : > { %14889 = vadd.xlane.f32.xlu1 %v14888_v61  ;;  %28296 = vmatpush3.bf16.msra.mxu1 %v34652_v60 }
0x1b6a   : > { %v34664_v28 = vpop.eup %30034  ;;  %v15128_v15 = vsub.f32 %v15126_v40, %v15127_v56  ;;  %v34666_v45 = vpack.c.bf16 %v15127_v56, %v15120_v62  ;;  %v15147_v30 = vsub.f32 %v14925_v2, %v14977_v18 }
0x1b6b   : > { %v14891_v46 = vsel %vm2867_vm2, %v34664_v28, 0.0 }
0x1b6c   : > { %14892 = vadd.xlane.f32.xlu0 %v14891_v46  ;;  %v15129_v21 = vand.u32 4294901760, %v15128_v15  ;;  %v15148_v20 = vand.u32 4294901760, %v15147_v30 }
0x1b6e   : > { %v34670_v8 = vpop.eup %30036  ;;  %v34672_v3 = vpack.c.bf16 %v15129_v21, %v15122_v59  ;;  %v15149_v62 = vsub.f32 %v15147_v30, %v15148_v20 }
0x1b6f   : > { %v14897_v4 = vsel %vm2867_vm2, %v34670_v8, 0.0 }
0x1b70   : > { %14898 = vadd.xlane.f32.xlu0 %v14897_v4  ;;  %v15150_v46 = vand.u32 4294901760, %v15149_v62  ;;  %v36939_v4 = vld [vmem:[#allocation27_spill] sm:$0xff] }
0x1b86   : > { %14928 = vrot.lane.b32.xlu0 %v36938_v49, %s30167_s24 }
0x1b8a   : > { %15818 = vrot.lane.b32.xlu0 %v33691_v36, %s30168_s25 }
0x1b8c   : > { %v14848_v34 = vpop.xlane.xlu1 %14847 }
0x1b8d   : > { %v14858_v11 = vsub.f32 %v34620_v57, %v14848_v34 }
0x1b8e   : > { %15822 = vrot.lane.b32.xlu0 %v33703_v35, %s30168_s25 }
0x1b8f   : > { %v14872_v24 = vmul.f32 1.442695, %v14858_v11 }
0x1b90   : > { %v14921_v42 = vpop.permute.xlu1 %14920 }
0x1b91   : > { %30038 = vpow2.f32 %v14872_v24  ;;  %v14971_v9 = vand.u32 4294901760, %v14921_v42 }
0x1b92   : > { %15826 = vrot.lane.b32.xlu0 %v33715_v43, %s30168_s25 }
0x1b93   : > { %v15133_v51 = vsub.f32 %v14921_v42, %v14971_v9 }
0x1b94   : > { %v14923_v10 = vpop.permute.xlu1 %14922 }
0x1b95   : > { %v15134_v31 = vand.u32 4294901760, %v15133_v51  ;;  %v14974_v22 = vand.u32 4294901760, %v14923_v10 }
0x1b96   : > { %15830 = vrot.lane.b32.xlu0 %v36938_v49, %s30168_s25 }
0x1b97   : > { %v34687_v57 = vpack.c.bf16 %v14974_v22, %v14971_v9  ;;  %v15140_v7 = vsub.f32 %v14923_v10, %v14974_v22  ;;  %v15135_v52 = vsub.f32 %v15133_v51, %v15134_v31 }
0x1b98   : > { %v14927_v55 = vpop.permute.xlu1 %14926 }
0x1b99   : > { %v15141_v38 = vand.u32 4294901760, %v15140_v7  ;;  %v14980_v53 = vand.u32 4294901760, %v14927_v55  ;;  %28298 = vmatprep.subr.bf16.mxu1 %v34687_v57  ;;  %v34690_v12 = vpack.c.bf16 %v15140_v7, %v15133_v51  ;;  %v15136_v40 = vand.u32 4294901760, %v15135_v52 }
0x1b9a   : > { %15802 = vrot.lane.b32.xlu0 %v33691_v36, %s30169_s26  ;;  %28300 = vmatpush3.bf16.msra.mxu1 %v34687_v57 }
0x1b9b   : > { %v34695_v16 = vpop.eup %30038  ;;  %v34697_v33 = vpack.c.bf16 %v14980_v53, %v14977_v18  ;;  %v15154_v26 = vsub.f32 %v14927_v55, %v14980_v53  ;;  %v15142_v44 = vsub.f32 %v15140_v7, %v15141_v38  ;;  %v34699_v23 = vpack.c.bf16 %v15141_v38, %v15134_v31 }
0x1b9c   : > { %v14894_v13 = vsel %vm2867_vm2, %v34695_v16, 0.0 }
0x1b9d   : > { %v15155_v47 = vand.u32 4294901760, %v15154_v26  ;;  %14895 = vadd.xlane.f32.xlu1 %v14894_v13  ;;  %28302 = vmatprep.subr.bf16.mxu1 %v34697_v33  ;;  %v15143_v39 = vand.u32 4294901760, %v15142_v44  ;;  %v34704_v56 = vpack.c.bf16 %v15154_v26, %v15147_v30 }
0x1b9e   : > { %15806 = vrot.lane.b32.xlu0 %v33703_v35, %s30169_s26  ;;  %28304 = vmatpush3.bf16.msra.mxu1 %v34697_v33 }
0x1b9f   : > { %v34709_v61 = vpack.c.bf16 %v15143_v39, %v15136_v40  ;;  %v15156_v0 = vsub.f32 %v15154_v26, %v15155_v47  ;;  %v34711_v15 = vpack.c.bf16 %v15155_v47, %v15148_v20 }
0x1ba1   : > { %v15157_v59 = vand.u32 4294901760, %v15156_v0 }
0x1ba2   : > { %15810 = vrot.lane.b32.xlu0 %v33715_v43, %s30169_s26 }
0x1ba3   : > { %v34715_v21 = vpack.c.bf16 %v15157_v59, %v15150_v46 }
0x1ba6   : > { %15814 = vrot.lane.b32.xlu0 %v36938_v49, %s30169_s26 }
0x1bae   : > { %14930 = vrot.lane.b32.xlu1 %v36939_v4, %s30167_s24 }
0x1bb2   : > { %15820 = vrot.lane.b32.xlu1 %v33689_v54, %s30168_s25 }
0x1bb6   : > { %15824 = vrot.lane.b32.xlu1 %v33699_v6, %s30168_s25 }
0x1bba   : > { %15828 = vrot.lane.b32.xlu1 %v33712_v5, %s30168_s25 }
0x1bbe   : > { %15832 = vrot.lane.b32.xlu1 %v36939_v4, %s30168_s25 }
0x1bc2   : > { %15804 = vrot.lane.b32.xlu1 %v33689_v54, %s30169_s26 }
0x1bc6   : > { %15808 = vrot.lane.b32.xlu1 %v33699_v6, %s30169_s26 }
0x1bca   : > { %15812 = vrot.lane.b32.xlu1 %v33712_v5, %s30169_s26 }
0x1bce   : > { %15816 = vrot.lane.b32.xlu1 %v36939_v4, %s30169_s26 }
0x1bec   : > { %v14881_v10 = vpop.xlane.xlu0 %14880 }
0x1bed   : > { %v14878_v34 = vpop.xlane.xlu1 %14877 }
0x1bee   : > { %30040 = vrcp.f32 %v14878_v34 }
0x1bef   : > { %30042 = vrcp.f32 %v14881_v10 }
0x1bf1   : > { %v14884_v31 = vpop.xlane.xlu1 %14883 }
0x1bf2   : > { %30044 = vrcp.f32 %v14884_v31 }
0x1bf5   : > { %v14887_v22 = vpop.xlane.xlu0 %14886 }
0x1bf6   : > { %30046 = vrcp.f32 %v14887_v22 }
0x1bf8   : > { %v30041_v2 = vpop.eup %30040 }
0x1bf9   : > { %v14901_v11 = vmul.f32 %v30041_v2, %v34640_v27  ;;  %v14890_v27 = vpop.xlane.xlu1 %14889  ;;  %v14893_v7 = vpop.xlane.xlu0 %14892 }
0x1bfa   : > { %30048 = vrcp.f32 %v14890_v27  ;;  %v30043_v55 = vpop.eup %30042 }
0x1bfb   : > { %v14941_v24 = vsel %vm2867_vm2, %v14901_v11, 0  ;;  %30050 = vrcp.f32 %v14893_v7  ;;  %v14903_v52 = vmul.f32 %v30043_v55, %v34638_v29 }
0x1bfc   : > { %v34739_v18 = vand.u32 4294901760, %v14941_v24  ;;  %v30045_v38 = vpop.eup %30044 }
0x1bfd   : > { %v14899_v20 = vpop.xlane.xlu0 %14898  ;;  %v14905_v26 = vmul.f32 %v30045_v38, %v34646_v41  ;;  %v14944_v47 = vsel %vm2867_vm2, %v14903_v52, 0 }
0x1bfe   : > { %v34742_v42 = vsub.f32 %v14941_v24, %v34739_v18  ;;  %30052 = vrcp.f32 %v14899_v20  ;;  %v34754_v46 = vand.u32 4294901760, %v14944_v47 }
0x1bff   : > { %v14947_v40 = vsel %vm2867_vm2, %v14905_v26, 0 }
0x1c00   : > { %v36713_v9 = vand.u32 4294901760, %v34742_v42  ;;  %v30047_v53 = vpop.eup %30046  ;;  %v34756_v34 = vand.u32 4294901760, %v14947_v40  ;;  %v34764_v24 = vsub.f32 %v14944_v47, %v34754_v46 }
0x1c01   : > { %v14929_v44 = vpop.permute.xlu0 %14928  ;;  %v14907_v62 = vmul.f32 %v30047_v53, %v34650_v58 }
0x1c02   : > { %v15040_v51 = vsub.f32 %v34742_v42, %v36713_v9  ;;  %v36710_v55 = vand.u32 4294901760, %v34764_v24 }
0x1c03   : > { %v14950_v29 = vsel %vm2867_vm2, %v14907_v62, 0 }
0x1c04   : > { %v15041_v30 = vand.u32 4294901760, %v15040_v51  ;;  %v30049_v13 = vpop.eup %30048  ;;  %v34761_v11 = vand.u32 4294901760, %v14950_v29  ;;  %v14983_v51 = vand.u32 4294901760, %v14929_v44 }
0x1c05   : > { %v14909_v39 = vmul.f32 %v30049_v13, %v34654_v14  ;;  %v30051_v0 = vpop.eup %30050  ;;  %v15819_v59 = vpop.permute.xlu0 %15818  ;;  %v34767_v14 = vsub.f32 %v14947_v40, %v34756_v34 }
0x1c06   : > { %25933 = vmatprep.mubr.f32.mxu1 %v15041_v30  ;;  %v14911_v2 = vmul.f32 %v30051_v0, %v34664_v28  ;;  %v34773_v27 = vsub.f32 %v14950_v29, %v34761_v11  ;;  %v34776_v7 = vsub.f32 %v14929_v44, %v14983_v51  ;;  %v34779_v20 = vsel %vm1996_vm1, %v15819_v59, 0 }
0x1c07   : > { %v14953_v41 = vsel %vm2867_vm2, %v14909_v39, 0  ;;  %v36711_v38 = vand.u32 4294901760, %v34767_v14  ;;  %v36712_v13 = vand.u32 4294901760, %v34779_v20  ;;  %v15050_v0 = vsub.f32 %v34764_v24, %v36710_v55 }
0x1c08   : > { %v30053_v58 = vpop.eup %30052  ;;  %v34769_v30 = vand.u32 4294901760, %v14953_v41  ;;  %v14956_v22 = vsel %vm2867_vm2, %v14911_v2, 0  ;;  %v36716_v47 = vand.u32 4294901760, %v34776_v7 }
0x1c09   : > { %v15823_v10 = vpop.permute.xlu0 %15822  ;;  %v14915_v28 = vmul.f32 %v30053_v58, %v34670_v8  ;;  %v34786_v52 = vand.u32 4294901760, %v14956_v22  ;;  %v36714_v8 = vand.u32 4294901760, %v34773_v27  ;;  %v15060_v59 = vsub.f32 %v34767_v14, %v36711_v38 }
0x1c0a   : > { %v34784_v53 = vsub.f32 %v14953_v41, %v34769_v30  ;;  %v34793_v40 = vsel %vm1996_vm1, %v15823_v10, 0  ;;  %v15051_v38 = vand.u32 4294901760, %v15050_v0 }
0x1c0b   : > { %v14962_v44 = vsel %vm2867_vm2, %v14915_v28, 0  ;;  %v34807_v58 = vsub.f32 %v14956_v22, %v34786_v52  ;;  %v34814_v28 = vsub.f32 %v34779_v20, %v36712_v13  ;;  %v15070_v22 = vsub.f32 %v34773_v27, %v36714_v8 }
0x1c0c   : > { %v36715_v2 = vand.u32 4294901760, %v34784_v53  ;;  %v15061_v9 = vand.u32 4294901760, %v15060_v59  ;;  %v15163_v8 = vsub.f32 %v34776_v7, %v36716_v47 }
0x1c0d   : > { %v15827_v39 = vpop.permute.xlu0 %15826  ;;  %v36718_v55 = vand.u32 4294901760, %v34814_v28 }
0x1c0e   : > { %v15164_v25 = vand.u32 4294901760, %v15163_v8 }
0x1c2a   : > { %v14896_v31 = vpop.xlane.xlu1 %14895 }
0x1c2b   : > { %30054 = vrcp.f32 %v14896_v31  ;;  %v34809_v31 = vand.u32 4294901760, %v14962_v44 }
0x1c2e   : > { %v14931_v26 = vpop.permute.xlu1 %14930 }
0x1c2f   : > { %v14986_v62 = vand.u32 4294901760, %v14931_v26 }
0x1c31   : > { %v34801_v29 = vpack.c.bf16 %v14986_v62, %v14983_v51  ;;  %v34803_v41 = vsub.f32 %v14931_v26, %v14986_v62  ;;  %v34836_v26 = vsel %vm1996_vm1, %v15827_v39, 0  ;;  %v15831_v62 = vpop.permute.xlu0 %15830  ;;  %v15071_v39 = vand.u32 4294901760, %v15070_v22 }
0x1c32   : > { %v15821_v10 = vpop.permute.xlu1 %15820  ;;  %v34865_v22 = vsel %vm1996_vm1, %v15831_v62, 0 }
0x1c33   : > { %v34818_v51 = vsel %vm1996_vm1, %v15821_v10, 0  ;;  %28306 = vmatprep.subr.bf16.mxu1 %v34801_v29  ;;  %v15080_v10 = vsub.f32 %v34784_v53, %v36715_v2  ;;  %v34845_v2 = vsub.f32 %v14962_v44, %v34809_v31  ;;  %v36941_v47 = vand.u32 4294901760, %v34803_v41 }
0x1c34   : > { %28308 = vmatpush3.bf16.msra.mxu1 %v34801_v29  ;;  %v36940_v0 = vand.u32 4294901760, %v34818_v51  ;;  %v36946_v4 = vand.u32 4294901760, %v34865_v22 }
0x1c35   : > { %v30055_v13 = vpop.eup %30054  ;;  %28310 = vmatprep.subr.bf16.mxu1 %v34672_v3  ;;  %v15170_v63 = vsub.f32 %v34803_v41, %v36941_v47  ;;  %v36943_v47 = vand.u32 4294901760, %v34807_v58 }
0x1c36   : > { %v34841_v37 = vsub.f32 %v34818_v51, %v36940_v0  ;;  %v15825_v59 = vpop.permute.xlu1 %15824  ;;  %v14913_v50 = vmul.f32 %v30055_v13, %v34695_v16  ;;  %v36942_v0 = vand.u32 4294901760, %v34793_v40  ;;  %v34926_v49 = vsub.f32 %v34865_v22, %v36946_v4 }
0x1c37   : > { %v34849_v48 = vsel %vm1996_vm1, %v15825_v59, 0  ;;  %25934 = vmatmul.mubr.f32.vlgmr.msra.gmra.mrb[72].mxu1 %v15051_v38  ;;  %v15090_v59 = vsub.f32 %v34807_v58, %v36943_v47  ;;  %v15171_v47 = vand.u32 4294901760, %v15170_v63 }
0x1c38   : > { %v34857_v19 = vsub.f32 %v34793_v40, %v36942_v0  ;;  %v36719_v16 = vand.u32 4294901760, %v34841_v37  ;;  %v36717_v13 = vand.u32 4294901760, %v34849_v48  ;;  %25936 = vmatprep.mubr.f32.mxu1 %v15061_v9  ;;  %28312 = vmatpush3.bf16.msra.mxu1 %v34672_v3  ;;  %v14959_v44 = vsel %vm2867_vm2, %v14913_v50, 0 }
0x1c39   : > { %28314 = vmatprep.subr.bf16.mxu1 %v34709_v61  ;;  %v34871_v0 = vand.u32 4294901760, %v14959_v44  ;;  %v15081_v50 = vand.u32 4294901760, %v15080_v10  ;;  %v15091_v63 = vand.u32 4294901760, %v15090_v59 }
0x1c3a   : > { %v34876_v9 = vsub.f32 %v34849_v48, %v36717_v13  ;;  %v15829_v3 = vpop.permute.xlu1 %15828  ;;  %v34883_v62 = vpack.c.bf16 %v36719_v16, %v36718_v55  ;;  %v36723_v55 = vand.u32 4294901760, %v34857_v19 }
0x1c3b   : > { %v34886_v32 = vsel %vm1996_vm1, %v15829_v3, 0  ;;  %25937 = vmatmul.mubr.f32.gmra.mrb[74].mxu1 %v15071_v39  ;;  %v34889_v17 = vsub.f32 %v14959_v44, %v34871_v0  ;;  %v36944_v3 = vand.u32 4294901760, %v34836_v26 }
0x1c3c   : > { %v36724_v10 = vand.u32 4294901760, %v34876_v9  ;;  %v36720_v38 = vand.u32 4294901760, %v34886_v32  ;;  %25939 = vmatprep.mubr.f32.mxu1 %v15081_v50  ;;  %28316 = vmatpush3.bf16.msra.mxu1 %v34709_v61  ;;  %v36945_v61 = vand.u32 4294901760, %v34845_v2 }
0x1c3d   : > { %v34899_v39 = vsub.f32 %v34836_v26, %v36944_v3  ;;  %28318 = vmatprep.subr.bf16.mxu1 %v34715_v21  ;;  %v15099_v44 = vand.u32 4294901760, %v34889_v17  ;;  %v28321_v3 = vpack.c.bf16 %v15171_v47, %v15164_v25 }
0x1c3e   : > { %v34906_v16 = vsub.f32 %v34886_v32, %v36720_v38  ;;  %v15833_v50 = vpop.permute.xlu1 %15832  ;;  %v15110_v8 = vsub.f32 %v34845_v2, %v36945_v61  ;;  %v34921_v38 = vpack.c.bf16 %v36724_v10, %v36723_v55  ;;  %v16064_v10 = vand.u32 4294901760, %v34926_v49 }
0x1c3f   : > { %v34912_v13 = vsel %vm1996_vm1, %v15833_v50, 0  ;;  %25940 = vmatmul.mubr.f32.gmra.mrb[76].mxu1 %v15091_v63  ;;  %v15100_v59 = vsub.f32 %v34889_v17, %v15099_v44  ;;  %v16050_v25 = vand.u32 4294901760, %v34899_v39 }
0x1c40   : > { %v16057_v50 = vand.u32 4294901760, %v34906_v16  ;;  %v15888_v63 = vand.u32 4294901760, %v34912_v13  ;;  %28320 = vmatpush3.bf16.msra.mxu1 %v34715_v21  ;;  %v15111_v55 = vand.u32 4294901760, %v15110_v8 }
0x1c41   : > { %28322 = vmatprep.subr.bf16.mxu1 %v28321_v3  ;;  %v15101_v47 = vand.u32 4294901760, %v15100_v59 }
0x1c42   : > { %v34935_v61 = vsub.f32 %v34912_v13, %v15888_v63  ;;  %v34941_v4 = vpack.c.bf16 %v16057_v50, %v16050_v25 }
0x1c43   : > { %25942 = vmatprep.mubr.f32.mxu1 %v15101_v47  ;;  %v36962_v47 = vand.u32 4294901760, %v34865_v22  ;;  %v36964_v22 = vand.u32 4294901760, %v34814_v28 }
0x1c44   : > { %v16071_v21 = vand.u32 4294901760, %v34935_v61  ;;  %25943 = vmatmul.mubr.f32.gmra.mrb[78].mxu1 %v15111_v55  ;;  %v28337_v55 = vpack.c.bf16 %v34803_v41, %v34776_v7 }
0x1c45   : > { %28324 = vmatpush3.bf16.msra.mxu1 %v28321_v3  ;;  %25961 = vmatprep.mubr.f32.mxu1 %v34739_v18  ;;  %v36950_v3 = vand.u32 4294901760, %v34773_v27  ;;  %v16023_v13 = vsub.f32 %v34814_v28, %v36964_v22 }
0x1c46   : > { %28326 = vmatprep.subr.bf16.mxu1 %v34661_v1  ;;  %v34951_v8 = vpack.c.bf16 %v16071_v21, %v16064_v10 }
0x1c48   : > { %25962 = vmatmul.mubr.f32.vlgmr.msra.gmra.mrb[72].mxu1 %v34754_v46 }
0x1c49   : > { %28328 = vmatpush3.bf16.msra.mxu1 %v34661_v1  ;;  %25964 = vmatprep.mubr.f32.mxu1 %v34756_v34  ;;  %v36947_v1 = vand.u32 4294901760, %v34742_v42 }
0x1c4a   : > { %28330 = vmatprep.subr.bf16.mxu1 %v34690_v12 }
0x1c4c   : > { %25965 = vmatmul.mubr.f32.gmra.mrb[74].mxu1 %v34761_v11 }
0x1c4d   : > { %28332 = vmatpush3.bf16.msra.mxu1 %v34690_v12  ;;  %25967 = vmatprep.mubr.f32.mxu1 %v34769_v30  ;;  %v36948_v12 = vand.u32 4294901760, %v34764_v24 }
0x1c4e   : > { %28334 = vmatprep.subr.bf16.mxu1 %v34704_v56 }
0x1c50   : > { %25968 = vmatmul.mubr.f32.gmra.mrb[76].mxu1 %v34786_v52 }
0x1c51   : > { %28336 = vmatpush3.bf16.msra.mxu1 %v34704_v56  ;;  %25970 = vmatprep.mubr.f32.mxu1 %v34871_v0  ;;  %v36949_v56 = vand.u32 4294901760, %v34767_v14 }
0x1c52   : > { %28338 = vmatprep.subr.bf16.mxu1 %v28337_v55 }
0x1c54   : > { %25971 = vmatmul.mubr.f32.gmra.mrb[78].mxu1 %v34809_v31 }
0x1c55   : > { %28340 = vmatpush3.bf16.msra.mxu1 %v28337_v55  ;;  %25989 = vmatprep.mubr.f32.mxu1 %v34742_v42  ;;  %v36951_v42 = vand.u32 4294901760, %v34784_v53  ;;  %v35078_v55 = vpack.c.bf16 %v15888_v63, %v36962_v47 }
0x1c56   : > { %28342 = vmatprep.subr.bf16.mxu1 %v34652_v60 }
0x1c58   : > { %25990 = vmatmul.mubr.f32.vlgmr.msra.gmra.mrb[72].mxu1 %v34764_v24  ;;  %v36952_v24 = vand.u32 4294901760, %v34807_v58 }
0x1c59   : > { %28344 = vmatpush3.bf16.msra.mxu1 %v34652_v60  ;;  %25992 = vmatprep.mubr.f32.mxu1 %v34767_v14  ;;  %v36954_v14 = vand.u32 4294901760, %v34803_v41  ;;  %v36959_v41 = vand.u32 4294901760, %v34849_v48  ;;  %v36960_v48 = vand.u32 4294901760, %v34836_v26 }
0x1c5a   : > { %28346 = vmatprep.subr.bf16.mxu1 %v34687_v57 }
0x1c5c   : > { %25993 = vmatmul.mubr.f32.gmra.mrb[74].mxu1 %v34773_v27  ;;  %v36956_v27 = vand.u32 4294901760, %v34779_v20 }
0x1c5d   : > { %28348 = vmatpush3.bf16.msra.mxu1 %v34687_v57  ;;  %25995 = vmatprep.mubr.f32.mxu1 %v34784_v53  ;;  %v36958_v53 = vand.u32 4294901760, %v34793_v40 }
0x1c5e   : > { %28350 = vmatprep.subr.bf16.mxu1 %v34697_v33 }
0x1c60   : > { %25996 = vmatmul.mubr.f32.gmra.mrb[76].mxu1 %v34807_v58 }
0x1c61   : > { %28352 = vmatpush3.bf16.msra.mxu1 %v34697_v33  ;;  %25998 = vmatprep.mubr.f32.mxu1 %v34889_v17  ;;  %v15803_v17 = vpop.permute.xlu0 %15802 }
0x1c62   : > { %28354 = vmatprep.subr.bf16.mxu1 %v34801_v29 }
0x1c64   : > { %25999 = vmatmul.mubr.f32.gmra.mrb[78].mxu1 %v34845_v2 }
0x1c65   : > { %28356 = vmatpush3.bf16.msra.mxu1 %v34801_v29  ;;  %26017 = vmatprep.mubr.f32.mxu1 %v36947_v1  ;;  %v36963_v1 = vand.u32 4294901760, %v34841_v37 }
0x1c66   : > { %28358 = vmatprep.subr.bf16.mxu1 %v34666_v45 }
0x1c68   : > { %26018 = vmatmul.mubr.f32.vlgmr.msra.gmra.mrb[72].mxu1 %v36948_v12  ;;  %v16030_v12 = vsub.f32 %v34841_v37, %v36963_v1 }
0x1c69   : > { %28360 = vmatpush3.bf16.msra.mxu1 %v34666_v45  ;;  %26020 = vmatprep.mubr.f32.mxu1 %v36949_v56  ;;  %v36953_v45 = vand.u32 4294901760, %v34776_v7 }
0x1c6a   : > { %28362 = vmatprep.subr.bf16.mxu1 %v34699_v23 }
0x1c6b   : > { %v28369_v59 = vpack.c.bf16 %v36954_v14, %v36953_v45 }
0x1c6c   : > { %26021 = vmatmul.mubr.f32.gmra.mrb[74].mxu1 %v36950_v3 }
0x1c6d   : > { %28364 = vmatpush3.bf16.msra.mxu1 %v34699_v23  ;;  %26023 = vmatprep.mubr.f32.mxu1 %v36951_v42  ;;  %v36955_v23 = vand.u32 4294901760, %v34845_v2 }
0x1c6e   : > { %28366 = vmatprep.subr.bf16.mxu1 %v34711_v15 }
0x1c70   : > { %26024 = vmatmul.mubr.f32.gmra.mrb[76].mxu1 %v36952_v24 }
0x1c71   : > { %28368 = vmatpush3.bf16.msra.mxu1 %v34711_v15  ;;  %26026 = vmatprep.mubr.f32.mxu1 %v15099_v44  ;;  %v15834_v15 = vsel %vm1996_vm1, %v15803_v17, 0 }
0x1c72   : > { %28370 = vmatprep.subr.bf16.mxu1 %v28369_v59 }
0x1c74   : > { %26027 = vmatmul.mubr.f32.gmra.mrb[78].mxu1 %v36955_v23  ;;  %v16031_v23 = vand.u32 4294901760, %v16030_v12 }
0x1c75   : > { %28372 = vmatpush3.bf16.msra.mxu1 %v28369_v59  ;;  %26045 = vmatprep.mubr.f32.mxu1 %v34739_v18 }
0x1c76   : > { %28374 = vmatprep.subr.bf16.mxu1 %v34652_v60 }
0x1c78   : > { %26046 = vmatmul.mubr.f32.vlgmr.msra.gmra.mrb[72].mxu1 %v34754_v46 }
0x1c79   : > { %28376 = vmatpush3.bf16.msra.mxu1 %v34652_v60  ;;  %26048 = vmatprep.mubr.f32.mxu1 %v34756_v34  ;;  %v35024_v60 = vand.u32 4294901760, %v15834_v15 }
0x1c7a   : > { %28378 = vmatprep.subr.bf16.mxu1 %v34687_v57 }
0x1c7c   : > { %26049 = vmatmul.mubr.f32.gmra.mrb[74].mxu1 %v34761_v11 }
0x1c7d   : > { %28380 = vmatpush3.bf16.msra.mxu1 %v34687_v57  ;;  %26051 = vmatprep.mubr.f32.mxu1 %v34769_v30  ;;  %v36957_v57 = vand.u32 4294901760, %v34818_v51 }
0x1c7e   : > { %28382 = vmatprep.subr.bf16.mxu1 %v34697_v33 }
0x1c7f   : > { %v35030_v7 = vpack.c.bf16 %v36957_v57, %v36956_v27  ;;  %v16024_v57 = vand.u32 4294901760, %v16023_v13 }
0x1c80   : > { %26052 = vmatmul.mubr.f32.gmra.mrb[76].mxu1 %v34786_v52 }
0x1c81   : > { %28384 = vmatpush3.bf16.msra.mxu1 %v34697_v33  ;;  %26054 = vmatprep.mubr.f32.mxu1 %v34871_v0  ;;  %v35037_v33 = vsub.f32 %v15834_v15, %v35024_v60 }
0x1c82   : > { %28386 = vmatprep.subr.bf16.mxu1 %v34801_v29 }
0x1c83   : > { %v15941_v20 = vand.u32 4294901760, %v35037_v33 }
0x1c84   : > { %26055 = vmatmul.mubr.f32.gmra.mrb[78].mxu1 %v34809_v31 }
0x1c85   : > { %28388 = vmatpush3.bf16.msra.mxu1 %v34801_v29  ;;  %26073 = vmatprep.mubr.f32.mxu1 %v34739_v18  ;;  %v35047_v29 = vpack.c.bf16 %v36959_v41, %v36958_v53  ;;  %v15805_v18 = vpop.permute.xlu1 %15804 }
0x1c86   : > { %28390 = vmatprep.subr.bf16.mxu1 %v35030_v7 }
0x1c88   : > { %26074 = vmatmul.mubr.f32.vlgmr.msra.gmra.mrb[72].mxu1 %v34754_v46  ;;  %v15942_v46 = vsub.f32 %v35037_v33, %v15941_v20 }
0x1c89   : > { %26076 = vmatprep.mubr.f32.mxu1 %v34756_v34  ;;  %v15807_v34 = vpop.permute.xlu0 %15806  ;;  %v15809_v2 = vpop.permute.xlu1 %15808 }
0x1c8a   : > { %v15838_v51 = vsel %vm1996_vm1, %v15807_v34, 0  ;;  %v28405_v34 = vpack.c.bf16 %v16031_v23, %v16024_v57 }
0x1c8b   : > { %v35070_v44 = vand.u32 4294901760, %v15838_v51 }
0x1c8c   : > { %26077 = vmatmul.mubr.f32.gmra.mrb[74].mxu1 %v34761_v11  ;;  %v15943_v11 = vand.u32 4294901760, %v15942_v46 }
0x1c8d   : > { %26079 = vmatprep.mubr.f32.mxu1 %v34769_v30  ;;  %v36961_v30 = vand.u32 4294901760, %v34886_v32  ;;  %v15811_v58 = vpop.permute.xlu0 %15810  ;;  %v15840_v32 = vsel %vm1996_vm1, %v15809_v2, 0  ;;  %v35094_v63 = vsub.f32 %v15838_v51, %v35070_v44 }
0x1c8e   : > { %28392 = vmatpush3.bf16.xpose.msra.mxu1 %v35030_v7  ;;  %v15842_v26 = vsel %vm1996_vm1, %v15811_v58, 0  ;;  %v35087_v42 = vand.u32 4294901760, %v15840_v32 }
0x1c8f   : > { %28394 = vmatprep.subr.bf16.mxu1 %v35047_v29  ;;  %v35062_v40 = vpack.c.bf16 %v36961_v30, %v36960_v48  ;;  %v35096_v24 = vand.u32 4294901760, %v15842_v26  ;;  %v15961_v53 = vand.u32 4294901760, %v35094_v63  ;;  %v36966_v30 = vand.u32 4294901760, %v34857_v19 }
0x1c90   : > { %26080 = vmatmul.mubr.f32.gmra.mrb[76].mxu1 %v34786_v52  ;;  %v15836_v52 = vsel %vm1996_vm1, %v15805_v18, 0  ;;  %v35102_v15 = vsub.f32 %v15840_v32, %v35087_v42 }
0x1c91   : > { %26082 = vmatprep.mubr.f32.mxu1 %v34871_v0  ;;  %v35068_v0 = vand.u32 4294901760, %v15836_v52  ;;  %v15815_v56 = vpop.permute.xlu0 %15814  ;;  %v35108_v41 = vsub.f32 %v15842_v26, %v35096_v24  ;;  %v16037_v2 = vsub.f32 %v34857_v19, %v36966_v30  ;;  %v15962_v47 = vsub.f32 %v35094_v63, %v15961_v53 }
0x1c92   : > { %v15846_v14 = vsel %vm1996_vm1, %v15815_v56, 0 }
0x1c93   : > { %v35085_v3 = vsub.f32 %v15836_v52, %v35068_v0  ;;  %v35110_v18 = vand.u32 4294901760, %v15846_v14  ;;  %v15971_v52 = vand.u32 4294901760, %v35102_v15  ;;  %v15981_v32 = vand.u32 4294901760, %v35108_v41 }
0x1c94   : > { %26083 = vmatmul.mubr.f32.gmra.mrb[78].mxu1 %v34809_v31  ;;  %v15813_v31 = vpop.permute.xlu1 %15812  ;;  %v16038_v12 = vand.u32 4294901760, %v16037_v2  ;;  %v16051_v2 = vsub.f32 %v34899_v39, %v16050_v25 }
0x1c95   : > { %26101 = vmatprep.mubr.f32.mxu1 %v15943_v11  ;;  %v15844_v45 = vsel %vm1996_vm1, %v15813_v31, 0  ;;  %v15951_v17 = vand.u32 4294901760, %v35085_v3  ;;  %v36965_v11 = vand.u32 4294901760, %v34876_v9  ;;  %v35131_v26 = vsub.f32 %v15846_v14, %v35110_v18 }
0x1c96   : > { %28396 = vmatpush3.bf16.xpose.msra.mxu1 %v35047_v29  ;;  %v35104_v27 = vand.u32 4294901760, %v15844_v45  ;;  %v15963_v14 = vand.u32 4294901760, %v15962_v47  ;;  %v15982_v23 = vsub.f32 %v35108_v41, %v15981_v32 }
0x1c97   : > { %28398 = vmatprep.subr.bf16.mxu1 %v35062_v40  ;;  %v16044_v48 = vsub.f32 %v34876_v9, %v36965_v11  ;;  %v15952_v58 = vsub.f32 %v35085_v3, %v15951_v17  ;;  %v16058_v11 = vsub.f32 %v34906_v16, %v16057_v50 }
0x1c98   : > { %v15817_v59 = vpop.permute.xlu1 %15816  ;;  %v35125_v51 = vsub.f32 %v15844_v45, %v35104_v27  ;;  %v15972_v45 = vsub.f32 %v35102_v15, %v15971_v52 }
0x1c99   : > { %v15848_v46 = vsel %vm1996_vm1, %v15817_v59, 0  ;;  %v16045_v1 = vand.u32 4294901760, %v16044_v48  ;;  %v15953_v56 = vand.u32 4294901760, %v15952_v58  ;;  %v16001_v59 = vand.u32 4294901760, %v35131_v26 }
0x1c9a   : > { %v35127_v31 = vand.u32 4294901760, %v15848_v46  ;;  %v15991_v22 = vand.u32 4294901760, %v35125_v51  ;;  %v15973_v48 = vand.u32 4294901760, %v15972_v45  ;;  %v15983_v58 = vand.u32 4294901760, %v15982_v23 }
0x1c9b   : > { %v28409_v57 = vpack.c.bf16 %v16045_v1, %v16038_v12  ;;  %v16002_v47 = vsub.f32 %v35131_v26, %v16001_v59  ;;  %v16059_v50 = vand.u32 4294901760, %v16058_v11  ;;  %v16052_v1 = vand.u32 4294901760, %v16051_v2 }
0x1c9c   : > { %v35138_v13 = vsub.f32 %v15848_v46, %v35127_v31  ;;  %v15992_v30 = vsub.f32 %v35125_v51, %v15991_v22  ;;  %v16072_v45 = vsub.f32 %v34935_v61, %v16071_v21  ;;  %v28421_v21 = vpack.c.bf16 %v34841_v37, %v34814_v28 }
0x1c9d   : > { %v28413_v25 = vpack.c.bf16 %v16059_v50, %v16052_v1  ;;  %v28429_v37 = vpack.c.bf16 %v34906_v16, %v34899_v39 }
0x1c9e   : > { %28400 = vmatpush3.bf16.xpose.msra.mxu1 %v35062_v40  ;;  %v16011_v46 = vand.u32 4294901760, %v35138_v13  ;;  %v16073_v11 = vand.u32 4294901760, %v16072_v45 }
0x1c9f   : > { %28402 = vmatprep.subr.bf16.mxu1 %v35078_v55 }
0x1ca0   : > { %v16012_v12 = vsub.f32 %v35138_v13, %v16011_v46 }
0x1ca2   : > { %v16013_v23 = vand.u32 4294901760, %v16012_v12 }
0x1ca6   : > { %28404 = vmatpush3.bf16.xpose.msra.mxu1 %v35078_v55 }
0x1ca7   : > { %28406 = vmatprep.subr.bf16.mxu1 %v28405_v34 }
0x1cad   : > { %26102 = vmatmul.mubr.f32.vlgmr.msra.gmra.mrb[80].mxu1 %v15953_v56  ;;  %v16003_v56 = vand.u32 4294901760, %v16002_v47 }
0x1cae   : > { %26104 = vmatprep.mubr.f32.mxu1 %v15963_v14  ;;  %28408 = vmatpush3.bf16.xpose.msra.mxu1 %v28405_v34  ;;  %v15993_v34 = vand.u32 4294901760, %v15992_v30  ;;  %v16065_v14 = vsub.f32 %v34926_v49, %v16064_v10  ;;  %v28425_v10 = vpack.c.bf16 %v34876_v9, %v34857_v19  ;;  %v28433_v19 = vpack.c.bf16 %v34935_v61, %v34926_v49 }
0x1caf   : > { %28410 = vmatprep.subr.bf16.mxu1 %v28409_v57 }
0x1cb1   : > { %26105 = vmatmul.mubr.f32.gmra.mrb[82].mxu1 %v15973_v48  ;;  %v16066_v48 = vand.u32 4294901760, %v16065_v14 }
0x1cb2   : > { %26107 = vmatprep.mubr.f32.mxu1 %v15983_v58 }
0x1cb3   : > { %v28417_v30 = vpack.c.bf16 %v16073_v11, %v16066_v48 }
0x1cb5   : > { %26108 = vmatmul.mubr.f32.gmra.mrb[84].mxu1 %v15993_v34 }
0x1cb6   : > { %26110 = vmatprep.mubr.f32.mxu1 %v16003_v56  ;;  %28412 = vmatpush3.bf16.xpose.msra.mxu1 %v28409_v57 }
0x1cb7   : > { %28414 = vmatprep.subr.bf16.mxu1 %v28413_v25 }
0x1cb9   : > { %26111 = vmatmul.mubr.f32.gmra.mrb[86].mxu1 %v16013_v23 }
0x1cba   : > { %26129 = vmatprep.mubr.f32.mxu1 %v35024_v60 }
0x1cbe   : > { %28416 = vmatpush3.bf16.xpose.msra.mxu1 %v28413_v25 }
0x1cbf   : > { %28418 = vmatprep.subr.bf16.mxu1 %v28417_v30 }
0x1cc6   : > { %28420 = vmatpush3.bf16.xpose.msra.mxu1 %v28417_v30 }
0x1cc7   : > { %28422 = vmatprep.subr.bf16.mxu1 %v28421_v21 }
0x1ccd   : > { %26130 = vmatmul.mubr.f32.vlgmr.msra.gmra.mrb[80].mxu1 %v35068_v0 }
0x1cce   : > { %26132 = vmatprep.mubr.f32.mxu1 %v35070_v44  ;;  %28424 = vmatpush3.bf16.xpose.msra.mxu1 %v28421_v21 }
0x1ccf   : > { %28426 = vmatprep.subr.bf16.mxu1 %v28425_v10 }
0x1cd1   : > { %26133 = vmatmul.mubr.f32.gmra.mrb[82].mxu1 %v35087_v42 }
0x1cd2   : > { %26135 = vmatprep.mubr.f32.mxu1 %v35096_v24 }
0x1cd5   : > { %26136 = vmatmul.mubr.f32.gmra.mrb[84].mxu1 %v35104_v27 }
0x1cd6   : > { %26138 = vmatprep.mubr.f32.mxu1 %v35110_v18  ;;  %28428 = vmatpush3.bf16.xpose.msra.mxu1 %v28425_v10 }
0x1cd7   : > { %28430 = vmatprep.subr.bf16.mxu1 %v28429_v37 }
0x1cd9   : > { %26139 = vmatmul.mubr.f32.gmra.mrb[86].mxu1 %v35127_v31 }
0x1cda   : > { %26157 = vmatprep.mubr.f32.mxu1 %v35037_v33 }
0x1cde   : > { %28432 = vmatpush3.bf16.xpose.msra.mxu1 %v28429_v37 }
0x1cdf   : > { %28434 = vmatprep.subr.bf16.mxu1 %v28433_v19 }
0x1ce6   : > { %28436 = vmatpush3.bf16.xpose.msra.mxu1 %v28433_v19 }
0x1ce7   : > { %28438 = vmatprep.subr.bf16.mxu1 %v35030_v7 }
0x1ced   : > { %26158 = vmatmul.mubr.f32.vlgmr.msra.gmra.mrb[80].mxu1 %v35085_v3 }
0x1cee   : > { %26160 = vmatprep.mubr.f32.mxu1 %v35094_v63  ;;  %28440 = vmatpush3.bf16.xpose.msra.mxu1 %v35030_v7 }
0x1cef   : > { %28442 = vmatprep.subr.bf16.mxu1 %v35047_v29 }
0x1cf1   : > { %26161 = vmatmul.mubr.f32.gmra.mrb[82].mxu1 %v35102_v15 }
0x1cf2   : > { %26163 = vmatprep.mubr.f32.mxu1 %v35108_v41 }
0x1cf5   : > { %26164 = vmatmul.mubr.f32.gmra.mrb[84].mxu1 %v35125_v51 }
0x1cf6   : > { %26166 = vmatprep.mubr.f32.mxu1 %v35131_v26  ;;  %28444 = vmatpush3.bf16.xpose.msra.mxu1 %v35047_v29 }
0x1cf7   : > { %28446 = vmatprep.subr.bf16.mxu1 %v35062_v40 }
0x1cf9   : > { %26167 = vmatmul.mubr.f32.gmra.mrb[86].mxu1 %v35138_v13 }
0x1cfa   : > { %26185 = vmatprep.mubr.f32.mxu1 %v15941_v20 }
0x1cfe   : > { %28448 = vmatpush3.bf16.xpose.msra.mxu1 %v35062_v40 }
0x1cff   : > { %28450 = vmatprep.subr.bf16.mxu1 %v35078_v55 }
0x1d06   : > { %28452 = vmatpush3.bf16.xpose.msra.mxu1 %v35078_v55 }
0x1d07   : > { %28454 = vmatprep.subr.bf16.mxu1 %v34883_v62 }
0x1d0d   : > { %26186 = vmatmul.mubr.f32.vlgmr.msra.gmra.mrb[80].mxu1 %v15951_v17 }
0x1d0e   : > { %26188 = vmatprep.mubr.f32.mxu1 %v15961_v53  ;;  %28456 = vmatpush3.bf16.xpose.msra.mxu1 %v34883_v62 }
0x1d0f   : > { %28458 = vmatprep.subr.bf16.mxu1 %v34921_v38 }
0x1d11   : > { %26189 = vmatmul.mubr.f32.gmra.mrb[82].mxu1 %v15971_v52 }
0x1d12   : > { %26191 = vmatprep.mubr.f32.mxu1 %v15981_v32 }
0x1d15   : > { %26192 = vmatmul.mubr.f32.gmra.mrb[84].mxu1 %v15991_v22 }
0x1d16   : > { %26194 = vmatprep.mubr.f32.mxu1 %v16001_v59  ;;  %28460 = vmatpush3.bf16.xpose.msra.mxu1 %v34921_v38 }
0x1d17   : > { %28462 = vmatprep.subr.bf16.mxu1 %v34941_v4 }
0x1d19   : > { %26195 = vmatmul.mubr.f32.gmra.mrb[86].mxu1 %v16011_v46 }
0x1d1a   : > { %26213 = vmatprep.mubr.f32.mxu1 %v35024_v60 }
0x1d1e   : > { %28464 = vmatpush3.bf16.xpose.msra.mxu1 %v34941_v4 }
0x1d1f   : > { %28466 = vmatprep.subr.bf16.mxu1 %v34951_v8 }
0x1d26   : > { %28468 = vmatpush3.bf16.xpose.msra.mxu1 %v34951_v8 }
0x1d27   : > { %28470 = vmatprep.subr.bf16.mxu1 %v35030_v7 }
0x1d2d   : > { %26214 = vmatmul.mubr.f32.vlgmr.msra.gmra.mrb[80].mxu1 %v35068_v0 }
0x1d2e   : > { %26216 = vmatprep.mubr.f32.mxu1 %v35070_v44  ;;  %28472 = vmatpush3.bf16.xpose.msra.mxu1 %v35030_v7 }
0x1d2f   : > { %28474 = vmatprep.subr.bf16.mxu1 %v35047_v29 }
0x1d31   : > { %26217 = vmatmul.mubr.f32.gmra.mrb[82].mxu1 %v35087_v42 }
0x1d32   : > { %26219 = vmatprep.mubr.f32.mxu1 %v35096_v24 }
0x1d35   : > { %26220 = vmatmul.mubr.f32.gmra.mrb[84].mxu1 %v35104_v27 }
0x1d36   : > { %26222 = vmatprep.mubr.f32.mxu1 %v35110_v18  ;;  %28476 = vmatpush3.bf16.xpose.msra.mxu1 %v35047_v29 }
0x1d37   : > { %28478 = vmatprep.subr.bf16.mxu1 %v35062_v40 }
0x1d39   : > { %26223 = vmatmul.mubr.f32.gmra.mrb[86].mxu1 %v35127_v31 }
0x1d3a   : > { %26241 = vmatprep.mubr.f32.mxu1 %v35024_v60 }
0x1d3e   : > { %28480 = vmatpush3.bf16.xpose.msra.mxu1 %v35062_v40 }
0x1d3f   : > { %28482 = vmatprep.subr.bf16.mxu1 %v35078_v55 }
0x1d46   : > { %28484 = vmatpush3.bf16.xpose.msra.mxu1 %v35078_v55 }
0x1d4d   : > { %26242 = vmatmul.mubr.f32.vlgmr.msra.gmra.mrb[80].mxu1 %v35068_v0 }
0x1d4e   : > { %26244 = vmatprep.mubr.f32.mxu1 %v35070_v44 }
0x1d51   : > { %26245 = vmatmul.mubr.f32.gmra.mrb[82].mxu1 %v35087_v42 }
0x1d52   : > { %26247 = vmatprep.mubr.f32.mxu1 %v35096_v24 }
0x1d55   : > { %26248 = vmatmul.mubr.f32.gmra.mrb[84].mxu1 %v35104_v27 }
0x1d56   : > { %26250 = vmatprep.mubr.f32.mxu1 %v35110_v18 }
0x1d59   : > { %26251 = vmatmul.mubr.f32.gmra.mrb[86].mxu1 %v35127_v31 }
0x1d5b   : > { %v35249_v49 = vpop.f32.mrb[72].mxu1 }
0x1d5c   : > { %36967 = vst [vmem:[#allocation5_spill] sm:$0xff] %v35249_v49  ;;  %v35251_v28 = vpop.f32.mrb[73].mxu1 }
0x1d5d   : > { %36968 = vst [vmem:[#allocation6_spill] sm:$0xff] %v35251_v28 }
0x1d5f   : > { %v35253_v16 = vpop.f32.mrb[74].mxu1 }
0x1d60   : > { %36969 = vst [vmem:[#allocation7_spill] sm:$0xff] %v35253_v16  ;;  %v35255_v38 = vpop.f32.mrb[75].mxu1 }
0x1d61   : > { %36970 = vst [vmem:[#allocation8_spill] sm:$0xff] %v35255_v38 }
0x1d63   : > { %v35257_v9 = vpop.f32.mrb[76].mxu1 }
0x1d64   : > { %36971 = vst [vmem:[#allocation9_spill] sm:$0xff] %v35257_v9  ;;  %v35259_v62 = vpop.f32.mrb[77].mxu1 }
0x1d65   : > { %36972 = vst [vmem:[#allocation10_spill] sm:$0xff] %v35259_v62 }
0x1d67   : > { %v35261_v39 = vpop.f32.mrb[78].mxu1 }
0x1d68   : > { %36973 = vst [vmem:[#allocation11_spill] sm:$0xff] %v35261_v39  ;;  %v35263_v61 = vpop.f32.mrb[79].mxu1 }
0x1d69   : > { %36974 = vst [vmem:[#allocation12_spill] sm:$0xff] %v35263_v61 }
0x1e20   : > { %v26243_v4 = vpop.f32.mrb[80].mxu1 }
0x1e21   : > { %v16658_v8 = vpop.f32.mrb[81].mxu1  ;;  %v16707_v60 = vsel %vm2867_vm2, %v26243_v4, -inf }
0x1e22   : > { %16708 = vmax.xlane.f32.xlu1 %v16707_v60  ;;  %v16704_v7 = vsel %vm2867_vm2, %v16658_v8, -inf }
0x1e23   : > { %16705 = vmax.xlane.f32.xlu0 %v16704_v7 }
0x1e24   : > { %v26246_v33 = vpop.f32.mrb[82].mxu1 }
0x1e25   : > { %v16670_v20 = vpop.f32.mrb[83].mxu1  ;;  %v16713_v44 = vsel %vm2867_vm2, %v26246_v33, -inf }
0x1e26   : > { %v16710_v29 = vsel %vm2867_vm2, %v16670_v20, -inf }
0x1e27   : > { %16711 = vmax.xlane.f32.xlu0 %v16710_v29 }
0x1e28   : > { %v26249_v40 = vpop.f32.mrb[84].mxu1 }
0x1e29   : > { %v16682_v0 = vpop.f32.mrb[85].mxu1  ;;  %v16719_v63 = vsel %vm2867_vm2, %v26249_v40, -inf }
0x1e2a   : > { %v16716_v55 = vsel %vm2867_vm2, %v16682_v0, -inf }
0x1e2b   : > { %16714 = vmax.xlane.f32.xlu0 %v16713_v44  ;;  %16717 = vmax.xlane.f32.xlu1 %v16716_v55 }
0x1e2c   : > { %v26252_v3 = vpop.f32.mrb[86].mxu1 }
0x1e2d   : > { %v35270_v42 = vpop.f32.mrb[87].mxu1  ;;  %v16725_v24 = vsel %vm2867_vm2, %v26252_v3, -inf }
0x1e2e   : > { %v16722_v17 = vsel %vm2867_vm2, %v35270_v42, -inf }
0x1e2f   : > { %16720 = vmax.xlane.f32.xlu0 %v16719_v63 }
0x1e33   : > { %16726 = vmax.xlane.f32.xlu0 %v16725_v24 }
0x1e3c   : > { %16792 = vrot.lane.b32.xlu1 %v33691_v36, %s30170_s29 }
0x1e49   : > { %16794 = vrot.lane.b32.xlu0 %v33689_v54, %s30170_s29 }
0x1e4d   : > { %16800 = vrot.lane.b32.xlu0 %v33715_v43, %s30170_s29 }
0x1e60   : > { %16723 = vmax.xlane.f32.xlu1 %v16722_v17 }
0x1e71   : > { %16796 = vrot.lane.b32.xlu1 %v33703_v35, %s30170_s29 }
0x1e75   : > { %16798 = vrot.lane.b32.xlu1 %v33699_v6, %s30170_s29 }
0x1e79   : > { %16802 = vrot.lane.b32.xlu1 %v33712_v5, %s30170_s29 }
0x1eaf   : > { %v16709_v15 = vpop.xlane.xlu1 %16708 }
0x1eb0   : > { %v16729_v27 = vsub.f32 %v26243_v4, %v16709_v15  ;;  %v16706_v53 = vpop.xlane.xlu0 %16705 }
0x1eb1   : > { %v16728_v41 = vsub.f32 %v16658_v8, %v16706_v53  ;;  %v36975_v53 = vld [vmem:[#allocation29_spill] sm:$0xff] }
0x1eb2   : > { %v16738_v18 = vmul.f32 1.442695, %v16729_v27 }
0x1eb3   : > { %v16736_v52 = vmul.f32 1.442695, %v16728_v41 }
0x1eb4   : > { %30056 = vpow2.f32 %v16738_v18  ;;  %v16712_v51 = vpop.xlane.xlu0 %16711 }
0x1eb5   : > { %30058 = vpow2.f32 %v16736_v52  ;;  %v16730_v31 = vsub.f32 %v16670_v20, %v16712_v51 }
0x1eb7   : > { %v16740_v32 = vmul.f32 1.442695, %v16730_v31 }
0x1eb8   : > { %v16715_v26 = vpop.xlane.xlu0 %16714  ;;  %v16718_v22 = vpop.xlane.xlu1 %16717 }
0x1eb9   : > { %30060 = vpow2.f32 %v16740_v32  ;;  %v16731_v13 = vsub.f32 %v26246_v33, %v16715_v26  ;;  %v16732_v59 = vsub.f32 %v16682_v0, %v16718_v22 }
0x1ebb   : > { %v16742_v57 = vmul.f32 1.442695, %v16731_v13  ;;  %v16744_v46 = vmul.f32 1.442695, %v16732_v59 }
0x1ebc   : > { %v16721_v2 = vpop.xlane.xlu0 %16720  ;;  %v16793_v58 = vpop.permute.xlu1 %16792 }
0x1ebd   : > { %30062 = vpow2.f32 %v16742_v57  ;;  %v16733_v47 = vsub.f32 %v26249_v40, %v16721_v2  ;;  %v16841_v50 = vand.u32 4294901760, %v16793_v58 }
0x1ebe   : > { %v35288_v34 = vpop.eup %30056  ;;  %30064 = vpow2.f32 %v16744_v46 }
0x1ebf   : > { %v35290_v1 = vpop.eup %30058  ;;  %v16746_v12 = vmul.f32 1.442695, %v16733_v47  ;;  %v16995_v56 = vsub.f32 %v16793_v58, %v16841_v50  ;;  %v16755_v45 = vsel %vm2867_vm2, %v35288_v34, 0.0 }
0x1ec0   : > { %16756 = vadd.xlane.f32.xlu0 %v16755_v45  ;;  %v16727_v25 = vpop.xlane.xlu0 %16726  ;;  %v16752_v14 = vsel %vm2867_vm2, %v35290_v1, 0.0 }
0x1ec1   : > { %30066 = vpow2.f32 %v16746_v12  ;;  %v16735_v23 = vsub.f32 %v26252_v3, %v16727_v25  ;;  %16753 = vadd.xlane.f32.xlu1 %v16752_v14  ;;  %v16996_v10 = vand.u32 4294901760, %v16995_v56 }
0x1ec3   : > { %v35296_v11 = vpop.eup %30060  ;;  %v16750_v48 = vmul.f32 1.442695, %v16735_v23  ;;  %v16997_v33 = vsub.f32 %v16995_v56, %v16996_v10 }
0x1ec4   : > { %v16795_v30 = vpop.permute.xlu0 %16794  ;;  %v16758_v21 = vsel %vm2867_vm2, %v35296_v11, 0.0 }
0x1ec5   : > { %30068 = vpow2.f32 %v16750_v48  ;;  %v16844_v37 = vand.u32 4294901760, %v16795_v30  ;;  %16759 = vadd.xlane.f32.xlu1 %v16758_v21  ;;  %v16998_v63 = vand.u32 4294901760, %v16997_v33 }
0x1ec7   : > { %v35300_v19 = vpop.eup %30062  ;;  %v35302_v4 = vpack.c.bf16 %v16844_v37, %v16841_v50  ;;  %v17002_v8 = vsub.f32 %v16795_v30, %v16844_v37 }
0x1ec8   : > { %v35304_v60 = vpop.eup %30064  ;;  %v16761_v7 = vsel %vm2867_vm2, %v35300_v19, 0.0  ;;  %v16801_v18 = vpop.permute.xlu0 %16800 }
0x1ec9   : > { %v17003_v20 = vand.u32 4294901760, %v17002_v8  ;;  %16762 = vadd.xlane.f32.xlu0 %v16761_v7  ;;  %28486 = vmatprep.subr.bf16.mxu0 %v35302_v4  ;;  %v16764_v29 = vsel %vm2867_vm2, %v35304_v60, 0.0  ;;  %v35311_v40 = vpack.c.bf16 %v17002_v8, %v16995_v56  ;;  %v16853_v31 = vand.u32 4294901760, %v16801_v18 }
0x1eca   : > { %16765 = vadd.xlane.f32.xlu1 %v16764_v29  ;;  %28488 = vmatpush3.bf16.msra.mxu0 %v35302_v4 }
0x1ecb   : > { %v35314_v0 = vpop.eup %30066  ;;  %v17004_v44 = vsub.f32 %v17002_v8, %v17003_v20  ;;  %v35316_v55 = vpack.c.bf16 %v17003_v20, %v16996_v10  ;;  %v17023_v13 = vsub.f32 %v16801_v18, %v16853_v31 }
0x1ecc   : > { %v16767_v3 = vsel %vm2867_vm2, %v35314_v0, 0.0 }
0x1ecd   : > { %16768 = vadd.xlane.f32.xlu0 %v16767_v3  ;;  %v17005_v24 = vand.u32 4294901760, %v17004_v44  ;;  %v17024_v58 = vand.u32 4294901760, %v17023_v13 }
0x1ecf   : > { %v35320_v17 = vpop.eup %30068  ;;  %v35322_v15 = vpack.c.bf16 %v17005_v24, %v16998_v63  ;;  %v17025_v21 = vsub.f32 %v17023_v13, %v17024_v58 }
0x1ed0   : > { %v16773_v27 = vsel %vm2867_vm2, %v35320_v17, 0.0 }
0x1ed1   : > { %16774 = vadd.xlane.f32.xlu0 %v16773_v27  ;;  %v17026_v3 = vand.u32 4294901760, %v17025_v21  ;;  %v36976_v27 = vld [vmem:[#allocation27_spill] sm:$0xff] }
0x1ee7   : > { %16804 = vrot.lane.b32.xlu0 %v36975_v53, %s30170_s29 }
0x1eeb   : > { %17694 = vrot.lane.b32.xlu0 %v33691_v36, %s30171_s30 }
0x1eed   : > { %v16724_v41 = vpop.xlane.xlu1 %16723 }
0x1eee   : > { %v16734_v52 = vsub.f32 %v35270_v42, %v16724_v41 }
0x1eef   : > { %17698 = vrot.lane.b32.xlu0 %v33703_v35, %s30171_s30 }
0x1ef0   : > { %v16748_v51 = vmul.f32 1.442695, %v16734_v52 }
0x1ef1   : > { %v16797_v32 = vpop.permute.xlu1 %16796 }
0x1ef2   : > { %30070 = vpow2.f32 %v16748_v51  ;;  %v16847_v26 = vand.u32 4294901760, %v16797_v32 }
0x1ef3   : > { %17702 = vrot.lane.b32.xlu0 %v33715_v43, %s30171_s30 }
0x1ef4   : > { %v17009_v22 = vsub.f32 %v16797_v32, %v16847_v26 }
0x1ef5   : > { %v16799_v59 = vpop.permute.xlu1 %16798 }
0x1ef6   : > { %v17010_v57 = vand.u32 4294901760, %v17009_v22  ;;  %v16850_v46 = vand.u32 4294901760, %v16799_v59 }
0x1ef7   : > { %17706 = vrot.lane.b32.xlu0 %v36975_v53, %s30171_s30 }
0x1ef8   : > { %v35337_v42 = vpack.c.bf16 %v16850_v46, %v16847_v26  ;;  %v17016_v2 = vsub.f32 %v16799_v59, %v16850_v46  ;;  %v17011_v50 = vsub.f32 %v17009_v22, %v17010_v57 }
0x1ef9   : > { %v16803_v47 = vpop.permute.xlu1 %16802 }
0x1efa   : > { %v17017_v12 = vand.u32 4294901760, %v17016_v2  ;;  %v16856_v56 = vand.u32 4294901760, %v16803_v47  ;;  %28490 = vmatprep.subr.bf16.mxu0 %v35337_v42  ;;  %v35340_v45 = vpack.c.bf16 %v17016_v2, %v17009_v22  ;;  %v17012_v8 = vand.u32 4294901760, %v17011_v50 }
0x1efb   : > { %17678 = vrot.lane.b32.xlu0 %v33691_v36, %s30172_s9  ;;  %28492 = vmatpush3.bf16.msra.mxu0 %v35337_v42 }
0x1efc   : > { %v35345_v25 = vpop.eup %30070  ;;  %v17018_v14 = vsub.f32 %v17016_v2, %v17017_v12  ;;  %v35347_v23 = vpack.c.bf16 %v16856_v56, %v16853_v31  ;;  %v17030_v48 = vsub.f32 %v16803_v47, %v16856_v56  ;;  %v35349_v30 = vpack.c.bf16 %v17017_v12, %v17010_v57 }
0x1efd   : > { %v16770_v10 = vsel %vm2867_vm2, %v35345_v25, 0.0 }
0x1efe   : > { %v17031_v37 = vand.u32 4294901760, %v17030_v48  ;;  %16771 = vadd.xlane.f32.xlu1 %v16770_v10  ;;  %28494 = vmatprep.subr.bf16.mxu0 %v35347_v23  ;;  %v17019_v7 = vand.u32 4294901760, %v17018_v14  ;;  %v35354_v33 = vpack.c.bf16 %v17030_v48, %v17023_v13 }
0x1eff   : > { %17682 = vrot.lane.b32.xlu0 %v33703_v35, %s30172_s9  ;;  %28496 = vmatpush3.bf16.msra.mxu0 %v35347_v23 }
0x1f00   : > { %v17032_v20 = vsub.f32 %v17030_v48, %v17031_v37  ;;  %v35359_v29 = vpack.c.bf16 %v17019_v7, %v17012_v8  ;;  %v35361_v44 = vpack.c.bf16 %v17031_v37, %v17024_v58 }
0x1f02   : > { %v17033_v63 = vand.u32 4294901760, %v17032_v20 }
0x1f03   : > { %17686 = vrot.lane.b32.xlu0 %v33715_v43, %s30172_s9 }
0x1f04   : > { %v35365_v24 = vpack.c.bf16 %v17033_v63, %v17026_v3 }
0x1f07   : > { %17690 = vrot.lane.b32.xlu0 %v36975_v53, %s30172_s9 }
0x1f0f   : > { %16806 = vrot.lane.b32.xlu1 %v36976_v27, %s30170_s29 }
0x1f13   : > { %17696 = vrot.lane.b32.xlu1 %v33689_v54, %s30171_s30 }
0x1f17   : > { %17700 = vrot.lane.b32.xlu1 %v33699_v6, %s30171_s30 }
0x1f1b   : > { %17704 = vrot.lane.b32.xlu1 %v33712_v5, %s30171_s30 }
0x1f1f   : > { %17708 = vrot.lane.b32.xlu1 %v36976_v27, %s30171_s30 }
0x1f23   : > { %17680 = vrot.lane.b32.xlu1 %v33689_v54, %s30172_s9 }
0x1f27   : > { %17684 = vrot.lane.b32.xlu1 %v33699_v6, %s30172_s9 }
0x1f2b   : > { %17688 = vrot.lane.b32.xlu1 %v33712_v5, %s30172_s9 }
0x1f2f   : > { %17692 = vrot.lane.b32.xlu1 %v36976_v27, %s30172_s9  ;;  %s37016_s9 = smov 24  }
0x1f4d   : > { %v16757_v59 = vpop.xlane.xlu0 %16756 }
0x1f4e   : > { %v16754_v41 = vpop.xlane.xlu1 %16753 }
0x1f4f   : > { %30072 = vrcp.f32 %v16754_v41 }
0x1f50   : > { %30074 = vrcp.f32 %v16757_v59 }
0x1f52   : > { %v16760_v57 = vpop.xlane.xlu1 %16759 }
0x1f53   : > { %30076 = vrcp.f32 %v16760_v57 }
0x1f56   : > { %v16763_v46 = vpop.xlane.xlu0 %16762 }
0x1f57   : > { %30078 = vrcp.f32 %v16763_v46 }
0x1f59   : > { %v30073_v18 = vpop.eup %30072 }
0x1f5a   : > { %v16777_v52 = vmul.f32 %v30073_v18, %v35290_v1  ;;  %v16766_v1 = vpop.xlane.xlu1 %16765  ;;  %v16769_v2 = vpop.xlane.xlu0 %16768 }
0x1f5b   : > { %30080 = vrcp.f32 %v16766_v1  ;;  %v30075_v47 = vpop.eup %30074 }
0x1f5c   : > { %v16817_v51 = vsel %vm2867_vm2, %v16777_v52, 0  ;;  %30082 = vrcp.f32 %v16769_v2  ;;  %v16779_v56 = vmul.f32 %v30075_v47, %v35288_v34 }
0x1f5d   : > { %v35389_v31 = vand.u32 4294901760, %v16817_v51  ;;  %v30077_v50 = vpop.eup %30076 }
0x1f5e   : > { %v16775_v58 = vpop.xlane.xlu0 %16774  ;;  %v16781_v14 = vmul.f32 %v30077_v50, %v35296_v11  ;;  %v16820_v37 = vsel %vm2867_vm2, %v16779_v56, 0 }
0x1f5f   : > { %v35392_v32 = vsub.f32 %v16817_v51, %v35389_v31  ;;  %30084 = vrcp.f32 %v16775_v58  ;;  %v35404_v3 = vand.u32 4294901760, %v16820_v37 }
0x1f60   : > { %v16823_v8 = vsel %vm2867_vm2, %v16781_v14, 0 }
0x1f61   : > { %v36728_v26 = vand.u32 4294901760, %v35392_v32  ;;  %v30079_v12 = vpop.eup %30078  ;;  %v35406_v41 = vand.u32 4294901760, %v16823_v8  ;;  %v35414_v51 = vsub.f32 %v16820_v37, %v35404_v3 }
0x1f62   : > { %v16805_v48 = vpop.permute.xlu0 %16804  ;;  %v16783_v10 = vmul.f32 %v30079_v12, %v35300_v19 }
0x1f63   : > { %v16916_v22 = vsub.f32 %v35392_v32, %v36728_v26  ;;  %v36725_v47 = vand.u32 4294901760, %v35414_v51 }
0x1f64   : > { %v16826_v34 = vsel %vm2867_vm2, %v16783_v10, 0 }
0x1f65   : > { %v16917_v13 = vand.u32 4294901760, %v16916_v22  ;;  %v30081_v21 = vpop.eup %30080  ;;  %v35411_v52 = vand.u32 4294901760, %v16826_v34  ;;  %v16859_v22 = vand.u32 4294901760, %v16805_v48 }
0x1f66   : > { %v16785_v7 = vmul.f32 %v30081_v21, %v35304_v60  ;;  %v30083_v20 = vpop.eup %30082  ;;  %v17695_v63 = vpop.permute.xlu0 %17694  ;;  %v35417_v60 = vsub.f32 %v16823_v8, %v35406_v41 }
0x1f67   : > { %26269 = vmatprep.mubr.f32.mxu0 %v16917_v13  ;;  %v16787_v11 = vmul.f32 %v30083_v20, %v35314_v0  ;;  %v35424_v1 = vsub.f32 %v16826_v34, %v35411_v52  ;;  %v35426_v2 = vsub.f32 %v16805_v48, %v16859_v22  ;;  %v35429_v58 = vsel %vm1996_vm1, %v17695_v63, 0 }
0x1f68   : > { %v16829_v18 = vsel %vm2867_vm2, %v16785_v7, 0  ;;  %v36726_v50 = vand.u32 4294901760, %v35417_v60  ;;  %v16926_v20 = vsub.f32 %v35414_v51, %v36725_v47 }
0x1f69   : > { %v30085_v19 = vpop.eup %30084  ;;  %v35419_v13 = vand.u32 4294901760, %v16829_v18  ;;  %v16832_v46 = vsel %vm2867_vm2, %v16787_v11, 0  ;;  %v36729_v10 = vand.u32 4294901760, %v35424_v1  ;;  %v36730_v37 = vand.u32 4294901760, %v35426_v2 }
0x1f6a   : > { %v17699_v59 = vpop.permute.xlu0 %17698  ;;  %v16791_v0 = vmul.f32 %v30085_v19, %v35320_v17  ;;  %v35436_v56 = vand.u32 4294901760, %v16832_v46  ;;  %v36727_v17 = vand.u32 4294901760, %v35429_v58  ;;  %v16936_v63 = vsub.f32 %v35417_v60, %v36726_v50 }
0x1f6b   : > { %v35434_v12 = vsub.f32 %v16829_v18, %v35419_v13  ;;  %v35443_v8 = vsel %vm1996_vm1, %v17699_v59, 0  ;;  %v16927_v50 = vand.u32 4294901760, %v16926_v20  ;;  %v17039_v26 = vsub.f32 %v35426_v2, %v36730_v37 }
0x1f6c   : > { %v16838_v48 = vsel %vm2867_vm2, %v16791_v0, 0  ;;  %v35457_v19 = vsub.f32 %v16832_v46, %v35436_v56  ;;  %v35464_v0 = vsub.f32 %v35429_v58, %v36727_v17  ;;  %v16946_v46 = vsub.f32 %v35424_v1, %v36729_v10 }
0x1f6d   : > { %v36731_v18 = vand.u32 4294901760, %v35434_v12  ;;  %v17040_v38 = vand.u32 4294901760, %v17039_v26 }
0x1f6e   : > { %v17703_v7 = vpop.permute.xlu0 %17702 }
0x1f6f   : > { %v16956_v47 = vsub.f32 %v35434_v12, %v36731_v18 }
0x1f8b   : > { %v16772_v57 = vpop.xlane.xlu1 %16771 }
0x1f8c   : > { %30086 = vrcp.f32 %v16772_v57  ;;  %v35459_v57 = vand.u32 4294901760, %v16838_v48 }
0x1f8f   : > { %v16807_v14 = vpop.permute.xlu1 %16806 }
0x1f90   : > { %v16862_v21 = vand.u32 4294901760, %v16807_v14 }
0x1f92   : > { %v35451_v34 = vpack.c.bf16 %v16862_v21, %v16859_v22  ;;  %v35453_v11 = vsub.f32 %v16807_v14, %v16862_v21  ;;  %v35486_v14 = vsel %vm1996_vm1, %v17703_v7, 0  ;;  %v17707_v21 = vpop.permute.xlu0 %17706 }
0x1f93   : > { %v17697_v59 = vpop.permute.xlu1 %17696 }
0x1f94   : > { %v35468_v22 = vsel %vm1996_vm1, %v17697_v59, 0  ;;  %28498 = vmatprep.subr.bf16.mxu0 %v35451_v34  ;;  %v16937_v59 = vand.u32 4294901760, %v16936_v63  ;;  %v35495_v63 = vsub.f32 %v16838_v48, %v35459_v57  ;;  %v36978_v18 = vand.u32 4294901760, %v35453_v11 }
0x1f95   : > { %28500 = vmatpush3.bf16.msra.mxu0 %v35451_v34  ;;  %v36977_v39 = vand.u32 4294901760, %v35468_v22 }
0x1f96   : > { %v30087_v17 = vpop.eup %30086  ;;  %28502 = vmatprep.subr.bf16.mxu0 %v35322_v15  ;;  %v17046_v10 = vsub.f32 %v35453_v11, %v36978_v18 }
0x1f97   : > { %v16789_v20 = vmul.f32 %v30087_v17, %v35345_v25  ;;  %v35492_v9 = vsub.f32 %v35468_v22, %v36977_v39  ;;  %v17701_v37 = vpop.permute.xlu1 %17700  ;;  %v16947_v25 = vand.u32 4294901760, %v16946_v46  ;;  %v36979_v17 = vand.u32 4294901760, %v35443_v8 }
0x1f98   : > { %v35502_v7 = vsel %vm1996_vm1, %v17701_v37, 0  ;;  %26270 = vmatmul.mubr.f32.vlgmr.msra.gmra.mrb[72].mxu0 %v16927_v50  ;;  %v35515_v37 = vsel %vm1996_vm1, %v17707_v21, 0  ;;  %v36980_v50 = vand.u32 4294901760, %v35457_v19  ;;  %v36981_v21 = vand.u32 4294901760, %v35464_v0 }
0x1f99   : > { %v35507_v39 = vsub.f32 %v35443_v8, %v36979_v17  ;;  %v36734_v49 = vand.u32 4294901760, %v35492_v9  ;;  %v36733_v48 = vand.u32 4294901760, %v35502_v7  ;;  %26272 = vmatprep.mubr.f32.mxu0 %v16937_v59  ;;  %28504 = vmatpush3.bf16.msra.mxu0 %v35322_v15  ;;  %v16835_v16 = vsel %vm2867_vm2, %v16789_v20, 0 }
0x1f9a   : > { %28506 = vmatprep.subr.bf16.mxu0 %v35359_v29  ;;  %v16966_v46 = vsub.f32 %v35457_v19, %v36980_v50  ;;  %v35521_v17 = vand.u32 4294901760, %v16835_v16  ;;  %v16957_v20 = vand.u32 4294901760, %v16956_v47  ;;  %v17047_v50 = vand.u32 4294901760, %v17046_v10 }
0x1f9b   : > { %v35526_v59 = vsub.f32 %v35502_v7, %v36733_v48  ;;  %v17705_v15 = vpop.permute.xlu1 %17704  ;;  %v35533_v27 = vpack.c.bf16 %v36734_v49, %v36981_v21  ;;  %v36737_v21 = vand.u32 4294901760, %v35507_v39  ;;  %v36984_v28 = vand.u32 4294901760, %v35515_v37 }
0x1f9c   : > { %v35536_v61 = vsel %vm1996_vm1, %v17705_v15, 0  ;;  %26273 = vmatmul.mubr.f32.gmra.mrb[74].mxu0 %v16947_v25  ;;  %v35539_v62 = vsub.f32 %v16835_v16, %v35521_v17  ;;  %v36982_v15 = vand.u32 4294901760, %v35486_v14  ;;  %v16967_v16 = vand.u32 4294901760, %v16966_v46 }
0x1f9d   : > { %v36738_v47 = vand.u32 4294901760, %v35526_v59  ;;  %v36735_v18 = vand.u32 4294901760, %v35536_v61  ;;  %26275 = vmatprep.mubr.f32.mxu0 %v16957_v20  ;;  %28508 = vmatpush3.bf16.msra.mxu0 %v35359_v29  ;;  %v36983_v29 = vand.u32 4294901760, %v35495_v63  ;;  %v35576_v53 = vsub.f32 %v35515_v37, %v36984_v28 }
0x1f9e   : > { %v35549_v25 = vsub.f32 %v35486_v14, %v36982_v15  ;;  %28510 = vmatprep.subr.bf16.mxu0 %v35365_v24  ;;  %v16975_v10 = vand.u32 4294901760, %v35539_v62  ;;  %v28513_v15 = vpack.c.bf16 %v17047_v50, %v17040_v38 }
0x1f9f   : > { %v35556_v49 = vsub.f32 %v35536_v61, %v36735_v18  ;;  %v17709_v20 = vpop.permute.xlu1 %17708  ;;  %v16986_v26 = vsub.f32 %v35495_v63, %v36983_v29  ;;  %v35571_v18 = vpack.c.bf16 %v36738_v47, %v36737_v21  ;;  %v17940_v47 = vand.u32 4294901760, %v35576_v53 }
0x1fa0   : > { %v35562_v48 = vsel %vm1996_vm1, %v17709_v20, 0  ;;  %26276 = vmatmul.mubr.f32.gmra.mrb[76].mxu0 %v16967_v16  ;;  %v16976_v46 = vsub.f32 %v35539_v62, %v16975_v10  ;;  %v17926_v38 = vand.u32 4294901760, %v35549_v25 }
0x1fa1   : > { %v17933_v20 = vand.u32 4294901760, %v35556_v49  ;;  %v17764_v16 = vand.u32 4294901760, %v35562_v48  ;;  %28512 = vmatpush3.bf16.msra.mxu0 %v35365_v24  ;;  %v16987_v21 = vand.u32 4294901760, %v16986_v26 }
0x1fa2   : > { %28514 = vmatprep.subr.bf16.mxu0 %v28513_v15  ;;  %v16977_v50 = vand.u32 4294901760, %v16976_v46 }
0x1fa3   : > { %v35585_v29 = vsub.f32 %v35562_v48, %v17764_v16  ;;  %v35591_v28 = vpack.c.bf16 %v17933_v20, %v17926_v38 }
0x1fa4   : > { %26278 = vmatprep.mubr.f32.mxu0 %v16977_v50  ;;  %v37000_v50 = vand.u32 4294901760, %v35492_v9 }
0x1fa5   : > { %v17947_v24 = vand.u32 4294901760, %v35585_v29  ;;  %26279 = vmatmul.mubr.f32.gmra.mrb[78].mxu0 %v16987_v21  ;;  %v28529_v21 = vpack.c.bf16 %v35453_v11, %v35426_v2 }
0x1fa6   : > { %28516 = vmatpush3.bf16.msra.mxu0 %v28513_v15  ;;  %26297 = vmatprep.mubr.f32.mxu0 %v35389_v31  ;;  %v36988_v15 = vand.u32 4294901760, %v35424_v1 }
0x1fa7   : > { %28518 = vmatprep.subr.bf16.mxu0 %v35311_v40  ;;  %v35601_v26 = vpack.c.bf16 %v17947_v24, %v17940_v47 }
0x1fa9   : > { %26298 = vmatmul.mubr.f32.vlgmr.msra.gmra.mrb[72].mxu0 %v35404_v3 }
0x1faa   : > { %28520 = vmatpush3.bf16.msra.mxu0 %v35311_v40  ;;  %26300 = vmatprep.mubr.f32.mxu0 %v35406_v41  ;;  %v36985_v40 = vand.u32 4294901760, %v35392_v32 }
0x1fab   : > { %28522 = vmatprep.subr.bf16.mxu0 %v35340_v45 }
0x1fad   : > { %26301 = vmatmul.mubr.f32.gmra.mrb[74].mxu0 %v35411_v52 }
0x1fae   : > { %28524 = vmatpush3.bf16.msra.mxu0 %v35340_v45  ;;  %26303 = vmatprep.mubr.f32.mxu0 %v35419_v13  ;;  %v36986_v45 = vand.u32 4294901760, %v35414_v51 }
0x1faf   : > { %28526 = vmatprep.subr.bf16.mxu0 %v35354_v33 }
0x1fb1   : > { %26304 = vmatmul.mubr.f32.gmra.mrb[76].mxu0 %v35436_v56 }
0x1fb2   : > { %28528 = vmatpush3.bf16.msra.mxu0 %v35354_v33  ;;  %26306 = vmatprep.mubr.f32.mxu0 %v35521_v17  ;;  %v36987_v33 = vand.u32 4294901760, %v35417_v60 }
0x1fb3   : > { %28530 = vmatprep.subr.bf16.mxu0 %v28529_v21 }
0x1fb5   : > { %26307 = vmatmul.mubr.f32.gmra.mrb[78].mxu0 %v35459_v57 }
0x1fb6   : > { %28532 = vmatpush3.bf16.msra.mxu0 %v28529_v21  ;;  %26325 = vmatprep.mubr.f32.mxu0 %v35392_v32  ;;  %v36989_v32 = vand.u32 4294901760, %v35434_v12  ;;  %v17906_v21 = vsub.f32 %v35492_v9, %v37000_v50 }
0x1fb7   : > { %28534 = vmatprep.subr.bf16.mxu0 %v35302_v4 }
0x1fb9   : > { %26326 = vmatmul.mubr.f32.vlgmr.msra.gmra.mrb[72].mxu0 %v35414_v51  ;;  %v36990_v51 = vand.u32 4294901760, %v35457_v19 }
0x1fba   : > { %28536 = vmatpush3.bf16.msra.mxu0 %v35302_v4  ;;  %26328 = vmatprep.mubr.f32.mxu0 %v35417_v60  ;;  %v36992_v60 = vand.u32 4294901760, %v35453_v11  ;;  %v36997_v11 = vand.u32 4294901760, %v35502_v7 }
0x1fbb   : > { %28538 = vmatprep.subr.bf16.mxu0 %v35337_v42 }
0x1fbd   : > { %26329 = vmatmul.mubr.f32.gmra.mrb[74].mxu0 %v35424_v1  ;;  %v36994_v1 = vand.u32 4294901760, %v35429_v58 }
0x1fbe   : > { %28540 = vmatpush3.bf16.msra.mxu0 %v35337_v42  ;;  %26331 = vmatprep.mubr.f32.mxu0 %v35434_v12  ;;  %v36996_v12 = vand.u32 4294901760, %v35443_v8  ;;  %v36998_v8 = vand.u32 4294901760, %v35486_v14 }
0x1fbf   : > { %28542 = vmatprep.subr.bf16.mxu0 %v35347_v23 }
0x1fc1   : > { %26332 = vmatmul.mubr.f32.gmra.mrb[76].mxu0 %v35457_v19 }
0x1fc2   : > { %28544 = vmatpush3.bf16.msra.mxu0 %v35347_v23  ;;  %26334 = vmatprep.mubr.f32.mxu0 %v35539_v62  ;;  %v17679_v62 = vpop.permute.xlu0 %17678 }
0x1fc3   : > { %28546 = vmatprep.subr.bf16.mxu0 %v35451_v34 }
0x1fc5   : > { %26335 = vmatmul.mubr.f32.gmra.mrb[78].mxu0 %v35495_v63 }
0x1fc6   : > { %28548 = vmatpush3.bf16.msra.mxu0 %v35451_v34  ;;  %26353 = vmatprep.mubr.f32.mxu0 %v36985_v40  ;;  %v37001_v40 = vand.u32 4294901760, %v35515_v37 }
0x1fc7   : > { %28550 = vmatprep.subr.bf16.mxu0 %v35316_v55 }
0x1fc9   : > { %26354 = vmatmul.mubr.f32.vlgmr.msra.gmra.mrb[72].mxu0 %v36986_v45  ;;  %v35731_v45 = vpack.c.bf16 %v17764_v16, %v37001_v40 }
0x1fca   : > { %28552 = vmatpush3.bf16.msra.mxu0 %v35316_v55  ;;  %26356 = vmatprep.mubr.f32.mxu0 %v36987_v33  ;;  %v36991_v55 = vand.u32 4294901760, %v35426_v2 }
0x1fcb   : > { %28554 = vmatprep.subr.bf16.mxu0 %v35349_v30 }
0x1fcc   : > { %v28561_v46 = vpack.c.bf16 %v36992_v60, %v36991_v55 }
0x1fcd   : > { %26357 = vmatmul.mubr.f32.gmra.mrb[74].mxu0 %v36988_v15  ;;  %v37002_v15 = vand.u32 4294901760, %v35464_v0 }
0x1fce   : > { %28556 = vmatpush3.bf16.msra.mxu0 %v35349_v30  ;;  %26359 = vmatprep.mubr.f32.mxu0 %v36989_v32  ;;  %v36993_v30 = vand.u32 4294901760, %v35495_v63 }
0x1fcf   : > { %28558 = vmatprep.subr.bf16.mxu0 %v35361_v44  ;;  %v17899_v32 = vsub.f32 %v35464_v0, %v37002_v15 }
0x1fd1   : > { %26360 = vmatmul.mubr.f32.gmra.mrb[76].mxu0 %v36990_v51 }
0x1fd2   : > { %28560 = vmatpush3.bf16.msra.mxu0 %v35361_v44  ;;  %26362 = vmatprep.mubr.f32.mxu0 %v16975_v10  ;;  %v17710_v44 = vsel %vm1996_vm1, %v17679_v62, 0 }
0x1fd3   : > { %28562 = vmatprep.subr.bf16.mxu0 %v28561_v46 }
0x1fd5   : > { %26363 = vmatmul.mubr.f32.gmra.mrb[78].mxu0 %v36993_v30  ;;  %v17907_v30 = vand.u32 4294901760, %v17906_v21 }
0x1fd6   : > { %28564 = vmatpush3.bf16.msra.mxu0 %v28561_v46  ;;  %26381 = vmatprep.mubr.f32.mxu0 %v35389_v31 }
0x1fd7   : > { %28566 = vmatprep.subr.bf16.mxu0 %v35302_v4 }
0x1fd9   : > { %26382 = vmatmul.mubr.f32.vlgmr.msra.gmra.mrb[72].mxu0 %v35404_v3 }
0x1fda   : > { %28568 = vmatpush3.bf16.msra.mxu0 %v35302_v4  ;;  %26384 = vmatprep.mubr.f32.mxu0 %v35406_v41  ;;  %v35674_v4 = vand.u32 4294901760, %v17710_v44 }
0x1fdb   : > { %28570 = vmatprep.subr.bf16.mxu0 %v35337_v42 }
0x1fdd   : > { %26385 = vmatmul.mubr.f32.gmra.mrb[74].mxu0 %v35411_v52 }
0x1fde   : > { %28572 = vmatpush3.bf16.msra.mxu0 %v35337_v42  ;;  %26387 = vmatprep.mubr.f32.mxu0 %v35419_v13  ;;  %v36995_v42 = vand.u32 4294901760, %v35468_v22 }
0x1fdf   : > { %28574 = vmatprep.subr.bf16.mxu0 %v35347_v23 }
0x1fe0   : > { %v35680_v2 = vpack.c.bf16 %v36995_v42, %v36994_v1  ;;  %v17900_v42 = vand.u32 4294901760, %v17899_v32 }
0x1fe1   : > { %26388 = vmatmul.mubr.f32.gmra.mrb[76].mxu0 %v35436_v56 }
0x1fe2   : > { %28576 = vmatpush3.bf16.msra.mxu0 %v35347_v23  ;;  %26390 = vmatprep.mubr.f32.mxu0 %v35521_v17  ;;  %v35687_v23 = vsub.f32 %v17710_v44, %v35674_v4 }
0x1fe3   : > { %28578 = vmatprep.subr.bf16.mxu0 %v35451_v34 }
0x1fe4   : > { %v17817_v58 = vand.u32 4294901760, %v35687_v23 }
0x1fe5   : > { %26391 = vmatmul.mubr.f32.gmra.mrb[78].mxu0 %v35459_v57 }
0x1fe6   : > { %28580 = vmatpush3.bf16.msra.mxu0 %v35451_v34  ;;  %26409 = vmatprep.mubr.f32.mxu0 %v35389_v31  ;;  %v35697_v34 = vpack.c.bf16 %v36997_v11, %v36996_v12  ;;  %v17681_v31 = vpop.permute.xlu1 %17680 }
0x1fe7   : > { %28582 = vmatprep.subr.bf16.mxu0 %v35680_v2 }
0x1fe9   : > { %26410 = vmatmul.mubr.f32.vlgmr.msra.gmra.mrb[72].mxu0 %v35404_v3  ;;  %v17818_v3 = vsub.f32 %v35687_v23, %v17817_v58 }
0x1fea   : > { %26412 = vmatprep.mubr.f32.mxu0 %v35406_v41  ;;  %v17683_v41 = vpop.permute.xlu0 %17682  ;;  %v17685_v22 = vpop.permute.xlu1 %17684 }
0x1feb   : > { %v17714_v7 = vsel %vm1996_vm1, %v17683_v41, 0  ;;  %v37003_v41 = vand.u32 4294901760, %v35526_v59 }
0x1fec   : > { %v35720_v10 = vand.u32 4294901760, %v17714_v7 }
0x1fed   : > { %26413 = vmatmul.mubr.f32.gmra.mrb[74].mxu0 %v35411_v52  ;;  %v17819_v52 = vand.u32 4294901760, %v17818_v3 }
0x1fee   : > { %26415 = vmatprep.mubr.f32.mxu0 %v35419_v13  ;;  %v36999_v13 = vand.u32 4294901760, %v35536_v61  ;;  %v17687_v63 = vpop.permute.xlu0 %17686  ;;  %v17716_v61 = vsel %vm1996_vm1, %v17685_v22, 0  ;;  %v35744_v37 = vsub.f32 %v17714_v7, %v35720_v10 }
0x1fef   : > { %28584 = vmatpush3.bf16.xpose.msra.mxu0 %v35680_v2  ;;  %v17718_v14 = vsel %vm1996_vm1, %v17687_v63, 0  ;;  %v35740_v55 = vand.u32 4294901760, %v17716_v61 }
0x1ff0   : > { %28586 = vmatprep.subr.bf16.mxu0 %v35697_v34  ;;  %v35712_v19 = vpack.c.bf16 %v36999_v13, %v36998_v8  ;;  %v35746_v48 = vand.u32 4294901760, %v17718_v14  ;;  %v17837_v12 = vand.u32 4294901760, %v35744_v37  ;;  %v28597_v8 = vpack.c.bf16 %v17907_v30, %v17900_v42 }
0x1ff1   : > { %26416 = vmatmul.mubr.f32.gmra.mrb[76].mxu0 %v35436_v56  ;;  %v17712_v56 = vsel %vm1996_vm1, %v17681_v31, 0  ;;  %v35752_v44 = vsub.f32 %v17716_v61, %v35740_v55  ;;  %v37004_v13 = vand.u32 4294901760, %v35507_v39  ;;  %v17934_v42 = vsub.f32 %v35556_v49, %v17933_v20 }
0x1ff2   : > { %26418 = vmatprep.mubr.f32.mxu0 %v35521_v17  ;;  %v35718_v17 = vand.u32 4294901760, %v17712_v56  ;;  %v17691_v33 = vpop.permute.xlu0 %17690  ;;  %v35758_v11 = vsub.f32 %v17718_v14, %v35746_v48  ;;  %v17838_v50 = vsub.f32 %v35744_v37, %v17837_v12 }
0x1ff3   : > { %v17722_v60 = vsel %vm1996_vm1, %v17691_v33, 0  ;;  %v17913_v22 = vsub.f32 %v35507_v39, %v37004_v13 }
0x1ff4   : > { %v35738_v51 = vsub.f32 %v17712_v56, %v35718_v17  ;;  %v35760_v31 = vand.u32 4294901760, %v17722_v60  ;;  %v17847_v56 = vand.u32 4294901760, %v35752_v44  ;;  %v17857_v61 = vand.u32 4294901760, %v35758_v11 }
0x1ff5   : > { %26419 = vmatmul.mubr.f32.gmra.mrb[78].mxu0 %v35459_v57  ;;  %v17689_v57 = vpop.permute.xlu1 %17688  ;;  %v17914_v40 = vand.u32 4294901760, %v17913_v22 }
0x1ff6   : > { %26437 = vmatprep.mubr.f32.mxu0 %v17819_v52  ;;  %v17720_v16 = vsel %vm1996_vm1, %v17689_v57, 0  ;;  %v17827_v62 = vand.u32 4294901760, %v35738_v51  ;;  %v17920_v52 = vsub.f32 %v35526_v59, %v37003_v41  ;;  %v35781_v14 = vsub.f32 %v17722_v60, %v35760_v31 }
0x1ff7   : > { %28588 = vmatpush3.bf16.xpose.msra.mxu0 %v35697_v34  ;;  %v35754_v1 = vand.u32 4294901760, %v17720_v16  ;;  %v17839_v60 = vand.u32 4294901760, %v17838_v50  ;;  %v17858_v30 = vsub.f32 %v35758_v11, %v17857_v61  ;;  %v17935_v50 = vand.u32 4294901760, %v17934_v42 }
0x1ff8   : > { %28590 = vmatprep.subr.bf16.mxu0 %v35712_v19  ;;  %v17828_v63 = vsub.f32 %v35738_v51, %v17827_v62  ;;  %v17921_v21 = vand.u32 4294901760, %v17920_v52 }
0x1ff9   : > { %v17693_v46 = vpop.permute.xlu1 %17692  ;;  %v35775_v7 = vsub.f32 %v17720_v16, %v35754_v1  ;;  %v17848_v16 = vsub.f32 %v35752_v44, %v17847_v56 }
0x1ffa   : > { %v17724_v3 = vsel %vm1996_vm1, %v17693_v46, 0  ;;  %v17829_v33 = vand.u32 4294901760, %v17828_v63  ;;  %v17877_v46 = vand.u32 4294901760, %v35781_v14  ;;  %v28601_v41 = vpack.c.bf16 %v17921_v21, %v17914_v40 }
0x1ffb   : > { %v35777_v57 = vand.u32 4294901760, %v17724_v3  ;;  %v17867_v15 = vand.u32 4294901760, %v35775_v7  ;;  %v17849_v13 = vand.u32 4294901760, %v17848_v16  ;;  %v17859_v63 = vand.u32 4294901760, %v17858_v30 }
0x1ffc   : > { %v17878_v20 = vsub.f32 %v35781_v14, %v17877_v46 }
0x1ffd   : > { %v35788_v32 = vsub.f32 %v17724_v3, %v35777_v57  ;;  %v17927_v3 = vsub.f32 %v35549_v25, %v17926_v38  ;;  %v17868_v22 = vsub.f32 %v35775_v7, %v17867_v15 }
0x1ffe   : > { %v17879_v40 = vand.u32 4294901760, %v17878_v20 }
0x1fff   : > { %28592 = vmatpush3.bf16.xpose.msra.mxu0 %v35712_v19  ;;  %v17887_v52 = vand.u32 4294901760, %v35788_v32  ;;  %v17928_v21 = vand.u32 4294901760, %v17927_v3 }
0x2000   : > { %28594 = vmatprep.subr.bf16.mxu0 %v35731_v45 }
0x2001   : > { %v17888_v38 = vsub.f32 %v35788_v32, %v17887_v52  ;;  %v28605_v16 = vpack.c.bf16 %v17935_v50, %v17928_v21 }
0x2003   : > { %v17889_v30 = vand.u32 4294901760, %v17888_v38 }
0x2007   : > { %28596 = vmatpush3.bf16.xpose.msra.mxu0 %v35731_v45 }
0x2008   : > { %28598 = vmatprep.subr.bf16.mxu0 %v28597_v8 }
0x200e   : > { %26438 = vmatmul.mubr.f32.vlgmr.msra.gmra.mrb[80].mxu0 %v17829_v33  ;;  %v17948_v33 = vsub.f32 %v35585_v29, %v17947_v24  ;;  %v28613_v24 = vpack.c.bf16 %v35492_v9, %v35464_v0  ;;  %v28621_v9 = vpack.c.bf16 %v35556_v49, %v35549_v25  ;;  %v28625_v0 = vpack.c.bf16 %v35585_v29, %v35576_v53 }
0x200f   : > { %26440 = vmatprep.mubr.f32.mxu0 %v17839_v60  ;;  %28600 = vmatpush3.bf16.xpose.msra.mxu0 %v28597_v8  ;;  %v17869_v8 = vand.u32 4294901760, %v17868_v22  ;;  %v17941_v60 = vsub.f32 %v35576_v53, %v17940_v47  ;;  %v28617_v47 = vpack.c.bf16 %v35526_v59, %v35507_v39 }
0x2010   : > { %28602 = vmatprep.subr.bf16.mxu0 %v28601_v41  ;;  %v17949_v42 = vand.u32 4294901760, %v17948_v33 }
0x2011   : > { %v17942_v3 = vand.u32 4294901760, %v17941_v60 }
0x2012   : > { %26441 = vmatmul.mubr.f32.gmra.mrb[82].mxu0 %v17849_v13 }
0x2013   : > { %26443 = vmatprep.mubr.f32.mxu0 %v17859_v63  ;;  %v28609_v13 = vpack.c.bf16 %v17949_v42, %v17942_v3 }
0x2016   : > { %26444 = vmatmul.mubr.f32.gmra.mrb[84].mxu0 %v17869_v8 }
0x2017   : > { %26446 = vmatprep.mubr.f32.mxu0 %v17879_v40  ;;  %28604 = vmatpush3.bf16.xpose.msra.mxu0 %v28601_v41 }
0x2018   : > { %28606 = vmatprep.subr.bf16.mxu0 %v28605_v16 }
0x201a   : > { %26447 = vmatmul.mubr.f32.gmra.mrb[86].mxu0 %v17889_v30 }
0x201b   : > { %26465 = vmatprep.mubr.f32.mxu0 %v35674_v4 }
0x201f   : > { %28608 = vmatpush3.bf16.xpose.msra.mxu0 %v28605_v16 }
0x2020   : > { %28610 = vmatprep.subr.bf16.mxu0 %v28609_v13 }
0x2027   : > { %28612 = vmatpush3.bf16.xpose.msra.mxu0 %v28609_v13 }
0x2028   : > { %28614 = vmatprep.subr.bf16.mxu0 %v28613_v24 }
0x202e   : > { %26466 = vmatmul.mubr.f32.vlgmr.msra.gmra.mrb[80].mxu0 %v35718_v17 }
0x202f   : > { %26468 = vmatprep.mubr.f32.mxu0 %v35720_v10  ;;  %28616 = vmatpush3.bf16.xpose.msra.mxu0 %v28613_v24 }
0x2030   : > { %28618 = vmatprep.subr.bf16.mxu0 %v28617_v47 }
0x2032   : > { %26469 = vmatmul.mubr.f32.gmra.mrb[82].mxu0 %v35740_v55 }
0x2033   : > { %26471 = vmatprep.mubr.f32.mxu0 %v35746_v48 }
0x2036   : > { %26472 = vmatmul.mubr.f32.gmra.mrb[84].mxu0 %v35754_v1 }
0x2037   : > { %26474 = vmatprep.mubr.f32.mxu0 %v35760_v31  ;;  %28620 = vmatpush3.bf16.xpose.msra.mxu0 %v28617_v47 }
0x2038   : > { %28622 = vmatprep.subr.bf16.mxu0 %v28621_v9 }
0x203a   : > { %26475 = vmatmul.mubr.f32.gmra.mrb[86].mxu0 %v35777_v57 }
0x203b   : > { %26493 = vmatprep.mubr.f32.mxu0 %v35687_v23 }
0x203f   : > { %28624 = vmatpush3.bf16.xpose.msra.mxu0 %v28621_v9 }
0x2040   : > { %28626 = vmatprep.subr.bf16.mxu0 %v28625_v0 }
0x2047   : > { %28628 = vmatpush3.bf16.xpose.msra.mxu0 %v28625_v0 }
0x2048   : > { %28630 = vmatprep.subr.bf16.mxu0 %v35680_v2 }
0x204e   : > { %26494 = vmatmul.mubr.f32.vlgmr.msra.gmra.mrb[80].mxu0 %v35738_v51 }
0x204f   : > { %26496 = vmatprep.mubr.f32.mxu0 %v35744_v37  ;;  %28632 = vmatpush3.bf16.xpose.msra.mxu0 %v35680_v2 }
0x2050   : > { %28634 = vmatprep.subr.bf16.mxu0 %v35697_v34 }
0x2052   : > { %26497 = vmatmul.mubr.f32.gmra.mrb[82].mxu0 %v35752_v44 }
0x2053   : > { %26499 = vmatprep.mubr.f32.mxu0 %v35758_v11 }
0x2056   : > { %26500 = vmatmul.mubr.f32.gmra.mrb[84].mxu0 %v35775_v7 }
0x2057   : > { %26502 = vmatprep.mubr.f32.mxu0 %v35781_v14  ;;  %28636 = vmatpush3.bf16.xpose.msra.mxu0 %v35697_v34 }
0x2058   : > { %28638 = vmatprep.subr.bf16.mxu0 %v35712_v19 }
0x205a   : > { %26503 = vmatmul.mubr.f32.gmra.mrb[86].mxu0 %v35788_v32 }
0x205b   : > { %26521 = vmatprep.mubr.f32.mxu0 %v17817_v58 }
0x205f   : > { %28640 = vmatpush3.bf16.xpose.msra.mxu0 %v35712_v19 }
0x2060   : > { %28642 = vmatprep.subr.bf16.mxu0 %v35731_v45 }
0x2067   : > { %28644 = vmatpush3.bf16.xpose.msra.mxu0 %v35731_v45 }
0x2068   : > { %28646 = vmatprep.subr.bf16.mxu0 %v35533_v27 }
0x206e   : > { %26522 = vmatmul.mubr.f32.vlgmr.msra.gmra.mrb[80].mxu0 %v17827_v62 }
0x206f   : > { %26524 = vmatprep.mubr.f32.mxu0 %v17837_v12  ;;  %28648 = vmatpush3.bf16.xpose.msra.mxu0 %v35533_v27 }
0x2070   : > { %28650 = vmatprep.subr.bf16.mxu0 %v35571_v18 }
0x2072   : > { %26525 = vmatmul.mubr.f32.gmra.mrb[82].mxu0 %v17847_v56 }
0x2073   : > { %26527 = vmatprep.mubr.f32.mxu0 %v17857_v61 }
0x2076   : > { %26528 = vmatmul.mubr.f32.gmra.mrb[84].mxu0 %v17867_v15 }
0x2077   : > { %26530 = vmatprep.mubr.f32.mxu0 %v17877_v46  ;;  %28652 = vmatpush3.bf16.xpose.msra.mxu0 %v35571_v18 }
0x2078   : > { %28654 = vmatprep.subr.bf16.mxu0 %v35591_v28 }
0x207a   : > { %26531 = vmatmul.mubr.f32.gmra.mrb[86].mxu0 %v17887_v52 }
0x207b   : > { %26549 = vmatprep.mubr.f32.mxu0 %v35674_v4 }
0x207f   : > { %28656 = vmatpush3.bf16.xpose.msra.mxu0 %v35591_v28 }
0x2080   : > { %28658 = vmatprep.subr.bf16.mxu0 %v35601_v26 }
0x2087   : > { %28660 = vmatpush3.bf16.xpose.msra.mxu0 %v35601_v26 }
0x2088   : > { %28662 = vmatprep.subr.bf16.mxu0 %v35680_v2 }
0x208e   : > { %26550 = vmatmul.mubr.f32.vlgmr.msra.gmra.mrb[80].mxu0 %v35718_v17 }
0x208f   : > { %26552 = vmatprep.mubr.f32.mxu0 %v35720_v10  ;;  %28664 = vmatpush3.bf16.xpose.msra.mxu0 %v35680_v2 }
0x2090   : > { %28666 = vmatprep.subr.bf16.mxu0 %v35697_v34 }
0x2092   : > { %26553 = vmatmul.mubr.f32.gmra.mrb[82].mxu0 %v35740_v55 }
0x2093   : > { %26555 = vmatprep.mubr.f32.mxu0 %v35746_v48 }
0x2096   : > { %26556 = vmatmul.mubr.f32.gmra.mrb[84].mxu0 %v35754_v1 }
0x2097   : > { %26558 = vmatprep.mubr.f32.mxu0 %v35760_v31  ;;  %28668 = vmatpush3.bf16.xpose.msra.mxu0 %v35697_v34 }
0x2098   : > { %28670 = vmatprep.subr.bf16.mxu0 %v35712_v19 }
0x209a   : > { %26559 = vmatmul.mubr.f32.gmra.mrb[86].mxu0 %v35777_v57 }
0x209b   : > { %26577 = vmatprep.mubr.f32.mxu0 %v35674_v4 }
0x209f   : > { %28672 = vmatpush3.bf16.xpose.msra.mxu0 %v35712_v19 }
0x20a0   : > { %28674 = vmatprep.subr.bf16.mxu0 %v35731_v45 }
0x20a7   : > { %28676 = vmatpush3.bf16.xpose.msra.mxu0 %v35731_v45 }
0x20ae   : > { %26578 = vmatmul.mubr.f32.vlgmr.msra.gmra.mrb[80].mxu0 %v35718_v17 }
0x20af   : > { %26580 = vmatprep.mubr.f32.mxu0 %v35720_v10 }
0x20b2   : > { %26581 = vmatmul.mubr.f32.gmra.mrb[82].mxu0 %v35740_v55 }
0x20b3   : > { %26583 = vmatprep.mubr.f32.mxu0 %v35746_v48 }
0x20b6   : > { %26584 = vmatmul.mubr.f32.gmra.mrb[84].mxu0 %v35754_v1 }
0x20b7   : > { %26586 = vmatprep.mubr.f32.mxu0 %v35760_v31 }
0x20ba   : > { %26587 = vmatmul.mubr.f32.gmra.mrb[86].mxu0 %v35777_v57 }
0x20bc   : > { %v35899_v49 = vpop.f32.mrb[72].mxu0 }
0x20bd   : > { %v35901_v53 = vpop.f32.mrb[73].mxu0 }
0x20c0   : > { %v35903_v27 = vpop.f32.mrb[74].mxu0 }
0x20c1   : > { %v35905_v39 = vpop.f32.mrb[75].mxu0 }
0x20c4   : > { %v35907_v18 = vpop.f32.mrb[76].mxu0 }
0x20c5   : > { %v35909_v59 = vpop.f32.mrb[77].mxu0 }
0x20c8   : > { %v35911_v25 = vpop.f32.mrb[78].mxu0 }
0x20c9   : > { %v35913_v29 = vpop.f32.mrb[79].mxu0 }
0x2181   : > { %v26579_v28 = vpop.f32.mrb[80].mxu0 }
0x2182   : > { %v18534_v26 = vpop.f32.mrb[81].mxu0  ;;  %v18583_v4 = vsel %vm2867_vm2, %v26579_v28, -inf }
0x2183   : > { %18584 = vmax.xlane.f32.xlu1 %v18583_v4  ;;  %v18580_v2 = vsel %vm2867_vm2, %v18534_v26, -inf }
0x2184   : > { %18581 = vmax.xlane.f32.xlu0 %v18580_v2 }
0x2185   : > { %v26582_v23 = vpop.f32.mrb[82].mxu0 }
0x2186   : > { %v18546_v58 = vpop.f32.mrb[83].mxu0  ;;  %v18589_v10 = vsel %vm2867_vm2, %v26582_v23, -inf }
0x2187   : > { %v18586_v34 = vsel %vm2867_vm2, %v18546_v58, -inf }
0x2188   : > { %18587 = vmax.xlane.f32.xlu0 %v18586_v34 }
0x2189   : > { %v26585_v19 = vpop.f32.mrb[84].mxu0 }
0x218a   : > { %v18558_v17 = vpop.f32.mrb[85].mxu0  ;;  %v18595_v37 = vsel %vm2867_vm2, %v26585_v19, -inf }
0x218b   : > { %v18592_v45 = vsel %vm2867_vm2, %v18558_v17, -inf }
0x218c   : > { %18590 = vmax.xlane.f32.xlu0 %v18589_v10  ;;  %18593 = vmax.xlane.f32.xlu1 %v18592_v45 }
0x218d   : > { %v26588_v51 = vpop.f32.mrb[86].mxu0 }
0x218e   : > { %v35920_v55 = vpop.f32.mrb[87].mxu0  ;;  %v18601_v48 = vsel %vm2867_vm2, %v26588_v51, -inf }
0x218f   : > { %v18598_v62 = vsel %vm2867_vm2, %v35920_v55, -inf }
0x2190   : > { %18596 = vmax.xlane.f32.xlu0 %v18595_v37  ;;  %v37006_v37 = vld [vmem:[#allocation6_spill] sm:$0xff] }
0x2194   : > { %18602 = vmax.xlane.f32.xlu0 %v18601_v48 }
0x219d   : > { %18668 = vrot.lane.b32.xlu1 %v33691_v36, %s30173_s10 }
0x21aa   : > { %18670 = vrot.lane.b32.xlu0 %v33689_v54, %s30173_s10 }
0x21ae   : > { %18676 = vrot.lane.b32.xlu0 %v33715_v43, %s30173_s10 }
0x21c1   : > { %18599 = vmax.xlane.f32.xlu1 %v18598_v62 }
0x21d2   : > { %18672 = vrot.lane.b32.xlu1 %v33703_v35, %s30173_s10 }
0x21d6   : > { %18674 = vrot.lane.b32.xlu1 %v33699_v6, %s30173_s10 }
0x21da   : > { %18678 = vrot.lane.b32.xlu1 %v33712_v5, %s30173_s10 }
0x2210   : > { %v18585_v36 = vpop.xlane.xlu1 %18584 }
0x2211   : > { %v18605_v44 = vsub.f32 %v26579_v28, %v18585_v36  ;;  %v18582_v1 = vpop.xlane.xlu0 %18581 }
0x2212   : > { %v18604_v54 = vsub.f32 %v18534_v26, %v18582_v1 }
0x2213   : > { %v18614_v12 = vmul.f32 1.442695, %v18605_v44 }
0x2214   : > { %v18612_v11 = vmul.f32 1.442695, %v18604_v54 }
0x2215   : > { %30088 = vpow2.f32 %v18614_v12  ;;  %v18588_v43 = vpop.xlane.xlu0 %18587 }
0x2216   : > { %30090 = vpow2.f32 %v18612_v11  ;;  %v18606_v31 = vsub.f32 %v18546_v58, %v18588_v43  ;;  %v37008_v11 = vld [vmem:[#allocation8_spill] sm:$0xff] }
0x2218   : > { %v18616_v56 = vmul.f32 1.442695, %v18606_v31 }
0x2219   : > { %v18591_v7 = vpop.xlane.xlu0 %18590  ;;  %v18594_v57 = vpop.xlane.xlu1 %18593 }
0x221a   : > { %30092 = vpow2.f32 %v18616_v56  ;;  %v18607_v35 = vsub.f32 %v26582_v23, %v18591_v7  ;;  %v18608_v61 = vsub.f32 %v18558_v17, %v18594_v57 }
0x221c   : > { %v18618_v6 = vmul.f32 1.442695, %v18607_v35  ;;  %v18620_v14 = vmul.f32 1.442695, %v18608_v61 }
0x221d   : > { %v18597_v15 = vpop.xlane.xlu0 %18596  ;;  %v18669_v5 = vpop.permute.xlu1 %18668 }
0x221e   : > { %30094 = vpow2.f32 %v18618_v6  ;;  %v18609_v32 = vsub.f32 %v26585_v19, %v18597_v15  ;;  %v18717_v46 = vand.u32 4294901760, %v18669_v5 }
0x221f   : > { %v35938_v41 = vpop.eup %30088  ;;  %30096 = vpow2.f32 %v18620_v14 }
0x2220   : > { %v35940_v52 = vpop.eup %30090  ;;  %v18622_v22 = vmul.f32 1.442695, %v18609_v32  ;;  %v18871_v63 = vsub.f32 %v18669_v5, %v18717_v46  ;;  %v18631_v20 = vsel %vm2867_vm2, %v35938_v41, 0.0  ;;  %v37009_v32 = vld [vmem:[#allocation10_spill] sm:$0xff] }
0x2221   : > { %18632 = vadd.xlane.f32.xlu0 %v18631_v20  ;;  %v18603_v50 = vpop.xlane.xlu0 %18602  ;;  %v18628_v8 = vsel %vm2867_vm2, %v35940_v52, 0.0 }
0x2222   : > { %30098 = vpow2.f32 %v18622_v22  ;;  %v18611_v21 = vsub.f32 %v26588_v51, %v18603_v50  ;;  %18629 = vadd.xlane.f32.xlu1 %v18628_v8  ;;  %v18872_v60 = vand.u32 4294901760, %v18871_v63  ;;  %v37005_v51 = vld [vmem:[#allocation29_spill] sm:$0xff] }
0x2224   : > { %v35946_v38 = vpop.eup %30092  ;;  %v18626_v40 = vmul.f32 1.442695, %v18611_v21  ;;  %v18873_v9 = vsub.f32 %v18871_v63, %v18872_v60 }
0x2225   : > { %v18671_v33 = vpop.permute.xlu0 %18670  ;;  %v18634_v16 = vsel %vm2867_vm2, %v35946_v38, 0.0 }
0x2226   : > { %30100 = vpow2.f32 %v18626_v40  ;;  %v18720_v30 = vand.u32 4294901760, %v18671_v33  ;;  %18635 = vadd.xlane.f32.xlu1 %v18634_v16  ;;  %v18874_v34 = vand.u32 4294901760, %v18873_v9 }
0x2228   : > { %v35950_v42 = vpop.eup %30094  ;;  %v35952_v3 = vpack.c.bf16 %v18720_v30, %v18717_v46  ;;  %v18878_v13 = vsub.f32 %v18671_v33, %v18720_v30 }
0x2229   : > { %v35954_v24 = vpop.eup %30096  ;;  %v18637_v47 = vsel %vm2867_vm2, %v35950_v42, 0.0  ;;  %v18677_v62 = vpop.permute.xlu0 %18676 }
0x222a   : > { %v18879_v0 = vand.u32 4294901760, %v18878_v13  ;;  %18638 = vadd.xlane.f32.xlu0 %v18637_v47  ;;  %28678 = vmatprep.subr.bf16.mxu1 %v35952_v3  ;;  %v18640_v28 = vsel %vm2867_vm2, %v35954_v24, 0.0  ;;  %v35961_v26 = vpack.c.bf16 %v18878_v13, %v18871_v63  ;;  %v18729_v1 = vand.u32 4294901760, %v18677_v62 }
0x222b   : > { %18641 = vadd.xlane.f32.xlu1 %v18640_v28  ;;  %28680 = vmatpush3.bf16.msra.mxu1 %v35952_v3 }
0x222c   : > { %v35964_v4 = vpop.eup %30098  ;;  %v18880_v2 = vsub.f32 %v18878_v13, %v18879_v0  ;;  %v35966_v23 = vpack.c.bf16 %v18879_v0, %v18872_v60  ;;  %v18899_v31 = vsub.f32 %v18677_v62, %v18729_v1  ;;  %v37010_v0 = vld [vmem:[#allocation12_spill] sm:$0xff] }
0x222d   : > { %v18643_v58 = vsel %vm2867_vm2, %v35964_v4, 0.0 }
0x222e   : > { %18644 = vadd.xlane.f32.xlu0 %v18643_v58  ;;  %v18881_v19 = vand.u32 4294901760, %v18880_v2  ;;  %v37011_v2 = vld [vmem:[#allocation27_spill] sm:$0xff] }
0x222f   : > { %v37013_v58 = vld [vmem:[#allocation7_spill] sm:$0xff] }
0x2230   : > { %v35970_v17 = vpop.eup %30100  ;;  %v35972_v10 = vpack.c.bf16 %v18881_v19, %v18874_v34  ;;  %v37014_v34 = vld [vmem:[#allocation9_spill] sm:$0xff] }
0x2231   : > { %v18649_v45 = vsel %vm2867_vm2, %v35970_v17, 0.0 }
0x2232   : > { %18650 = vadd.xlane.f32.xlu0 %v18649_v45 }
0x2248   : > { %18680 = vrot.lane.b32.xlu0 %v37005_v51, %s30173_s10 }
0x224c   : > { %19562 = vrot.lane.b32.xlu0 %v37006_v37, %s30174_s11 }
0x224e   : > { %v18600_v48 = vpop.xlane.xlu1 %18599 }
0x224f   : > { %v18610_v36 = vsub.f32 %v35920_v55, %v18600_v48 }
0x2250   : > { %19594 = vrot.lane.b32.xlu0 %v35901_v53, %s37007_s19  ;;  %v18900_v53 = vand.u32 4294901760, %v18899_v31 }
0x2251   : > { %v18624_v44 = vmul.f32 1.442695, %v18610_v36 }
0x2252   : > { %v18673_v54 = vpop.permute.xlu1 %18672  ;;  %v18901_v50 = vsub.f32 %v18899_v31, %v18900_v53 }
0x2253   : > { %30102 = vpow2.f32 %v18624_v44  ;;  %v18723_v12 = vand.u32 4294901760, %v18673_v54 }
0x2254   : > { %19566 = vrot.lane.b32.xlu0 %v37008_v11, %s30174_s11  ;;  %v18902_v47 = vand.u32 4294901760, %v18901_v50 }
0x2255   : > { %v18885_v43 = vsub.f32 %v18673_v54, %v18723_v12 }
0x2256   : > { %v18675_v56 = vpop.permute.xlu1 %18674 }
0x2257   : > { %v18886_v7 = vand.u32 4294901760, %v18885_v43  ;;  %v18726_v57 = vand.u32 4294901760, %v18675_v56 }
0x2258   : > { %19598 = vrot.lane.b32.xlu0 %v35905_v39, %s37007_s19 }
0x2259   : > { %v35987_v55 = vpack.c.bf16 %v18726_v57, %v18723_v12  ;;  %v18892_v35 = vsub.f32 %v18675_v56, %v18726_v57  ;;  %v18887_v6 = vsub.f32 %v18885_v43, %v18886_v7 }
0x225a   : > { %v18679_v61 = vpop.permute.xlu1 %18678 }
0x225b   : > { %v18893_v14 = vand.u32 4294901760, %v18892_v35  ;;  %v18732_v15 = vand.u32 4294901760, %v18679_v61  ;;  %28682 = vmatprep.subr.bf16.mxu1 %v35987_v55  ;;  %v35990_v5 = vpack.c.bf16 %v18892_v35, %v18885_v43  ;;  %v18888_v40 = vand.u32 4294901760, %v18887_v6 }
0x225c   : > { %19570 = vrot.lane.b32.xlu0 %v37009_v32, %s30174_s11  ;;  %28684 = vmatpush3.bf16.msra.mxu1 %v35987_v55 }
0x225d   : > { %v35995_v46 = vpop.eup %30102  ;;  %v18894_v39 = vsub.f32 %v18892_v35, %v18893_v14  ;;  %v35997_v22 = vpack.c.bf16 %v18732_v15, %v18729_v1  ;;  %v18906_v63 = vsub.f32 %v18679_v61, %v18732_v15  ;;  %v35999_v20 = vpack.c.bf16 %v18893_v14, %v18886_v7 }
0x225e   : > { %v18646_v8 = vsel %vm2867_vm2, %v35995_v46, 0.0 }
0x225f   : > { %v18907_v21 = vand.u32 4294901760, %v18906_v63  ;;  %18647 = vadd.xlane.f32.xlu1 %v18646_v8  ;;  %28686 = vmatprep.subr.bf16.mxu1 %v35997_v22  ;;  %v18895_v33 = vand.u32 4294901760, %v18894_v39  ;;  %v36004_v16 = vpack.c.bf16 %v18906_v63, %v18899_v31 }
0x2260   : > { %19602 = vrot.lane.b32.xlu0 %v35909_v59, %s37007_s19  ;;  %28688 = vmatpush3.bf16.msra.mxu1 %v35997_v22  ;;  %v37012_v59 = vld [vmem:[#allocation5_spill] sm:$0xff] }
0x2261   : > { %v18908_v60 = vsub.f32 %v18906_v63, %v18907_v21  ;;  %v36009_v30 = vpack.c.bf16 %v18895_v33, %v18888_v40  ;;  %v36011_v13 = vpack.c.bf16 %v18907_v21, %v18900_v53 }
0x2263   : > { %v18909_v9 = vand.u32 4294901760, %v18908_v60 }
0x2264   : > { %19574 = vrot.lane.b32.xlu0 %v37010_v0, %s30174_s11 }
0x2265   : > { %v36015_v28 = vpack.c.bf16 %v18909_v9, %v18902_v47 }
0x2268   : > { %19606 = vrot.lane.b32.xlu0 %v35913_v29, %s37007_s19  ;;  %v37015_v29 = vld [vmem:[#allocation11_spill] sm:$0xff] }
0x2270   : > { %18682 = vrot.lane.b32.xlu1 %v37011_v2, %s30173_s10 }
0x2274   : > { %19564 = vrot.lane.b32.xlu1 %v37012_v59, %s30174_s11 }
0x2278   : > { %19596 = vrot.lane.b32.xlu1 %v35899_v49, %s37007_s19 }
0x227c   : > { %19568 = vrot.lane.b32.xlu1 %v37013_v58, %s30174_s11 }
0x2280   : > { %19600 = vrot.lane.b32.xlu1 %v35903_v27, %s37007_s19 }
0x2284   : > { %19572 = vrot.lane.b32.xlu1 %v37014_v34, %s30174_s11 }
0x2288   : > { %19604 = vrot.lane.b32.xlu1 %v35907_v18, %s37007_s19 }
0x228c   : > { %19576 = vrot.lane.b32.xlu1 %v37015_v29, %s30174_s11 }
0x2290   : > { %19608 = vrot.lane.b32.xlu1 %v35911_v25, %s37007_s19  ;;  %s37033_s19 = sshll.u32 %s37035_s28, 6 }
0x2291   : > { %s320_s22 = scalar_lea.vmem %s36608_s8, %s37033_s19 }
0x22ae   : > { %v18633_v25 = vpop.xlane.xlu0 %18632 }
0x22af   : > { %v18630_v19 = vpop.xlane.xlu1 %18629 }
0x22b0   : > { %30104 = vrcp.f32 %v18630_v19 }
0x22b1   : > { %30106 = vrcp.f32 %v18633_v25 }
0x22b3   : > { %v18636_v36 = vpop.xlane.xlu1 %18635 }
0x22b4   : > { %30108 = vrcp.f32 %v18636_v36 }
0x22b7   : > { %v18639_v44 = vpop.xlane.xlu0 %18638 }
0x22b8   : > { %30110 = vrcp.f32 %v18639_v44 }
0x22ba   : > { %v30105_v49 = vpop.eup %30104 }
0x22bb   : > { %v18653_v45 = vmul.f32 %v30105_v49, %v35940_v52  ;;  %v18642_v52 = vpop.xlane.xlu1 %18641  ;;  %v18645_v1 = vpop.xlane.xlu0 %18644 }
0x22bc   : > { %30112 = vrcp.f32 %v18642_v52  ;;  %v30107_v54 = vpop.eup %30106 }
0x22bd   : > { %v18693_v51 = vsel %vm2867_vm2, %v18653_v45, 0  ;;  %30114 = vrcp.f32 %v18645_v1  ;;  %v18655_v43 = vmul.f32 %v30107_v54, %v35938_v41 }
0x22be   : > { %v36039_v27 = vand.u32 4294901760, %v18693_v51  ;;  %v30109_v11 = vpop.eup %30108 }
0x22bf   : > { %v18651_v12 = vpop.xlane.xlu0 %18650  ;;  %v18657_v56 = vmul.f32 %v30109_v11, %v35946_v38  ;;  %v18696_v57 = vsel %vm2867_vm2, %v18655_v43, 0 }
0x22c0   : > { %v36042_v37 = vsub.f32 %v18693_v51, %v36039_v27  ;;  %30116 = vrcp.f32 %v18651_v12  ;;  %v36054_v14 = vand.u32 4294901760, %v18696_v57 }
0x22c1   : > { %v18699_v6 = vsel %vm2867_vm2, %v18657_v56, 0 }
0x22c2   : > { %v18791_v18 = vand.u32 4294901760, %v36042_v37  ;;  %v30111_v31 = vpop.eup %30110  ;;  %v36057_v32 = vand.u32 4294901760, %v18699_v6  ;;  %v36062_v63 = vsub.f32 %v18696_v57, %v36054_v14 }
0x22c3   : > { %v18659_v35 = vmul.f32 %v30111_v31, %v35950_v42  ;;  %v18681_v42 = vpop.permute.xlu0 %18680 }
0x22c4   : > { %v18792_v48 = vsub.f32 %v36042_v37, %v18791_v18  ;;  %v36067_v8 = vsub.f32 %v18699_v6, %v36057_v32  ;;  %v18735_v33 = vand.u32 4294901760, %v18681_v42  ;;  %v18801_v60 = vand.u32 4294901760, %v36062_v63 }
0x22c5   : > { %v18702_v41 = vsel %vm2867_vm2, %v18659_v35, 0 }
0x22c6   : > { %v18793_v62 = vand.u32 4294901760, %v18792_v48  ;;  %v30113_v7 = vpop.eup %30112  ;;  %v36064_v50 = vand.u32 4294901760, %v18702_v41  ;;  %v18811_v2 = vand.u32 4294901760, %v36067_v8  ;;  %v36084_v29 = vsub.f32 %v18681_v42, %v18735_v33 }
0x22c7   : > { %v30115_v53 = vpop.eup %30114  ;;  %v18661_v61 = vmul.f32 %v30113_v7, %v35954_v24 }
0x22c8   : > { %26605 = vmatprep.mubr.f32.mxu1 %v18793_v62  ;;  %v18663_v15 = vmul.f32 %v30115_v53, %v35964_v4  ;;  %v36075_v47 = vsub.f32 %v18702_v41, %v36064_v50  ;;  %v18812_v48 = vsub.f32 %v36067_v8, %v18811_v2  ;;  %v18914_v52 = vand.u32 4294901760, %v36084_v29 }
0x22c9   : > { %v18705_v38 = vsel %vm2867_vm2, %v18661_v61, 0 }
0x22ca   : > { %v30117_v39 = vpop.eup %30116  ;;  %v36069_v21 = vand.u32 4294901760, %v18705_v38  ;;  %v18708_v4 = vsel %vm2867_vm2, %v18663_v15, 0  ;;  %v18821_v45 = vand.u32 4294901760, %v36075_v47  ;;  %v18813_v43 = vand.u32 4294901760, %v18812_v48 }
0x22cb   : > { %v18667_v40 = vmul.f32 %v30117_v39, %v35970_v17  ;;  %v36077_v9 = vand.u32 4294901760, %v18708_v4  ;;  %v18802_v17 = vsub.f32 %v36062_v63, %v18801_v60 }
0x22cc   : > { %v36081_v59 = vsub.f32 %v18705_v38, %v36069_v21  ;;  %v18822_v54 = vsub.f32 %v36075_v47, %v18821_v45 }
0x22cd   : > { %v18714_v34 = vsel %vm2867_vm2, %v18667_v40, 0  ;;  %v36095_v51 = vsub.f32 %v18708_v4, %v36077_v9  ;;  %v18803_v1 = vand.u32 4294901760, %v18802_v17 }
0x22ce   : > { %v18831_v62 = vand.u32 4294901760, %v36081_v59  ;;  %v36101_v25 = vand.u32 4294901760, %v18714_v34  ;;  %v18823_v35 = vand.u32 4294901760, %v18822_v54 }
0x22cf   : > { %v18841_v12 = vand.u32 4294901760, %v36095_v51 }
0x22d0   : > { %v18832_v31 = vsub.f32 %v36081_v59, %v18831_v62  ;;  %v36117_v56 = vsub.f32 %v18714_v34, %v36101_v25 }
0x22d1   : > { %v18842_v53 = vsub.f32 %v36095_v51, %v18841_v12 }
0x22d2   : > { %v18833_v6 = vand.u32 4294901760, %v18832_v31  ;;  %v18861_v15 = vand.u32 4294901760, %v36117_v56 }
0x22d3   : > { %v18843_v38 = vand.u32 4294901760, %v18842_v53 }
0x22ec   : > { %v18648_v24 = vpop.xlane.xlu1 %18647 }
0x22ed   : > { %30118 = vrcp.f32 %v18648_v24  ;;  %v18862_v24 = vsub.f32 %v36117_v56, %v18861_v15 }
0x22f0   : > { %v18683_v0 = vpop.permute.xlu1 %18682 }
0x22f1   : > { %v18738_v58 = vand.u32 4294901760, %v18683_v0 }
0x22f3   : > { %v36089_v19 = vpack.c.bf16 %v18738_v58, %v18735_v33  ;;  %v36091_v49 = vsub.f32 %v18683_v0, %v18738_v58  ;;  %v18863_v0 = vand.u32 4294901760, %v18862_v24 }
0x22f5   : > { %v18921_v36 = vand.u32 4294901760, %v36091_v49  ;;  %28690 = vmatprep.subr.bf16.mxu1 %v36089_v19 }
0x22f6   : > { %28692 = vmatpush3.bf16.msra.mxu1 %v36089_v19 }
0x22f7   : > { %v30119_v44 = vpop.eup %30118  ;;  %28694 = vmatprep.subr.bf16.mxu1 %v35972_v10  ;;  %v18922_v7 = vsub.f32 %v36091_v49, %v18921_v36 }
0x22f8   : > { %v18665_v11 = vmul.f32 %v30119_v44, %v35995_v46  ;;  %v18915_v46 = vsub.f32 %v36084_v29, %v18914_v52 }
0x22f9   : > { %26606 = vmatmul.mubr.f32.vlgmr.msra.gmra.mrb[88].mxu1 %v18803_v1 }
0x22fa   : > { %26608 = vmatprep.mubr.f32.mxu1 %v18813_v43  ;;  %28696 = vmatpush3.bf16.msra.mxu1 %v35972_v10  ;;  %v18711_v57 = vsel %vm2867_vm2, %v18665_v11, 0  ;;  %v18923_v10 = vand.u32 4294901760, %v18922_v7  ;;  %v18916_v39 = vand.u32 4294901760, %v18915_v46  ;;  %v19565_v11 = vpop.permute.xlu1 %19564  ;;  %v19563_v43 = vpop.permute.xlu0 %19562 }
0x22fb   : > { %28698 = vmatprep.subr.bf16.mxu1 %v36009_v30  ;;  %v36131_v61 = vand.u32 4294901760, %v18711_v57 }
0x22fc   : > { %v28705_v4 = vpack.c.bf16 %v18923_v10, %v18916_v39 }
0x22fd   : > { %26609 = vmatmul.mubr.f32.gmra.mrb[90].mxu1 %v18823_v35  ;;  %v36135_v41 = vsub.f32 %v18711_v57, %v36131_v61 }
0x22fe   : > { %26611 = vmatprep.mubr.f32.mxu1 %v18833_v6  ;;  %28700 = vmatpush3.bf16.msra.mxu1 %v36009_v30  ;;  %v28721_v30 = vpack.c.bf16 %v36091_v49, %v36084_v29  ;;  %v19597_v31 = vpop.permute.xlu1 %19596 }
0x22ff   : > { %28702 = vmatprep.subr.bf16.mxu1 %v36015_v28  ;;  %v18851_v42 = vand.u32 4294901760, %v36135_v41 }
0x2301   : > { %26612 = vmatmul.mubr.f32.gmra.mrb[92].mxu1 %v18843_v38  ;;  %v18852_v40 = vsub.f32 %v36135_v41, %v18851_v42 }
0x2302   : > { %28704 = vmatpush3.bf16.msra.mxu1 %v36015_v28  ;;  %v19569_v7 = vpop.permute.xlu1 %19568 }
0x2303   : > { %28706 = vmatprep.subr.bf16.mxu1 %v28705_v4  ;;  %v18853_v33 = vand.u32 4294901760, %v18852_v40 }
0x2305   : > { %26614 = vmatprep.mubr.f32.mxu1 %v18853_v33 }
0x2306   : > { %26615 = vmatmul.mubr.f32.gmra.mrb[94].mxu1 %v18863_v0  ;;  %v19601_v46 = vpop.permute.xlu1 %19600 }
0x2307   : > { %28708 = vmatpush3.bf16.msra.mxu1 %v28705_v4  ;;  %26633 = vmatprep.mubr.f32.mxu1 %v36039_v27  ;;  %v37018_v4 = vld [vmem:[#allocation16_spill] sm:$0xff] }
0x2308   : > { %28710 = vmatprep.subr.bf16.mxu1 %v35961_v26  ;;  %v19650_v40 = vsel %vm1996_vm1, %v37018_v4, %v19563_v43 }
0x230a   : > { %26634 = vmatmul.mubr.f32.vlgmr.msra.gmra.mrb[88].mxu1 %v36054_v14  ;;  %v19573_v53 = vpop.permute.xlu1 %19572 }
0x230b   : > { %28712 = vmatpush3.bf16.msra.mxu1 %v35961_v26  ;;  %26636 = vmatprep.mubr.f32.mxu1 %v36057_v32  ;;  %v28753_v26 = vpack.c.bf16 %v18921_v36, %v18914_v52 }
0x230c   : > { %28714 = vmatprep.subr.bf16.mxu1 %v35990_v5 }
0x230e   : > { %26637 = vmatmul.mubr.f32.gmra.mrb[90].mxu1 %v36064_v50  ;;  %v19605_v6 = vpop.permute.xlu1 %19604 }
0x230f   : > { %28716 = vmatpush3.bf16.msra.mxu1 %v35990_v5  ;;  %26639 = vmatprep.mubr.f32.mxu1 %v36069_v21 }
0x2310   : > { %28718 = vmatprep.subr.bf16.mxu1 %v36004_v16 }
0x2312   : > { %26640 = vmatmul.mubr.f32.gmra.mrb[92].mxu1 %v36077_v9  ;;  %v19577_v10 = vpop.permute.xlu1 %19576 }
0x2313   : > { %28720 = vmatpush3.bf16.msra.mxu1 %v36004_v16  ;;  %26642 = vmatprep.mubr.f32.mxu1 %v36131_v61  ;;  %v21418_v16 = vld [vmem:[%s36605_s5 + $0x38] sm:$0xff] }
0x2314   : > { %28722 = vmatprep.subr.bf16.mxu1 %v28721_v30  ;;  %v19721_v28 = vand.u32 4294901760, %v21418_v16 }
0x2316   : > { %26643 = vmatmul.mubr.f32.gmra.mrb[94].mxu1 %v36101_v25  ;;  %v19609_v38 = vpop.permute.xlu1 %19608 }
0x2317   : > { %28724 = vmatpush3.bf16.msra.mxu1 %v28721_v30  ;;  %26661 = vmatprep.mubr.f32.mxu1 %v36042_v37 }
0x2318   : > { %28726 = vmatprep.subr.bf16.mxu1 %v35952_v3 }
0x231a   : > { %26662 = vmatmul.mubr.f32.vlgmr.msra.gmra.mrb[88].mxu1 %v36062_v63 }
0x231b   : > { %28728 = vmatpush3.bf16.msra.mxu1 %v35952_v3  ;;  %26664 = vmatprep.mubr.f32.mxu1 %v36067_v8 }
0x231c   : > { %28730 = vmatprep.subr.bf16.mxu1 %v35987_v55 }
0x231e   : > { %26665 = vmatmul.mubr.f32.gmra.mrb[90].mxu1 %v36075_v47 }
0x231f   : > { %28732 = vmatpush3.bf16.msra.mxu1 %v35987_v55  ;;  %26667 = vmatprep.mubr.f32.mxu1 %v36081_v59 }
0x2320   : > { %28734 = vmatprep.subr.bf16.mxu1 %v35997_v22 }
0x2322   : > { %26668 = vmatmul.mubr.f32.gmra.mrb[92].mxu1 %v36095_v51 }
0x2323   : > { %28736 = vmatpush3.bf16.msra.mxu1 %v35997_v22  ;;  %26670 = vmatprep.mubr.f32.mxu1 %v36135_v41 }
0x2324   : > { %28738 = vmatprep.subr.bf16.mxu1 %v36089_v19 }
0x2326   : > { %26671 = vmatmul.mubr.f32.gmra.mrb[94].mxu1 %v36117_v56  ;;  %v19595_v56 = vpop.permute.xlu0 %19594 }
0x2327   : > { %28740 = vmatpush3.bf16.msra.mxu1 %v36089_v19  ;;  %26689 = vmatprep.mubr.f32.mxu1 %v18791_v18  ;;  %v19658_v30 = vsel %vm9574_vm3, %v19650_v40, %v19595_v56 }
0x2328   : > { %28742 = vmatprep.subr.bf16.mxu1 %v35966_v23 }
0x232a   : > { %26690 = vmatmul.mubr.f32.vlgmr.msra.gmra.mrb[88].mxu1 %v18801_v60  ;;  %v19567_v57 = vpop.permute.xlu0 %19566 }
0x232b   : > { %28744 = vmatpush3.bf16.msra.mxu1 %v35966_v23  ;;  %26692 = vmatprep.mubr.f32.mxu1 %v18811_v2  ;;  %v21416_v23 = vld [vmem:[%s36605_s5 + $0x28] sm:$0xff]  ;;  %v19883_v2 = vsub.f32 %v21418_v16, %v19721_v28 }
0x232c   : > { %28746 = vmatprep.subr.bf16.mxu1 %v35999_v20  ;;  %v19715_v5 = vand.u32 4294901760, %v21416_v23 }
0x232e   : > { %26693 = vmatmul.mubr.f32.gmra.mrb[90].mxu1 %v18821_v45  ;;  %v19599_v35 = vpop.permute.xlu0 %19598 }
0x232f   : > { %28748 = vmatpush3.bf16.msra.mxu1 %v35999_v20  ;;  %26695 = vmatprep.mubr.f32.mxu1 %v18831_v62  ;;  %v21417_v20 = vld [vmem:[%s36605_s5 + $0x30] sm:$0xff] }
0x2330   : > { %28750 = vmatprep.subr.bf16.mxu1 %v36011_v13 }
0x2332   : > { %26696 = vmatmul.mubr.f32.gmra.mrb[92].mxu1 %v18841_v12 }
0x2333   : > { %28752 = vmatpush3.bf16.msra.mxu1 %v36011_v13  ;;  %26698 = vmatprep.mubr.f32.mxu1 %v18851_v42  ;;  %v19718_v13 = vand.u32 4294901760, %v21417_v20  ;;  %v37017_v42 = vld [vmem:[#allocation15_spill] sm:$0xff] }
0x2334   : > { %28754 = vmatprep.subr.bf16.mxu1 %v28753_v26  ;;  %v19651_v24 = vsel %vm1996_vm1, %v37017_v42, %v19565_v11 }
0x2335   : > { %v19659_v33 = vsel %vm9574_vm3, %v19651_v24, %v19597_v31 }
0x2336   : > { %26699 = vmatmul.mubr.f32.gmra.mrb[94].mxu1 %v18861_v15 }
0x2337   : > { %28756 = vmatpush3.bf16.msra.mxu1 %v28753_v26  ;;  %26717 = vmatprep.mubr.f32.mxu1 %v36039_v27 }
0x2338   : > { %28758 = vmatprep.subr.bf16.mxu1 %v35952_v3 }
0x233a   : > { %26718 = vmatmul.mubr.f32.vlgmr.msra.gmra.mrb[88].mxu1 %v36054_v14 }
0x233b   : > { %28760 = vmatpush3.bf16.msra.mxu1 %v35952_v3  ;;  %26720 = vmatprep.mubr.f32.mxu1 %v36057_v32  ;;  %v21415_v3 = vld [vmem:[%s36605_s5 + $0x20] sm:$0xff] }
0x233c   : > { %28762 = vmatprep.subr.bf16.mxu1 %v35987_v55 }
0x233e   : > { %26721 = vmatmul.mubr.f32.gmra.mrb[90].mxu1 %v36064_v50 }
0x233f   : > { %28764 = vmatpush3.bf16.msra.mxu1 %v35987_v55  ;;  %26723 = vmatprep.mubr.f32.mxu1 %v36069_v21  ;;  %v19712_v55 = vand.u32 4294901760, %v21415_v3 }
0x2340   : > { %28766 = vmatprep.subr.bf16.mxu1 %v35997_v22 }
0x2342   : > { %26724 = vmatmul.mubr.f32.gmra.mrb[92].mxu1 %v36077_v9 }
0x2343   : > { %28768 = vmatpush3.bf16.msra.mxu1 %v35997_v22  ;;  %26726 = vmatprep.mubr.f32.mxu1 %v36131_v61  ;;  %v36231_v22 = vpack.c.bf16 %v19715_v5, %v19712_v55 }
0x2344   : > { %28770 = vmatprep.subr.bf16.mxu1 %v36089_v19 }
0x2346   : > { %26727 = vmatmul.mubr.f32.gmra.mrb[94].mxu1 %v36101_v25 }
0x2347   : > { %28772 = vmatpush3.bf16.msra.mxu1 %v36089_v19  ;;  %26745 = vmatprep.mubr.f32.mxu1 %v36039_v27  ;;  %v36241_v27 = vpack.c.bf16 %v19721_v28, %v19718_v13  ;;  %v19884_v19 = vand.u32 4294901760, %v19883_v2  ;;  %v37020_v28 = vld [vmem:[#allocation18_spill] sm:$0xff] }
0x2348   : > { %28774 = vmatprep.subr.bf16.mxu1 %v36231_v22 }
0x2349   : > { %v19885_v51 = vsub.f32 %v19883_v2, %v19884_v19 }
0x234a   : > { %26746 = vmatmul.mubr.f32.vlgmr.msra.gmra.mrb[88].mxu1 %v36054_v14  ;;  %v19862_v14 = vsub.f32 %v21415_v3, %v19712_v55 }
0x234b   : > { %26748 = vmatprep.mubr.f32.mxu1 %v36057_v32  ;;  %28776 = vmatpush3.bf16.msra.mxu1 %v36231_v22  ;;  %v19869_v32 = vsub.f32 %v21416_v23, %v19715_v5  ;;  %v19886_v36 = vand.u32 4294901760, %v19885_v51  ;;  %v37019_v5 = vld [vmem:[#allocation17_spill] sm:$0xff] }
0x234c   : > { %28778 = vmatprep.subr.bf16.mxu1 %v36241_v27  ;;  %v19863_v8 = vand.u32 4294901760, %v19862_v14  ;;  %v37023_v51 = vld [vmem:[#allocation21_spill] sm:$0xff] }
0x234d   : > { %v36258_v52 = vpack.c.bf16 %v19869_v32, %v19862_v14 }
0x234e   : > { %26749 = vmatmul.mubr.f32.gmra.mrb[90].mxu1 %v36064_v50  ;;  %v19864_v60 = vsub.f32 %v19862_v14, %v19863_v8 }
0x234f   : > { %26751 = vmatprep.mubr.f32.mxu1 %v36069_v21  ;;  %28780 = vmatpush3.bf16.msra.mxu1 %v36241_v27  ;;  %v19870_v21 = vand.u32 4294901760, %v19869_v32 }
0x2350   : > { %v19865_v34 = vand.u32 4294901760, %v19864_v60 }
0x2351   : > { %v19871_v47 = vsub.f32 %v19869_v32, %v19870_v21  ;;  %v36262_v54 = vpack.c.bf16 %v19870_v21, %v19863_v8 }
0x2352   : > { %26752 = vmatmul.mubr.f32.gmra.mrb[92].mxu1 %v36077_v9  ;;  %v19876_v9 = vsub.f32 %v21417_v20, %v19718_v13  ;;  %v19653_v20 = vsel %vm1996_vm1, %v37019_v5, %v19569_v7 }
0x2353   : > { %26754 = vmatprep.mubr.f32.mxu1 %v36131_v61  ;;  %v19872_v29 = vand.u32 4294901760, %v19871_v47  ;;  %v19571_v61 = vpop.permute.xlu0 %19570 }
0x2354   : > { %v19877_v17 = vand.u32 4294901760, %v19876_v9  ;;  %v36260_v1 = vpack.c.bf16 %v19883_v2, %v19876_v9 }
0x2355   : > { %v36251_v49 = vpack.c.bf16 %v19872_v29, %v19865_v34  ;;  %v37022_v34 = vld [vmem:[#allocation20_spill] sm:$0xff] }
0x2356   : > { %26755 = vmatmul.mubr.f32.gmra.mrb[94].mxu1 %v36101_v25  ;;  %v19878_v45 = vsub.f32 %v19876_v9, %v19877_v17  ;;  %v36264_v12 = vpack.c.bf16 %v19884_v19, %v19877_v17  ;;  %v19655_v29 = vsel %vm1996_vm1, %v37022_v34, %v19573_v53 }
0x2357   : > { %28782 = vmatprep.subr.bf16.mxu1 %v36251_v49  ;;  %v19603_v15 = vpop.permute.xlu0 %19602 }
0x2358   : > { %v19879_v25 = vand.u32 4294901760, %v19878_v45 }
0x235a   : > { %v36256_v44 = vpack.c.bf16 %v19886_v36, %v19879_v25 }
0x235b   : > { %v19575_v41 = vpop.permute.xlu0 %19574 }
0x235f   : > { %v19607_v39 = vpop.permute.xlu0 %19606 }
0x241d   : > { %v26747_v37 = vpop.f32.mrb[88].mxu1 }
0x241e   : > { %19628 = vrot.lane.b32.xlu1 %v26747_v37, %s37016_s9  ;;  %v19508_v18 = vpop.f32.mrb[89].mxu1  ;;  %v19652_v37 = vsel %vm1996_vm1, %v37020_v28, %v19567_v57 }
0x241f   : > { %19626 = vrot.lane.b32.xlu0 %v19508_v18, %s37016_s9  ;;  %v19661_v18 = vsel %vm9574_vm3, %v19653_v20, %v19601_v46 }
0x2421   : > { %v26750_v63 = vpop.f32.mrb[90].mxu1 }
0x2422   : > { %19632 = vrot.lane.b32.xlu1 %v26750_v63, %s37016_s9  ;;  %v19520_v50 = vpop.f32.mrb[91].mxu1  ;;  %v19660_v63 = vsel %vm9574_vm3, %v19652_v37, %v19599_v35 }
0x2423   : > { %19630 = vrot.lane.b32.xlu0 %v19520_v50, %s37016_s9  ;;  %v37021_v50 = vld [vmem:[#allocation19_spill] sm:$0xff] }
0x2424   : > { %v19654_v8 = vsel %vm1996_vm1, %v37021_v50, %v19571_v61 }
0x2425   : > { %v26753_v59 = vpop.f32.mrb[92].mxu1  ;;  %v19662_v9 = vsel %vm9574_vm3, %v19654_v8, %v19603_v15 }
0x2426   : > { %19636 = vrot.lane.b32.xlu1 %v26753_v59, %s37016_s9  ;;  %v19532_v58 = vpop.f32.mrb[93].mxu1 }
0x2427   : > { %19634 = vrot.lane.b32.xlu0 %v19532_v58, %s37016_s9 }
0x2429   : > { %v26756_v48 = vpop.f32.mrb[94].mxu1 }
0x242a   : > { %19640 = vrot.lane.b32.xlu1 %v26756_v48, %s37016_s9  ;;  %v19544_v62 = vpop.f32.mrb[95].mxu1  ;;  %v19656_v48 = vsel %vm1996_vm1, %v37023_v51, %v19575_v41 }
0x242b   : > { %19638 = vrot.lane.b32.xlu0 %v19544_v62, %s37016_s9  ;;  %v19663_v62 = vsel %vm9574_vm3, %v19655_v29, %v19605_v6  ;;  %v19664_v43 = vsel %vm9574_vm3, %v19656_v48, %v19607_v39  ;;  %v37024_v6 = vld [vmem:[#allocation22_spill] sm:$0xff] }
0x242c   : > { %v19657_v15 = vsel %vm1996_vm1, %v37024_v6, %v19577_v10 }
0x242d   : > { %v19665_v24 = vsel %vm9574_vm3, %v19657_v15, %v19609_v38 }
0x2490   : > { %v19629_v0 = vpop.permute.xlu1 %19628 }
0x2491   : > { %v19667_v26 = vsel %vm9583_vm4, %v19659_v33, %v19629_v0  ;;  %v19627_v3 = vpop.permute.xlu0 %19626 }
0x2492   : > { %v19691_v23 = vsel %vm340_vm0, %v19667_v26, 0  ;;  %v19666_v55 = vsel %vm9583_vm4, %v19658_v30, %v19627_v3 }
0x2493   : > { %v36277_v16 = vand.u32 4294901760, %v19691_v23  ;;  %v19688_v13 = vsel %vm340_vm0, %v19666_v55, 0 }
0x2494   : > { %v36283_v14 = vand.u32 4294901760, %v19688_v13  ;;  %v19633_v32 = vpop.permute.xlu1 %19632 }
0x2495   : > { %v36289_v21 = vsub.f32 %v19691_v23, %v36277_v16  ;;  %v19669_v60 = vsel %vm9583_vm4, %v19661_v18, %v19633_v32  ;;  %v19631_v47 = vpop.permute.xlu0 %19630 }
0x2496   : > { %v36294_v2 = vsub.f32 %v19688_v13, %v36283_v14  ;;  %v19697_v59 = vsel %vm340_vm0, %v19669_v60, 0  ;;  %v19668_v58 = vsel %vm9583_vm4, %v19660_v63, %v19631_v47 }
0x2497   : > { %v19792_v17 = vand.u32 4294901760, %v36289_v21  ;;  %v36301_v19 = vand.u32 4294901760, %v19697_v59  ;;  %v19694_v45 = vsel %vm340_vm0, %v19668_v58, 0 }
0x2498   : > { %v36307_v25 = vand.u32 4294901760, %v19694_v45  ;;  %v19637_v36 = vpop.permute.xlu1 %19636  ;;  %v19782_v11 = vand.u32 4294901760, %v36294_v2 }
0x2499   : > { %v19793_v31 = vsub.f32 %v36289_v21, %v19792_v17  ;;  %v36315_v56 = vsub.f32 %v19697_v59, %v36301_v19  ;;  %v19671_v7 = vsel %vm9583_vm4, %v19663_v62, %v19637_v36  ;;  %v19635_v57 = vpop.permute.xlu0 %19634 }
0x249a   : > { %v36319_v46 = vsub.f32 %v19694_v45, %v36307_v25  ;;  %v19703_v35 = vsel %vm340_vm0, %v19671_v7, 0  ;;  %v19670_v53 = vsel %vm9583_vm4, %v19662_v9, %v19635_v57  ;;  %v19783_v61 = vsub.f32 %v36294_v2, %v19782_v11 }
0x249b   : > { %v36328_v41 = vand.u32 4294901760, %v19703_v35  ;;  %v19700_v39 = vsel %vm340_vm0, %v19670_v53, 0  ;;  %v19812_v42 = vand.u32 4294901760, %v36315_v56  ;;  %v19794_v30 = vand.u32 4294901760, %v19793_v31 }
0x249c   : > { %v36333_v4 = vand.u32 4294901760, %v19700_v39  ;;  %v19641_v40 = vpop.permute.xlu1 %19640  ;;  %v19784_v33 = vand.u32 4294901760, %v19783_v61  ;;  %v19802_v0 = vand.u32 4294901760, %v36319_v46 }
0x249d   : > { %v36337_v26 = vsub.f32 %v19703_v35, %v36328_v41  ;;  %v19673_v10 = vsel %vm9583_vm4, %v19665_v24, %v19641_v40  ;;  %v19639_v3 = vpop.permute.xlu0 %19638  ;;  %v19813_v23 = vsub.f32 %v36315_v56, %v19812_v42 }
0x249e   : > { %v36344_v55 = vsub.f32 %v19700_v39, %v36333_v4  ;;  %v19709_v38 = vsel %vm340_vm0, %v19673_v10, 0  ;;  %v19672_v5 = vsel %vm9583_vm4, %v19664_v43, %v19639_v3  ;;  %26765 = vmatprep.mubr.f32.mxu1 %v19784_v33  ;;  %v19803_v20 = vsub.f32 %v36319_v46, %v19802_v0  ;;  %v37026_v3 = vld [vmem:[#allocation24_spill] sm:$0xff] }
0x249f   : > { %v36351_v13 = vand.u32 4294901760, %v19709_v38  ;;  %v19706_v28 = vsel %vm340_vm0, %v19672_v5, 0  ;;  %26766 = vmatmul.mubr.f32.vlgmr.msra.gmra.mrb[96].mxu1 %v19794_v30  ;;  %v19832_v37 = vand.u32 4294901760, %v36337_v26  ;;  %v19814_v8 = vand.u32 4294901760, %v19813_v23 }
0x24a0   : > { %v36355_v18 = vand.u32 4294901760, %v19706_v28  ;;  %28784 = vmatpush3.bf16.msra.mxu1 %v36251_v49  ;;  %v19804_v32 = vand.u32 4294901760, %v19803_v20  ;;  %v19822_v63 = vand.u32 4294901760, %v36344_v55 }
0x24a1   : > { %v19851_v50 = vsub.f32 %v19709_v38, %v36351_v13  ;;  %v19833_v60 = vsub.f32 %v36337_v26, %v19832_v37  ;;  %28786 = vmatprep.subr.bf16.mxu1 %v36256_v44 }
0x24a2   : > { %v19841_v47 = vsub.f32 %v19706_v28, %v36355_v18  ;;  %26768 = vmatprep.mubr.f32.mxu1 %v19804_v32  ;;  %v19823_v9 = vsub.f32 %v36344_v55, %v19822_v63  ;;  %v37027_v32 = vld [vmem:[#allocation26_spill] sm:$0xff] }
0x24a3   : > { %26769 = vmatmul.mubr.f32.gmra.mrb[98].mxu1 %v19814_v8  ;;  %v19852_v59 = vand.u32 4294901760, %v19851_v50  ;;  %v19834_v34 = vand.u32 4294901760, %v19833_v60  ;;  %v37028_v8 = vld [vmem:[#allocation28_spill] sm:$0xff] }
0x24a4   : > { %v19824_v58 = vand.u32 4294901760, %v19823_v9  ;;  %28788 = vmatpush3.bf16.msra.mxu1 %v36256_v44  ;;  %v19842_v49 = vand.u32 4294901760, %v19841_v47 }
0x24a5   : > { %v19853_v29 = vsub.f32 %v19851_v50, %v19852_v59  ;;  %28790 = vmatprep.subr.bf16.mxu1 %v36258_v52 }
0x24a6   : > { %26771 = vmatprep.mubr.f32.mxu1 %v19824_v58  ;;  %v19843_v45 = vsub.f32 %v19841_v47, %v19842_v49 }
0x24a7   : > { %26772 = vmatmul.mubr.f32.gmra.mrb[100].mxu1 %v19834_v34  ;;  %v19854_v48 = vand.u32 4294901760, %v19853_v29 }
0x24a8   : > { %v19844_v51 = vand.u32 4294901760, %v19843_v45 }
0x24aa   : > { %26774 = vmatprep.mubr.f32.mxu1 %v19844_v51 }
0x24ab   : > { %26775 = vmatmul.mubr.f32.gmra.mrb[102].mxu1 %v19854_v48 }
0x24ac   : > { %26785 = vmatprep.mubr.f32.mxu1 %v36283_v14 }
0x24af   : > { %26786 = vmatmul.mubr.f32.vlgmr.msra.gmra.mrb[96].mxu1 %v36277_v16 }
0x24b0   : > { %26788 = vmatprep.mubr.f32.mxu1 %v36307_v25  ;;  %28792 = vmatpush3.bf16.msra.mxu1 %v36258_v52 }
0x24b1   : > { %28794 = vmatprep.subr.bf16.mxu1 %v36260_v1 }
0x24b3   : > { %26789 = vmatmul.mubr.f32.gmra.mrb[98].mxu1 %v36301_v19 }
0x24b4   : > { %26791 = vmatprep.mubr.f32.mxu1 %v36333_v4  ;;  %28796 = vmatpush3.bf16.msra.mxu1 %v36260_v1 }
0x24b5   : > { %28798 = vmatprep.subr.bf16.mxu1 %v36231_v22 }
0x24b7   : > { %26792 = vmatmul.mubr.f32.gmra.mrb[100].mxu1 %v36328_v41 }
0x24b8   : > { %26794 = vmatprep.mubr.f32.mxu1 %v36355_v18 }
0x24bb   : > { %26795 = vmatmul.mubr.f32.gmra.mrb[102].mxu1 %v36351_v13 }
0x24bc   : > { %26805 = vmatprep.mubr.f32.mxu1 %v36294_v2 }
0x24bf   : > { %26806 = vmatmul.mubr.f32.vlgmr.msra.gmra.mrb[96].mxu1 %v36289_v21 }
0x24c0   : > { %26808 = vmatprep.mubr.f32.mxu1 %v36319_v46  ;;  %28800 = vmatpush3.bf16.msra.mxu1 %v36231_v22 }
0x24c1   : > { %28802 = vmatprep.subr.bf16.mxu1 %v36241_v27 }
0x24c3   : > { %26809 = vmatmul.mubr.f32.gmra.mrb[98].mxu1 %v36315_v56 }
0x24c4   : > { %26811 = vmatprep.mubr.f32.mxu1 %v36344_v55  ;;  %28804 = vmatpush3.bf16.msra.mxu1 %v36241_v27 }
0x24c5   : > { %28806 = vmatprep.subr.bf16.mxu1 %v36262_v54 }
0x24c7   : > { %26812 = vmatmul.mubr.f32.gmra.mrb[100].mxu1 %v36337_v26  ;;  %v37025_v26 = vld [vmem:[#allocation13_spill] sm:$0xff] }
0x24c8   : > { %26814 = vmatprep.mubr.f32.mxu1 %v19841_v47 }
0x24cb   : > { %26815 = vmatmul.mubr.f32.gmra.mrb[102].mxu1 %v19851_v50 }
0x24cc   : > { %26825 = vmatprep.mubr.f32.mxu1 %v19782_v11 }
0x24cf   : > { %26826 = vmatmul.mubr.f32.vlgmr.msra.gmra.mrb[96].mxu1 %v19792_v17 }
0x24d0   : > { %26828 = vmatprep.mubr.f32.mxu1 %v19802_v0  ;;  %28808 = vmatpush3.bf16.msra.mxu1 %v36262_v54  ;;  %v21423_v54 = vld [vmem:[%s36607_s7 + $0x30] sm:$0xff] }
0x24d1   : > { %28810 = vmatprep.subr.bf16.mxu1 %v36264_v12 }
0x24d3   : > { %26829 = vmatmul.mubr.f32.gmra.mrb[98].mxu1 %v19812_v42 }
0x24d4   : > { %26831 = vmatprep.mubr.f32.mxu1 %v19822_v63  ;;  %28812 = vmatpush3.bf16.msra.mxu1 %v36264_v12  ;;  %v21424_v12 = vld [vmem:[%s36607_s7 + $0x38] sm:$0xff] }
0x24d5   : > { %28814 = vmatprep.subr.bf16.mxu1 %v36231_v22 }
0x24d7   : > { %26832 = vmatmul.mubr.f32.gmra.mrb[100].mxu1 %v19832_v37 }
0x24d8   : > { %26834 = vmatprep.mubr.f32.mxu1 %v19842_v49 }
0x24db   : > { %26835 = vmatmul.mubr.f32.gmra.mrb[102].mxu1 %v19852_v59 }
0x24dc   : > { %26845 = vmatprep.mubr.f32.mxu1 %v36283_v14 }
0x24df   : > { %26846 = vmatmul.mubr.f32.vlgmr.msra.gmra.mrb[96].mxu1 %v36277_v16 }
0x24e0   : > { %26848 = vmatprep.mubr.f32.mxu1 %v36307_v25  ;;  %28816 = vmatpush3.bf16.msra.mxu1 %v36231_v22  ;;  %v21421_v22 = vld [vmem:[%s36607_s7 + $0x20] sm:$0xff] }
0x24e1   : > { %28818 = vmatprep.subr.bf16.mxu1 %v36241_v27  ;;  %v20535_v44 = vand.u32 4294901760, %v21421_v22 }
0x24e3   : > { %26849 = vmatmul.mubr.f32.gmra.mrb[98].mxu1 %v36301_v19  ;;  %v20685_v2 = vsub.f32 %v21421_v22, %v20535_v44  ;;  %v37029_v22 = vld [vmem:[#allocation30_spill] sm:$0xff] }
0x24e4   : > { %26851 = vmatprep.mubr.f32.mxu1 %v36333_v4  ;;  %28820 = vmatpush3.bf16.msra.mxu1 %v36241_v27  ;;  %v21422_v27 = vld [vmem:[%s36607_s7 + $0x28] sm:$0xff] }
0x24e5   : > { %v20538_v52 = vand.u32 4294901760, %v21422_v27 }
0x24e7   : > { %26852 = vmatmul.mubr.f32.gmra.mrb[100].mxu1 %v36328_v41  ;;  %v36425_v1 = vpack.c.bf16 %v20538_v52, %v20535_v44  ;;  %v20692_v17 = vsub.f32 %v21422_v27, %v20538_v52 }
0x24e8   : > { %26854 = vmatprep.mubr.f32.mxu1 %v36355_v18 }
0x24e9   : > { %28822 = vmatprep.subr.bf16.mxu0 %v36425_v1  ;;  %v20693_v62 = vand.u32 4294901760, %v20692_v17 }
0x24ea   : > { %28824 = vmatpush3.bf16.msra.mxu0 %v36425_v1 }
0x24eb   : > { %26855 = vmatmul.mubr.f32.gmra.mrb[102].mxu1 %v36351_v13  ;;  %v20694_v36 = vsub.f32 %v20692_v17, %v20693_v62 }
0x24ec   : > { %26865 = vmatprep.mubr.f32.mxu1 %v36283_v14  ;;  %v20544_v14 = vand.u32 4294901760, %v21424_v12 }
0x24ed   : > { %v20695_v56 = vand.u32 4294901760, %v20694_v36 }
0x24ee   : > { %v20706_v43 = vsub.f32 %v21424_v12, %v20544_v14  ;;  %v37030_v12 = vld [vmem:[#allocation14_spill] sm:$0xff] }
0x24ef   : > { %26866 = vmatmul.mubr.f32.vlgmr.msra.gmra.mrb[96].mxu1 %v36277_v16  ;;  %v20541_v16 = vand.u32 4294901760, %v21423_v54 }
0x24f0   : > { %26868 = vmatprep.mubr.f32.mxu1 %v36307_v25  ;;  %v20707_v57 = vand.u32 4294901760, %v20706_v43 }
0x24f1   : > { %v36435_v21 = vpack.c.bf16 %v20544_v14, %v20541_v16  ;;  %v20699_v11 = vsub.f32 %v21423_v54, %v20541_v16 }
0x24f2   : > { %v20708_v53 = vsub.f32 %v20706_v43, %v20707_v57 }
0x24f3   : > { %26869 = vmatmul.mubr.f32.gmra.mrb[98].mxu1 %v36301_v19  ;;  %28826 = vmatprep.subr.bf16.mxu0 %v36435_v21  ;;  %v20686_v19 = vand.u32 4294901760, %v20685_v2  ;;  %v20700_v7 = vand.u32 4294901760, %v20699_v11  ;;  %v36446_v39 = vpack.c.bf16 %v20706_v43, %v20699_v11 }
0x24f4   : > { %26871 = vmatprep.mubr.f32.mxu1 %v36333_v4  ;;  %28828 = vmatpush3.bf16.msra.mxu0 %v36435_v21  ;;  %v20709_v6 = vand.u32 4294901760, %v20708_v53  ;;  %v21420_v4 = vld [vmem:[%s36606_s6 + $0x1] ss:$0 sm:$0xff] }
0x24f5   : > { %v20687_v25 = vsub.f32 %v20685_v2, %v20686_v19  ;;  %v20701_v35 = vsub.f32 %v20699_v11, %v20700_v7  ;;  %v36448_v42 = vpack.c.bf16 %v20693_v62, %v20686_v19  ;;  %v36450_v24 = vpack.c.bf16 %v20707_v57, %v20700_v7 }
0x24f7   : > { %26872 = vmatmul.mubr.f32.gmra.mrb[100].mxu1 %v36328_v41  ;;  %v20688_v31 = vand.u32 4294901760, %v20687_v25  ;;  %v20702_v61 = vand.u32 4294901760, %v20701_v35  ;;  %v36444_v41 = vpack.c.bf16 %v20692_v17, %v20685_v2 }
0x24f8   : > { %26874 = vmatprep.mubr.f32.mxu1 %v36355_v18 }
0x24f9   : > { %v36439_v46 = vpack.c.bf16 %v20695_v56, %v20688_v31  ;;  %v36442_v15 = vpack.c.bf16 %v20709_v6, %v20702_v61  ;;  %v37031_v56 = vld [vmem:[#allocation23_spill] sm:$0xff]  ;;  %v37032_v6 = vld [vmem:[#allocation25_spill] sm:$0xff] }
0x24fb   : > { %26875 = vmatmul.mubr.f32.gmra.mrb[102].mxu1 %v36351_v13  ;;  %28830 = vmatprep.subr.bf16.mxu0 %v36439_v46 }
0x25c2   : > { %v26867_v40 = vpop.f32.mrb[96].mxu1 }
0x25c3   : > { %v28917_v33 = vadd.f32 %v26867_v40, %v21420_v4  ;;  %v20451_v0 = vpop.f32.mrb[97].mxu1 }
0x25c4   : > { %v28918_v30 = vadd.f32 %v21420_v4, %v20451_v0 }
0x25c5   : > { %v20498_v10 = vadd.f32 %v28917_v33, %v37025_v26 }
0x25c6   : > { %v20497_v23 = vadd.f32 %v28918_v30, %v37026_v3  ;;  %v26870_v55 = vpop.f32.mrb[98].mxu1 }
0x25c7   : > { %v20514_v38 = vsel %vm340_vm0, %v20498_v10, 0  ;;  %v28919_v5 = vadd.f32 %v26870_v55, %v21420_v4  ;;  %v20463_v20 = vpop.f32.mrb[99].mxu1 }
0x25c8   : > { %v36458_v13 = vand.u32 4294901760, %v20514_v38  ;;  %v20511_v28 = vsel %vm340_vm0, %v20497_v23, 0  ;;  %v28920_v37 = vadd.f32 %v21420_v4, %v20463_v20 }
0x25c9   : > { %v36461_v18 = vand.u32 4294901760, %v20511_v28  ;;  %v20500_v63 = vadd.f32 %v28919_v5, %v37027_v32 }
0x25ca   : > { %v36465_v50 = vsub.f32 %v20514_v38, %v36458_v13  ;;  %v20499_v60 = vadd.f32 %v28920_v37, %v37028_v8  ;;  %v26873_v47 = vpop.f32.mrb[100].mxu1 }
0x25cb   : > { %v36469_v9 = vsub.f32 %v20511_v28, %v36461_v18  ;;  %v20520_v59 = vsel %vm340_vm0, %v20500_v63, 0  ;;  %v28921_v58 = vadd.f32 %v26873_v47, %v21420_v4  ;;  %v20475_v49 = vpop.f32.mrb[101].mxu1 }
0x25cc   : > { %v20615_v34 = vand.u32 4294901760, %v36465_v50  ;;  %v36473_v29 = vand.u32 4294901760, %v20520_v59  ;;  %v20517_v45 = vsel %vm340_vm0, %v20499_v60, 0  ;;  %v28922_v51 = vadd.f32 %v21420_v4, %v20475_v49 }
0x25cd   : > { %v36476_v48 = vand.u32 4294901760, %v20517_v45  ;;  %v20502_v27 = vadd.f32 %v28921_v58, %v37029_v22  ;;  %v20605_v44 = vand.u32 4294901760, %v36469_v9 }
0x25ce   : > { %v20616_v52 = vsub.f32 %v36465_v50, %v20615_v34  ;;  %v36484_v54 = vsub.f32 %v20520_v59, %v36473_v29  ;;  %v20501_v16 = vadd.f32 %v28922_v51, %v37030_v12  ;;  %v26876_v14 = vpop.f32.mrb[102].mxu1 }
0x25cf   : > { %v36488_v2 = vsub.f32 %v20517_v45, %v36476_v48  ;;  %v20526_v17 = vsel %vm340_vm0, %v20502_v27, 0  ;;  %v28923_v19 = vadd.f32 %v26876_v14, %v21420_v4  ;;  %v20487_v62 = vpop.f32.mrb[103].mxu1  ;;  %v20606_v25 = vsub.f32 %v36469_v9, %v20605_v44 }
0x25d0   : > { %v36494_v36 = vand.u32 4294901760, %v20526_v17  ;;  %v20523_v11 = vsel %vm340_vm0, %v20501_v16, 0  ;;  %v28924_v43 = vadd.f32 %v21420_v4, %v20487_v62  ;;  %v20617_v53 = vand.u32 4294901760, %v20616_v52 }
0x25d1   : > { %v36497_v31 = vand.u32 4294901760, %v20523_v11  ;;  %v20504_v7 = vadd.f32 %v28923_v19, %v37031_v56  ;;  %v20607_v57 = vand.u32 4294901760, %v20606_v25  ;;  %v20625_v35 = vand.u32 4294901760, %v36488_v2 }
0x25d2   : > { %v36502_v61 = vsub.f32 %v20526_v17, %v36494_v36  ;;  %v20503_v40 = vadd.f32 %v28924_v43, %v37032_v6  ;;  %v20635_v33 = vand.u32 4294901760, %v36484_v54 }
0x25d3   : > { %v36507_v0 = vsub.f32 %v20523_v11, %v36497_v31  ;;  %v20532_v4 = vsel %vm340_vm0, %v20504_v7, 0  ;;  %26885 = vmatprep.mubr.f32.mxu0 %v20607_v57  ;;  %v20626_v30 = vsub.f32 %v36488_v2, %v20625_v35 }
0x25d4   : > { %v36513_v26 = vand.u32 4294901760, %v20532_v4  ;;  %v20529_v10 = vsel %vm340_vm0, %v20503_v40, 0  ;;  %26886 = vmatmul.mubr.f32.vlgmr.msra.gmra.mrb[88].mxu0 %v20617_v53  ;;  %v20636_v3 = vsub.f32 %v36484_v54, %v20635_v33  ;;  %v20655_v23 = vand.u32 4294901760, %v36502_v61 }
0x25d5   : > { %v36520_v55 = vand.u32 4294901760, %v20529_v10  ;;  %28832 = vmatpush3.bf16.msra.mxu0 %v36439_v46  ;;  %v20627_v38 = vand.u32 4294901760, %v20626_v30  ;;  %v20645_v5 = vand.u32 4294901760, %v36507_v0 }
0x25d6   : > { %v20674_v20 = vsub.f32 %v20532_v4, %v36513_v26  ;;  %v20637_v28 = vand.u32 4294901760, %v20636_v3  ;;  %v20656_v37 = vsub.f32 %v36502_v61, %v20655_v23  ;;  %28834 = vmatprep.subr.bf16.mxu0 %v36442_v15 }
0x25d7   : > { %v20664_v32 = vsub.f32 %v20529_v10, %v36520_v55  ;;  %26888 = vmatprep.mubr.f32.mxu0 %v20627_v38  ;;  %v20646_v63 = vsub.f32 %v36507_v0, %v20645_v5 }
0x25d8   : > { %26889 = vmatmul.mubr.f32.gmra.mrb[90].mxu0 %v20637_v28  ;;  %v20675_v8 = vand.u32 4294901760, %v20674_v20  ;;  %v20657_v47 = vand.u32 4294901760, %v20656_v37 }
0x25d9   : > { %v20647_v60 = vand.u32 4294901760, %v20646_v63  ;;  %28836 = vmatpush3.bf16.msra.mxu0 %v36442_v15  ;;  %v20665_v46 = vand.u32 4294901760, %v20664_v32 }
0x25da   : > { %v20676_v59 = vsub.f32 %v20674_v20, %v20675_v8  ;;  %28838 = vmatprep.subr.bf16.mxu0 %v36444_v41 }
0x25db   : > { %26891 = vmatprep.mubr.f32.mxu0 %v20647_v60  ;;  %v20666_v58 = vsub.f32 %v20664_v32, %v20665_v46 }
0x25dc   : > { %26892 = vmatmul.mubr.f32.gmra.mrb[92].mxu0 %v20657_v47  ;;  %v20677_v45 = vand.u32 4294901760, %v20676_v59 }
0x25dd   : > { %v20667_v49 = vand.u32 4294901760, %v20666_v58 }
0x25df   : > { %26894 = vmatprep.mubr.f32.mxu0 %v20667_v49 }
0x25e0   : > { %26895 = vmatmul.mubr.f32.gmra.mrb[94].mxu0 %v20677_v45 }
0x25e1   : > { %26905 = vmatprep.mubr.f32.mxu0 %v36461_v18 }
0x25e4   : > { %26906 = vmatmul.mubr.f32.vlgmr.msra.gmra.mrb[88].mxu0 %v36458_v13 }
0x25e5   : > { %26908 = vmatprep.mubr.f32.mxu0 %v36476_v48  ;;  %28840 = vmatpush3.bf16.msra.mxu0 %v36444_v41 }
0x25e6   : > { %28842 = vmatprep.subr.bf16.mxu0 %v36446_v39 }
0x25e8   : > { %26909 = vmatmul.mubr.f32.gmra.mrb[90].mxu0 %v36473_v29 }
0x25e9   : > { %26911 = vmatprep.mubr.f32.mxu0 %v36497_v31  ;;  %28844 = vmatpush3.bf16.msra.mxu0 %v36446_v39 }
0x25ea   : > { %28846 = vmatprep.subr.bf16.mxu0 %v36425_v1 }
0x25ec   : > { %26912 = vmatmul.mubr.f32.gmra.mrb[92].mxu0 %v36494_v36 }
0x25ed   : > { %26914 = vmatprep.mubr.f32.mxu0 %v36520_v55 }
0x25f0   : > { %26915 = vmatmul.mubr.f32.gmra.mrb[94].mxu0 %v36513_v26 }
0x25f1   : > { %26925 = vmatprep.mubr.f32.mxu0 %v36469_v9 }
0x25f4   : > { %26926 = vmatmul.mubr.f32.vlgmr.msra.gmra.mrb[88].mxu0 %v36465_v50 }
0x25f5   : > { %26928 = vmatprep.mubr.f32.mxu0 %v36488_v2  ;;  %28848 = vmatpush3.bf16.msra.mxu0 %v36425_v1 }
0x25f6   : > { %28850 = vmatprep.subr.bf16.mxu0 %v36435_v21 }
0x25f8   : > { %26929 = vmatmul.mubr.f32.gmra.mrb[90].mxu0 %v36484_v54 }
0x25f9   : > { %26931 = vmatprep.mubr.f32.mxu0 %v36507_v0  ;;  %28852 = vmatpush3.bf16.msra.mxu0 %v36435_v21 }
0x25fa   : > { %28854 = vmatprep.subr.bf16.mxu0 %v36448_v42 }
0x25fc   : > { %26932 = vmatmul.mubr.f32.gmra.mrb[92].mxu0 %v36502_v61 }
0x25fd   : > { %26934 = vmatprep.mubr.f32.mxu0 %v20664_v32 }
0x2600   : > { %26935 = vmatmul.mubr.f32.gmra.mrb[94].mxu0 %v20674_v20 }
0x2601   : > { %26945 = vmatprep.mubr.f32.mxu0 %v20605_v44 }
0x2604   : > { %26946 = vmatmul.mubr.f32.vlgmr.msra.gmra.mrb[88].mxu0 %v20615_v34 }
0x2605   : > { %26948 = vmatprep.mubr.f32.mxu0 %v20625_v35  ;;  %28856 = vmatpush3.bf16.msra.mxu0 %v36448_v42 }
0x2606   : > { %28858 = vmatprep.subr.bf16.mxu0 %v36450_v24 }
0x2608   : > { %26949 = vmatmul.mubr.f32.gmra.mrb[90].mxu0 %v20635_v33 }
0x2609   : > { %26951 = vmatprep.mubr.f32.mxu0 %v20645_v5  ;;  %28860 = vmatpush3.bf16.msra.mxu0 %v36450_v24 }
0x260a   : > { %28862 = vmatprep.subr.bf16.mxu0 %v36425_v1 }
0x260c   : > { %26952 = vmatmul.mubr.f32.gmra.mrb[92].mxu0 %v20655_v23 }
0x260d   : > { %26954 = vmatprep.mubr.f32.mxu0 %v20665_v46 }
0x2610   : > { %26955 = vmatmul.mubr.f32.gmra.mrb[94].mxu0 %v20675_v8 }
0x2611   : > { %26965 = vmatprep.mubr.f32.mxu0 %v36461_v18 }
0x2614   : > { %26966 = vmatmul.mubr.f32.vlgmr.msra.gmra.mrb[88].mxu0 %v36458_v13 }
0x2615   : > { %26968 = vmatprep.mubr.f32.mxu0 %v36476_v48  ;;  %28864 = vmatpush3.bf16.msra.mxu0 %v36425_v1 }
0x2616   : > { %28866 = vmatprep.subr.bf16.mxu0 %v36435_v21 }
0x2618   : > { %26969 = vmatmul.mubr.f32.gmra.mrb[90].mxu0 %v36473_v29 }
0x2619   : > { %26971 = vmatprep.mubr.f32.mxu0 %v36497_v31  ;;  %28868 = vmatpush3.bf16.msra.mxu0 %v36435_v21 }
0x261c   : > { %26972 = vmatmul.mubr.f32.gmra.mrb[92].mxu0 %v36494_v36 }
0x261d   : > { %26974 = vmatprep.mubr.f32.mxu0 %v36520_v55 }
0x2620   : > { %26975 = vmatmul.mubr.f32.gmra.mrb[94].mxu0 %v36513_v26 }
0x2621   : > { %26985 = vmatprep.mubr.f32.mxu0 %v36461_v18 }
0x2624   : > { %26986 = vmatmul.mubr.f32.vlgmr.msra.gmra.mrb[88].mxu0 %v36458_v13 }
0x2625   : > { %26988 = vmatprep.mubr.f32.mxu0 %v36476_v48 }
0x2628   : > { %26989 = vmatmul.mubr.f32.gmra.mrb[90].mxu0 %v36473_v29 }
0x2629   : > { %26991 = vmatprep.mubr.f32.mxu0 %v36497_v31 }
0x262c   : > { %26992 = vmatmul.mubr.f32.gmra.mrb[92].mxu0 %v36494_v36 }
0x262d   : > { %26994 = vmatprep.mubr.f32.mxu0 %v36520_v55 }
0x2630   : > { %26995 = vmatmul.mubr.f32.gmra.mrb[94].mxu0 %v36513_v26 }
0x26f7   : > { %v26987_v1 = vpop.f32.mrb[88].mxu0 }
0x26f8   : > { %21321 = vst.msk [vmem:[%s320_s22 + $0x8] sm:$0xff] %vm340_vm0, %v26987_v1  ;;  %v21274_v21 = vpop.f32.mrb[89].mxu0 }
0x26f9   : > { %21320 = vst.msk [vmem:[%s320_s22] sm:$0xff] %vm340_vm0, %v21274_v21 }
0x26fb   : > { %v26990_v15 = vpop.f32.mrb[90].mxu0 }
0x26fc   : > { %21323 = vst.msk [vmem:[%s320_s22 + $0x18] sm:$0xff] %vm340_vm0, %v26990_v15  ;;  %v21286_v41 = vpop.f32.mrb[91].mxu0 }
0x26fd   : > { %21322 = vst.msk [vmem:[%s320_s22 + $0x10] sm:$0xff] %vm340_vm0, %v21286_v41 }
0x26ff   : > { %v26993_v39 = vpop.f32.mrb[92].mxu0 }
0x2700   : > { %21325 = vst.msk [vmem:[%s320_s22 + $0x28] sm:$0xff] %vm340_vm0, %v26993_v39  ;;  %v21298_v42 = vpop.f32.mrb[93].mxu0 }
0x2701   : > { %21324 = vst.msk [vmem:[%s320_s22 + $0x20] sm:$0xff] %vm340_vm0, %v21298_v42 }
0x2703   : > { %v26996_v24 = vpop.f32.mrb[94].mxu0 }
0x2704   : > { %21327 = vst.msk [vmem:[%s320_s22 + $0x38] sm:$0xff] %vm340_vm0, %v26996_v24  ;;  %v21310_v13 = vpop.f32.mrb[95].mxu0 }
0x2705   : > { %21326 = vst.msk [vmem:[%s320_s22 + $0x30] sm:$0xff] %vm340_vm0, %v21310_v13 }
0x2706 PF: > { %s19_s27 = sadd.s32 1, %s30158_s27  }
0x2707   : > { %p16_p3 = scmp.ge.s32.totalorder %s19_s27, 4  }
0x2709   :  { %18 = sbr.rel (!%p16_p3) target bundleno = 1 (0x1), region = 92 }
0x2710   :  { %21349 = vsyncpa [#allocation3], 1 }
0x2711   :  { %21351 = vsyncpa [#allocation3 + $0x1], 1 }

</bundles_post_ra>
